<compile_context>
chip_gen: v5e
topology: v5e:2x2
jax: 0.10.0
libtpu: 0.0.40
codegen_flags: <defaults>
</compile_context>

<pallas_src>
import functools

import jax
import jax.numpy as jnp
from jax.experimental import pallas as pl
from jax.experimental.pallas import tpu as pltpu

LEAKY_SLOPE = 0.2
BN_EPS = 1e-5


# ---------------------------------------------------------------------------
# Fused whole-network kernel (one grid step == one tile of batch*time rows)
# ---------------------------------------------------------------------------
def _disc_kernel(z_ref,                      # (TR, 4*C0)     bf16
                 w1_ref, b1_ref,             # (4, 4*C0, 256) bf16, (1, 256) f32
                 w2_ref, b2_ref,             # (4, 256, 512)  bf16, (1, 512) f32
                 w3_ref, b3_ref,             # (3, 512, 1024) bf16, (1, 1024) f32
                 w4a_ref, w4b_ref, w4c_ref,  # (1, 1024) f32 each
                 b4_ref,                     # (1, 1) f32
                 o_ref,                      # (TR, 1) f32
                 *, seq_len, slope):
    rows = z_ref.shape[0]            # TR: rows per step, a multiple of seq_len
    m = seq_len                      # rows per batch element (= T // 4)

    # Sequence-boundary masks so conv taps never leak across batch elements.
    pos = jax.lax.broadcasted_iota(jnp.int32, (rows, 1), 0) % m
    first = pos == 0
    last = pos == (m - 1)

    # Row shift commutes with a per-row matmul, so shifts are applied to the
    # f32 partial products (XLU roll + one masked select; no shifted copies of
    # the bf16 matmul operands, no packed-dtype sublane rolls).
    def down(p):                     # row r -> p[r-1]; zero at sequence starts
        if m == 1:
            return jnp.zeros_like(p)
        return jnp.where(first, 0.0, pltpu.roll(p, shift=1, axis=0))

    def up(p):                       # row r -> p[r+1]; zero at sequence ends
        if m == 1:
            return jnp.zeros_like(p)
        return jnp.where(last, 0.0, pltpu.roll(p, shift=rows - 1, axis=0))

    def leaky(y):
        return jnp.where(y >= 0.0, y, y * slope)

    def mm(a, w):                    # bf16 x bf16 MXU matmul, f32 accumulation
        return jnp.dot(a, w, preferred_element_type=jnp.float32)

    z = z_ref[...]                                        # (TR, 4*C0) bf16

    # ---- layer 1: Conv1d(C0->256, k=4, s=2, p=1) + BN + LeakyReLU ----------
    # Emitted directly as even/odd output rows of length M on the
    # time-pair-folded input (BN scale already folded into the weights).
    h1e = down(mm(z, w1_ref[0])) + mm(z, w1_ref[1])
    h1o = mm(z, w1_ref[2]) + up(mm(z, w1_ref[3]))
    h1e = leaky(h1e + b1_ref[...]).astype(jnp.bfloat16)   # (TR, 256)
    h1o = leaky(h1o + b1_ref[...]).astype(jnp.bfloat16)   # (TR, 256)

    # ---- layer 2: Conv1d(256->512, k=4, s=2, p=1) + BN + LeakyReLU ---------
    h2 = (down(mm(h1o, w2_ref[0])) + mm(h1e, w2_ref[1])
          + mm(h1o, w2_ref[2]) + up(mm(h1e, w2_ref[3])))
    h2 = leaky(h2 + b2_ref[...]).astype(jnp.bfloat16)     # (TR, 512)

    # ---- layer 3: Conv1d(512->1024, k=3, s=1, p=1) + BN + LeakyReLU --------
    h3 = down(mm(h2, w3_ref[0])) + mm(h2, w3_ref[1]) + up(mm(h2, w3_ref[2]))
    h3 = leaky(h3 + b3_ref[...])                          # (TR, 1024) f32 (VPU only)

    # ---- layer 4: Conv1d(1024->1, k=3, s=1, p=1) as VPU mult + lane reduce --
    q0 = jnp.sum(h3 * w4a_ref[...], axis=1, keepdims=True)
    q1 = jnp.sum(h3 * w4b_ref[...], axis=1, keepdims=True)
    q2 = jnp.sum(h3 * w4c_ref[...], axis=1, keepdims=True)
    o_ref[...] = down(q0) + q1 + up(q2) + b4_ref[...]     # (TR, 1)


def _build_pallas_fn(total_rows, tile_rows, k0, seq_len):
    kernel = functools.partial(_disc_kernel, seq_len=seq_len, slope=LEAKY_SLOPE)
    n_steps = total_rows // tile_rows
    return pl.pallas_call(
        kernel,
        out_shape=jax.ShapeDtypeStruct((total_rows, 1), jnp.float32),
        grid=(n_steps,),
        in_specs=[
            pl.BlockSpec((tile_rows, k0), lambda i: (i, 0)),      # z rows
            pl.BlockSpec((4, k0, 256), lambda i: (0, 0, 0)),      # w1 (resident)
            pl.BlockSpec((1, 256), lambda i: (0, 0)),             # b1
            pl.BlockSpec((4, 256, 512), lambda i: (0, 0, 0)),     # w2
            pl.BlockSpec((1, 512), lambda i: (0, 0)),             # b2
            pl.BlockSpec((3, 512, 1024), lambda i: (0, 0, 0)),    # w3
            pl.BlockSpec((1, 1024), lambda i: (0, 0)),            # b3
            pl.BlockSpec((1, 1024), lambda i: (0, 0)),            # w4 tap 0
            pl.BlockSpec((1, 1024), lambda i: (0, 0)),            # w4 tap 1
            pl.BlockSpec((1, 1024), lambda i: (0, 0)),            # w4 tap 2
            pl.BlockSpec((1, 1), lambda i: (0, 0)),               # b4
        ],
        out_specs=pl.BlockSpec((tile_rows, 1), lambda i: (i, 0)),
        compiler_params=pltpu.CompilerParams(
            # Row tiles are independent -> parallel (drives both v7x TCs when
            # there is more than one tile; a no-op on v5e/v6e).
            dimension_semantics=("parallel",),
            # ~5 MiB resident bf16 weights (x2 buffers) + <=~8 MiB f32
            # activations at 256-row tiles: fits the 32 MiB scoped limit on
            # all of v5e/v6e/v7x.
            vmem_limit_bytes=32 << 20,
        ),
    )


def _choose_group(batch, seq_len, target_rows=256):
    """Batch elements per grid step: fill ~target_rows MXU rows per tile."""
    g = max(1, min(batch, target_rows // max(seq_len, 1)))
    while g > 1 and (batch % g or (g * seq_len) % 8):
        g -= 1
    if g < batch and (batch % g or (g * seq_len) % 8):
        g = batch                     # fall back to a single grid step
    return g


# ---------------------------------------------------------------------------
# Forward pass (jitted; only free reshapes + one bf16 cast outside the kernel)
# ---------------------------------------------------------------------------
@jax.jit
def pose_sequence_discriminator_forward(x, params):
    # x: (B, T, NUM_LANDMARKS, 2)  ->  torch does reshape(B,T,-1).transpose(1,2)
    batch, t = x.shape[0], x.shape[1]
    c0 = x.shape[2] * x.shape[3]
    # TODO(synk): T not divisible by 4 would need explicit edge handling.
    assert t % 4 == 0, "sequence length must be divisible by 4"
    m = t // 4
    k0 = 4 * c0
    total_rows = batch * m
    # channels-last + time-pair folding + batch folding: contiguous reshape,
    # cast to bf16 once here (halves the per-step HBM read).
    z = x.reshape(total_rows, k0).astype(jnp.bfloat16)
    g = _choose_group(batch, m)
    fn = _build_pallas_fn(total_rows, g * m, k0, m)
    out = fn(z,
             params["w1"], params["b1"],
             params["w2"], params["b2"],
             params["w3"], params["b3"],
             params["w4_0"], params["w4_1"], params["w4_2"],
             params["b4"])
    return out.reshape(batch, m)                    # squeeze(1) -> (B, T//4)


# ---------------------------------------------------------------------------
# Deterministic parameter construction (+ weight pre-transform / BN folding)
# ---------------------------------------------------------------------------
def _conv_params(key, c_out, c_in, ks):
    k_w, k_b = jax.random.split(key)
    fan_in = c_in * ks
    w = jax.random.normal(k_w, (c_out, c_in, ks), jnp.float32) / jnp.sqrt(fan_in)
    b = 0.01 * jax.random.normal(k_b, (c_out,), jnp.float32)
    return w, b


def _bn_params(key, c):
    k_g, k_be, k_m, k_v = jax.random.split(key, 4)
    gamma = 1.0 + 0.1 * jax.random.normal(k_g, (c,), jnp.float32)
    beta = 0.1 * jax.random.normal(k_be, (c,), jnp.float32)
    mean = 0.1 * jax.random.normal(k_m, (c,), jnp.float32)
    var = 1.0 + 0.1 * jnp.abs(jax.random.normal(k_v, (c,), jnp.float32))
    return gamma, beta, mean, var


def _fold_bn(b_conv, bn):
    gamma, beta, mean, var = bn
    scale = gamma / jnp.sqrt(var + BN_EPS)
    bias = (b_conv - mean) * scale + beta
    return scale, bias


def init_params(key, num_landmarks):
    c0 = num_landmarks * 2
    k1, k2, k3, k4, kb1, kb2, kb3 = jax.random.split(key, 7)

    w1, bc1 = _conv_params(k1, 256, c0, 4)      # Conv1d(C0, 256, 4, 2, 1)
    w2, bc2 = _conv_params(k2, 512, 256, 4)     # Conv1d(256, 512, 4, 2, 1)
    w3, bc3 = _conv_params(k3, 1024, 512, 3)    # Conv1d(512, 1024, 3, 1, 1)
    w4, bc4 = _conv_params(k4, 1, 1024, 3)      # Conv1d(1024, 1, 3, 1, 1)

    bn1 = _bn_params(kb1, 256)
    bn2 = _bn_params(kb2, 512)
    bn3 = _bn_params(kb3, 1024)
    s1, b1 = _fold_bn(bc1, bn1)
    s2, b2 = _fold_bn(bc2, bn2)
    s3, b3 = _fold_bn(bc3, bn3)

    # Layer 1: stride-2 k=4 conv re-expressed on the time-pair-folded
    # (4*C0)-channel input, split into even/odd output rows.
    wk = [w1[:, :, k].T for k in range(4)]                        # each (C0, 256)
    zero = jnp.zeros_like(wk[0])
    a_e0 = jnp.concatenate([zero, zero, zero, wk[0]], axis=0)     # * z[m-1]
    a_e1 = jnp.concatenate([wk[1], wk[2], wk[3], zero], axis=0)   # * z[m]
    a_o0 = jnp.concatenate([zero, wk[0], wk[1], wk[2]], axis=0)   # * z[m]
    a_o1 = jnp.concatenate([wk[3], zero, zero, zero], axis=0)     # * z[m+1]
    # BN scale folded into the output columns of the bf16 weights.
    w1s = jnp.stack([a_e0, a_e1, a_o0, a_o1], axis=0) * s1[None, None, :]
    w2s = jnp.stack([w2[:, :, k].T for k in range(4)], axis=0) * s2[None, None, :]
    w3s = jnp.stack([w3[:, :, k].T for k in range(3)], axis=0) * s3[None, None, :]

    params = {
        "w1": w1s.astype(jnp.bfloat16), "b1": b1.reshape(1, -1),
        "w2": w2s.astype(jnp.bfloat16), "b2": b2.reshape(1, -1),
        "w3": w3s.astype(jnp.bfloat16), "b3": b3.reshape(1, -1),
        "w4_0": w4[0, :, 0].reshape(1, -1).astype(jnp.float32),
        "w4_1": w4[0, :, 1].reshape(1, -1).astype(jnp.float32),
        "w4_2": w4[0, :, 2].reshape(1, -1).astype(jnp.float32),
        "b4": bc4.reshape(1, 1).astype(jnp.float32),
    }
    raw = {"w1": w1, "bc1": bc1, "bn1": bn1,
           "w2": w2, "bc2": bc2, "bn2": bn2,
           "w3": w3, "bc3": bc3, "bn3": bn3,
           "w4": w4, "bc4": bc4}
    return params, raw


# ---------------------------------------------------------------------------
# Pure-JAX f32 reference (eval-mode BN), matching the PyTorch module
# ---------------------------------------------------------------------------
def _reference_forward(x, raw):
    b, t = x.shape[0], x.shape[1]
    c0 = x.shape[2] * x.shape[3]
    h = x.reshape(b, t, c0).transpose(0, 2, 1)            # (B, C0, T)

    def conv1d(h, w, bias, stride, pad):
        hp = jnp.pad(h, ((0, 0), (0, 0), (pad, pad)))
        k = w.shape[2]
        l_out = (h.shape[2] + 2 * pad - k) // stride + 1
        idx = jnp.arange(l_out) * stride
        out = sum(jnp.einsum("oc,bcl->bol", w[:, :, j], hp[:, :, idx + j])
                  for j in range(k))
        return out + bias[None, :, None]

    def bn(h, stats):
        gamma, beta, mean, var = stats
        inv = gamma / jnp.sqrt(var + BN_EPS)
        return (h - mean[None, :, None]) * inv[None, :, None] + beta[None, :, None]

    def lrelu(h):
        return jnp.where(h >= 0, h, LEAKY_SLOPE * h)

    h = lrelu(bn(conv1d(h, raw["w1"], raw["bc1"], 2, 1), raw["bn1"]))
    h = lrelu(bn(conv1d(h, raw["w2"], raw["bc2"], 2, 1), raw["bn2"]))
    h = lrelu(bn(conv1d(h, raw["w3"], raw["bc3"], 1, 1), raw["bn3"]))
    h = conv1d(h, raw["w4"], raw["bc4"], 1, 1)
    return h[:, 0, :]                                     # (B, T//4)


if __name__ == "__main__":
    key = jax.random.PRNGKey(0)
    k_x, k_p = jax.random.split(key)

    B, T, NUM_LANDMARKS = 2, 16, 4
    x = jax.random.normal(k_x, (B, T, NUM_LANDMARKS, 2), jnp.float32)
    params, raw = init_params(k_p, NUM_LANDMARKS)

    out = pose_sequence_discriminator_forward(x, params)
    out = jax.block_until_ready(out)

    # T=16 -> two stride-2 downsamples -> final length 4; output (B, 4)
    assert out.shape == (B, T // 4), out.shape
    assert bool(jnp.all(jnp.isfinite(out)))

    # Tolerance check vs. f32 reference (kernel uses bf16 weights/activations).
    ref = _reference_forward(x, raw)
    max_err = float(jnp.max(jnp.abs(out - ref)))
    assert bool(jnp.allclose(out, ref, atol=1e-1, rtol=5e-2)), \
        f"mismatch vs reference, max abs err = {max_err}"
    print("KERNEL_OK")
</pallas_src>

<mosaic_0001>
module attributes {stable_mosaic.version = 11 : i64} {
  func.func @_disc_kernel(%arg0: i32, %arg1: memref<8x32xbf16, #tpu.memory_space<vmem>>, %arg2: memref<4x32x256xbf16, #tpu.memory_space<vmem>>, %arg3: memref<1x256xf32, #tpu.memory_space<vmem>>, %arg4: memref<4x256x512xbf16, #tpu.memory_space<vmem>>, %arg5: memref<1x512xf32, #tpu.memory_space<vmem>>, %arg6: memref<3x512x1024xbf16, #tpu.memory_space<vmem>>, %arg7: memref<1x1024xf32, #tpu.memory_space<vmem>>, %arg8: memref<1x1024xf32, #tpu.memory_space<vmem>>, %arg9: memref<1x1024xf32, #tpu.memory_space<vmem>>, %arg10: memref<1x1024xf32, #tpu.memory_space<vmem>>, %arg11: memref<1x1xf32, #tpu.memory_space<vmem>>, %arg12: memref<8x1xf32, #tpu.memory_space<vmem>>) attributes {dimension_semantics = [#tpu.dimension_semantics<parallel>], iteration_bounds = array<i64: 1>, scalar_prefetch = 0 : i64, scratch_operands = 0 : i64, tpu.core_type = #tpu.core_type<tc>, window_params = [{transform_indices = @transform_0, window_bounds = array<i64: 8, 32>}, {pipeline_mode = #tpu.pipeline_mode<synchronous>, transform_indices = @transform_1, window_bounds = array<i64: 4, 32, 256>}, {pipeline_mode = #tpu.pipeline_mode<synchronous>, transform_indices = @transform_2, window_bounds = array<i64: 1, 256>}, {pipeline_mode = #tpu.pipeline_mode<synchronous>, transform_indices = @transform_3, window_bounds = array<i64: 4, 256, 512>}, {pipeline_mode = #tpu.pipeline_mode<synchronous>, transform_indices = @transform_4, window_bounds = array<i64: 1, 512>}, {pipeline_mode = #tpu.pipeline_mode<synchronous>, transform_indices = @transform_5, window_bounds = array<i64: 3, 512, 1024>}, {pipeline_mode = #tpu.pipeline_mode<synchronous>, transform_indices = @transform_6, window_bounds = array<i64: 1, 1024>}, {pipeline_mode = #tpu.pipeline_mode<synchronous>, transform_indices = @transform_7, window_bounds = array<i64: 1, 1024>}, {pipeline_mode = #tpu.pipeline_mode<synchronous>, transform_indices = @transform_8, window_bounds = array<i64: 1, 1024>}, {pipeline_mode = #tpu.pipeline_mode<synchronous>, transform_indices = @transform_9, window_bounds = array<i64: 1, 1024>}, {pipeline_mode = #tpu.pipeline_mode<synchronous>, transform_indices = @transform_10, window_bounds = array<i64: 1, 1>}, {transform_indices = @transform_11, window_bounds = array<i64: 8, 1>}]} {
    %0 = tpu.iota {dimensions = array<i32: 0>} : vector<8x1xi32>
    %c4_i32 = arith.constant 4 : i32
    %c0_i32 = arith.constant 0 : i32
    %1 = arith.cmpi eq, %c4_i32, %c0_i32 : i32
    %c1_i32 = arith.constant 1 : i32
    %2 = arith.select %1, %c1_i32, %c4_i32 : i32
    %3 = vector.broadcast %2 : i32 to vector<8x1xi32>
    %4 = arith.remsi %0, %3 : vector<8x1xi32>
    %c0_i32_0 = arith.constant 0 : i32
    %5 = vector.broadcast %c0_i32_0 : i32 to vector<8x1xi32>
    %6 = arith.cmpi ne, %4, %5 : vector<8x1xi32>
    %c0_i32_1 = arith.constant 0 : i32
    %7 = vector.broadcast %c0_i32_1 : i32 to vector<8x1xi32>
    %8 = arith.cmpi slt, %4, %7 : vector<8x1xi32>
    %c0_i32_2 = arith.constant 0 : i32
    %9 = arith.cmpi slt, %2, %c0_i32_2 : i32
    %10 = vector.broadcast %9 : i1 to vector<8x1xi1>
    %11 = vector.broadcast %10 : vector<8x1xi1> to vector<8x1xi1>
    %12 = arith.xori %8, %11 : vector<8x1xi1>
    %13 = arith.andi %12, %6 : vector<8x1xi1>
    %14 = vector.broadcast %2 : i32 to vector<8x1xi32>
    %15 = arith.addi %4, %14 : vector<8x1xi32>
    %16 = arith.select %13, %15, %4 : vector<8x1xi1>, vector<8x1xi32>
    %c0_i32_3 = arith.constant 0 : i32
    %17 = vector.broadcast %c0_i32_3 : i32 to vector<8x1xi32>
    %18 = arith.cmpi eq, %16, %17 : vector<8x1xi32>
    %c3_i32 = arith.constant 3 : i32
    %19 = vector.broadcast %c3_i32 : i32 to vector<8x1xi32>
    %20 = arith.cmpi eq, %16, %19 : vector<8x1xi32>
    %c0 = arith.constant 0 : index
    %c0_4 = arith.constant 0 : index
    %21 = vector.load %arg1[%c0, %c0_4] : memref<8x32xbf16, #tpu.memory_space<vmem>>, vector<8x32xbf16>
    %c0_5 = arith.constant 0 : index
    %c0_6 = arith.constant 0 : index
    %c0_7 = arith.constant 0 : index
    %22 = vector.load %arg2[%c0_5, %c0_6, %c0_7] : memref<4x32x256xbf16, #tpu.memory_space<vmem>>, vector<1x32x256xbf16>
    %23 = vector.shape_cast %22 : vector<1x32x256xbf16> to vector<32x256xbf16>
    %cst = arith.constant dense<0.000000e+00> : vector<8x256xf32>
    %24 = tpu.matmul %21, %23, %cst {dimension_numbers = #tpu.dot_dimension_numbers<[1], [0], [0], [1], [0, 0, 1, 1], [], []>} : vector<8x32xbf16>, vector<32x256xbf16>, vector<8x256xf32> -> vector<8x256xf32>
    %c1_i32_8 = arith.constant 1 : i32
    %25 = tpu.dynamic_rotate %24 by %c1_i32_8 dim 0 : vector<8x256xf32>, i32 -> vector<8x256xf32>
    %cst_9 = arith.constant 0.000000e+00 : f32
    %26 = vector.shape_cast %18 : vector<8x1xi1> to vector<8x1xi1>
    %27 = vector.broadcast %26 : vector<8x1xi1> to vector<8x256xi1>
    %28 = vector.broadcast %cst_9 : f32 to vector<8x256xf32>
    %29 = arith.select %27, %28, %25 : vector<8x256xi1>, vector<8x256xf32>
    %c1 = arith.constant 1 : index
    %c0_10 = arith.constant 0 : index
    %c0_11 = arith.constant 0 : index
    %30 = vector.load %arg2[%c1, %c0_10, %c0_11] : memref<4x32x256xbf16, #tpu.memory_space<vmem>>, vector<1x32x256xbf16>
    %31 = vector.shape_cast %30 : vector<1x32x256xbf16> to vector<32x256xbf16>
    %cst_12 = arith.constant dense<0.000000e+00> : vector<8x256xf32>
    %32 = tpu.matmul %21, %31, %cst_12 {dimension_numbers = #tpu.dot_dimension_numbers<[1], [0], [0], [1], [0, 0, 1, 1], [], []>} : vector<8x32xbf16>, vector<32x256xbf16>, vector<8x256xf32> -> vector<8x256xf32>
    %33 = arith.addf %29, %32 : vector<8x256xf32>
    %c2 = arith.constant 2 : index
    %c0_13 = arith.constant 0 : index
    %c0_14 = arith.constant 0 : index
    %34 = vector.load %arg2[%c2, %c0_13, %c0_14] : memref<4x32x256xbf16, #tpu.memory_space<vmem>>, vector<1x32x256xbf16>
    %35 = vector.shape_cast %34 : vector<1x32x256xbf16> to vector<32x256xbf16>
    %cst_15 = arith.constant dense<0.000000e+00> : vector<8x256xf32>
    %36 = tpu.matmul %21, %35, %cst_15 {dimension_numbers = #tpu.dot_dimension_numbers<[1], [0], [0], [1], [0, 0, 1, 1], [], []>} : vector<8x32xbf16>, vector<32x256xbf16>, vector<8x256xf32> -> vector<8x256xf32>
    %c3 = arith.constant 3 : index
    %c0_16 = arith.constant 0 : index
    %c0_17 = arith.constant 0 : index
    %37 = vector.load %arg2[%c3, %c0_16, %c0_17] : memref<4x32x256xbf16, #tpu.memory_space<vmem>>, vector<1x32x256xbf16>
    %38 = vector.shape_cast %37 : vector<1x32x256xbf16> to vector<32x256xbf16>
    %cst_18 = arith.constant dense<0.000000e+00> : vector<8x256xf32>
    %39 = tpu.matmul %21, %38, %cst_18 {dimension_numbers = #tpu.dot_dimension_numbers<[1], [0], [0], [1], [0, 0, 1, 1], [], []>} : vector<8x32xbf16>, vector<32x256xbf16>, vector<8x256xf32> -> vector<8x256xf32>
    %c7_i32 = arith.constant 7 : i32
    %40 = tpu.dynamic_rotate %39 by %c7_i32 dim 0 : vector<8x256xf32>, i32 -> vector<8x256xf32>
    %cst_19 = arith.constant 0.000000e+00 : f32
    %41 = vector.shape_cast %20 : vector<8x1xi1> to vector<8x1xi1>
    %42 = vector.broadcast %41 : vector<8x1xi1> to vector<8x256xi1>
    %43 = vector.broadcast %cst_19 : f32 to vector<8x256xf32>
    %44 = arith.select %42, %43, %40 : vector<8x256xi1>, vector<8x256xf32>
    %45 = arith.addf %36, %44 : vector<8x256xf32>
    %c0_20 = arith.constant 0 : index
    %c0_21 = arith.constant 0 : index
    %46 = vector.load %arg3[%c0_20, %c0_21] : memref<1x256xf32, #tpu.memory_space<vmem>>, vector<1x256xf32>
    %47 = vector.broadcast %46 : vector<1x256xf32> to vector<8x256xf32>
    %48 = arith.addf %33, %47 : vector<8x256xf32>
    %cst_22 = arith.constant 0.000000e+00 : f32
    %49 = vector.broadcast %cst_22 : f32 to vector<8x256xf32>
    %50 = arith.cmpf oge, %48, %49 : vector<8x256xf32>
    %cst_23 = arith.constant 2.000000e-01 : f32
    %51 = vector.broadcast %cst_23 : f32 to vector<8x256xf32>
    %52 = arith.mulf %48, %51 : vector<8x256xf32>
    %53 = arith.select %50, %48, %52 : vector<8x256xi1>, vector<8x256xf32>
    %54 = arith.truncf %53 : vector<8x256xf32> to vector<8x256xbf16>
    %c0_24 = arith.constant 0 : index
    %c0_25 = arith.constant 0 : index
    %55 = vector.load %arg3[%c0_24, %c0_25] : memref<1x256xf32, #tpu.memory_space<vmem>>, vector<1x256xf32>
    %56 = vector.broadcast %55 : vector<1x256xf32> to vector<8x256xf32>
    %57 = arith.addf %45, %56 : vector<8x256xf32>
    %cst_26 = arith.constant 0.000000e+00 : f32
    %58 = vector.broadcast %cst_26 : f32 to vector<8x256xf32>
    %59 = arith.cmpf oge, %57, %58 : vector<8x256xf32>
    %cst_27 = arith.constant 2.000000e-01 : f32
    %60 = vector.broadcast %cst_27 : f32 to vector<8x256xf32>
    %61 = arith.mulf %57, %60 : vector<8x256xf32>
    %62 = arith.select %59, %57, %61 : vector<8x256xi1>, vector<8x256xf32>
    %63 = arith.truncf %62 : vector<8x256xf32> to vector<8x256xbf16>
    %c0_28 = arith.constant 0 : index
    %c0_29 = arith.constant 0 : index
    %c0_30 = arith.constant 0 : index
    %64 = vector.load %arg4[%c0_28, %c0_29, %c0_30] : memref<4x256x512xbf16, #tpu.memory_space<vmem>>, vector<1x256x512xbf16>
    %65 = vector.shape_cast %64 : vector<1x256x512xbf16> to vector<256x512xbf16>
    %cst_31 = arith.constant dense<0.000000e+00> : vector<8x512xf32>
    %66 = tpu.matmul %63, %65, %cst_31 {dimension_numbers = #tpu.dot_dimension_numbers<[1], [0], [0], [1], [0, 0, 1, 1], [], []>} : vector<8x256xbf16>, vector<256x512xbf16>, vector<8x512xf32> -> vector<8x512xf32>
    %c1_i32_32 = arith.constant 1 : i32
    %67 = tpu.dynamic_rotate %66 by %c1_i32_32 dim 0 : vector<8x512xf32>, i32 -> vector<8x512xf32>
    %cst_33 = arith.constant 0.000000e+00 : f32
    %68 = vector.shape_cast %18 : vector<8x1xi1> to vector<8x1xi1>
    %69 = vector.broadcast %68 : vector<8x1xi1> to vector<8x512xi1>
    %70 = vector.broadcast %cst_33 : f32 to vector<8x512xf32>
    %71 = arith.select %69, %70, %67 : vector<8x512xi1>, vector<8x512xf32>
    %c1_34 = arith.constant 1 : index
    %c0_35 = arith.constant 0 : index
    %c0_36 = arith.constant 0 : index
    %72 = vector.load %arg4[%c1_34, %c0_35, %c0_36] : memref<4x256x512xbf16, #tpu.memory_space<vmem>>, vector<1x256x512xbf16>
    %73 = vector.shape_cast %72 : vector<1x256x512xbf16> to vector<256x512xbf16>
    %cst_37 = arith.constant dense<0.000000e+00> : vector<8x512xf32>
    %74 = tpu.matmul %54, %73, %cst_37 {dimension_numbers = #tpu.dot_dimension_numbers<[1], [0], [0], [1], [0, 0, 1, 1], [], []>} : vector<8x256xbf16>, vector<256x512xbf16>, vector<8x512xf32> -> vector<8x512xf32>
    %75 = arith.addf %71, %74 : vector<8x512xf32>
    %c2_38 = arith.constant 2 : index
    %c0_39 = arith.constant 0 : index
    %c0_40 = arith.constant 0 : index
    %76 = vector.load %arg4[%c2_38, %c0_39, %c0_40] : memref<4x256x512xbf16, #tpu.memory_space<vmem>>, vector<1x256x512xbf16>
    %77 = vector.shape_cast %76 : vector<1x256x512xbf16> to vector<256x512xbf16>
    %cst_41 = arith.constant dense<0.000000e+00> : vector<8x512xf32>
    %78 = tpu.matmul %63, %77, %cst_41 {dimension_numbers = #tpu.dot_dimension_numbers<[1], [0], [0], [1], [0, 0, 1, 1], [], []>} : vector<8x256xbf16>, vector<256x512xbf16>, vector<8x512xf32> -> vector<8x512xf32>
    %79 = arith.addf %75, %78 : vector<8x512xf32>
    %c3_42 = arith.constant 3 : index
    %c0_43 = arith.constant 0 : index
    %c0_44 = arith.constant 0 : index
    %80 = vector.load %arg4[%c3_42, %c0_43, %c0_44] : memref<4x256x512xbf16, #tpu.memory_space<vmem>>, vector<1x256x512xbf16>
    %81 = vector.shape_cast %80 : vector<1x256x512xbf16> to vector<256x512xbf16>
    %cst_45 = arith.constant dense<0.000000e+00> : vector<8x512xf32>
    %82 = tpu.matmul %54, %81, %cst_45 {dimension_numbers = #tpu.dot_dimension_numbers<[1], [0], [0], [1], [0, 0, 1, 1], [], []>} : vector<8x256xbf16>, vector<256x512xbf16>, vector<8x512xf32> -> vector<8x512xf32>
    %c7_i32_46 = arith.constant 7 : i32
    %83 = tpu.dynamic_rotate %82 by %c7_i32_46 dim 0 : vector<8x512xf32>, i32 -> vector<8x512xf32>
    %cst_47 = arith.constant 0.000000e+00 : f32
    %84 = vector.shape_cast %20 : vector<8x1xi1> to vector<8x1xi1>
    %85 = vector.broadcast %84 : vector<8x1xi1> to vector<8x512xi1>
    %86 = vector.broadcast %cst_47 : f32 to vector<8x512xf32>
    %87 = arith.select %85, %86, %83 : vector<8x512xi1>, vector<8x512xf32>
    %88 = arith.addf %79, %87 : vector<8x512xf32>
    %c0_48 = arith.constant 0 : index
    %c0_49 = arith.constant 0 : index
    %89 = vector.load %arg5[%c0_48, %c0_49] : memref<1x512xf32, #tpu.memory_space<vmem>>, vector<1x512xf32>
    %90 = vector.broadcast %89 : vector<1x512xf32> to vector<8x512xf32>
    %91 = arith.addf %88, %90 : vector<8x512xf32>
    %cst_50 = arith.constant 0.000000e+00 : f32
    %92 = vector.broadcast %cst_50 : f32 to vector<8x512xf32>
    %93 = arith.cmpf oge, %91, %92 : vector<8x512xf32>
    %cst_51 = arith.constant 2.000000e-01 : f32
    %94 = vector.broadcast %cst_51 : f32 to vector<8x512xf32>
    %95 = arith.mulf %91, %94 : vector<8x512xf32>
    %96 = arith.select %93, %91, %95 : vector<8x512xi1>, vector<8x512xf32>
    %97 = arith.truncf %96 : vector<8x512xf32> to vector<8x512xbf16>
    %c0_52 = arith.constant 0 : index
    %c0_53 = arith.constant 0 : index
    %c0_54 = arith.constant 0 : index
    %98 = vector.load %arg6[%c0_52, %c0_53, %c0_54] : memref<3x512x1024xbf16, #tpu.memory_space<vmem>>, vector<1x512x1024xbf16>
    %99 = vector.shape_cast %98 : vector<1x512x1024xbf16> to vector<512x1024xbf16>
    %cst_55 = arith.constant dense<0.000000e+00> : vector<8x1024xf32>
    %100 = tpu.matmul %97, %99, %cst_55 {dimension_numbers = #tpu.dot_dimension_numbers<[1], [0], [0], [1], [0, 0, 1, 1], [], []>} : vector<8x512xbf16>, vector<512x1024xbf16>, vector<8x1024xf32> -> vector<8x1024xf32>
    %c1_i32_56 = arith.constant 1 : i32
    %101 = tpu.dynamic_rotate %100 by %c1_i32_56 dim 0 : vector<8x1024xf32>, i32 -> vector<8x1024xf32>
    %cst_57 = arith.constant 0.000000e+00 : f32
    %102 = vector.shape_cast %18 : vector<8x1xi1> to vector<8x1xi1>
    %103 = vector.broadcast %102 : vector<8x1xi1> to vector<8x1024xi1>
    %104 = vector.broadcast %cst_57 : f32 to vector<8x1024xf32>
    %105 = arith.select %103, %104, %101 : vector<8x1024xi1>, vector<8x1024xf32>
    %c1_58 = arith.constant 1 : index
    %c0_59 = arith.constant 0 : index
    %c0_60 = arith.constant 0 : index
    %106 = vector.load %arg6[%c1_58, %c0_59, %c0_60] : memref<3x512x1024xbf16, #tpu.memory_space<vmem>>, vector<1x512x1024xbf16>
    %107 = vector.shape_cast %106 : vector<1x512x1024xbf16> to vector<512x1024xbf16>
    %cst_61 = arith.constant dense<0.000000e+00> : vector<8x1024xf32>
    %108 = tpu.matmul %97, %107, %cst_61 {dimension_numbers = #tpu.dot_dimension_numbers<[1], [0], [0], [1], [0, 0, 1, 1], [], []>} : vector<8x512xbf16>, vector<512x1024xbf16>, vector<8x1024xf32> -> vector<8x1024xf32>
    %109 = arith.addf %105, %108 : vector<8x1024xf32>
    %c2_62 = arith.constant 2 : index
    %c0_63 = arith.constant 0 : index
    %c0_64 = arith.constant 0 : index
    %110 = vector.load %arg6[%c2_62, %c0_63, %c0_64] : memref<3x512x1024xbf16, #tpu.memory_space<vmem>>, vector<1x512x1024xbf16>
    %111 = vector.shape_cast %110 : vector<1x512x1024xbf16> to vector<512x1024xbf16>
    %cst_65 = arith.constant dense<0.000000e+00> : vector<8x1024xf32>
    %112 = tpu.matmul %97, %111, %cst_65 {dimension_numbers = #tpu.dot_dimension_numbers<[1], [0], [0], [1], [0, 0, 1, 1], [], []>} : vector<8x512xbf16>, vector<512x1024xbf16>, vector<8x1024xf32> -> vector<8x1024xf32>
    %c7_i32_66 = arith.constant 7 : i32
    %113 = tpu.dynamic_rotate %112 by %c7_i32_66 dim 0 : vector<8x1024xf32>, i32 -> vector<8x1024xf32>
    %cst_67 = arith.constant 0.000000e+00 : f32
    %114 = vector.shape_cast %20 : vector<8x1xi1> to vector<8x1xi1>
    %115 = vector.broadcast %114 : vector<8x1xi1> to vector<8x1024xi1>
    %116 = vector.broadcast %cst_67 : f32 to vector<8x1024xf32>
    %117 = arith.select %115, %116, %113 : vector<8x1024xi1>, vector<8x1024xf32>
    %118 = arith.addf %109, %117 : vector<8x1024xf32>
    %c0_68 = arith.constant 0 : index
    %c0_69 = arith.constant 0 : index
    %119 = vector.load %arg7[%c0_68, %c0_69] : memref<1x1024xf32, #tpu.memory_space<vmem>>, vector<1x1024xf32>
    %120 = vector.broadcast %119 : vector<1x1024xf32> to vector<8x1024xf32>
    %121 = arith.addf %118, %120 : vector<8x1024xf32>
    %cst_70 = arith.constant 0.000000e+00 : f32
    %122 = vector.broadcast %cst_70 : f32 to vector<8x1024xf32>
    %123 = arith.cmpf oge, %121, %122 : vector<8x1024xf32>
    %cst_71 = arith.constant 2.000000e-01 : f32
    %124 = vector.broadcast %cst_71 : f32 to vector<8x1024xf32>
    %125 = arith.mulf %121, %124 : vector<8x1024xf32>
    %126 = arith.select %123, %121, %125 : vector<8x1024xi1>, vector<8x1024xf32>
    %c0_72 = arith.constant 0 : index
    %c0_73 = arith.constant 0 : index
    %127 = vector.load %arg8[%c0_72, %c0_73] : memref<1x1024xf32, #tpu.memory_space<vmem>>, vector<1x1024xf32>
    %128 = vector.broadcast %127 : vector<1x1024xf32> to vector<8x1024xf32>
    %129 = arith.mulf %126, %128 : vector<8x1024xf32>
    %cst_74 = arith.constant dense<0.000000e+00> : vector<8xf32>
    %130 = vector.multi_reduction <add>, %129, %cst_74 [1] : vector<8x1024xf32> to vector<8xf32>
    %131 = vector.shape_cast %130 : vector<8xf32> to vector<8x1xf32>
    %c0_75 = arith.constant 0 : index
    %c0_76 = arith.constant 0 : index
    %132 = vector.load %arg9[%c0_75, %c0_76] : memref<1x1024xf32, #tpu.memory_space<vmem>>, vector<1x1024xf32>
    %133 = vector.broadcast %132 : vector<1x1024xf32> to vector<8x1024xf32>
    %134 = arith.mulf %126, %133 : vector<8x1024xf32>
    %cst_77 = arith.constant dense<0.000000e+00> : vector<8xf32>
    %135 = vector.multi_reduction <add>, %134, %cst_77 [1] : vector<8x1024xf32> to vector<8xf32>
    %136 = vector.shape_cast %135 : vector<8xf32> to vector<8x1xf32>
    %c0_78 = arith.constant 0 : index
    %c0_79 = arith.constant 0 : index
    %137 = vector.load %arg10[%c0_78, %c0_79] : memref<1x1024xf32, #tpu.memory_space<vmem>>, vector<1x1024xf32>
    %138 = vector.broadcast %137 : vector<1x1024xf32> to vector<8x1024xf32>
    %139 = arith.mulf %126, %138 : vector<8x1024xf32>
    %cst_80 = arith.constant dense<0.000000e+00> : vector<8xf32>
    %140 = vector.multi_reduction <add>, %139, %cst_80 [1] : vector<8x1024xf32> to vector<8xf32>
    %141 = vector.shape_cast %140 : vector<8xf32> to vector<8x1xf32>
    %c1_i32_81 = arith.constant 1 : i32
    %142 = tpu.dynamic_rotate %131 by %c1_i32_81 dim 0 : vector<8x1xf32>, i32 -> vector<8x1xf32>
    %cst_82 = arith.constant 0.000000e+00 : f32
    %143 = vector.broadcast %cst_82 : f32 to vector<8x1xf32>
    %144 = arith.select %18, %143, %142 : vector<8x1xi1>, vector<8x1xf32>
    %145 = arith.addf %144, %136 : vector<8x1xf32>
    %c7_i32_83 = arith.constant 7 : i32
    %146 = tpu.dynamic_rotate %141 by %c7_i32_83 dim 0 : vector<8x1xf32>, i32 -> vector<8x1xf32>
    %cst_84 = arith.constant 0.000000e+00 : f32
    %147 = vector.broadcast %cst_84 : f32 to vector<8x1xf32>
    %148 = arith.select %20, %147, %146 : vector<8x1xi1>, vector<8x1xf32>
    %149 = arith.addf %145, %148 : vector<8x1xf32>
    %c0_85 = arith.constant 0 : index
    %c0_86 = arith.constant 0 : index
    %150 = vector.load %arg11[%c0_85, %c0_86] : memref<1x1xf32, #tpu.memory_space<vmem>>, vector<1x1xf32>
    %151 = vector.broadcast %150 : vector<1x1xf32> to vector<8x1xf32>
    %152 = arith.addf %149, %151 : vector<8x1xf32>
    %c0_87 = arith.constant 0 : index
    %c0_88 = arith.constant 0 : index
    %153 = vector.load %arg12[%c0_87, %c0_88] : memref<8x1xf32, #tpu.memory_space<vmem>>, vector<8x1xf32>
    tpu.vector_store %arg12[%c0_87, %c0_88], %152 {strides = array<i32>} : memref<8x1xf32, #tpu.memory_space<vmem>>, vector<8x1xf32>,
    return
  }
  func.func @transform_0(%arg0: i32) -> (i32, i32) {
    %c0_i32 = arith.constant 0 : i32
    %c0_i32_0 = arith.constant 0 : i32
    return %arg0, %c0_i32 : i32, i32
  }
  func.func @transform_1(%arg0: i32) -> (i32, i32, i32) {
    %c0_i32 = arith.constant 0 : i32
    %c0_i32_0 = arith.constant 0 : i32
    %c0_i32_1 = arith.constant 0 : i32
    %c0_i32_2 = arith.constant 0 : i32
    return %c0_i32, %c0_i32_0, %c0_i32_1 : i32, i32, i32
  }
  func.func @transform_2(%arg0: i32) -> (i32, i32) {
    %c0_i32 = arith.constant 0 : i32
    %c0_i32_0 = arith.constant 0 : i32
    %c0_i32_1 = arith.constant 0 : i32
    return %c0_i32, %c0_i32_0 : i32, i32
  }
  func.func @transform_3(%arg0: i32) -> (i32, i32, i32) {
    %c0_i32 = arith.constant 0 : i32
    %c0_i32_0 = arith.constant 0 : i32
    %c0_i32_1 = arith.constant 0 : i32
    %c0_i32_2 = arith.constant 0 : i32
    return %c0_i32, %c0_i32_0, %c0_i32_1 : i32, i32, i32
  }
  func.func @transform_4(%arg0: i32) -> (i32, i32) {
    %c0_i32 = arith.constant 0 : i32
    %c0_i32_0 = arith.constant 0 : i32
    %c0_i32_1 = arith.constant 0 : i32
    return %c0_i32, %c0_i32_0 : i32, i32
  }
  func.func @transform_5(%arg0: i32) -> (i32, i32, i32) {
    %c0_i32 = arith.constant 0 : i32
    %c0_i32_0 = arith.constant 0 : i32
    %c0_i32_1 = arith.constant 0 : i32
    %c0_i32_2 = arith.constant 0 : i32
    return %c0_i32, %c0_i32_0, %c0_i32_1 : i32, i32, i32
  }
  func.func @transform_6(%arg0: i32) -> (i32, i32) {
    %c0_i32 = arith.constant 0 : i32
    %c0_i32_0 = arith.constant 0 : i32
    %c0_i32_1 = arith.constant 0 : i32
    return %c0_i32, %c0_i32_0 : i32, i32
  }
  func.func @transform_7(%arg0: i32) -> (i32, i32) {
    %c0_i32 = arith.constant 0 : i32
    %c0_i32_0 = arith.constant 0 : i32
    %c0_i32_1 = arith.constant 0 : i32
    return %c0_i32, %c0_i32_0 : i32, i32
  }
  func.func @transform_8(%arg0: i32) -> (i32, i32) {
    %c0_i32 = arith.constant 0 : i32
    %c0_i32_0 = arith.constant 0 : i32
    %c0_i32_1 = arith.constant 0 : i32
    return %c0_i32, %c0_i32_0 : i32, i32
  }
  func.func @transform_9(%arg0: i32) -> (i32, i32) {
    %c0_i32 = arith.constant 0 : i32
    %c0_i32_0 = arith.constant 0 : i32
    %c0_i32_1 = arith.constant 0 : i32
    return %c0_i32, %c0_i32_0 : i32, i32
  }
  func.func @transform_10(%arg0: i32) -> (i32, i32) {
    %c0_i32 = arith.constant 0 : i32
    %c0_i32_0 = arith.constant 0 : i32
    %c0_i32_1 = arith.constant 0 : i32
    return %c0_i32, %c0_i32_0 : i32, i32
  }
  func.func @transform_11(%arg0: i32) -> (i32, i32) {
    %c0_i32 = arith.constant 0 : i32
    %c0_i32_0 = arith.constant 0 : i32
    return %arg0, %c0_i32 : i32, i32
  }
}

</mosaic_0001>

<bundles_post_ra>
// kernel: pose_sequence_discriminator_forward.1
= control target key start
LH: loop header
LB: loop body
LE: loop exit
PB: predicated region body
PF: predicated region fallthrough
CT: control target
= control target key end

     0   :  { %s14564_s0 = inlined_call_operand.vmem [shape: bf16[8,32], index: 0, kind: input, shape index: {}]   ;;  %s14565_s1 = inlined_call_operand.hbm [shape: bf16[4,32,256], index: 1, kind: input, shape index: {}]   ;;  %s14566_s2 = inlined_call_operand.hbm [shape: f32[1,256], index: 2, kind: input, shape index: {}]   ;;  %s14567_s3 = inlined_call_operand.hbm [shape: bf16[4,256,512], index: 3, kind: input, shape index: {}]   ;;  %s14568_s4 = inlined_call_operand.hbm [shape: f32[1,512], index: 4, kind: input, shape index: {}]   ;;  %s14569_s5 = inlined_call_operand.hbm [shape: bf16[3,512,1024], index: 5, kind: input, shape index: {}]   ;;  %s14570_s6 = inlined_call_operand.hbm [shape: f32[1,1024], index: 6, kind: input, shape index: {}]   ;;  %s14571_s7 = inlined_call_operand.hbm [shape: f32[1,1024], index: 7, kind: input, shape index: {}]   ;;  %s14572_s8 = inlined_call_operand.hbm [shape: f32[1,1024], index: 8, kind: input, shape index: {}]   ;;  %s14573_s9 = inlined_call_operand.hbm [shape: f32[1,1024], index: 9, kind: input, shape index: {}]   ;;  %s14574_s10 = inlined_call_operand.<no memory space> [shape: f32[1,1], index: 10, kind: input, shape index: {}]   ;;  %s14575_s11 = inlined_call_operand.vmem [shape: f32[8,1], index: 11, kind: output, shape index: {}]  }
   0x1   :  { %v16_v0 = vstv %s14574_s10 }
   0x2   :  { %17 = vst [vmem:[#allocation2] sm:$0x1] %v16_v0 }
   0x3   :  { %18 = vsyncpa [#allocation4], 0 }
   0x4   :  { %19 = vsyncpa [#allocation6], 0 }
   0x5   :  { %20 = vsyncpa [#allocation9], 0 }
   0x6   :  { %21 = vsyncpa [#allocation12], 0  ;;  %s43_s21 = sshll.u32 %s14566_s2, 4  ;;  %s44_s21 = int_to_ptr.hbm [resolvable:$true] %s43_s21 }
   0x7   :  { %22 = vsyncpa [#allocation15], 0  ;;  %s13979_s22 = smov [#allocation5]   ;;  %s67_s26 = sshll.u32 %s14568_s4, 4  ;;  %s68_s26 = int_to_ptr.hbm [resolvable:$true] %s67_s26 }
   0x8   :  { %s45_s23 = sshll.u32 %s13979_s22, 4  ;;  %s13980_s10 = smov [#allocation8]   ;;  %s46_s23 = int_to_ptr.vmem [resolvable:$true] %s45_s23 }
   0x9   :  { %48 = dma.hbm_to_vmem [thread:$0]  %s44_s21, 32, %s46_s23, [#allocation6]  }
   0xa   :  { %s69_s27 = sshll.u32 %s13980_s10, 4  ;;  %s91_s30 = sshll.u32 %s14570_s6, 4  ;;  %s70_s27 = int_to_ptr.vmem [resolvable:$true] %s69_s27  ;;  %s92_s30 = int_to_ptr.hbm [resolvable:$true] %s91_s30 }
   0xb   :  { %72 = dma.hbm_to_vmem [thread:$0]  %s68_s26, 64, %s70_s27, [#allocation9]  }
   0xc   :  { %s113_s13 = sshll.u32 %s14572_s8, 4  ;;  %s13981_s14 = smov [#allocation11]   ;;  %s114_s13 = int_to_ptr.hbm [resolvable:$true] %s113_s13 }
   0xd   :  { %s93_s15 = sshll.u32 %s13981_s14, 4  ;;  %s13982_s4 = smov [#allocation14]   ;;  %s94_s15 = int_to_ptr.vmem [resolvable:$true] %s93_s15 }
   0xe   :  { %96 = dma.hbm_to_vmem [thread:$0]  %s92_s30, 128, %s94_s15, [#allocation12]  }
   0xf   :  { %s115_s16 = sshll.u32 %s13982_s4, 4  ;;  %s29_s19 = sshll.u32 %s14565_s1, 4  ;;  %s116_s16 = int_to_ptr.vmem [resolvable:$true] %s115_s16  ;;  %s30_s19 = int_to_ptr.hbm [resolvable:$true] %s29_s19 }
  0x10   :  { %118 = dma.hbm_to_vmem [thread:$0]  %s114_s13, 128, %s116_s16, [#allocation15]  }
  0x11   :  { %s13983_s6 = smov [#allocation3]   ;;  %s53_s8 = sshll.u32 %s14567_s3, 4  ;;  %s54_s8 = int_to_ptr.hbm [resolvable:$true] %s53_s8 }
  0x12   :  { %s31_s20 = sshll.u32 %s13983_s6, 4  ;;  %s13984_s23 = smov 128   ;;  %s32_s20 = int_to_ptr.vmem [resolvable:$true] %s31_s20 }
  0x13   :  { %s13985_s24 = smov 8   ;;  %s13986_s25 = smov [#allocation7]  }
  0x14   :  { %37 = dma.hbm_to_vmem [thread:$0]  %s30_s19, 2048, %s32_s20, [#allocation4], %s13984_s23, %s13984_s23, %s13985_s24  }
  0x15   :  { %s55_s26 = sshll.u32 %s13986_s25, 4  ;;  %s13987_s10 = smov 256   ;;  %s56_s26 = int_to_ptr.vmem [resolvable:$true] %s55_s26 }
  0x16   :  { %s13988_s27 = smov 16   ;;  %s77_s29 = sshll.u32 %s14569_s5, 4  ;;  %s78_s29 = int_to_ptr.hbm [resolvable:$true] %s77_s29 }
  0x17   :  { %61 = dma.hbm_to_vmem [thread:$0]  %s54_s8, 32768, %s56_s26, [#allocation6], %s13987_s10, %s13987_s10, %s13988_s27  }
  0x18   :  { %s13989_s30 = smov [#allocation10]   ;;  %s102_s13 = sshll.u32 %s14571_s7, 4  ;;  %s103_s13 = int_to_ptr.hbm [resolvable:$true] %s102_s13 }
  0x19   :  { %s79_s2 = sshll.u32 %s13989_s30, 4  ;;  %s13990_s14 = smov 512   ;;  %s80_s2 = int_to_ptr.vmem [resolvable:$true] %s79_s2 }
  0x1a   :  { %s13991_s15 = smov 32   ;;  %s13992_s4 = smov [#allocation13]  }
  0x1b   :  { %85 = dma.hbm_to_vmem [thread:$0]  %s78_s29, 98304, %s80_s2, [#allocation9], %s13990_s14, %s13990_s14, %s13991_s15  }
  0x1c   :  { %s104_s16 = sshll.u32 %s13992_s4, 4  ;;  %s124_s19 = sshll.u32 %s14573_s9, 4  ;;  %s105_s16 = int_to_ptr.vmem [resolvable:$true] %s104_s16  ;;  %s125_s19 = int_to_ptr.hbm [resolvable:$true] %s124_s19 }
  0x1d   :  { %107 = dma.hbm_to_vmem [thread:$0]  %s103_s13, 128, %s105_s16, [#allocation12]  }
  0x1e   :  { %s13993_s5 = smov [#allocation16]  }
  0x1f   :  { %s126_s6 = sshll.u32 %s13993_s5, 4  ;;  %s127_s6 = int_to_ptr.vmem [resolvable:$true] %s126_s6 }
  0x20   :  { %129 = dma.hbm_to_vmem [thread:$0]  %s125_s19, 128, %s127_s6, [#allocation15]  }
  0x21   :  { %13969 = dma.done.wait [#allocation4], 2048  }
  0x22   :  { %13970 = vsyncadd [#allocation4], 4294965248 }
  0x23   :  { %13971 = dma.done.wait [#allocation6], 32800  }
  0x24   :  { %13972 = vsyncadd [#allocation6], 4294934496 }
  0x25   :  { %13973 = dma.done.wait [#allocation9], 98368  }
  0x26   :  { %13974 = vsyncadd [#allocation9], 4294868928 }
  0x27   :  { %13975 = dma.done.wait [#allocation12], 256  }
  0x28   :  { %13976 = vsyncadd [#allocation12], 4294967040 }
  0x29   :  { %13977 = dma.done.wait [#allocation15], 256  }
  0x2a   :  { %13978 = vsyncadd [#allocation15], 4294967040  ;;  %vm210_vm0 = vcmask 261120   ;;  %v8539_v1 = vld [vmem:[#allocation3 + $0x10] sm:$0xf] }
  0x2b   :  { %v12700_v2 = vld [vmem:[#allocation3 + $0x14] sm:$0xf0]  ;;  %v12699_v3 = vld [vmem:[#allocation3 + $0x14] sm:$0xf]  ;;  %v8541_v5 = vld [vmem:[#allocation3 + $0x18] sm:$0xf0] }
  0x2c   :  { %v8540_v4 = vor.u32 %v12700_v2, %v8539_v1  ;;  %v8557_v6 = vld [vmem:[#allocation3 + $0x30] sm:$0xf]  ;;  %v12704_v7 = vld [vmem:[#allocation3 + $0x34] sm:$0xf0]  ;;  %v8544_v8 = vor.u32 %v12699_v3, %v8541_v5  ;;  %v12703_v10 = vld [vmem:[#allocation3 + $0x34] sm:$0xf] }
  0x2d   :  { %v8558_v9 = vor.u32 %v12704_v7, %v8557_v6  ;;  %v8559_v11 = vld [vmem:[#allocation3 + $0x38] sm:$0xf0]  ;;  %v8531_v12 = vld [vmem:[#allocation3] sm:$0xf]  ;;  %v12698_v14 = vld [vmem:[#allocation3 + $0x4] sm:$0xf0] }
  0x2e   :  { %220 = vmatpush.bf16.msra.mxu0 %v8540_v4  ;;  %v8562_v13 = vor.u32 %v12703_v10, %v8559_v11  ;;  %v12697_v15 = vld [vmem:[#allocation3 + $0x4] sm:$0xf]  ;;  %v8533_v16 = vld [vmem:[#allocation3 + $0x8] sm:$0xf0]  ;;  %233 = vmatpush.bf16.msra.mxu1 %v8544_v8  ;;  %v8532_v17 = vor.u32 %v12698_v14, %v8531_v12  ;;  %v8549_v19 = vld [vmem:[#allocation3 + $0x20] sm:$0xf] }
  0x2f   :  { %277 = vmatpush.bf16.msra.mxu2 %v8558_v9  ;;  %v8536_v18 = vor.u32 %v12697_v15, %v8533_v16  ;;  %v12702_v20 = vld [vmem:[#allocation3 + $0x24] sm:$0xf0]  ;;  %v12701_v21 = vld [vmem:[#allocation3 + $0x24] sm:$0xf]  ;;  %v8551_v23 = vld [vmem:[#allocation3 + $0x28] sm:$0xf0] }
  0x30   :  { %290 = vmatpush.bf16.msra.mxu3 %v8562_v13  ;;  %v8550_v22 = vor.u32 %v12702_v20, %v8549_v19  ;;  %v14087_v24 = vld [vmem:[%s14564_s0] sm:$0xf]  ;;  %v8575_v25 = vld [vmem:[#allocation3 + $0x70] sm:$0xf]  ;;  %v8554_v26 = vor.u32 %v12701_v21, %v8551_v23  ;;  %v12712_v27 = vld [vmem:[#allocation3 + $0x74] sm:$0xf0] }
  0x31   :  { %v12711_v28 = vld [vmem:[#allocation3 + $0x74] sm:$0xf]  ;;  %v8577_v29 = vld [vmem:[#allocation3 + $0x78] sm:$0xf0]  ;;  %v8576_v30 = vor.u32 %v12712_v27, %v8575_v25  ;;  %v8593_v32 = vld [vmem:[#allocation3 + $0x50] sm:$0xf] }
  0x32   :  { %221 = vmatpush.bf16.msra.mxu0 %v8532_v17  ;;  %v8580_v31 = vor.u32 %v12711_v28, %v8577_v29  ;;  %v12708_v33 = vld [vmem:[#allocation3 + $0x54] sm:$0xf0]  ;;  %v12707_v34 = vld [vmem:[#allocation3 + $0x54] sm:$0xf]  ;;  %234 = vmatpush.bf16.msra.mxu1 %v8536_v18  ;;  %v8595_v36 = vld [vmem:[#allocation3 + $0x58] sm:$0xf0] }
  0x33   :  { %278 = vmatpush.bf16.msra.mxu2 %v8550_v22  ;;  %v8594_v35 = vor.u32 %v12708_v33, %v8593_v32  ;;  %v8567_v37 = vld [vmem:[#allocation3 + $0x60] sm:$0xf]  ;;  %v12710_v38 = vld [vmem:[#allocation3 + $0x64] sm:$0xf0]  ;;  %v8598_v39 = vor.u32 %v12707_v34, %v8595_v36  ;;  %v12709_v41 = vld [vmem:[#allocation3 + $0x64] sm:$0xf] }
  0x34   :  { %291 = vmatpush.bf16.msra.mxu3 %v8554_v26  ;;  %v8568_v40 = vor.u32 %v12710_v38, %v8567_v37  ;;  %v8569_v42 = vld [vmem:[#allocation3 + $0x68] sm:$0xf0]  ;;  %v8585_v43 = vld [vmem:[#allocation3 + $0x40] sm:$0xf]  ;;  %v12706_v45 = vld [vmem:[#allocation3 + $0x44] sm:$0xf0] }
  0x35   :  { %8545 = vmatmul.msk.bf16.vlgmr.msra.gmra.mxu0 %vm210_vm0, %v14087_v24  ;;  %v8572_v44 = vor.u32 %v12709_v41, %v8569_v42  ;;  %v12705_v46 = vld [vmem:[#allocation3 + $0x44] sm:$0xf]  ;;  %v8587_v47 = vld [vmem:[#allocation3 + $0x48] sm:$0xf0]  ;;  %8546 = vmatmul.msk.bf16.vlgmr.msra.gmra.mxu1 %vm210_vm0, %v14087_v24  ;;  %v12743_v49 = vld [vmem:[#allocation7 + $0xec] sm:$0xf0]  ;;  %v8586_v51 = vor.u32 %v12706_v45, %v8585_v43 }
  0x36   :  { %335 = vmatpush.bf16.msrb.mxu0 %v8576_v30  ;;  %348 = vmatpush.bf16.msrb.mxu1 %v8580_v31  ;;  %v8715_v48 = vld [vmem:[#allocation7 + $0xe0] sm:$0xf]  ;;  %v12775_v53 = vld [vmem:[#allocation7 + $0x1ec] sm:$0xf0]  ;;  %v12741_v54 = vld [vmem:[#allocation7 + $0xe4] sm:$0xf]  ;;  %v8590_v56 = vor.u32 %v12705_v46, %v8587_v47 }
  0x37   :  { %8563 = vmatmul.msk.bf16.vlgmr.msra.gmra.mxu2 %vm210_vm0, %v14087_v24  ;;  %v8843_v50 = vld [vmem:[#allocation7 + $0x1e0] sm:$0xf]  ;;  %8564 = vmatmul.msk.bf16.vlgmr.msra.gmra.mxu3 %vm210_vm0, %v14087_v24  ;;  %v8716_v52 = vor.u32 %v12743_v49, %v8715_v48  ;;  %v8717_v55 = vld [vmem:[#allocation7 + $0xf0] sm:$0xf0]  ;;  %v12773_v59 = vld [vmem:[#allocation7 + $0x1e4] sm:$0xf] }
  0x38   :  { %387 = vmatpush.bf16.msrb.mxu2 %v8594_v35  ;;  %400 = vmatpush.bf16.msrb.mxu3 %v8598_v39  ;;  %v8844_v57 = vor.u32 %v12775_v53, %v8843_v50  ;;  %v8720_v58 = vor.u32 %v12741_v54, %v8717_v55  ;;  %v8845_v60 = vld [vmem:[#allocation7 + $0x1f0] sm:$0xf0]  ;;  %v8699_v61 = vld [vmem:[#allocation7 + $0xc0] sm:$0xf]  ;;  %v12739_v63 = vld [vmem:[#allocation7 + $0xcc] sm:$0xf0] }
  0x39   :  { %v8848_v62 = vor.u32 %v12773_v59, %v8845_v60  ;;  %v8827_v0 = vld [vmem:[#allocation7 + $0x1c0] sm:$0xf]  ;;  %v12771_v1 = vld [vmem:[#allocation7 + $0x1cc] sm:$0xf0]  ;;  %v8700_v2 = vor.u32 %v12739_v63, %v8699_v61  ;;  %v12737_v4 = vld [vmem:[#allocation7 + $0xc4] sm:$0xf] }
  0x3a   :  { %336 = vmatpush.bf16.msrb.mxu0 %v8568_v40  ;;  %349 = vmatpush.bf16.msrb.mxu1 %v8572_v44  ;;  %v8828_v3 = vor.u32 %v12771_v1, %v8827_v0  ;;  %v8701_v5 = vld [vmem:[#allocation7 + $0xd0] sm:$0xf0]  ;;  %v12769_v6 = vld [vmem:[#allocation7 + $0x1c4] sm:$0xf]  ;;  %v8683_v8 = vld [vmem:[#allocation7 + $0xa0] sm:$0xf] }
  0x3b   :  { %v8829_v7 = vld [vmem:[#allocation7 + $0x1d0] sm:$0xf0]  ;;  %v12735_v9 = vld [vmem:[#allocation7 + $0xac] sm:$0xf0]  ;;  %v8704_v10 = vor.u32 %v12737_v4, %v8701_v5  ;;  %v8811_v11 = vld [vmem:[#allocation7 + $0x1a0] sm:$0xf] }
  0x3c   :  { %388 = vmatpush.bf16.msrb.mxu2 %v8586_v51  ;;  %401 = vmatpush.bf16.msrb.mxu3 %v8590_v56  ;;  %v12767_v12 = vld [vmem:[#allocation7 + $0x1ac] sm:$0xf0]  ;;  %v8832_v13 = vor.u32 %v12769_v6, %v8829_v7  ;;  %v8684_v14 = vor.u32 %v12735_v9, %v8683_v8  ;;  %v12733_v15 = vld [vmem:[#allocation7 + $0xa4] sm:$0xf]  ;;  %v8685_v16 = vld [vmem:[#allocation7 + $0xb0] sm:$0xf0] }
  0x3d   :  { %v8812_v17 = vor.u32 %v12767_v12, %v8811_v11  ;;  %v12765_v18 = vld [vmem:[#allocation7 + $0x1a4] sm:$0xf]  ;;  %v8813_v19 = vld [vmem:[#allocation7 + $0x1b0] sm:$0xf0]  ;;  %v8688_v20 = vor.u32 %v12733_v15, %v8685_v16  ;;  %v8667_v21 = vld [vmem:[#allocation7 + $0x80] sm:$0xf] }
  0x3e   :  { %817 = vmatpush.bf16.msra.mxu0 %v8716_v52  ;;  %830 = vmatpush.bf16.msra.mxu1 %v8844_v57  ;;  %v12731_v22 = vld [vmem:[#allocation7 + $0x8c] sm:$0xf0]  ;;  %v8795_v23 = vld [vmem:[#allocation7 + $0x180] sm:$0xf]  ;;  %v8816_v25 = vor.u32 %v12765_v18, %v8813_v19  ;;  %v12729_v27 = vld [vmem:[#allocation7 + $0x84] sm:$0xf] }
  0x3f   :  { %v12763_v26 = vld [vmem:[#allocation7 + $0x18c] sm:$0xf0]  ;;  %v8669_v28 = vld [vmem:[#allocation7 + $0x90] sm:$0xf0]  ;;  %v12761_v29 = vld [vmem:[#allocation7 + $0x184] sm:$0xf]  ;;  %v8668_v31 = vor.u32 %v12731_v22, %v8667_v21 }
  0x40   :  { %843 = vmatpush.bf16.msra.mxu2 %v8720_v58  ;;  %856 = vmatpush.bf16.msra.mxu3 %v8848_v62  ;;  %v8797_v30 = vld [vmem:[#allocation7 + $0x190] sm:$0xf0]  ;;  %v8796_v32 = vor.u32 %v12763_v26, %v8795_v23  ;;  %v8672_v33 = vor.u32 %v12729_v27, %v8669_v28  ;;  %v8651_v34 = vld [vmem:[#allocation7 + $0x60] sm:$0xf]  ;;  %v12727_v35 = vld [vmem:[#allocation7 + $0x6c] sm:$0xf0] }
  0x41   :  { %v8779_v36 = vld [vmem:[#allocation7 + $0x160] sm:$0xf]  ;;  %v8800_v37 = vor.u32 %v12761_v29, %v8797_v30  ;;  %v12759_v38 = vld [vmem:[#allocation7 + $0x16c] sm:$0xf0]  ;;  %v12725_v39 = vld [vmem:[#allocation7 + $0x64] sm:$0xf]  ;;  %v8652_v43 = vor.u32 %v12727_v35, %v8651_v34 }
  0x42   :  { %818 = vmatpush.bf16.msra.mxu0 %v8700_v2  ;;  %831 = vmatpush.bf16.msra.mxu1 %v8828_v3  ;;  %v8653_v40 = vld [vmem:[#allocation7 + $0x70] sm:$0xf0]  ;;  %v12757_v41 = vld [vmem:[#allocation7 + $0x164] sm:$0xf]  ;;  %v8635_v44 = vld [vmem:[#allocation7 + $0x40] sm:$0xf]  ;;  %v8780_v45 = vor.u32 %v12759_v38, %v8779_v36 }
  0x43   :  { %v8781_v42 = vld [vmem:[#allocation7 + $0x170] sm:$0xf0]  ;;  %v8656_v46 = vor.u32 %v12725_v39, %v8653_v40  ;;  %v12723_v47 = vld [vmem:[#allocation7 + $0x4c] sm:$0xf0]  ;;  %v8763_v48 = vld [vmem:[#allocation7 + $0x140] sm:$0xf] }
  0x44   :  { %844 = vmatpush.bf16.msra.mxu2 %v8704_v10  ;;  %857 = vmatpush.bf16.msra.mxu3 %v8832_v13  ;;  %v8784_v49 = vor.u32 %v12757_v41, %v8781_v42  ;;  %v12755_v50 = vld [vmem:[#allocation7 + $0x14c] sm:$0xf0]  ;;  %v12721_v51 = vld [vmem:[#allocation7 + $0x44] sm:$0xf]  ;;  %v8637_v52 = vld [vmem:[#allocation7 + $0x50] sm:$0xf0]  ;;  %v8636_v55 = vor.u32 %v12723_v47, %v8635_v44 }
  0x45   :  { %8581 = vmatmul.msk.bf16.vlgmr.msrb.gmra.mxu0 %vm210_vm0, %v14087_v24  ;;  %8582 = vmatmul.msk.bf16.vlgmr.msrb.gmra.mxu1 %vm210_vm0, %v14087_v24  ;;  %v12753_v53 = vld [vmem:[#allocation7 + $0x144] sm:$0xf]  ;;  %v8765_v54 = vld [vmem:[#allocation7 + $0x150] sm:$0xf0]  ;;  %v8640_v56 = vor.u32 %v12721_v51, %v8637_v52  ;;  %v8619_v57 = vld [vmem:[#allocation7 + $0x20] sm:$0xf] }
  0x46   :  { %819 = vmatpush.bf16.msra.mxu0 %v8684_v14  ;;  %832 = vmatpush.bf16.msra.mxu1 %v8812_v17  ;;  %v12719_v58 = vld [vmem:[#allocation7 + $0x2c] sm:$0xf0]  ;;  %v8747_v59 = vld [vmem:[#allocation7 + $0x120] sm:$0xf]  ;;  %v8768_v60 = vor.u32 %v12753_v53, %v8765_v54  ;;  %v12717_v62 = vld [vmem:[#allocation7 + $0x24] sm:$0xf] }
  0x47   :  { %8599 = vmatmul.msk.bf16.vlgmr.msrb.gmra.mxu2 %vm210_vm0, %v14087_v24  ;;  %8600 = vmatmul.msk.bf16.vlgmr.msrb.gmra.mxu3 %vm210_vm0, %v14087_v24  ;;  %v8764_v24 = vor.u32 %v12755_v50, %v8763_v48  ;;  %v12751_v61 = vld [vmem:[#allocation7 + $0x12c] sm:$0xf0]  ;;  %v8621_v63 = vld [vmem:[#allocation7 + $0x30] sm:$0xf0]  ;;  %v12749_v0 = vld [vmem:[#allocation7 + $0x124] sm:$0xf]  ;;  %v8620_v2 = vor.u32 %v12719_v58, %v8619_v57 }
  0x48   :  { %845 = vmatpush.bf16.msra.mxu2 %v8688_v20  ;;  %858 = vmatpush.bf16.msra.mxu3 %v8816_v25  ;;  %v8749_v1 = vld [vmem:[#allocation7 + $0x130] sm:$0xf0]  ;;  %v8748_v3 = vor.u32 %v12751_v61, %v8747_v59  ;;  %v8624_v4 = vor.u32 %v12717_v62, %v8621_v63  ;;  %v8603_v6 = vld [vmem:[#allocation7] sm:$0xf]  ;;  %v12715_v7 = vld [vmem:[#allocation7 + $0xc] sm:$0xf0] }
  0x49   :  { %v8752_v5 = vor.u32 %v12749_v0, %v8749_v1  ;;  %v8731_v8 = vld [vmem:[#allocation7 + $0x100] sm:$0xf]  ;;  %v8604_v9 = vor.u32 %v12715_v7, %v8603_v6  ;;  %v12747_v10 = vld [vmem:[#allocation7 + $0x10c] sm:$0xf0]  ;;  %v12713_v11 = vld [vmem:[#allocation7 + $0x4] sm:$0xf] }
  0x4a   :  { %820 = vmatpush.bf16.msra.mxu0 %v8668_v31  ;;  %833 = vmatpush.bf16.msra.mxu1 %v8796_v32  ;;  %v8605_v12 = vld [vmem:[#allocation7 + $0x10] sm:$0xf0]  ;;  %v8732_v13 = vor.u32 %v12747_v10, %v8731_v8  ;;  %v12745_v15 = vld [vmem:[#allocation7 + $0x104] sm:$0xf]  ;;  %v8723_v17 = vld [vmem:[#allocation7 + $0xe8] sm:$0xf] }
  0x4b   :  { %v8608_v14 = vor.u32 %v12713_v11, %v8605_v12  ;;  %v8733_v16 = vld [vmem:[#allocation7 + $0x110] sm:$0xf0]  ;;  %v12744_v19 = vld [vmem:[#allocation7 + $0xf4] sm:$0xf0]  ;;  %v8851_v20 = vld [vmem:[#allocation7 + $0x1e8] sm:$0xf] }
  0x4c   :  { %846 = vmatpush.bf16.msra.mxu2 %v8672_v33  ;;  %859 = vmatpush.bf16.msra.mxu3 %v8800_v37  ;;  %v8736_v18 = vor.u32 %v12745_v15, %v8733_v16  ;;  %v12776_v21 = vld [vmem:[#allocation7 + $0x1f4] sm:$0xf0]  ;;  %v8724_v22 = vor.u32 %v12744_v19, %v8723_v17  ;;  %v12742_v25 = vld [vmem:[#allocation7 + $0xec] sm:$0xf]  ;;  %v8725_v26 = vld [vmem:[#allocation7 + $0xf8] sm:$0xf0] }
  0x4d   :  { %v8852_v23 = vor.u32 %v12776_v21, %v8851_v20  ;;  %v12774_v27 = vld [vmem:[#allocation7 + $0x1ec] sm:$0xf]  ;;  %v8728_v28 = vor.u32 %v12742_v25, %v8725_v26  ;;  %v8853_v29 = vld [vmem:[#allocation7 + $0x1f8] sm:$0xf0]  ;;  %v8707_v30 = vld [vmem:[#allocation7 + $0xc8] sm:$0xf] }
  0x4e   :  { %821 = vmatpush.bf16.msra.mxu0 %v8652_v43  ;;  %834 = vmatpush.bf16.msra.mxu1 %v8780_v45  ;;  %v8856_v31 = vor.u32 %v12774_v27, %v8853_v29  ;;  %v12740_v32 = vld [vmem:[#allocation7 + $0xd4] sm:$0xf0]  ;;  %v8835_v33 = vld [vmem:[#allocation7 + $0x1c8] sm:$0xf]  ;;  %v12738_v37 = vld [vmem:[#allocation7 + $0xcc] sm:$0xf] }
  0x4f   :  { %v12772_v34 = vld [vmem:[#allocation7 + $0x1d4] sm:$0xf0]  ;;  %v8708_v35 = vor.u32 %v12740_v32, %v8707_v30  ;;  %v8709_v38 = vld [vmem:[#allocation7 + $0xd8] sm:$0xf0]  ;;  %v12770_v39 = vld [vmem:[#allocation7 + $0x1cc] sm:$0xf] }
  0x50   :  { %847 = vmatpush.bf16.msra.mxu2 %v8656_v46  ;;  %860 = vmatpush.bf16.msra.mxu3 %v8784_v49  ;;  %v8836_v36 = vor.u32 %v12772_v34, %v8835_v33  ;;  %v8712_v40 = vor.u32 %v12738_v37, %v8709_v38  ;;  %v8837_v41 = vld [vmem:[#allocation7 + $0x1d8] sm:$0xf0]  ;;  %v8691_v42 = vld [vmem:[#allocation7 + $0xa8] sm:$0xf]  ;;  %v12736_v44 = vld [vmem:[#allocation7 + $0xb4] sm:$0xf0] }
  0x51   :  { %v8840_v43 = vor.u32 %v12770_v39, %v8837_v41  ;;  %v8819_v45 = vld [vmem:[#allocation7 + $0x1a8] sm:$0xf]  ;;  %v12768_v46 = vld [vmem:[#allocation7 + $0x1b4] sm:$0xf0]  ;;  %v8692_v47 = vor.u32 %v12736_v44, %v8691_v42  ;;  %v12734_v49 = vld [vmem:[#allocation7 + $0xac] sm:$0xf] }
  0x52   :  { %822 = vmatpush.bf16.msra.mxu0 %v8636_v55  ;;  %835 = vmatpush.bf16.msra.mxu1 %v8764_v24  ;;  %v8820_v48 = vor.u32 %v12768_v46, %v8819_v45  ;;  %v8693_v50 = vld [vmem:[#allocation7 + $0xb8] sm:$0xf0]  ;;  %v12766_v51 = vld [vmem:[#allocation7 + $0x1ac] sm:$0xf]  ;;  %v8675_v55 = vld [vmem:[#allocation7 + $0x88] sm:$0xf] }
  0x53   :  { %v8696_v52 = vor.u32 %v12734_v49, %v8693_v50  ;;  %v8821_v53 = vld [vmem:[#allocation7 + $0x1b8] sm:$0xf0]  ;;  %v12732_v24 = vld [vmem:[#allocation7 + $0x94] sm:$0xf0]  ;;  %v12730_v59 = vld [vmem:[#allocation7 + $0x8c] sm:$0xf] }
  0x54   :  { %848 = vmatpush.bf16.msra.mxu2 %v8640_v56  ;;  %861 = vmatpush.bf16.msra.mxu3 %v8768_v60  ;;  %v8824_v54 = vor.u32 %v12766_v51, %v8821_v53  ;;  %v8803_v56 = vld [vmem:[#allocation7 + $0x188] sm:$0xf]  ;;  %v8676_v57 = vor.u32 %v12732_v24, %v8675_v55  ;;  %v12764_v58 = vld [vmem:[#allocation7 + $0x194] sm:$0xf0]  ;;  %v8677_v60 = vld [vmem:[#allocation7 + $0x98] sm:$0xf0] }
  0x55   :  { %v8804_v61 = vor.u32 %v12764_v58, %v8803_v56  ;;  %v8680_v62 = vor.u32 %v12730_v59, %v8677_v60  ;;  %v12762_v63 = vld [vmem:[#allocation7 + $0x18c] sm:$0xf]  ;;  %v8805_v0 = vld [vmem:[#allocation7 + $0x198] sm:$0xf0]  ;;  %v12760_v6 = vld [vmem:[#allocation7 + $0x174] sm:$0xf0] }
  0x56   :  { %823 = vmatpush.bf16.msra.mxu0 %v8620_v2  ;;  %836 = vmatpush.bf16.msra.mxu1 %v8748_v3  ;;  %v8808_v1 = vor.u32 %v12762_v63, %v8805_v0  ;;  %v8659_v2 = vld [vmem:[#allocation7 + $0x68] sm:$0xf]  ;;  %v12728_v3 = vld [vmem:[#allocation7 + $0x74] sm:$0xf0]  ;;  %v12726_v7 = vld [vmem:[#allocation7 + $0x6c] sm:$0xf] }
  0x57   :  { %v8661_v8 = vld [vmem:[#allocation7 + $0x78] sm:$0xf0]  ;;  %v12758_v11 = vld [vmem:[#allocation7 + $0x16c] sm:$0xf]  ;;  %v12724_v15 = vld [vmem:[#allocation7 + $0x54] sm:$0xf0] }
  0x58   :  { %849 = vmatpush.bf16.msra.mxu2 %v8624_v4  ;;  %862 = vmatpush.bf16.msra.mxu3 %v8752_v5  ;;  %v8787_v4 = vld [vmem:[#allocation7 + $0x168] sm:$0xf]  ;;  %v8660_v5 = vor.u32 %v12728_v3, %v8659_v2  ;;  %v8664_v10 = vor.u32 %v12726_v7, %v8661_v8  ;;  %v8789_v12 = vld [vmem:[#allocation7 + $0x178] sm:$0xf0]  ;;  %v12722_v19 = vld [vmem:[#allocation7 + $0x4c] sm:$0xf] }
  0x59   :  { %v8771_v16 = vld [vmem:[#allocation7 + $0x148] sm:$0xf]  ;;  %v8645_v20 = vld [vmem:[#allocation7 + $0x58] sm:$0xf0]  ;;  %v12718_v32 = vld [vmem:[#allocation7 + $0x2c] sm:$0xf] }
  0x5a   :  { %824 = vmatpush.bf16.msra.mxu0 %v8604_v9  ;;  %837 = vmatpush.bf16.msra.mxu1 %v8732_v13  ;;  %v8788_v9 = vor.u32 %v12760_v6, %v8787_v4  ;;  %v8792_v13 = vor.u32 %v12758_v11, %v8789_v12  ;;  %v8773_v25 = vld [vmem:[#allocation7 + $0x158] sm:$0xf0]  ;;  %v8627_v27 = vld [vmem:[#allocation7 + $0x28] sm:$0xf]  ;;  %v12714_v44 = vld [vmem:[#allocation7 + $0xc] sm:$0xf] }
  0x5b   :  { %v8755_v29 = vld [vmem:[#allocation7 + $0x128] sm:$0xf]  ;;  %v8629_v33 = vld [vmem:[#allocation7 + $0x38] sm:$0xf0]  ;;  %v12746_v49 = vld [vmem:[#allocation7 + $0x10c] sm:$0xf] }
  0x5c   :  { %850 = vmatpush.bf16.msra.mxu2 %v8608_v14  ;;  %863 = vmatpush.bf16.msra.mxu3 %v8736_v18  ;;  %v8643_v14 = vld [vmem:[#allocation7 + $0x48] sm:$0xf]  ;;  %v12756_v18 = vld [vmem:[#allocation7 + $0x154] sm:$0xf0]  ;;  %v8757_v37 = vld [vmem:[#allocation7 + $0x138] sm:$0xf0] }
  0x5d   :  { %v8644_v17 = vor.u32 %v12724_v15, %v8643_v14  ;;  %v8772_v21 = vor.u32 %v12756_v18, %v8771_v16  ;;  %v8611_v39 = vld [vmem:[#allocation7 + $0x8] sm:$0xf]  ;;  %v8613_v45 = vld [vmem:[#allocation7 + $0x18] sm:$0xf0]  ;;  %v8971_v14 = vld [vmem:[#allocation7 + $0x2e0] sm:$0xf] }
  0x5e   :  { %869 = vmatpush.bf16.msrb.mxu0 %v8724_v22  ;;  %882 = vmatpush.bf16.msrb.mxu1 %v8852_v23  ;;  %v8648_v22 = vor.u32 %v12722_v19, %v8645_v20  ;;  %v12754_v23 = vld [vmem:[#allocation7 + $0x14c] sm:$0xf]  ;;  %v8739_v41 = vld [vmem:[#allocation7 + $0x108] sm:$0xf]  ;;  %v8741_v50 = vld [vmem:[#allocation7 + $0x118] sm:$0xf0] }
  0x5f   :  { %v8776_v26 = vor.u32 %v12754_v23, %v8773_v25  ;;  %v14117_v2 = vld [vmem:[#allocation5] sm:$0x3]  ;;  %v12807_v15 = vld [vmem:[#allocation7 + $0x2ec] sm:$0xf0]  ;;  %v9099_v16 = vld [vmem:[#allocation7 + $0x3e0] sm:$0xf] }
  0x60   :  { %895 = vmatpush.bf16.msrb.mxu2 %v8728_v28  ;;  %908 = vmatpush.bf16.msrb.mxu3 %v8856_v31  ;;  %v12720_v28 = vld [vmem:[#allocation7 + $0x34] sm:$0xf0]  ;;  %v409_v6 = vperm.slane %v14117_v2, 0  ;;  %v12839_v18 = vld [vmem:[#allocation7 + $0x3ec] sm:$0xf0] }
  0x61   :  { %v8628_v30 = vor.u32 %v12720_v28, %v8627_v27  ;;  %v12752_v31 = vld [vmem:[#allocation7 + $0x134] sm:$0xf0]  ;;  %v12805_v19 = vld [vmem:[#allocation7 + $0x2e4] sm:$0xf]  ;;  %v8973_v20 = vld [vmem:[#allocation7 + $0x2f0] sm:$0xf0] }
  0x62   :  { %870 = vmatpush.bf16.msrb.mxu0 %v8708_v35  ;;  %883 = vmatpush.bf16.msrb.mxu1 %v8836_v36  ;;  %v8756_v34 = vor.u32 %v12752_v31, %v8755_v29  ;;  %v8632_v35 = vor.u32 %v12718_v32, %v8629_v33  ;;  %v12750_v36 = vld [vmem:[#allocation7 + $0x12c] sm:$0xf]  ;;  %v9101_v25 = vld [vmem:[#allocation7 + $0x3f0] sm:$0xf0]  ;;  %v9100_v31 = vor.u32 %v12839_v18, %v9099_v16  ;;  %v8955_v32 = vld [vmem:[#allocation7 + $0x2c0] sm:$0xf] }
  0x63   :  { %v8760_v38 = vor.u32 %v12750_v36, %v8757_v37  ;;  %v12803_v33 = vld [vmem:[#allocation7 + $0x2cc] sm:$0xf0]  ;;  %v8976_v36 = vor.u32 %v12805_v19, %v8973_v20 }
  0x64   :  { %896 = vmatpush.bf16.msrb.mxu2 %v8712_v40  ;;  %909 = vmatpush.bf16.msrb.mxu3 %v8840_v43  ;;  %v12716_v40 = vld [vmem:[#allocation7 + $0x14] sm:$0xf0]  ;;  %v12791_v18 = vld [vmem:[#allocation7 + $0x26c] sm:$0xf0] }
  0x65   :  { %v8612_v42 = vor.u32 %v12716_v40, %v8611_v39  ;;  %v12748_v43 = vld [vmem:[#allocation7 + $0x114] sm:$0xf0]  ;;  %v12835_v39 = vld [vmem:[#allocation7 + $0x3cc] sm:$0xf0]  ;;  %v12801_v40 = vld [vmem:[#allocation7 + $0x2c4] sm:$0xf] }
  0x66   :  { %871 = vmatpush.bf16.msrb.mxu0 %v8692_v47  ;;  %884 = vmatpush.bf16.msrb.mxu1 %v8820_v48  ;;  %v8740_v47 = vor.u32 %v12748_v43, %v8739_v41  ;;  %v8616_v48 = vor.u32 %v12714_v44, %v8613_v45  ;;  %v8957_v41 = vld [vmem:[#allocation7 + $0x2d0] sm:$0xf0] }
  0x67   :  { %v9085_v43 = vld [vmem:[#allocation7 + $0x3d0] sm:$0xf0] }
  0x68   :  { %897 = vmatpush.bf16.msrb.mxu2 %v8696_v52  ;;  %910 = vmatpush.bf16.msrb.mxu3 %v8824_v54  ;;  %v8744_v52 = vor.u32 %v12746_v49, %v8741_v50  ;;  %v169_v54 = vlaneseq  ;;  %v8939_v49 = vld [vmem:[#allocation7 + $0x2a0] sm:$0xf]  ;;  %v12799_v50 = vld [vmem:[#allocation7 + $0x2ac] sm:$0xf0] }
  0x6a   :  { %872 = vmatpush.bf16.msrb.mxu0 %v8676_v57  ;;  %885 = vmatpush.bf16.msrb.mxu1 %v8804_v61  ;;  %v170_v57 = vshrl.u32 %v169_v54, 7 }
  0x6c   :  { %898 = vmatpush.bf16.msrb.mxu2 %v8680_v62  ;;  %911 = vmatpush.bf16.msrb.mxu3 %v8808_v1  ;;  %v175_v59 = vand.u32 3, %v170_v57  ;;  %v12797_v57 = vld [vmem:[#allocation7 + $0x2a4] sm:$0xf] }
  0x6e   :  { %873 = vmatpush.bf16.msrb.mxu0 %v8660_v5  ;;  %886 = vmatpush.bf16.msrb.mxu1 %v8788_v9  ;;  %vm14113_vm1 = vcmp.eq.s32.totalorder %v175_v59, 3  ;;  %vm14138_vm4 = vcmp.eq.s32.totalorder %v175_v59, 0 }
  0x70   :  { %899 = vmatpush.bf16.msrb.mxu2 %v8664_v10  ;;  %912 = vmatpush.bf16.msrb.mxu3 %v8792_v13  ;;  %v410_v10 = vperm.slane %v14117_v2, 1  ;;  %v12781_v2 = vld [vmem:[#allocation7 + $0x224] sm:$0xf] }
  0x72   :  { %874 = vmatpush.bf16.msrb.mxu0 %v8644_v17  ;;  %887 = vmatpush.bf16.msrb.mxu1 %v8772_v21 }
  0x74   :  { %900 = vmatpush.bf16.msrb.mxu2 %v8648_v22  ;;  %913 = vmatpush.bf16.msrb.mxu3 %v8776_v26  ;;  %v12837_v22 = vld [vmem:[#allocation7 + $0x3e4] sm:$0xf] }
  0x75   :  { %v9104_v37 = vor.u32 %v12837_v22, %v9101_v25  ;;  %v12823_v22 = vld [vmem:[#allocation7 + $0x36c] sm:$0xf0]  ;;  %v8909_v25 = vld [vmem:[#allocation7 + $0x270] sm:$0xf0] }
  0x76   :  { %875 = vmatpush.bf16.msrb.mxu0 %v8628_v30  ;;  %888 = vmatpush.bf16.msrb.mxu1 %v8756_v34  ;;  %v8972_v30 = vor.u32 %v12807_v15, %v8971_v14 }
  0x78   :  { %901 = vmatpush.bf16.msrb.mxu2 %v8632_v35  ;;  %914 = vmatpush.bf16.msrb.mxu3 %v8760_v38  ;;  %v9083_v38 = vld [vmem:[#allocation7 + $0x3c0] sm:$0xf] }
  0x7a   :  { %876 = vmatpush.bf16.msrb.mxu0 %v8612_v42  ;;  %889 = vmatpush.bf16.msrb.mxu1 %v8740_v47  ;;  %v12833_v42 = vld [vmem:[#allocation7 + $0x3c4] sm:$0xf]  ;;  %v8956_v47 = vor.u32 %v12803_v33, %v8955_v32  ;;  %v8891_v32 = vld [vmem:[#allocation7 + $0x240] sm:$0xf]  ;;  %v12787_v33 = vld [vmem:[#allocation7 + $0x24c] sm:$0xf0] }
  0x7b   :  { %v9088_v54 = vor.u32 %v12833_v42, %v9085_v43  ;;  %v8892_v43 = vor.u32 %v12787_v33, %v8891_v32  ;;  %v12802_v32 = vld [vmem:[#allocation7 + $0x2cc] sm:$0xf]  ;;  %v8965_v33 = vld [vmem:[#allocation7 + $0x2d8] sm:$0xf0] }
  0x7c   :  { %902 = vmatpush.bf16.msrb.mxu2 %v8616_v48  ;;  %915 = vmatpush.bf16.msrb.mxu3 %v8744_v52  ;;  %v9084_v48 = vor.u32 %v12835_v39, %v9083_v38  ;;  %v8960_v52 = vor.u32 %v12801_v40, %v8957_v41  ;;  %v12819_v38 = vld [vmem:[#allocation7 + $0x34c] sm:$0xf0]  ;;  %v12785_v39 = vld [vmem:[#allocation7 + $0x244] sm:$0xf]  ;;  %v9021_v40 = vld [vmem:[#allocation7 + $0x350] sm:$0xf0] }
  0xb2   :  { %v14105_v46 = vpop.f32.mrf.mxu0  ;;  %v14107_v51 = vpop.f32.mrf.mxu1 }
  0xb3   :  { %v240_v44 = vrot.slane %v14105_v46, 7  ;;  %v9069_v46 = vld [vmem:[#allocation7 + $0x3b0] sm:$0xf0]  ;;  %v241_v59 = vrot.slane %v14107_v51, 7 }
  0xb5   :  { %v245_v14 = vsel %vm14138_vm4, 0.0, %v241_v59  ;;  %v12779_v59 = vld [vmem:[#allocation7 + $0x20c] sm:$0xf0] }
  0xba   :  { %v14109_v53 = vpop.f32.mrf.mxu2  ;;  %v14111_v55 = vpop.f32.mrf.mxu3 }
  0xbb   :  { %v225_v24 = vpop.f32.mrf.mxu0  ;;  %v238_v56 = vpop.f32.mrf.mxu1 }
  0xbc   :  { %v9067_v24 = vld [vmem:[#allocation7 + $0x3a0] sm:$0xf]  ;;  %v12831_v56 = vld [vmem:[#allocation7 + $0x3ac] sm:$0xf0] }
  0xc2   :  { %v282_v58 = vpop.f32.mrf.mxu2  ;;  %v295_v60 = vpop.f32.mrf.mxu3 }
  0xc3   :  { %v338_v61 = vpop.f32.mrf.mxu0  ;;  %v351_v63 = vpop.f32.mrf.mxu1  ;;  %v8941_v58 = vld [vmem:[#allocation7 + $0x2b0] sm:$0xf0]  ;;  %v12829_v60 = vld [vmem:[#allocation7 + $0x3a4] sm:$0xf] }
  0xc4   :  { %v355_v62 = vrot.slane %v338_v61, 1  ;;  %v356_v0 = vrot.slane %v351_v63, 1  ;;  %v244_v61 = vsel %vm14138_vm4, 0.0, %v240_v44  ;;  %v9068_v63 = vor.u32 %v12831_v56, %v9067_v24  ;;  %v12813_v24 = vld [vmem:[#allocation7 + $0x324] sm:$0xf] }
  0xc5   :  { %v297_v51 = vadd.f32 %v14109_v53, %v244_v61  ;;  %v298_v53 = vadd.f32 %v14111_v55, %v245_v14  ;;  %v8893_v55 = vld [vmem:[#allocation7 + $0x250] sm:$0xf0]  ;;  %v8987_v61 = vld [vmem:[#allocation7 + $0x300] sm:$0xf] }
  0xc6   :  { %v359_v3 = vsel %vm14113_vm1, 0.0, %v355_v62  ;;  %v360_v4 = vsel %vm14113_vm1, 0.0, %v356_v0  ;;  %v8940_v62 = vor.u32 %v12799_v50, %v8939_v49  ;;  %v8923_v0 = vld [vmem:[#allocation7 + $0x280] sm:$0xf]  ;;  %v8896_v49 = vor.u32 %v12785_v39, %v8893_v55  ;;  %v9005_v56 = vld [vmem:[#allocation7 + $0x330] sm:$0xf0] }
  0xc7   :  { %v414_v41 = vadd.f32 %v410_v10, %v298_v53  ;;  %v8947_v55 = vld [vmem:[#allocation7 + $0x2a8] sm:$0xf] }
  0xc9   :  { %vm416_vm6 = vcmp.ge.f32.partialorder %v414_v41, 0.0 }
  0xca   :  { %v390_v5 = vpop.f32.mrf.mxu2  ;;  %v403_v8 = vpop.f32.mrf.mxu3 }
  0xcb   :  { %v391_v7 = vadd.f32 %v390_v5, %v359_v3  ;;  %v340_v9 = vpop.f32.mrf.mxu0  ;;  %v404_v11 = vadd.f32 %v403_v8, %v360_v4  ;;  %v353_v12 = vpop.f32.mrf.mxu1  ;;  %v12795_v3 = vld [vmem:[#allocation7 + $0x28c] sm:$0xf0]  ;;  %v8944_v4 = vor.u32 %v12797_v57, %v8941_v58  ;;  %v9072_v5 = vor.u32 %v12829_v60, %v9069_v46  ;;  %v8859_v58 = vld [vmem:[#allocation7 + $0x200] sm:$0xf] }
  0xcc   :  { %v12827_v8 = vld [vmem:[#allocation7 + $0x38c] sm:$0xf0]  ;;  %v12793_v9 = vld [vmem:[#allocation7 + $0x284] sm:$0xf]  ;;  %v8924_v15 = vor.u32 %v12795_v3, %v8923_v0  ;;  %v418_v57 = vmul.f32 0.2, %v414_v41  ;;  %v9008_v0 = vor.u32 %v12813_v24, %v9005_v56 }
  0xcd   :  { %v423_v13 = vadd.f32 %v409_v6, %v391_v7  ;;  %v424_v17 = vadd.f32 %v410_v10, %v404_v11  ;;  %v9051_v7 = vld [vmem:[#allocation7 + $0x380] sm:$0xf]  ;;  %v8925_v11 = vld [vmem:[#allocation7 + $0x290] sm:$0xf0]  ;;  %v12825_v12 = vld [vmem:[#allocation7 + $0x384] sm:$0xf] }
  0xce   :  { %v9052_v16 = vor.u32 %v12827_v8, %v9051_v7  ;;  %v8928_v19 = vor.u32 %v12793_v9, %v8925_v11  ;;  %v8877_v10 = vld [vmem:[#allocation7 + $0x230] sm:$0xf0]  ;;  %v12777_v3 = vld [vmem:[#allocation7 + $0x204] sm:$0xf]  ;;  %v8979_v8 = vld [vmem:[#allocation7 + $0x2e8] sm:$0xf] }
  0xcf   :  { %vm425_vm2 = vcmp.ge.f32.partialorder %v423_v13, 0.0  ;;  %v427_v21 = vmul.f32 0.2, %v423_v13  ;;  %vm426_vm3 = vcmp.ge.f32.partialorder %v424_v17, 0.0  ;;  %v428_v23 = vmul.f32 0.2, %v424_v17 }
  0xd0   :  { %v8989_v7 = vld [vmem:[#allocation7 + $0x310] sm:$0xf0]  ;;  %v12808_v9 = vld [vmem:[#allocation7 + $0x2f4] sm:$0xf0]  ;;  %v9107_v11 = vld [vmem:[#allocation7 + $0x3e8] sm:$0xf] }
  0xd1   :  { %v429_v26 = vsel %vm425_vm2, %v423_v13, %v427_v21  ;;  %v430_v28 = vsel %vm426_vm3, %v424_v17, %v428_v23  ;;  %v9053_v13 = vld [vmem:[#allocation7 + $0x390] sm:$0xf0]  ;;  %v8907_v17 = vld [vmem:[#allocation7 + $0x260] sm:$0xf]  ;;  %v12789_v23 = vld [vmem:[#allocation7 + $0x264] sm:$0xf] }
  0xd2   :  { %v14129_v27 = vpack.c.bf16 %v429_v26, %v429_v26  ;;  %v392_v29 = vpop.f32.mrf.mxu2  ;;  %v14131_v34 = vpack.c.bf16 %v430_v28, %v430_v28  ;;  %v405_v35 = vpop.f32.mrf.mxu3  ;;  %v9056_v20 = vor.u32 %v12825_v12, %v9053_v13  ;;  %v9035_v21 = vld [vmem:[#allocation7 + $0x360] sm:$0xf]  ;;  %v12821_v26 = vld [vmem:[#allocation7 + $0x364] sm:$0xf]  ;;  %v9037_v28 = vld [vmem:[#allocation7 + $0x370] sm:$0xf0] }
  0xd3   :  { %v14151_v29 = vadd.f32 %v409_v6, %v297_v51  ;;  %v8912_v35 = vor.u32 %v12789_v23, %v8909_v25  ;;  %v12817_v6 = vld [vmem:[#allocation7 + $0x344] sm:$0xf]  ;;  %v12840_v12 = vld [vmem:[#allocation7 + $0x3f4] sm:$0xf0]  ;;  %v12806_v13 = vld [vmem:[#allocation7 + $0x2ec] sm:$0xf]  ;;  %v8860_v51 = vor.u32 %v12779_v59, %v8859_v58 }
  0xd4   :  { %825 = vmatmul.bf16.vlgmr.msra.gmra.mxu0 %v14129_v27  ;;  %851 = vmatmul.bf16.vlgmr.msra.gmra.mxu2 %v14129_v27  ;;  %v9024_v50 = vor.u32 %v12817_v6, %v9021_v40  ;;  %v8963_v23 = vld [vmem:[#allocation7 + $0x2c8] sm:$0xf]  ;;  %v12804_v25 = vld [vmem:[#allocation7 + $0x2d4] sm:$0xf0]  ;;  %v8968_v40 = vor.u32 %v12802_v32, %v8965_v33  ;;  %v12794_v58 = vld [vmem:[#allocation7 + $0x28c] sm:$0xf] }
  0xd5   :  { %838 = vmatmul.bf16.vlgmr.msra.gmra.mxu1 %v14131_v34  ;;  %864 = vmatmul.bf16.vlgmr.msra.gmra.mxu3 %v14131_v34  ;;  %v417_v42 = vmul.f32 0.2, %v14151_v29  ;;  %vm415_vm5 = vcmp.ge.f32.partialorder %v14151_v29, 0.0  ;;  %v12800_v6 = vld [vmem:[#allocation7 + $0x2b4] sm:$0xf0] }
  0xd6   :  { %1314 = vmatpush.bf16.msra.mxu0 %v8972_v30  ;;  %1327 = vmatpush.bf16.msra.mxu1 %v9100_v31  ;;  %v8908_v30 = vor.u32 %v12791_v18, %v8907_v17  ;;  %v9036_v31 = vor.u32 %v12823_v22, %v9035_v21  ;;  %v9109_v17 = vld [vmem:[#allocation7 + $0x3f8] sm:$0xf0]  ;;  %v8980_v21 = vor.u32 %v12808_v9, %v8979_v8  ;;  %v9059_v56 = vld [vmem:[#allocation7 + $0x388] sm:$0xf]  ;;  %v12790_v8 = vld [vmem:[#allocation7 + $0x26c] sm:$0xf] }
  0xd7   :  { %1340 = vmatpush.bf16.msra.mxu2 %v8976_v36  ;;  %1353 = vmatpush.bf16.msra.mxu3 %v9104_v37  ;;  %v9040_v36 = vor.u32 %v12821_v26, %v9037_v28  ;;  %v9019_v37 = vld [vmem:[#allocation7 + $0x340] sm:$0xf]  ;;  %v9108_v22 = vor.u32 %v12840_v12, %v9107_v11  ;;  %v420_v26 = vsel %vm416_vm6, %v414_v41, %v418_v57  ;;  %v12828_v57 = vld [vmem:[#allocation7 + $0x394] sm:$0xf0]  ;;  %v9061_v59 = vld [vmem:[#allocation7 + $0x398] sm:$0xf0] }
  0xd8   :  { %v9020_v44 = vor.u32 %v12819_v38, %v9019_v37  ;;  %v8964_v38 = vor.u32 %v12804_v25, %v8963_v23  ;;  %v8917_v9 = vld [vmem:[#allocation7 + $0x278] sm:$0xf0]  ;;  %v12822_v11 = vld [vmem:[#allocation7 + $0x36c] sm:$0xf]  ;;  %v9011_v32 = vld [vmem:[#allocation7 + $0x328] sm:$0xf] }
  0xd9   :  { %v9045_v12 = vld [vmem:[#allocation7 + $0x378] sm:$0xf0]  ;;  %v12816_v33 = vld [vmem:[#allocation7 + $0x334] sm:$0xf0] }
  0xda   :  { %1315 = vmatpush.bf16.msra.mxu0 %v8956_v47  ;;  %1328 = vmatpush.bf16.msra.mxu1 %v9084_v48  ;;  %v8875_v47 = vld [vmem:[#allocation7 + $0x220] sm:$0xf]  ;;  %v12783_v48 = vld [vmem:[#allocation7 + $0x22c] sm:$0xf0]  ;;  %v9029_v23 = vld [vmem:[#allocation7 + $0x358] sm:$0xf0] }
  0xdb   :  { %1341 = vmatpush.bf16.msra.mxu2 %v8960_v52  ;;  %1354 = vmatpush.bf16.msra.mxu3 %v9088_v54  ;;  %v9003_v52 = vld [vmem:[#allocation7 + $0x320] sm:$0xf]  ;;  %v12815_v54 = vld [vmem:[#allocation7 + $0x32c] sm:$0xf0]  ;;  %v8876_v60 = vor.u32 %v12783_v48, %v8875_v47  ;;  %v8949_v47 = vld [vmem:[#allocation7 + $0x2b8] sm:$0xf0] }
  0xdc   :  { %v9004_v46 = vor.u32 %v12815_v54, %v9003_v52  ;;  %v12830_v48 = vld [vmem:[#allocation7 + $0x3ac] sm:$0xf]  ;;  %v8931_v54 = vld [vmem:[#allocation7 + $0x288] sm:$0xf] }
  0xde   :  { %1316 = vmatpush.bf16.msra.mxu0 %v8940_v62  ;;  %1329 = vmatpush.bf16.msra.mxu1 %v9068_v63  ;;  %v12811_v62 = vld [vmem:[#allocation7 + $0x30c] sm:$0xf0]  ;;  %v8880_v63 = vor.u32 %v12781_v2, %v8877_v10  ;;  %v12796_v2 = vld [vmem:[#allocation7 + $0x294] sm:$0xf0] }
  0xdf   :  { %1342 = vmatpush.bf16.msra.mxu2 %v8944_v4  ;;  %1355 = vmatpush.bf16.msra.mxu3 %v9072_v5  ;;  %v8861_v4 = vld [vmem:[#allocation7 + $0x210] sm:$0xf0]  ;;  %v12809_v5 = vld [vmem:[#allocation7 + $0x304] sm:$0xf]  ;;  %v8988_v14 = vor.u32 %v12811_v62, %v8987_v61  ;;  %v8932_v61 = vor.u32 %v12796_v2, %v8931_v54  ;;  %v9060_v62 = vor.u32 %v12828_v57, %v9059_v56  ;;  %v9227_v54 = vld [vmem:[#allocation7 + $0x4e0] sm:$0xf] }
  0xe0   :  { %v8864_v18 = vor.u32 %v12777_v3, %v8861_v4  ;;  %v12871_v2 = vld [vmem:[#allocation7 + $0x4ec] sm:$0xf0]  ;;  %v12869_v56 = vld [vmem:[#allocation7 + $0x4e4] sm:$0xf] }
  0xe2   :  { %1317 = vmatpush.bf16.msra.mxu0 %v8924_v15  ;;  %1330 = vmatpush.bf16.msra.mxu1 %v9052_v16  ;;  %v8981_v15 = vld [vmem:[#allocation7 + $0x2f8] sm:$0xf0]  ;;  %v12838_v16 = vld [vmem:[#allocation7 + $0x3ec] sm:$0xf] }
  0xe3   :  { %1343 = vmatpush.bf16.msra.mxu2 %v8928_v19  ;;  %1356 = vmatpush.bf16.msra.mxu3 %v9056_v20  ;;  %v8992_v19 = vor.u32 %v12809_v5, %v8989_v7  ;;  %v419_v20 = vsel %vm415_vm5, %v14151_v29, %v417_v42  ;;  %v8984_v28 = vor.u32 %v12806_v13, %v8981_v15  ;;  %v9075_v42 = vld [vmem:[#allocation7 + $0x3a8] sm:$0xf]  ;;  %v12824_v7 = vld [vmem:[#allocation7 + $0x374] sm:$0xf0]  ;;  %vm8518_vm5 = vcmask 7168  }
  0xe4   :  { %877 = vmatmul.bf16.vlgmr.msrb.gmra.mxu0 %v14129_v27  ;;  %903 = vmatmul.bf16.vlgmr.msrb.gmra.mxu2 %v14129_v27  ;;  %v9112_v53 = vor.u32 %v12838_v16, %v9109_v17  ;;  %v14165_v37 = vpack.c.bf16 %v419_v20, %v419_v20  ;;  %v14167_v29 = vpack.c.bf16 %v420_v26, %v420_v26  ;;  %v9043_v5 = vld [vmem:[#allocation7 + $0x368] sm:$0xf]  ;;  %v12788_v15 = vld [vmem:[#allocation7 + $0x254] sm:$0xf0]  ;;  %v12786_v20 = vld [vmem:[#allocation7 + $0x24c] sm:$0xf] }
  0xe5   :  { %890 = vmatmul.bf16.vlgmr.msrb.gmra.mxu1 %v14131_v34  ;;  %916 = vmatmul.bf16.vlgmr.msrb.gmra.mxu3 %v14131_v34  ;;  %v8920_v16 = vor.u32 %v12790_v8, %v8917_v9  ;;  %v9048_v17 = vor.u32 %v12822_v11, %v9045_v12  ;;  %v9339_v8 = vld [vmem:[#allocation7 + $0x5c0] sm:$0xf]  ;;  %v12899_v9 = vld [vmem:[#allocation7 + $0x5cc] sm:$0xf0]  ;;  %v12865_v11 = vld [vmem:[#allocation7 + $0x4c4] sm:$0xf] }
  0xe6   :  { %1318 = vmatpush.bf16.msra.mxu0 %v8908_v30  ;;  %1331 = vmatpush.bf16.msra.mxu1 %v9036_v31  ;;  %v9091_v30 = vld [vmem:[#allocation7 + $0x3c8] sm:$0xf]  ;;  %v12836_v31 = vld [vmem:[#allocation7 + $0x3d4] sm:$0xf0]  ;;  %v9213_v12 = vld [vmem:[#allocation7 + $0x4d0] sm:$0xf0] }
  0xe7   :  { %1344 = vmatpush.bf16.msra.mxu2 %v8912_v35  ;;  %1357 = vmatpush.bf16.msra.mxu3 %v9040_v36  ;;  %v12834_v35 = vld [vmem:[#allocation7 + $0x3cc] sm:$0xf]  ;;  %v9093_v36 = vld [vmem:[#allocation7 + $0x3d8] sm:$0xf0]  ;;  %v9092_v39 = vor.u32 %v12836_v31, %v9091_v30 }
  0xe8   :  { %v9096_v41 = vor.u32 %v12834_v35, %v9093_v36  ;;  %v12782_v35 = vld [vmem:[#allocation7 + $0x22c] sm:$0xf]  ;;  %v8885_v36 = vld [vmem:[#allocation7 + $0x238] sm:$0xf0] }
  0xea   :  { %1319 = vmatpush.bf16.msra.mxu0 %v8892_v43  ;;  %1332 = vmatpush.bf16.msra.mxu1 %v9020_v44  ;;  %v12832_v43 = vld [vmem:[#allocation7 + $0x3b4] sm:$0xf0]  ;;  %v12798_v44 = vld [vmem:[#allocation7 + $0x2ac] sm:$0xf] }
  0xeb   :  { %1345 = vmatpush.bf16.msra.mxu2 %v8896_v49  ;;  %1358 = vmatpush.bf16.msra.mxu3 %v9024_v50  ;;  %v9077_v49 = vld [vmem:[#allocation7 + $0x3b8] sm:$0xf0]  ;;  %v8948_v50 = vor.u32 %v12800_v6, %v8947_v55  ;;  %v9076_v52 = vor.u32 %v12832_v43, %v9075_v42  ;;  %v8952_v10 = vor.u32 %v12798_v44, %v8949_v47  ;;  %v8867_v55 = vld [vmem:[#allocation7 + $0x208] sm:$0xf]  ;;  %v12812_v43 = vld [vmem:[#allocation7 + $0x314] sm:$0xf0] }
  0xec   :  { %v9080_v24 = vor.u32 %v12830_v48, %v9077_v49  ;;  %v8995_v42 = vld [vmem:[#allocation7 + $0x308] sm:$0xf]  ;;  %v8888_v44 = vor.u32 %v12782_v35, %v8885_v36  ;;  %v12778_v48 = vld [vmem:[#allocation7 + $0x20c] sm:$0xf]  ;;  %v8869_v49 = vld [vmem:[#allocation7 + $0x218] sm:$0xf0] }
  0xed   :  { %v9307_v35 = vld [vmem:[#allocation7 + $0x580] sm:$0xf]  ;;  %v12891_v36 = vld [vmem:[#allocation7 + $0x58c] sm:$0xf0] }
  0xee   :  { %1320 = vmatpush.bf16.msra.mxu0 %v8876_v60  ;;  %1333 = vmatpush.bf16.msra.mxu1 %v9004_v46  ;;  %v8933_v60 = vld [vmem:[#allocation7 + $0x298] sm:$0xf0]  ;;  %v12826_v46 = vld [vmem:[#allocation7 + $0x38c] sm:$0xf] }
  0xef   :  { %1346 = vmatpush.bf16.msra.mxu2 %v8880_v63  ;;  %1359 = vmatpush.bf16.msra.mxu3 %v9008_v0  ;;  %v8915_v63 = vld [vmem:[#allocation7 + $0x268] sm:$0xf]  ;;  %v12792_v0 = vld [vmem:[#allocation7 + $0x274] sm:$0xf0]  ;;  %v8936_v3 = vor.u32 %v12794_v58, %v8933_v60  ;;  %v9064_v4 = vor.u32 %v12826_v46, %v9061_v59  ;;  %v8996_v58 = vor.u32 %v12812_v43, %v8995_v42  ;;  %v9229_v60 = vld [vmem:[#allocation7 + $0x4f0] sm:$0xf0] }
  0xf0   :  { %v8916_v13 = vor.u32 %v12792_v0, %v8915_v63  ;;  %v12901_v46 = vld [vmem:[#allocation7 + $0x5e4] sm:$0xf]  ;;  %v9357_v59 = vld [vmem:[#allocation7 + $0x5f0] sm:$0xf0]  ;;  %v9228_v63 = vor.u32 %v12871_v2, %v9227_v54  ;;  %v9163_v42 = vld [vmem:[#allocation7 + $0x460] sm:$0xf] }
  0xf1   :  { %v12855_v43 = vld [vmem:[#allocation7 + $0x46c] sm:$0xf0]  ;;  %v12885_v54 = vld [vmem:[#allocation7 + $0x564] sm:$0xf]  ;;  %v9293_v2 = vld [vmem:[#allocation7 + $0x570] sm:$0xf0] }
  0xf2   :  { %1321 = vmatpush.bf16.msra.mxu0 %v8860_v51  ;;  %1334 = vmatpush.bf16.msra.mxu1 %v8988_v14  ;;  %v9044_v51 = vor.u32 %v12824_v7, %v9043_v5  ;;  %v8899_v14 = vld [vmem:[#allocation7 + $0x248] sm:$0xf]  ;;  %v9232_v5 = vor.u32 %v12869_v56, %v9229_v60  ;;  %v9360_v7 = vor.u32 %v12901_v46, %v9357_v59  ;;  %v9147_v56 = vld [vmem:[#allocation7 + $0x440] sm:$0xf]  ;;  %v12883_v59 = vld [vmem:[#allocation7 + $0x54c] sm:$0xf0] }
  0xf3   :  { %1347 = vmatpush.bf16.msra.mxu2 %v8864_v18  ;;  %1360 = vmatpush.bf16.msra.mxu3 %v8992_v19  ;;  %v9027_v18 = vld [vmem:[#allocation7 + $0x348] sm:$0xf]  ;;  %v12820_v19 = vld [vmem:[#allocation7 + $0x354] sm:$0xf0]  ;;  %v8900_v25 = vor.u32 %v12788_v15, %v8899_v14  ;;  %v9340_v15 = vor.u32 %v12899_v9, %v9339_v8  ;;  %v9296_v60 = vor.u32 %v12885_v54, %v9293_v2  ;;  %v9275_v46 = vld [vmem:[#allocation7 + $0x540] sm:$0xf] }
  0xf4   :  { %v9028_v26 = vor.u32 %v12820_v19, %v9027_v18  ;;  %v9216_v18 = vor.u32 %v12865_v11, %v9213_v12  ;;  %v9259_v11 = vld [vmem:[#allocation7 + $0x520] sm:$0xf]  ;;  %v12879_v12 = vld [vmem:[#allocation7 + $0x52c] sm:$0xf0]  ;;  %v12866_v54 = vld [vmem:[#allocation7 + $0x4cc] sm:$0xf] }
  0xf5   :  { %1322 = vmatmul.bf16.vlgmr.msra.gmra.mxu0 %v14165_v37  ;;  %1335 = vmatmul.bf16.vlgmr.msra.gmra.mxu1 %v14167_v29  ;;  %v9221_v2 = vld [vmem:[#allocation7 + $0x4d8] sm:$0xf0] }
  0xf6   :  { %1366 = vmatpush.bf16.msrb.mxu0 %v8980_v21  ;;  %1379 = vmatpush.bf16.msrb.mxu1 %v9108_v22  ;;  %v8901_v21 = vld [vmem:[#allocation7 + $0x258] sm:$0xf0]  ;;  %v12818_v22 = vld [vmem:[#allocation7 + $0x34c] sm:$0xf] }
  0xf7   :  { %1392 = vmatpush.bf16.msrb.mxu2 %v8984_v28  ;;  %1405 = vmatpush.bf16.msrb.mxu3 %v9112_v53  ;;  %v8883_v28 = vld [vmem:[#allocation7 + $0x228] sm:$0xf]  ;;  %v12784_v53 = vld [vmem:[#allocation7 + $0x234] sm:$0xf0]  ;;  %v8904_v30 = vor.u32 %v12786_v20, %v8901_v21  ;;  %v9032_v31 = vor.u32 %v12818_v22, %v9029_v23  ;;  %v9323_v20 = vld [vmem:[#allocation7 + $0x5a0] sm:$0xf] }
  0xf8   :  { %1348 = vmatmul.bf16.vlgmr.msra.gmra.mxu2 %v14165_v37  ;;  %1361 = vmatmul.bf16.vlgmr.msra.gmra.mxu3 %v14167_v29  ;;  %v8884_v6 = vor.u32 %v12784_v53, %v8883_v28  ;;  %v12895_v21 = vld [vmem:[#allocation7 + $0x5ac] sm:$0xf0]  ;;  %v12861_v22 = vld [vmem:[#allocation7 + $0x4a4] sm:$0xf]  ;;  %v9197_v23 = vld [vmem:[#allocation7 + $0x4b0] sm:$0xf0] }
  0xf9   :  { %v9324_v53 = vor.u32 %v12895_v21, %v9323_v20  ;;  %v9243_v20 = vld [vmem:[#allocation7 + $0x500] sm:$0xf]  ;;  %v12875_v21 = vld [vmem:[#allocation7 + $0x50c] sm:$0xf0] }
  0xfa   :  { %1367 = vmatpush.bf16.msrb.mxu0 %v8964_v38  ;;  %1380 = vmatpush.bf16.msrb.mxu1 %v9092_v39  ;;  %v12814_v38 = vld [vmem:[#allocation7 + $0x32c] sm:$0xf]  ;;  %v9013_v39 = vld [vmem:[#allocation7 + $0x338] sm:$0xf0] }
  0xfb   :  { %1393 = vmatpush.bf16.msrb.mxu2 %v8968_v40  ;;  %1406 = vmatpush.bf16.msrb.mxu3 %v9096_v41  ;;  %v9012_v40 = vor.u32 %v12816_v33, %v9011_v32  ;;  %v12780_v41 = vld [vmem:[#allocation7 + $0x214] sm:$0xf0]  ;;  %v9016_v47 = vor.u32 %v12814_v38, %v9013_v39  ;;  %v9200_v32 = vor.u32 %v12861_v22, %v9197_v23  ;;  %v12857_v38 = vld [vmem:[#allocation7 + $0x484] sm:$0xf]  ;;  %v9181_v39 = vld [vmem:[#allocation7 + $0x490] sm:$0xf0] }
  0xfc   :  { %v8868_v57 = vor.u32 %v12780_v41, %v8867_v55  ;;  %v12889_v55 = vld [vmem:[#allocation7 + $0x584] sm:$0xf]  ;;  %v9308_v41 = vor.u32 %v12891_v36, %v9307_v35  ;;  %v12870_v35 = vld [vmem:[#allocation7 + $0x4ec] sm:$0xf] }
  0xfe   :  { %1368 = vmatpush.bf16.msrb.mxu0 %v8948_v50  ;;  %1381 = vmatpush.bf16.msrb.mxu1 %v9076_v52  ;;  %v12810_v50 = vld [vmem:[#allocation7 + $0x30c] sm:$0xf]  ;;  %v8997_v52 = vld [vmem:[#allocation7 + $0x318] sm:$0xf0] }
  0xff   :  { %1394 = vmatpush.bf16.msrb.mxu2 %v8952_v10  ;;  %1407 = vmatpush.bf16.msrb.mxu3 %v9080_v24  ;;  %v9355_v10 = vld [vmem:[#allocation7 + $0x5e0] sm:$0xf]  ;;  %v12903_v24 = vld [vmem:[#allocation7 + $0x5ec] sm:$0xf0] }
 0x100   :  { %v9356_v0 = vor.u32 %v12903_v24, %v9355_v10  ;;  %v9164_v10 = vor.u32 %v12855_v43, %v9163_v42 }
 0x102   :  { %1369 = vmatpush.bf16.msrb.mxu0 %v8932_v61  ;;  %1382 = vmatpush.bf16.msrb.mxu1 %v9060_v62  ;;  %v8872_v61 = vor.u32 %v12778_v48, %v8869_v49  ;;  %v9000_v62 = vor.u32 %v12810_v50, %v8997_v52  ;;  %v9291_v48 = vld [vmem:[#allocation7 + $0x560] sm:$0xf]  ;;  %v12887_v49 = vld [vmem:[#allocation7 + $0x56c] sm:$0xf0]  ;;  %v12853_v50 = vld [vmem:[#allocation7 + $0x464] sm:$0xf] }
 0x103   :  { %1395 = vmatpush.bf16.msrb.mxu2 %v8936_v3  ;;  %1408 = vmatpush.bf16.msrb.mxu3 %v9064_v4  ;;  %v9211_v3 = vld [vmem:[#allocation7 + $0x4c0] sm:$0xf]  ;;  %v12867_v4 = vld [vmem:[#allocation7 + $0x4cc] sm:$0xf0]  ;;  %v9165_v52 = vld [vmem:[#allocation7 + $0x470] sm:$0xf0]  ;;  %v9292_v24 = vor.u32 %v12887_v49, %v9291_v48 }
 0x104   :  { %v9212_v14 = vor.u32 %v12867_v4, %v9211_v3  ;;  %v9276_v4 = vor.u32 %v12883_v59, %v9275_v46  ;;  %v9224_v46 = vor.u32 %v12866_v54, %v9221_v2  ;;  %v9267_v54 = vld [vmem:[#allocation7 + $0x528] sm:$0xf]  ;;  %v12880_v2 = vld [vmem:[#allocation7 + $0x534] sm:$0xf0] }
 0x106   :  { %1370 = vmatpush.bf16.msrb.mxu0 %v8916_v13  ;;  %1383 = vmatpush.bf16.msrb.mxu1 %v9044_v51  ;;  %v12897_v13 = vld [vmem:[#allocation7 + $0x5c4] sm:$0xf]  ;;  %v9341_v51 = vld [vmem:[#allocation7 + $0x5d0] sm:$0xf0] }
 0x107   :  { %1396 = vmatpush.bf16.msrb.mxu2 %v8920_v16  ;;  %1409 = vmatpush.bf16.msrb.mxu3 %v9048_v17  ;;  %v9195_v16 = vld [vmem:[#allocation7 + $0x4a0] sm:$0xf]  ;;  %v12863_v17 = vld [vmem:[#allocation7 + $0x4ac] sm:$0xf0]  ;;  %v9344_v19 = vor.u32 %v12897_v13, %v9341_v51  ;;  %v12845_v13 = vld [vmem:[#allocation7 + $0x424] sm:$0xf] }
 0x108   :  { %v9196_v28 = vor.u32 %v12863_v17, %v9195_v16  ;;  %v9133_v51 = vld [vmem:[#allocation7 + $0x430] sm:$0xf0]  ;;  %v9115_v16 = vld [vmem:[#allocation7 + $0x400] sm:$0xf] }
 0x109   :  { %v9136_v22 = vor.u32 %v12845_v13, %v9133_v51  ;;  %v9315_v13 = vld [vmem:[#allocation7 + $0x588] sm:$0xf]  ;;  %v12892_v51 = vld [vmem:[#allocation7 + $0x594] sm:$0xf0] }
 0x10a   :  { %1371 = vmatpush.bf16.msrb.mxu0 %v8900_v25  ;;  %1384 = vmatpush.bf16.msrb.mxu1 %v9028_v26  ;;  %v12893_v25 = vld [vmem:[#allocation7 + $0x5a4] sm:$0xf]  ;;  %v9325_v26 = vld [vmem:[#allocation7 + $0x5b0] sm:$0xf0] }
 0x10b   :  { %1397 = vmatpush.bf16.msrb.mxu2 %v8904_v30  ;;  %1410 = vmatpush.bf16.msrb.mxu3 %v9032_v31  ;;  %v9179_v30 = vld [vmem:[#allocation7 + $0x480] sm:$0xf]  ;;  %v12859_v31 = vld [vmem:[#allocation7 + $0x48c] sm:$0xf0]  ;;  %v9328_v33 = vor.u32 %v12893_v25, %v9325_v26  ;;  %v12841_v25 = vld [vmem:[#allocation7 + $0x404] sm:$0xf] }
 0x10c   :  { %v9117_v26 = vld [vmem:[#allocation7 + $0x410] sm:$0xf0] }
 0x10e   :  { %1372 = vmatpush.bf16.msrb.mxu0 %v8884_v6  ;;  %1385 = vmatpush.bf16.msrb.mxu1 %v9012_v40  ;;  %v9309_v6 = vld [vmem:[#allocation7 + $0x590] sm:$0xf0]  ;;  %v9180_v40 = vor.u32 %v12859_v31, %v9179_v30  ;;  %v9235_v30 = vld [vmem:[#allocation7 + $0x4e8] sm:$0xf]  ;;  %v12872_v31 = vld [vmem:[#allocation7 + $0x4f4] sm:$0xf0] }
 0x10f   :  { %1398 = vmatpush.bf16.msrb.mxu2 %v8888_v44  ;;  %1411 = vmatpush.bf16.msrb.mxu3 %v9016_v47  ;;  %v9184_v44 = vor.u32 %v12857_v38, %v9181_v39  ;;  %v9312_v47 = vor.u32 %v12889_v55, %v9309_v6  ;;  %v9244_v38 = vor.u32 %v12875_v21, %v9243_v20  ;;  %v9237_v39 = vld [vmem:[#allocation7 + $0x4f8] sm:$0xf0]  ;;  %v12902_v55 = vld [vmem:[#allocation7 + $0x5ec] sm:$0xf]  ;;  %v9171_v20 = vld [vmem:[#allocation7 + $0x468] sm:$0xf] }
 0x110   :  { %v9365_v6 = vld [vmem:[#allocation7 + $0x5f8] sm:$0xf0]  ;;  %v9236_v42 = vor.u32 %v12872_v31, %v9235_v30  ;;  %v9240_v48 = vor.u32 %v12870_v35, %v9237_v39  ;;  %v12856_v21 = vld [vmem:[#allocation7 + $0x474] sm:$0xf0]  ;;  %v12886_v30 = vld [vmem:[#allocation7 + $0x56c] sm:$0xf] }
 0x111   :  { %v9368_v49 = vor.u32 %v12902_v55, %v9365_v6  ;;  %v9301_v31 = vld [vmem:[#allocation7 + $0x578] sm:$0xf0]  ;;  %v9155_v35 = vld [vmem:[#allocation7 + $0x448] sm:$0xf]  ;;  %v12884_v6 = vld [vmem:[#allocation7 + $0x554] sm:$0xf0] }
 0x112   :  { %1373 = vmatpush.bf16.msrb.mxu0 %v8868_v57  ;;  %1386 = vmatpush.bf16.msrb.mxu1 %v8996_v58  ;;  %v12851_v57 = vld [vmem:[#allocation7 + $0x44c] sm:$0xf0]  ;;  %v9168_v58 = vor.u32 %v12853_v50, %v9165_v52  ;;  %v9347_v50 = vld [vmem:[#allocation7 + $0x5c8] sm:$0xf]  ;;  %v12900_v52 = vld [vmem:[#allocation7 + $0x5d4] sm:$0xf0]  ;;  %v9304_v39 = vor.u32 %v12886_v30, %v9301_v31 }
 0x113   :  { %1399 = vmatpush.bf16.msrb.mxu2 %v8872_v61  ;;  %1412 = vmatpush.bf16.msrb.mxu3 %v9000_v62  ;;  %v12849_v61 = vld [vmem:[#allocation7 + $0x444] sm:$0xf]  ;;  %v9149_v62 = vld [vmem:[#allocation7 + $0x450] sm:$0xf0]  ;;  %v9148_v3 = vor.u32 %v12851_v57, %v9147_v56  ;;  %v9348_v57 = vor.u32 %v12900_v52, %v9347_v50  ;;  %v9283_v55 = vld [vmem:[#allocation7 + $0x548] sm:$0xf] }
 0x114   :  { %v9152_v8 = vor.u32 %v12849_v61, %v9149_v62  ;;  %v9331_v61 = vld [vmem:[#allocation7 + $0x5a8] sm:$0xf]  ;;  %v12896_v62 = vld [vmem:[#allocation7 + $0x5b4] sm:$0xf0]  ;;  %v12929_v30 = vld [vmem:[#allocation7 + $0x6c4] sm:$0xf] }
 0x115   :  { %1374 = vmatmul.bf16.vlgmr.msrb.gmra.mxu0 %v14165_v37  ;;  %1387 = vmatmul.bf16.vlgmr.msrb.gmra.mxu1 %v14167_v29  ;;  %v9469_v31 = vld [vmem:[#allocation7 + $0x6d0] sm:$0xf0] }
 0x116   :  { %1807 = vmatpush.bf16.msra.mxu0 %v9228_v63  ;;  %1820 = vmatpush.bf16.msra.mxu1 %v9356_v0  ;;  %v12881_v63 = vld [vmem:[#allocation7 + $0x544] sm:$0xf]  ;;  %v9277_v0 = vld [vmem:[#allocation7 + $0x550] sm:$0xf0] }
 0x117   :  { %1833 = vmatpush.bf16.msra.mxu2 %v9232_v5  ;;  %1846 = vmatpush.bf16.msra.mxu3 %v9360_v7  ;;  %v9131_v5 = vld [vmem:[#allocation7 + $0x420] sm:$0xf]  ;;  %v12847_v7 = vld [vmem:[#allocation7 + $0x42c] sm:$0xf0]  ;;  %v9280_v9 = vor.u32 %v12881_v63, %v9277_v0  ;;  %v12862_v63 = vld [vmem:[#allocation7 + $0x4ac] sm:$0xf] }
 0x118   :  { %1400 = vmatmul.bf16.vlgmr.msrb.gmra.mxu2 %v14165_v37  ;;  %1413 = vmatmul.bf16.vlgmr.msrb.gmra.mxu3 %v14167_v29  ;;  %v9132_v17 = vor.u32 %v12847_v7, %v9131_v5  ;;  %v9205_v0 = vld [vmem:[#allocation7 + $0x4b8] sm:$0xf0]  ;;  %v9332_v7 = vor.u32 %v12896_v62, %v9331_v61  ;;  %v9251_v61 = vld [vmem:[#allocation7 + $0x508] sm:$0xf]  ;;  %v12876_v62 = vld [vmem:[#allocation7 + $0x514] sm:$0xf0] }
 0x11a   :  { %1808 = vmatpush.bf16.msra.mxu0 %v9212_v14  ;;  %1821 = vmatpush.bf16.msra.mxu1 %v9340_v15  ;;  %v12877_v14 = vld [vmem:[#allocation7 + $0x524] sm:$0xf]  ;;  %v9261_v15 = vld [vmem:[#allocation7 + $0x530] sm:$0xf0] }
 0x11b   :  { %1834 = vmatpush.bf16.msra.mxu2 %v9216_v18  ;;  %1847 = vmatpush.bf16.msra.mxu3 %v9344_v19  ;;  %v9260_v18 = vor.u32 %v12879_v12, %v9259_v11  ;;  %v12843_v19 = vld [vmem:[#allocation7 + $0x40c] sm:$0xf0]  ;;  %v9264_v23 = vor.u32 %v12877_v14, %v9261_v15  ;;  %v9208_v11 = vor.u32 %v12862_v63, %v9205_v0  ;;  %v12858_v14 = vld [vmem:[#allocation7 + $0x48c] sm:$0xf]  ;;  %v9189_v15 = vld [vmem:[#allocation7 + $0x498] sm:$0xf0] }
 0x11c   :  { %v9116_v36 = vor.u32 %v12843_v19, %v9115_v16  ;;  %v12890_v16 = vld [vmem:[#allocation7 + $0x58c] sm:$0xf]  ;;  %v9316_v19 = vor.u32 %v12892_v51, %v9315_v13  ;;  %v12933_v13 = vld [vmem:[#allocation7 + $0x6e4] sm:$0xf] }
 0x11e   :  { %1809 = vmatpush.bf16.msra.mxu0 %v9196_v28  ;;  %1822 = vmatpush.bf16.msra.mxu1 %v9324_v53  ;;  %v12873_v28 = vld [vmem:[#allocation7 + $0x504] sm:$0xf]  ;;  %v9245_v53 = vld [vmem:[#allocation7 + $0x510] sm:$0xf0] }
 0x11f   :  { %1835 = vmatpush.bf16.msra.mxu2 %v9200_v32  ;;  %1848 = vmatpush.bf16.msra.mxu3 %v9328_v33  ;;  %v9363_v32 = vld [vmem:[#allocation7 + $0x5e8] sm:$0xf]  ;;  %v12904_v33 = vld [vmem:[#allocation7 + $0x5f4] sm:$0xf0] }
 0x120   :  { %v9364_v43 = vor.u32 %v12904_v33, %v9363_v32  ;;  %v9172_v32 = vor.u32 %v12856_v21, %v9171_v20 }
 0x122   :  { %1810 = vmatpush.bf16.msra.mxu0 %v9180_v40  ;;  %1823 = vmatpush.bf16.msra.mxu1 %v9308_v41  ;;  %v9120_v40 = vor.u32 %v12841_v25, %v9117_v26  ;;  %v9248_v41 = vor.u32 %v12873_v28, %v9245_v53  ;;  %v9299_v25 = vld [vmem:[#allocation7 + $0x568] sm:$0xf]  ;;  %v12888_v26 = vld [vmem:[#allocation7 + $0x574] sm:$0xf0]  ;;  %v12854_v28 = vld [vmem:[#allocation7 + $0x46c] sm:$0xf] }
 0x123   :  { %1836 = vmatpush.bf16.msra.mxu2 %v9184_v44  ;;  %1849 = vmatpush.bf16.msra.mxu3 %v9312_v47  ;;  %v9219_v44 = vld [vmem:[#allocation7 + $0x4c8] sm:$0xf]  ;;  %v12868_v47 = vld [vmem:[#allocation7 + $0x4d4] sm:$0xf0]  ;;  %v9173_v53 = vld [vmem:[#allocation7 + $0x478] sm:$0xf0]  ;;  %v9300_v33 = vor.u32 %v12888_v26, %v9299_v25 }
 0x124   :  { %v9220_v56 = vor.u32 %v12868_v47, %v9219_v44  ;;  %v9284_v47 = vor.u32 %v12884_v6, %v9283_v55  ;;  %v9472_v55 = vor.u32 %v12929_v30, %v9469_v31 }
 0x126   :  { %1811 = vmatpush.bf16.msra.mxu0 %v9164_v10  ;;  %1824 = vmatpush.bf16.msra.mxu1 %v9292_v24  ;;  %v12898_v10 = vld [vmem:[#allocation7 + $0x5cc] sm:$0xf]  ;;  %v9349_v24 = vld [vmem:[#allocation7 + $0x5d8] sm:$0xf0] }
 0x127   :  { %1837 = vmatpush.bf16.msra.mxu2 %v9168_v58  ;;  %1850 = vmatpush.bf16.msra.mxu3 %v9296_v60  ;;  %v9203_v58 = vld [vmem:[#allocation7 + $0x4a8] sm:$0xf]  ;;  %v12864_v60 = vld [vmem:[#allocation7 + $0x4b4] sm:$0xf0]  ;;  %v9352_v59 = vor.u32 %v12898_v10, %v9349_v24  ;;  %v12846_v10 = vld [vmem:[#allocation7 + $0x42c] sm:$0xf] }
 0x128   :  { %v9204_v5 = vor.u32 %v12864_v60, %v9203_v58  ;;  %v9141_v24 = vld [vmem:[#allocation7 + $0x438] sm:$0xf0]  ;;  %v9123_v58 = vld [vmem:[#allocation7 + $0x408] sm:$0xf] }
 0x129   :  { %v9144_v63 = vor.u32 %v12846_v10, %v9141_v24 }
 0x12a   :  { %1812 = vmatpush.bf16.msra.mxu0 %v9148_v3  ;;  %1825 = vmatpush.bf16.msra.mxu1 %v9276_v4  ;;  %v12894_v3 = vld [vmem:[#allocation7 + $0x5ac] sm:$0xf]  ;;  %v9333_v4 = vld [vmem:[#allocation7 + $0x5b8] sm:$0xf0] }
 0x12b   :  { %1838 = vmatpush.bf16.msra.mxu2 %v9152_v8  ;;  %1851 = vmatpush.bf16.msra.mxu3 %v9280_v9  ;;  %v9187_v8 = vld [vmem:[#allocation7 + $0x488] sm:$0xf]  ;;  %v12860_v9 = vld [vmem:[#allocation7 + $0x494] sm:$0xf0]  ;;  %v9336_v12 = vor.u32 %v12894_v3, %v9333_v4  ;;  %v12842_v3 = vld [vmem:[#allocation7 + $0x40c] sm:$0xf] }
 0x12c   :  { %v9125_v4 = vld [vmem:[#allocation7 + $0x418] sm:$0xf0] }
 0x12e   :  { %1813 = vmatpush.bf16.msra.mxu0 %v9132_v17  ;;  %1826 = vmatpush.bf16.msra.mxu1 %v9260_v18  ;;  %v9317_v17 = vld [vmem:[#allocation7 + $0x598] sm:$0xf0]  ;;  %v9188_v18 = vor.u32 %v12860_v9, %v9187_v8  ;;  %v9483_v8 = vld [vmem:[#allocation7 + $0x6e0] sm:$0xf]  ;;  %v12935_v9 = vld [vmem:[#allocation7 + $0x6ec] sm:$0xf0] }
 0x12f   :  { %1839 = vmatpush.bf16.msra.mxu2 %v9136_v22  ;;  %1852 = vmatpush.bf16.msra.mxu3 %v9264_v23  ;;  %v9192_v22 = vor.u32 %v12858_v14, %v9189_v15  ;;  %v9320_v23 = vor.u32 %v12890_v16, %v9317_v17  ;;  %v9252_v14 = vor.u32 %v12876_v62, %v9251_v61  ;;  %v9485_v15 = vld [vmem:[#allocation7 + $0x6f0] sm:$0xf0]  ;;  %v12965_v16 = vld [vmem:[#allocation7 + $0x7e4] sm:$0xf]  ;;  %v9419_v62 = vld [vmem:[#allocation7 + $0x660] sm:$0xf] }
 0x130   :  { %v9613_v17 = vld [vmem:[#allocation7 + $0x7f0] sm:$0xf0]  ;;  %v9484_v20 = vor.u32 %v12935_v9, %v9483_v8  ;;  %v9488_v25 = vor.u32 %v12933_v13, %v9485_v15  ;;  %v12917_v8 = vld [vmem:[#allocation7 + $0x664] sm:$0xf] }
 0x131   :  { %v9616_v26 = vor.u32 %v12965_v16, %v9613_v17  ;;  %v9549_v13 = vld [vmem:[#allocation7 + $0x770] sm:$0xf0] }
 0x132   :  { %1814 = vmatpush.bf16.msra.mxu0 %v9116_v36  ;;  %1827 = vmatpush.bf16.msra.mxu1 %v9244_v38  ;;  %v12852_v36 = vld [vmem:[#allocation7 + $0x454] sm:$0xf0]  ;;  %v9176_v38 = vor.u32 %v12854_v28, %v9173_v53  ;;  %v9595_v28 = vld [vmem:[#allocation7 + $0x7c0] sm:$0xf]  ;;  %v12963_v53 = vld [vmem:[#allocation7 + $0x7cc] sm:$0xf0] }
 0x133   :  { %1840 = vmatpush.bf16.msra.mxu2 %v9120_v40  ;;  %1853 = vmatpush.bf16.msra.mxu3 %v9248_v41  ;;  %v12850_v40 = vld [vmem:[#allocation7 + $0x44c] sm:$0xf]  ;;  %v9157_v41 = vld [vmem:[#allocation7 + $0x458] sm:$0xf0]  ;;  %v9156_v44 = vor.u32 %v12852_v36, %v9155_v35  ;;  %v9596_v36 = vor.u32 %v12963_v53, %v9595_v28  ;;  %v12945_v28 = vld [vmem:[#allocation7 + $0x744] sm:$0xf] }
 0x134   :  { %v9160_v50 = vor.u32 %v12850_v40, %v9157_v41  ;;  %v9579_v40 = vld [vmem:[#allocation7 + $0x7a0] sm:$0xf]  ;;  %v12959_v41 = vld [vmem:[#allocation7 + $0x7ac] sm:$0xf0]  ;;  %v9533_v53 = vld [vmem:[#allocation7 + $0x750] sm:$0xf0] }
 0x135   :  { %1815 = vmatmul.bf16.vlgmr.msra.gmra.mxu0 %v14129_v27  ;;  %1828 = vmatmul.bf16.vlgmr.msra.gmra.mxu1 %v14131_v34 }
 0x136   :  { %1859 = vmatpush.bf16.msrb.mxu0 %v9236_v42  ;;  %1872 = vmatpush.bf16.msrb.mxu1 %v9364_v43  ;;  %v12882_v42 = vld [vmem:[#allocation7 + $0x54c] sm:$0xf]  ;;  %v9285_v43 = vld [vmem:[#allocation7 + $0x558] sm:$0xf0] }
 0x137   :  { %1885 = vmatpush.bf16.msrb.mxu2 %v9240_v48  ;;  %1898 = vmatpush.bf16.msrb.mxu3 %v9368_v49  ;;  %v9139_v48 = vld [vmem:[#allocation7 + $0x428] sm:$0xf]  ;;  %v12848_v49 = vld [vmem:[#allocation7 + $0x434] sm:$0xf0]  ;;  %v9288_v52 = vor.u32 %v12882_v42, %v9285_v43  ;;  %v12925_v42 = vld [vmem:[#allocation7 + $0x6a4] sm:$0xf] }
 0x138   :  { %1841 = vmatmul.bf16.vlgmr.msra.gmra.mxu2 %v14129_v27  ;;  %1854 = vmatmul.bf16.vlgmr.msra.gmra.mxu3 %v14131_v34  ;;  %v9140_v60 = vor.u32 %v12848_v49, %v9139_v48  ;;  %v9453_v43 = vld [vmem:[#allocation7 + $0x6b0] sm:$0xf0] }
 0x139   :  { %v9456_v10 = vor.u32 %v12925_v42, %v9453_v43  ;;  %v12941_v42 = vld [vmem:[#allocation7 + $0x724] sm:$0xf]  ;;  %v9517_v43 = vld [vmem:[#allocation7 + $0x730] sm:$0xf0] }
 0x13a   :  { %1860 = vmatpush.bf16.msrb.mxu0 %v9220_v56  ;;  %1873 = vmatpush.bf16.msrb.mxu1 %v9348_v57  ;;  %v12878_v56 = vld [vmem:[#allocation7 + $0x52c] sm:$0xf]  ;;  %v9269_v57 = vld [vmem:[#allocation7 + $0x538] sm:$0xf0] }
 0x13b   :  { %1886 = vmatpush.bf16.msrb.mxu2 %v9224_v46  ;;  %1899 = vmatpush.bf16.msrb.mxu3 %v9352_v59  ;;  %v9268_v46 = vor.u32 %v12880_v2, %v9267_v54  ;;  %v12844_v59 = vld [vmem:[#allocation7 + $0x414] sm:$0xf0]  ;;  %v9272_v0 = vor.u32 %v12878_v56, %v9269_v57  ;;  %v9435_v54 = vld [vmem:[#allocation7 + $0x680] sm:$0xf]  ;;  %v12923_v2 = vld [vmem:[#allocation7 + $0x68c] sm:$0xf0] }
 0x13c   :  { %v9124_v51 = vor.u32 %v12844_v59, %v9123_v58  ;;  %v9563_v57 = vld [vmem:[#allocation7 + $0x780] sm:$0xf]  ;;  %v12955_v58 = vld [vmem:[#allocation7 + $0x78c] sm:$0xf0]  ;;  %v9436_v59 = vor.u32 %v12923_v2, %v9435_v54 }
 0x13d   :  { %v9564_v61 = vor.u32 %v12955_v58, %v9563_v57  ;;  %v9499_v54 = vld [vmem:[#allocation7 + $0x700] sm:$0xf]  ;;  %v12939_v2 = vld [vmem:[#allocation7 + $0x70c] sm:$0xf0]  ;;  %v12905_v58 = vld [vmem:[#allocation7 + $0x604] sm:$0xf] }
 0x13e   :  { %1861 = vmatpush.bf16.msrb.mxu0 %v9204_v5  ;;  %1874 = vmatpush.bf16.msrb.mxu1 %v9332_v7  ;;  %v12874_v5 = vld [vmem:[#allocation7 + $0x50c] sm:$0xf]  ;;  %v9253_v7 = vld [vmem:[#allocation7 + $0x518] sm:$0xf0] }
 0x13f   :  { %1887 = vmatpush.bf16.msrb.mxu2 %v9208_v11  ;;  %1900 = vmatpush.bf16.msrb.mxu3 %v9336_v12  ;;  %v9611_v11 = vld [vmem:[#allocation7 + $0x7e0] sm:$0xf]  ;;  %v12967_v12 = vld [vmem:[#allocation7 + $0x7ec] sm:$0xf0] }
 0x140   :  { %v9612_v21 = vor.u32 %v12967_v12, %v9611_v11  ;;  %v9421_v11 = vld [vmem:[#allocation7 + $0x670] sm:$0xf0]  ;;  %v12949_v12 = vld [vmem:[#allocation7 + $0x764] sm:$0xf] }
 0x142   :  { %1862 = vmatpush.bf16.msrb.mxu0 %v9188_v18  ;;  %1875 = vmatpush.bf16.msrb.mxu1 %v9316_v19  ;;  %v9128_v18 = vor.u32 %v12842_v3, %v9125_v4  ;;  %v9256_v19 = vor.u32 %v12874_v5, %v9253_v7  ;;  %v9547_v5 = vld [vmem:[#allocation7 + $0x760] sm:$0xf]  ;;  %v12951_v7 = vld [vmem:[#allocation7 + $0x76c] sm:$0xf0] }
 0x143   :  { %1888 = vmatpush.bf16.msrb.mxu2 %v9192_v22  ;;  %1901 = vmatpush.bf16.msrb.mxu3 %v9320_v23  ;;  %v9467_v22 = vld [vmem:[#allocation7 + $0x6c0] sm:$0xf]  ;;  %v12931_v23 = vld [vmem:[#allocation7 + $0x6cc] sm:$0xf0]  ;;  %v9548_v16 = vor.u32 %v12951_v7, %v9547_v5  ;;  %v12966_v5 = vld [vmem:[#allocation7 + $0x7ec] sm:$0xf] }
 0x144   :  { %v9468_v35 = vor.u32 %v12931_v23, %v9467_v22  ;;  %v9531_v22 = vld [vmem:[#allocation7 + $0x740] sm:$0xf]  ;;  %v12947_v23 = vld [vmem:[#allocation7 + $0x74c] sm:$0xf0]  ;;  %v9621_v7 = vld [vmem:[#allocation7 + $0x7f8] sm:$0xf0] }
 0x145   :  { %v9532_v31 = vor.u32 %v12947_v23, %v9531_v22  ;;  %v12964_v22 = vld [vmem:[#allocation7 + $0x7d4] sm:$0xf0]  ;;  %v12930_v23 = vld [vmem:[#allocation7 + $0x6cc] sm:$0xf] }
 0x146   :  { %1863 = vmatpush.bf16.msrb.mxu0 %v9172_v32  ;;  %1876 = vmatpush.bf16.msrb.mxu1 %v9300_v33  ;;  %v12961_v32 = vld [vmem:[#allocation7 + $0x7c4] sm:$0xf]  ;;  %v9597_v33 = vld [vmem:[#allocation7 + $0x7d0] sm:$0xf0] }
 0x147   :  { %1889 = vmatpush.bf16.msrb.mxu2 %v9176_v38  ;;  %1902 = vmatpush.bf16.msrb.mxu3 %v9304_v39  ;;  %v9451_v38 = vld [vmem:[#allocation7 + $0x6a0] sm:$0xf]  ;;  %v12927_v39 = vld [vmem:[#allocation7 + $0x6ac] sm:$0xf0]  ;;  %v9600_v6 = vor.u32 %v12961_v32, %v9597_v33 }
 0x148   :  { %v9452_v49 = vor.u32 %v12927_v39, %v9451_v38  ;;  %v9387_v32 = vld [vmem:[#allocation7 + $0x620] sm:$0xf]  ;;  %v12911_v33 = vld [vmem:[#allocation7 + $0x62c] sm:$0xf0] }
 0x149   :  { %v9515_v39 = vld [vmem:[#allocation7 + $0x720] sm:$0xf] }
 0x14a   :  { %1864 = vmatpush.bf16.msrb.mxu0 %v9156_v44  ;;  %1877 = vmatpush.bf16.msrb.mxu1 %v9284_v47  ;;  %v12957_v44 = vld [vmem:[#allocation7 + $0x7a4] sm:$0xf]  ;;  %v9581_v47 = vld [vmem:[#allocation7 + $0x7b0] sm:$0xf0] }
 0x14b   :  { %1890 = vmatpush.bf16.msrb.mxu2 %v9160_v50  ;;  %1903 = vmatpush.bf16.msrb.mxu3 %v9288_v52  ;;  %v9580_v50 = vor.u32 %v12959_v41, %v9579_v40  ;;  %v9584_v24 = vor.u32 %v12957_v44, %v9581_v47  ;;  %v9389_v41 = vld [vmem:[#allocation7 + $0x630] sm:$0xf0]  ;;  %v9371_v47 = vld [vmem:[#allocation7 + $0x600] sm:$0xf] }
 0x14e   :  { %1865 = vmatpush.bf16.msrb.mxu0 %v9140_v60  ;;  %1878 = vmatpush.bf16.msrb.mxu1 %v9268_v46  ;;  %v12921_v60 = vld [vmem:[#allocation7 + $0x684] sm:$0xf] }
 0x14f   :  { %1891 = vmatpush.bf16.msrb.mxu2 %v9144_v63  ;;  %1904 = vmatpush.bf16.msrb.mxu3 %v9272_v0  ;;  %v12953_v46 = vld [vmem:[#allocation7 + $0x784] sm:$0xf]  ;;  %v12919_v63 = vld [vmem:[#allocation7 + $0x66c] sm:$0xf0] }
 0x150   :  { %v9420_v15 = vor.u32 %v12919_v63, %v9419_v62  ;;  %v12968_v62 = vld [vmem:[#allocation7 + $0x7f4] sm:$0xf0]  ;;  %v12934_v63 = vld [vmem:[#allocation7 + $0x6ec] sm:$0xf] }
 0x151   :  { %v826_v48 = vpop.f32.mrf.mxu0 }
 0x152   :  { %1866 = vmatpush.bf16.msrb.mxu0 %v9124_v51  ;;  %1879 = vmatpush.bf16.msrb.mxu1 %v9252_v14  ;;  %v839_v52 = vpop.f32.mrf.mxu1 }
 0x153   :  { %1892 = vmatpush.bf16.msrb.mxu2 %v9128_v18  ;;  %1905 = vmatpush.bf16.msrb.mxu3 %v9256_v19  ;;  %v14185_v56 = vadd.f32 %v839_v52, %v826_v48  ;;  %v9403_v18 = vld [vmem:[#allocation7 + $0x640] sm:$0xf]  ;;  %v12915_v19 = vld [vmem:[#allocation7 + $0x64c] sm:$0xf0]  ;;  %v9388_v48 = vor.u32 %v12911_v33, %v9387_v32  ;;  %v9459_v32 = vld [vmem:[#allocation7 + $0x6a8] sm:$0xf] }
 0x154   :  { %v9404_v30 = vor.u32 %v12915_v19, %v9403_v18  ;;  %v12907_v52 = vld [vmem:[#allocation7 + $0x60c] sm:$0xf0]  ;;  %v9624_v18 = vor.u32 %v12966_v5, %v9621_v7  ;;  %v12928_v33 = vld [vmem:[#allocation7 + $0x6b4] sm:$0xf0]  ;;  %v9555_v5 = vld [vmem:[#allocation7 + $0x768] sm:$0xf] }
 0x155   :  { %1867 = vmatmul.bf16.vlgmr.msrb.gmra.mxu0 %v14129_v27  ;;  %1880 = vmatmul.bf16.vlgmr.msrb.gmra.mxu1 %v14131_v34  ;;  %v12952_v7 = vld [vmem:[#allocation7 + $0x774] sm:$0xf0] }
 0x156   :  { %2300 = vmatpush.bf16.msra.mxu0 %v9484_v20  ;;  %2313 = vmatpush.bf16.msra.mxu1 %v9612_v21  ;;  %v9424_v20 = vor.u32 %v12917_v8, %v9421_v11  ;;  %v9552_v21 = vor.u32 %v12949_v12, %v9549_v13 }
 0x157   :  { %2326 = vmatpush.bf16.msra.mxu2 %v9488_v25  ;;  %2339 = vmatpush.bf16.msra.mxu3 %v9616_v26  ;;  %v852_v4 = vpop.f32.mrf.mxu2  ;;  %v12913_v25 = vld [vmem:[#allocation7 + $0x644] sm:$0xf]  ;;  %v9405_v26 = vld [vmem:[#allocation7 + $0x650] sm:$0xf0] }
 0x158   :  { %1893 = vmatmul.bf16.vlgmr.msrb.gmra.mxu2 %v14129_v27  ;;  %1906 = vmatmul.bf16.vlgmr.msrb.gmra.mxu3 %v14131_v34  ;;  %v9437_v27 = vld [vmem:[#allocation7 + $0x690] sm:$0xf0]  ;;  %v865_v9 = vpop.f32.mrf.mxu3 }
 0x159   :  { %v9565_v34 = vld [vmem:[#allocation7 + $0x790] sm:$0xf0]  ;;  %v9440_v0 = vor.u32 %v12921_v60, %v9437_v27  ;;  %v14187_v51 = vadd.f32 %v865_v9, %v852_v4  ;;  %v828_v14 = vpop.f32.mrf.mxu0  ;;  %v12937_v27 = vld [vmem:[#allocation7 + $0x704] sm:$0xf]  ;;  %v9493_v4 = vld [vmem:[#allocation7 + $0x6f8] sm:$0xf0] }
 0x15a   :  { %2301 = vmatpush.bf16.msra.mxu0 %v9468_v35  ;;  %2314 = vmatpush.bf16.msra.mxu1 %v9596_v36  ;;  %v9568_v3 = vor.u32 %v12953_v46, %v9565_v34  ;;  %v841_v17 = vpop.f32.mrf.mxu1  ;;  %v9408_v35 = vor.u32 %v12913_v25, %v9405_v26  ;;  %v9536_v36 = vor.u32 %v12945_v28, %v9533_v53  ;;  %v9373_v60 = vld [vmem:[#allocation7 + $0x610] sm:$0xf0]  ;;  %v9491_v34 = vld [vmem:[#allocation7 + $0x6e8] sm:$0xf]  ;;  %v9477_v26 = vld [vmem:[#allocation7 + $0x6d8] sm:$0xf0] }
 0x15b   :  { %2327 = vmatpush.bf16.msra.mxu2 %v9472_v55  ;;  %2340 = vmatpush.bf16.msra.mxu3 %v9600_v6  ;;  %v12943_v55 = vld [vmem:[#allocation7 + $0x72c] sm:$0xf0]  ;;  %v12909_v6 = vld [vmem:[#allocation7 + $0x624] sm:$0xf]  ;;  %v9501_v46 = vld [vmem:[#allocation7 + $0x710] sm:$0xf0]  ;;  %v9376_v8 = vor.u32 %v12905_v58, %v9373_v60  ;;  %v9496_v17 = vor.u32 %v12934_v63, %v9493_v4 }
 0x15c   :  { %v9504_v9 = vor.u32 %v12937_v27, %v9501_v46  ;;  %v12962_v28 = vld [vmem:[#allocation7 + $0x7cc] sm:$0xf]  ;;  %v9605_v53 = vld [vmem:[#allocation7 + $0x7d8] sm:$0xf0]  ;;  %v9427_v63 = vld [vmem:[#allocation7 + $0x668] sm:$0xf] }
 0x15d   :  { %v9445_v58 = vld [vmem:[#allocation7 + $0x698] sm:$0xf0]  ;;  %v12954_v60 = vld [vmem:[#allocation7 + $0x78c] sm:$0xf] }
 0x15e   :  { %2302 = vmatpush.bf16.msra.mxu0 %v9452_v49  ;;  %2315 = vmatpush.bf16.msra.mxu1 %v9580_v50  ;;  %v9516_v49 = vor.u32 %v12943_v55, %v9515_v39  ;;  %v12960_v39 = vld [vmem:[#allocation7 + $0x7b4] sm:$0xf0]  ;;  %v12926_v55 = vld [vmem:[#allocation7 + $0x6ac] sm:$0xf]  ;;  %v9573_v27 = vld [vmem:[#allocation7 + $0x798] sm:$0xf0] }
 0x15f   :  { %2328 = vmatpush.bf16.msra.mxu2 %v9456_v10  ;;  %2341 = vmatpush.bf16.msra.mxu3 %v9584_v24  ;;  %v854_v38 = vpop.f32.mrf.mxu2  ;;  %v9392_v10 = vor.u32 %v12909_v6, %v9389_v41  ;;  %v9520_v24 = vor.u32 %v12941_v42, %v9517_v43  ;;  %v9461_v6 = vld [vmem:[#allocation7 + $0x6b8] sm:$0xf0]  ;;  %v921_v43 = vrot.slane %v14185_v56, 7  ;;  %v9576_v4 = vor.u32 %v12954_v60, %v9573_v27  ;;  %v12940_v60 = vld [vmem:[#allocation7 + $0x714] sm:$0xf0] }
 0x160   :  { %v867_v40 = vpop.f32.mrf.mxu3  ;;  %v9587_v38 = vld [vmem:[#allocation7 + $0x7a8] sm:$0xf]  ;;  %v9589_v41 = vld [vmem:[#allocation7 + $0x7b8] sm:$0xf0]  ;;  %v12906_v27 = vld [vmem:[#allocation7 + $0x60c] sm:$0xf] }
 0x161   :  { %v878_v44 = vpop.f32.mrf.mxu0  ;;  %v12958_v40 = vld [vmem:[#allocation7 + $0x7ac] sm:$0xf]  ;;  %v925_v56 = vsel %vm14138_vm4, 0.0, %v921_v43  ;;  %v12944_v43 = vld [vmem:[#allocation7 + $0x734] sm:$0xf0] }
 0x162   :  { %2303 = vmatpush.bf16.msra.mxu0 %v9436_v59  ;;  %2316 = vmatpush.bf16.msra.mxu1 %v9564_v61  ;;  %v891_v50 = vpop.f32.mrf.mxu1  ;;  %v12936_v59 = vld [vmem:[#allocation7 + $0x6f4] sm:$0xf0]  ;;  %v9619_v61 = vld [vmem:[#allocation7 + $0x7e8] sm:$0xf] }
 0x163   :  { %2329 = vmatpush.bf16.msra.mxu2 %v9440_v0  ;;  %2342 = vmatpush.bf16.msra.mxu3 %v9568_v3  ;;  %v14189_v57 = vadd.f32 %v891_v50, %v878_v44  ;;  %v9372_v0 = vor.u32 %v12907_v52, %v9371_v47  ;;  %v9500_v3 = vor.u32 %v12939_v2, %v9499_v54  ;;  %v12924_v50 = vld [vmem:[#allocation7 + $0x694] sm:$0xf0]  ;;  %v9571_v2 = vld [vmem:[#allocation7 + $0x788] sm:$0xf] }
 0x164   :  { %v9492_v12 = vor.u32 %v12936_v59, %v9491_v34  ;;  %v9620_v13 = vor.u32 %v12968_v62, %v9619_v61  ;;  %v9460_v44 = vor.u32 %v12928_v33, %v9459_v32  ;;  %v9588_v47 = vor.u32 %v12960_v39, %v9587_v38  ;;  %v9395_v39 = vld [vmem:[#allocation7 + $0x628] sm:$0xf] }
 0x165   :  { %v9464_v52 = vor.u32 %v12926_v55, %v9461_v6  ;;  %v9592_v54 = vor.u32 %v12958_v40, %v9589_v41  ;;  %v12912_v55 = vld [vmem:[#allocation7 + $0x634] sm:$0xf0] }
 0x166   :  { %2304 = vmatpush.bf16.msra.mxu0 %v9420_v15  ;;  %2317 = vmatpush.bf16.msra.mxu1 %v9548_v16  ;;  %v9475_v15 = vld [vmem:[#allocation7 + $0x6c8] sm:$0xf]  ;;  %v12932_v16 = vld [vmem:[#allocation7 + $0x6d4] sm:$0xf0] }
 0x167   :  { %2330 = vmatpush.bf16.msra.mxu2 %v9424_v20  ;;  %2343 = vmatpush.bf16.msra.mxu3 %v9552_v21  ;;  %v904_v11 = vpop.f32.mrf.mxu2  ;;  %v9603_v21 = vld [vmem:[#allocation7 + $0x7c8] sm:$0xf] }
 0x168   :  { %v917_v14 = vpop.f32.mrf.mxu3 }
 0x169   :  { %v14191_v19 = vadd.f32 %v917_v14, %v904_v11  ;;  %v880_v20 = vpop.f32.mrf.mxu0  ;;  %v9429_v11 = vld [vmem:[#allocation7 + $0x678] sm:$0xf0]  ;;  %v922_v14 = vrot.slane %v14187_v51, 7 }
 0x16a   :  { %2305 = vmatpush.bf16.msra.mxu0 %v9404_v30  ;;  %2318 = vmatpush.bf16.msra.mxu1 %v9532_v31  ;;  %v893_v25 = vpop.f32.mrf.mxu1  ;;  %v9476_v30 = vor.u32 %v12932_v16, %v9475_v15  ;;  %v9604_v31 = vor.u32 %v12964_v22, %v9603_v21  ;;  %v9556_v16 = vor.u32 %v12952_v7, %v9555_v5  ;;  %v9539_v22 = vld [vmem:[#allocation7 + $0x748] sm:$0xf] }
 0x16b   :  { %2331 = vmatpush.bf16.msra.mxu2 %v9408_v35  ;;  %2344 = vmatpush.bf16.msra.mxu3 %v9536_v36  ;;  %v9480_v35 = vor.u32 %v12930_v23, %v9477_v26  ;;  %v9608_v36 = vor.u32 %v12962_v28, %v9605_v53  ;;  %v12948_v23 = vld [vmem:[#allocation7 + $0x754] sm:$0xf0]  ;;  %v12914_v25 = vld [vmem:[#allocation7 + $0x64c] sm:$0xf]  ;;  %v9413_v53 = vld [vmem:[#allocation7 + $0x658] sm:$0xf0] }
 0x16c   :  { %v9540_v38 = vor.u32 %v12948_v23, %v9539_v22  ;;  %v9416_v40 = vor.u32 %v12914_v25, %v9413_v53  ;;  %v13021_v23 = vld [vmem:[#allocation10 + $0x19c] sm:$0xf0] }
 0x16d   :  { %v10107_v25 = vld [vmem:[#allocation10 + $0x3c0] sm:$0xf] }
 0x16e   :  { %2306 = vmatpush.bf16.msra.mxu0 %v9388_v48  ;;  %2319 = vmatpush.bf16.msra.mxu1 %v9516_v49  ;;  %v9443_v49 = vld [vmem:[#allocation7 + $0x688] sm:$0xf] }
 0x16f   :  { %2332 = vmatpush.bf16.msra.mxu2 %v9392_v10  ;;  %2345 = vmatpush.bf16.msra.mxu3 %v9520_v24  ;;  %v906_v42 = vpop.f32.mrf.mxu2  ;;  %v12956_v10 = vld [vmem:[#allocation7 + $0x794] sm:$0xf0]  ;;  %v12922_v24 = vld [vmem:[#allocation7 + $0x68c] sm:$0xf]  ;;  %v9444_v61 = vor.u32 %v12924_v50, %v9443_v49  ;;  %v9525_v49 = vld [vmem:[#allocation7 + $0x738] sm:$0xf0]  ;;  %v9396_v50 = vor.u32 %v12912_v55, %v9395_v39 }
 0x170   :  { %v919_v48 = vpop.f32.mrf.mxu3  ;;  %v9572_v62 = vor.u32 %v12956_v10, %v9571_v2  ;;  %v9523_v42 = vld [vmem:[#allocation7 + $0x728] sm:$0xf]  ;;  %v12908_v2 = vld [vmem:[#allocation7 + $0x614] sm:$0xf0]  ;;  %v13005_v39 = vld [vmem:[#allocation10 + $0x11c] sm:$0xf0] }
 0x171   :  { %v12942_v48 = vld [vmem:[#allocation7 + $0x72c] sm:$0xf] }
 0x172   :  { %2307 = vmatpush.bf16.msra.mxu0 %v9372_v0  ;;  %2320 = vmatpush.bf16.msra.mxu1 %v9500_v3  ;;  %v1323_v46 = vpop.f32.mrf.mxu0  ;;  %v1336_v34 = vpop.f32.mrf.mxu1  ;;  %v12920_v0 = vld [vmem:[#allocation7 + $0x674] sm:$0xf0]  ;;  %v9448_v3 = vor.u32 %v12922_v24, %v9445_v58  ;;  %v9528_v24 = vor.u32 %v12942_v48, %v9525_v49  ;;  %v9507_v58 = vld [vmem:[#allocation7 + $0x708] sm:$0xf] }
 0x173   :  { %2333 = vmatpush.bf16.msra.mxu2 %v9376_v8  ;;  %2346 = vmatpush.bf16.msra.mxu3 %v9504_v9  ;;  %v1337_v59 = vadd.f32 %v1336_v34, %v1323_v46  ;;  %v12918_v8 = vld [vmem:[#allocation7 + $0x66c] sm:$0xf]  ;;  %v9428_v15 = vor.u32 %v12920_v0, %v9427_v63  ;;  %v9508_v63 = vor.u32 %v12940_v60, %v9507_v58  ;;  %v9979_v58 = vld [vmem:[#allocation10 + $0x2c0] sm:$0xf] }
 0x174   :  { %v9432_v20 = vor.u32 %v12918_v8, %v9429_v11  ;;  %v13061_v60 = vld [vmem:[#allocation10 + $0x2dc] sm:$0xf0] }
 0x175   :  { %2308 = vmatmul.bf16.vlgmr.msra.gmra.mxu0 %v14165_v37  ;;  %2321 = vmatmul.bf16.vlgmr.msra.gmra.mxu1 %v14167_v29  ;;  %v14200_v9 = vadd.f32 %v1337_v59, %v925_v56  ;;  %v9381_v56 = vld [vmem:[#allocation7 + $0x618] sm:$0xf0]  ;;  %v12938_v59 = vld [vmem:[#allocation7 + $0x70c] sm:$0xf] }
 0x176   :  { %2352 = vmatpush.bf16.msrb.mxu0 %v9492_v12  ;;  %2365 = vmatpush.bf16.msrb.mxu1 %v9620_v13  ;;  %v12950_v12 = vld [vmem:[#allocation7 + $0x76c] sm:$0xf]  ;;  %v9557_v13 = vld [vmem:[#allocation7 + $0x778] sm:$0xf0]  ;;  %v9384_v0 = vor.u32 %v12906_v27, %v9381_v56  ;;  %v9980_v27 = vor.u32 %v13061_v60, %v9979_v58  ;;  %v9659_v56 = vld [vmem:[#allocation10 + $0x40] sm:$0xf] }
 0x177   :  { %2378 = vmatpush.bf16.msrb.mxu2 %v9496_v17  ;;  %2391 = vmatpush.bf16.msrb.mxu3 %v9624_v18  ;;  %v9411_v17 = vld [vmem:[#allocation7 + $0x648] sm:$0xf]  ;;  %v12916_v18 = vld [vmem:[#allocation7 + $0x654] sm:$0xf0]  ;;  %v9560_v21 = vor.u32 %v12950_v12, %v9557_v13  ;;  %v924_v13 = vrot.slane %v14191_v19, 7 }
 0x178   :  { %2334 = vmatmul.bf16.vlgmr.msra.gmra.mxu2 %v14165_v37  ;;  %2347 = vmatmul.bf16.vlgmr.msra.gmra.mxu3 %v14167_v29  ;;  %v13001_v58 = vld [vmem:[#allocation10 + $0x104] sm:$0xf] }
 0x179   :  { %v9757_v60 = vld [vmem:[#allocation10 + $0x120] sm:$0xf0] }
 0x17a   :  { %2353 = vmatpush.bf16.msrb.mxu0 %v9476_v30  ;;  %2366 = vmatpush.bf16.msrb.mxu1 %v9604_v31  ;;  %v12946_v30 = vld [vmem:[#allocation7 + $0x74c] sm:$0xf]  ;;  %v9541_v31 = vld [vmem:[#allocation7 + $0x758] sm:$0xf0]  ;;  %v1325_v51 = vpop.f32.mrf.mxu0  ;;  %v1338_v33 = vpop.f32.mrf.mxu1 }
 0x17b   :  { %2379 = vmatpush.bf16.msrb.mxu2 %v9480_v35  ;;  %2392 = vmatpush.bf16.msrb.mxu3 %v9608_v36  ;;  %v1349_v26 = vpop.f32.mrf.mxu2  ;;  %v1362_v28 = vpop.f32.mrf.mxu3  ;;  %v926_v35 = vsel %vm14138_vm4, 0.0, %v922_v14  ;;  %v9412_v36 = vor.u32 %v12916_v18, %v9411_v17  ;;  %v9544_v41 = vor.u32 %v12946_v30, %v9541_v31  ;;  %v10075_v30 = vld [vmem:[#allocation10 + $0x380] sm:$0xf] }
 0x17c   :  { %v1363_v32 = vadd.f32 %v1362_v28, %v1349_v26  ;;  %v13093_v26 = vld [vmem:[#allocation10 + $0x3dc] sm:$0xf0] }
 0x17d   :  { %v10108_v19 = vor.u32 %v13093_v26, %v10107_v25  ;;  %v9787_v51 = vld [vmem:[#allocation10 + $0x140] sm:$0xf] }
 0x17e   :  { %2354 = vmatpush.bf16.msrb.mxu0 %v9460_v44  ;;  %2367 = vmatpush.bf16.msrb.mxu1 %v9588_v47  ;;  %v14205_v6 = vadd.f32 %v1363_v32, %v926_v35  ;;  %v12910_v44 = vld [vmem:[#allocation7 + $0x62c] sm:$0xf]  ;;  %v9397_v47 = vld [vmem:[#allocation7 + $0x638] sm:$0xf0]  ;;  %v13085_v32 = vld [vmem:[#allocation10 + $0x39c] sm:$0xf0] }
 0x17f   :  { %2380 = vmatpush.bf16.msrb.mxu2 %v9464_v52  ;;  %2393 = vmatpush.bf16.msrb.mxu3 %v9592_v54  ;;  %v9524_v52 = vor.u32 %v12944_v43, %v9523_v42  ;;  %v9379_v54 = vld [vmem:[#allocation7 + $0x608] sm:$0xf]  ;;  %v9400_v10 = vor.u32 %v12910_v44, %v9397_v47  ;;  %v13013_v33 = vld [vmem:[#allocation10 + $0x15c] sm:$0xf0]  ;;  %v10076_v35 = vor.u32 %v13085_v32, %v10075_v30 }
 0x180   :  { %v9723_v43 = vld [vmem:[#allocation10 + $0xc0] sm:$0xf] }
 0x181   :  { %v12997_v44 = vld [vmem:[#allocation10 + $0xdc] sm:$0xf0] }
 0x182   :  { %2355 = vmatpush.bf16.msrb.mxu0 %v9444_v61  ;;  %2368 = vmatpush.bf16.msrb.mxu1 %v9572_v62  ;;  %v9509_v61 = vld [vmem:[#allocation7 + $0x718] sm:$0xf0]  ;;  %v9380_v62 = vor.u32 %v12908_v2, %v9379_v54  ;;  %v9724_v49 = vor.u32 %v12997_v44, %v9723_v43  ;;  %v9691_v2 = vld [vmem:[#allocation10 + $0x80] sm:$0xf] }
 0x183   :  { %2381 = vmatpush.bf16.msrb.mxu2 %v9448_v3  ;;  %2394 = vmatpush.bf16.msrb.mxu3 %v9576_v4  ;;  %v1351_v46 = vpop.f32.mrf.mxu2  ;;  %v1364_v34 = vpop.f32.mrf.mxu3  ;;  %v9512_v3 = vor.u32 %v12938_v59, %v9509_v61  ;;  %v923_v4 = vrot.slane %v14189_v57, 7  ;;  %v9851_v57 = vld [vmem:[#allocation10 + $0x1c0] sm:$0xf] }
 0x184   :  { %v12981_v59 = vld [vmem:[#allocation10 + $0x5c] sm:$0xf0] }
 0x185   :  { %v927_v11 = vsel %vm14138_vm4, 0.0, %v923_v4  ;;  %v10619_v32 = vld [vmem:[#allocation10 + $0x7c0] sm:$0xf] }
 0x186   :  { %2356 = vmatpush.bf16.msrb.mxu0 %v9428_v15  ;;  %2369 = vmatpush.bf16.msrb.mxu1 %v9556_v16  ;;  %v13213_v44 = vld [vmem:[#allocation10 + $0x79c] sm:$0xf0] }
 0x187   :  { %2382 = vmatpush.bf16.msrb.mxu2 %v9432_v20  ;;  %2395 = vmatpush.bf16.msrb.mxu3 %v9560_v21  ;;  %v13029_v20 = vld [vmem:[#allocation10 + $0x1dc] sm:$0xf0] }
 0x188   :  { %v9819_v21 = vld [vmem:[#allocation10 + $0x180] sm:$0xf]  ;;  %v9852_v22 = vor.u32 %v13029_v20, %v9851_v57 }
 0x189   :  { %v9820_v31 = vor.u32 %v13021_v23, %v9819_v21  ;;  %v10331_v20 = vld [vmem:[#allocation10 + $0x580] sm:$0xf] }
 0x18a   :  { %2357 = vmatpush.bf16.msrb.mxu0 %v9412_v36  ;;  %2370 = vmatpush.bf16.msrb.mxu1 %v9540_v38  ;;  %v9788_v36 = vor.u32 %v13013_v33, %v9787_v51  ;;  %v9755_v38 = vld [vmem:[#allocation10 + $0x100] sm:$0xf]  ;;  %v13089_v33 = vld [vmem:[#allocation10 + $0x3c4] sm:$0xf] }
 0x18b   :  { %2383 = vmatpush.bf16.msrb.mxu2 %v9416_v40  ;;  %2396 = vmatpush.bf16.msrb.mxu3 %v9544_v41  ;;  %v9756_v55 = vor.u32 %v13005_v39, %v9755_v38  ;;  %v10043_v40 = vld [vmem:[#allocation10 + $0x340] sm:$0xf] }
 0x18c   :  { %v13077_v41 = vld [vmem:[#allocation10 + $0x35c] sm:$0xf0] }
 0x18d   :  { %v10044_v42 = vor.u32 %v13077_v41, %v10043_v40  ;;  %v13149_v21 = vld [vmem:[#allocation10 + $0x59c] sm:$0xf0]  ;;  %v13009_v40 = vld [vmem:[#allocation10 + $0x144] sm:$0xf] }
 0x18e   :  { %2358 = vmatpush.bf16.msrb.mxu0 %v9396_v50  ;;  %2371 = vmatpush.bf16.msrb.mxu1 %v9524_v52  ;;  %v10011_v50 = vld [vmem:[#allocation10 + $0x300] sm:$0xf]  ;;  %v10332_v26 = vor.u32 %v13149_v21, %v10331_v20  ;;  %v9789_v41 = vld [vmem:[#allocation10 + $0x160] sm:$0xf0] }
 0x18f   :  { %2384 = vmatpush.bf16.msrb.mxu2 %v9400_v10  ;;  %2397 = vmatpush.bf16.msrb.mxu3 %v9528_v24  ;;  %v13069_v52 = vld [vmem:[#allocation10 + $0x31c] sm:$0xf0] }
 0x190   :  { %v10012_v54 = vor.u32 %v13069_v52, %v10011_v50  ;;  %v12989_v10 = vld [vmem:[#allocation10 + $0x9c] sm:$0xf0]  ;;  %v10077_v50 = vld [vmem:[#allocation10 + $0x3a0] sm:$0xf0]  ;;  %v9792_v52 = vor.u32 %v13009_v40, %v9789_v41 }
 0x191   :  { %v9692_v24 = vor.u32 %v12989_v10, %v9691_v2  ;;  %v13221_v51 = vld [vmem:[#allocation10 + $0x7dc] sm:$0xf0]  ;;  %v9661_v40 = vld [vmem:[#allocation10 + $0x60] sm:$0xf0] }
 0x192   :  { %2359 = vmatpush.bf16.msrb.mxu0 %v9380_v62  ;;  %2372 = vmatpush.bf16.msrb.mxu1 %v9508_v63  ;;  %v1375_v5 = vpop.f32.mrf.mxu0  ;;  %v1388_v7 = vpop.f32.mrf.mxu1  ;;  %v9660_v63 = vor.u32 %v12981_v59, %v9659_v56  ;;  %v10299_v38 = vld [vmem:[#allocation10 + $0x540] sm:$0xf]  ;;  %v9760_v56 = vor.u32 %v13001_v58, %v9757_v60  ;;  %v12969_v58 = vld [vmem:[#allocation10 + $0x4] sm:$0xf] }
 0x193   :  { %2385 = vmatpush.bf16.msrb.mxu2 %v9384_v0  ;;  %2398 = vmatpush.bf16.msrb.mxu3 %v9512_v3  ;;  %v1389_v8 = vadd.f32 %v1388_v7, %v1375_v5  ;;  %v9947_v0 = vld [vmem:[#allocation10 + $0x280] sm:$0xf] }
 0x194   :  { %v13053_v3 = vld [vmem:[#allocation10 + $0x29c] sm:$0xf0] }
 0x195   :  { %2360 = vmatmul.bf16.vlgmr.msrb.gmra.mxu0 %v14165_v37  ;;  %2373 = vmatmul.bf16.vlgmr.msrb.gmra.mxu1 %v14167_v29  ;;  %v14214_v12 = vadd.f32 %v1389_v8, %v927_v11  ;;  %v9948_v4 = vor.u32 %v13053_v3, %v9947_v0  ;;  %v9627_v5 = vld [vmem:[#allocation10] sm:$0xf]  ;;  %v10045_v0 = vld [vmem:[#allocation10 + $0x360] sm:$0xf0] }
 0x196   :  { %2386 = vmatmul.bf16.vlgmr.msrb.gmra.mxu2 %v14165_v37  ;;  %2399 = vmatmul.bf16.vlgmr.msrb.gmra.mxu3 %v14167_v29  ;;  %v928_v37 = vsel %vm14138_vm4, 0.0, %v924_v13  ;;  %v12973_v7 = vld [vmem:[#allocation10 + $0x1c] sm:$0xf0] }
 0x197   :  { %3982 = vmatpush.bf16.msra.mxu0 %v9852_v22  ;;  %3995 = vmatpush.bf16.msra.mxu1 %v10108_v19  ;;  %v9628_v8 = vor.u32 %v12973_v7, %v9627_v5  ;;  %v10363_v11 = vld [vmem:[#allocation10 + $0x5c0] sm:$0xf]  ;;  %v13017_v22 = vld [vmem:[#allocation10 + $0x184] sm:$0xf] }
 0x198   :  { %v13157_v13 = vld [vmem:[#allocation10 + $0x5dc] sm:$0xf0]  ;;  %v12993_v7 = vld [vmem:[#allocation10 + $0xc4] sm:$0xf] }
 0x199   :  { %v13037_v19 = vld [vmem:[#allocation10 + $0x21c] sm:$0xf0] }
 0x19a   :  { %v1377_v17 = vpop.f32.mrf.mxu0  ;;  %v1390_v18 = vpop.f32.mrf.mxu1  ;;  %v13141_v39 = vld [vmem:[#allocation10 + $0x55c] sm:$0xf0] }
 0x19b   :  { %v1401_v14 = vpop.f32.mrf.mxu2  ;;  %v1414_v15 = vpop.f32.mrf.mxu3  ;;  %3983 = vmatpush.bf16.msra.mxu0 %v9820_v31  ;;  %3996 = vmatpush.bf16.msra.mxu1 %v10076_v35  ;;  %v9915_v17 = vld [vmem:[#allocation10 + $0x240] sm:$0xf]  ;;  %v10620_v35 = vor.u32 %v13221_v51, %v10619_v32  ;;  %v10300_v43 = vor.u32 %v13141_v39, %v10299_v38  ;;  %v9981_v32 = vld [vmem:[#allocation10 + $0x2e0] sm:$0xf0] }
 0x19c   :  { %v1415_v16 = vadd.f32 %v1414_v15, %v1401_v14  ;;  %v13025_v14 = vld [vmem:[#allocation10 + $0x1c4] sm:$0xf]  ;;  %v10364_v15 = vor.u32 %v13157_v13, %v10363_v11  ;;  %v13045_v18 = vld [vmem:[#allocation10 + $0x25c] sm:$0xf0] }
 0x19d   :  { %v9916_v57 = vor.u32 %v13045_v18, %v9915_v17  ;;  %4021 = vmatpush.bf16.msra.mxu3 %v10620_v35  ;;  %v10267_v2 = vld [vmem:[#allocation10 + $0x500] sm:$0xf]  ;;  %v9725_v11 = vld [vmem:[#allocation10 + $0xe0] sm:$0xf0] }
 0x19e   :  { %v14219_v29 = vadd.f32 %v1415_v16, %v928_v37  ;;  %v9853_v16 = vld [vmem:[#allocation10 + $0x1e0] sm:$0xf0]  ;;  %4008 = vmatpush.bf16.msra.mxu2 %v10364_v15  ;;  %v13133_v10 = vld [vmem:[#allocation10 + $0x51c] sm:$0xf0]  ;;  %v9728_v15 = vor.u32 %v12993_v7, %v9725_v11 }
 0x19f   :  { %3984 = vmatpush.bf16.msra.mxu0 %v9788_v36  ;;  %3997 = vmatpush.bf16.msra.mxu1 %v10044_v42  ;;  %v9856_v37 = vor.u32 %v13025_v14, %v9853_v16  ;;  %v10109_v36 = vld [vmem:[#allocation10 + $0x3e0] sm:$0xf0]  ;;  %v10587_v42 = vld [vmem:[#allocation10 + $0x780] sm:$0xf] }
 0x1a0   :  { %v10555_v59 = vld [vmem:[#allocation10 + $0x740] sm:$0xf]  ;;  %v13065_v18 = vld [vmem:[#allocation10 + $0x304] sm:$0xf] }
 0x1a1   :  { %v13125_v5 = vld [vmem:[#allocation10 + $0x4dc] sm:$0xf0] }
 0x1a2   :  { %4009 = vmatpush.bf16.msra.mxu2 %v10332_v26  ;;  %v10523_v16 = vld [vmem:[#allocation10 + $0x700] sm:$0xf]  ;;  %v9693_v26 = vld [vmem:[#allocation10 + $0xa0] sm:$0xf0] }
 0x1a3   :  { %v1403_v28 = vpop.f32.mrf.mxu2  ;;  %v1416_v53 = vpop.f32.mrf.mxu3  ;;  %3985 = vmatpush.bf16.msra.mxu0 %v9756_v55  ;;  %3998 = vmatpush.bf16.msra.mxu1 %v10012_v54  ;;  %v10112_v55 = vor.u32 %v13089_v33, %v10109_v36  ;;  %v10588_v54 = vor.u32 %v13213_v44, %v10587_v42  ;;  %v13197_v17 = vld [vmem:[#allocation10 + $0x71c] sm:$0xf0]  ;;  %v12977_v36 = vld [vmem:[#allocation10 + $0x44] sm:$0xf] }
 0x1a4   :  { %v9821_v28 = vld [vmem:[#allocation10 + $0x1a0] sm:$0xf0]  ;;  %v9883_v53 = vld [vmem:[#allocation10 + $0x200] sm:$0xf] }
 0x1a5   :  { %v9824_v30 = vor.u32 %v13017_v22, %v9821_v28  ;;  %v9884_v31 = vor.u32 %v13037_v19, %v9883_v53  ;;  %4022 = vmatpush.bf16.msra.mxu3 %v10588_v54  ;;  %v10203_v21 = vld [vmem:[#allocation10 + $0x480] sm:$0xf]  ;;  %v9949_v54 = vld [vmem:[#allocation10 + $0x2a0] sm:$0xf0] }
 0x1a6   :  { %4010 = vmatpush.bf16.msra.mxu2 %v10300_v43  ;;  %v13117_v22 = vld [vmem:[#allocation10 + $0x49c] sm:$0xf0]  ;;  %v9664_v43 = vor.u32 %v12977_v36, %v9661_v40  ;;  %v13201_v36 = vld [vmem:[#allocation10 + $0x744] sm:$0xf] }
 0x1a7   :  { %3986 = vmatpush.bf16.msra.mxu0 %v9724_v49  ;;  %3999 = vmatpush.bf16.msra.mxu1 %v9980_v27  ;;  %v13081_v49 = vld [vmem:[#allocation10 + $0x384] sm:$0xf]  ;;  %v10268_v27 = vor.u32 %v13133_v10, %v10267_v2  ;;  %v10491_v53 = vld [vmem:[#allocation10 + $0x6c0] sm:$0xf] }
 0x1a8   :  { %v13189_v19 = vld [vmem:[#allocation10 + $0x6dc] sm:$0xf0] }
 0x1a9   :  { %v10171_v33 = vld [vmem:[#allocation10 + $0x440] sm:$0xf] }
 0x1aa   :  { %4011 = vmatpush.bf16.msra.mxu2 %v10268_v27  ;;  %v13109_v35 = vld [vmem:[#allocation10 + $0x45c] sm:$0xf0]  ;;  %v9629_v27 = vld [vmem:[#allocation10 + $0x20] sm:$0xf0] }
 0x1ab   :  { %3987 = vmatpush.bf16.msra.mxu0 %v9692_v24  ;;  %4000 = vmatpush.bf16.msra.mxu1 %v9948_v4  ;;  %v10080_v24 = vor.u32 %v13081_v49, %v10077_v50  ;;  %v10235_v4 = vld [vmem:[#allocation10 + $0x4c0] sm:$0xf]  ;;  %v13049_v50 = vld [vmem:[#allocation10 + $0x284] sm:$0xf] }
 0x1ac   :  { %v10459_v44 = vld [vmem:[#allocation10 + $0x680] sm:$0xf]  ;;  %v9952_v2 = vor.u32 %v13049_v50, %v9949_v54  ;;  %v10525_v54 = vld [vmem:[#allocation10 + $0x720] sm:$0xf0] }
 0x1ad   :  { %v13181_v49 = vld [vmem:[#allocation10 + $0x69c] sm:$0xf0] }
 0x1ae   :  { %v10139_v10 = vld [vmem:[#allocation10 + $0x400] sm:$0xf] }
 0x1af   :  { %3988 = vmatpush.bf16.msra.mxu0 %v9660_v63  ;;  %4001 = vmatpush.bf16.msra.mxu1 %v9916_v57  ;;  %v10013_v57 = vld [vmem:[#allocation10 + $0x320] sm:$0xf0] }
 0x1b0   :  { %v10016_v20 = vor.u32 %v13065_v18, %v10013_v57  ;;  %v10395_v18 = vld [vmem:[#allocation10 + $0x600] sm:$0xf] }
 0x1b2   :  { %v14221_v47 = vpop.f32.mrf.mxu0  ;;  %v14223_v48 = vpop.f32.mrf.mxu1 }
 0x1b3   :  { %3989 = vmatpush.bf16.msra.mxu0 %v9628_v8  ;;  %4002 = vmatpush.bf16.msra.mxu1 %v9884_v31  ;;  %v10236_v8 = vor.u32 %v13125_v5, %v10235_v4  ;;  %v13057_v31 = vld [vmem:[#allocation10 + $0x2c4] sm:$0xf] }
 0x1b4   :  { %v9984_v51 = vor.u32 %v13057_v31, %v9981_v32  ;;  %v9917_v5 = vld [vmem:[#allocation10 + $0x260] sm:$0xf0] }
 0x1b5   :  { %4012 = vmatpush.bf16.msra.mxu2 %v10236_v8  ;;  %v10589_v31 = vld [vmem:[#allocation10 + $0x7a0] sm:$0xf0] }
 0x1b7   :  { %4034 = vmatpush.bf16.msrb.mxu0 %v9856_v37  ;;  %4047 = vmatpush.bf16.msrb.mxu1 %v10112_v55  ;;  %v10524_v37 = vor.u32 %v13197_v17, %v10523_v16  ;;  %v10172_v55 = vor.u32 %v13109_v35, %v10171_v33  ;;  %v10333_v16 = vld [vmem:[#allocation10 + $0x5a0] sm:$0xf0] }
 0x1b8   :  { %v10269_v33 = vld [vmem:[#allocation10 + $0x520] sm:$0xf0] }
 0x1ba   :  { %v1818_v61 = vpop.f32.mrf.mxu0  ;;  %v1831_v62 = vpop.f32.mrf.mxu1 }
 0x1bb   :  { %v14225_v46 = vpop.f32.mrf.mxu2  ;;  %v14227_v34 = vpop.f32.mrf.mxu3  ;;  %4035 = vmatpush.bf16.msrb.mxu0 %v9824_v30  ;;  %4048 = vmatpush.bf16.msrb.mxu1 %v10080_v24  ;;  %v13205_v61 = vld [vmem:[#allocation10 + $0x75c] sm:$0xf0]  ;;  %v13073_v62 = vld [vmem:[#allocation10 + $0x344] sm:$0xf]  ;;  %v10492_v30 = vor.u32 %v13189_v19, %v10491_v53 }
 0x1bc   :  { %v10556_v63 = vor.u32 %v13205_v61, %v10555_v59  ;;  %v10048_v3 = vor.u32 %v13073_v62, %v10045_v0  ;;  %v13101_v24 = vld [vmem:[#allocation10 + $0x41c] sm:$0xf0]  ;;  %v9632_v59 = vor.u32 %v12969_v58, %v9629_v27  ;;  %v10365_v61 = vld [vmem:[#allocation10 + $0x5e0] sm:$0xf0] }
 0x1bd   :  { %v10140_v60 = vor.u32 %v13101_v24, %v10139_v10  ;;  %v13173_v0 = vld [vmem:[#allocation10 + $0x65c] sm:$0xf0]  ;;  %v10301_v53 = vld [vmem:[#allocation10 + $0x560] sm:$0xf0]  ;;  %v14239_v10 = vld [vmem:[#allocation8] sm:$0xf] }
 0x1be   :  { %4023 = vmatpush.bf16.msra.mxu3 %v10556_v63  ;;  %v10427_v63 = vld [vmem:[#allocation10 + $0x640] sm:$0xf]  ;;  %v13113_v58 = vld [vmem:[#allocation10 + $0x484] sm:$0xf] }
 0x1bf   :  { %4036 = vmatpush.bf16.msrb.mxu0 %v9792_v52  ;;  %4049 = vmatpush.bf16.msrb.mxu1 %v10048_v3  ;;  %v10460_v52 = vor.u32 %v13181_v49, %v10459_v44  ;;  %v13041_v3 = vld [vmem:[#allocation10 + $0x244] sm:$0xf]  ;;  %v10428_v4 = vor.u32 %v13173_v0, %v10427_v63  ;;  %v1830_v44 = vadd.f32 %v14223_v48, %v14221_v47 }
 0x1c0   :  { %v9920_v11 = vor.u32 %v13041_v3, %v9917_v5  ;;  %v10493_v47 = vld [vmem:[#allocation10 + $0x6e0] sm:$0xf0]  ;;  %v1856_v5 = vadd.f32 %v14227_v34, %v14225_v46  ;;  %v2419_v46 = vperm.slane %v14239_v10, 1 }
 0x1c1   :  { %v13105_v3 = vld [vmem:[#allocation10 + $0x444] sm:$0xf] }
 0x1c2   :  { %4024 = vmatpush.bf16.msra.mxu3 %v10524_v37  ;;  %v13165_v37 = vld [vmem:[#allocation10 + $0x61c] sm:$0xf0]  ;;  %v13097_v34 = vld [vmem:[#allocation10 + $0x404] sm:$0xf] }
 0x1c3   :  { %v1844_v23 = vpop.f32.mrf.mxu2  ;;  %v1857_v25 = vpop.f32.mrf.mxu3  ;;  %4037 = vmatpush.bf16.msrb.mxu0 %v9760_v56  ;;  %4050 = vmatpush.bf16.msrb.mxu1 %v10016_v20  ;;  %v13153_v56 = vld [vmem:[#allocation10 + $0x5c4] sm:$0xf]  ;;  %v10396_v57 = vor.u32 %v13165_v37, %v10395_v18 }
 0x1c4   :  { %v12985_v23 = vld [vmem:[#allocation10 + $0x84] sm:$0xf]  ;;  %v10204_v25 = vor.u32 %v13117_v22, %v10203_v21  ;;  %v10368_v62 = vor.u32 %v13153_v56, %v10365_v61  ;;  %v2418_v61 = vperm.slane %v14239_v10, 0 }
 0x1c5   :  { %v9696_v28 = vor.u32 %v12985_v23, %v9693_v26  ;;  %v13033_v20 = vld [vmem:[#allocation10 + $0x204] sm:$0xf] }
 0x1c6   :  { %4013 = vmatpush.bf16.msra.mxu2 %v10204_v25  ;;  %4025 = vmatpush.bf16.msra.mxu3 %v10492_v30  ;;  %v9885_v21 = vld [vmem:[#allocation10 + $0x220] sm:$0xf0] }
 0x1c7   :  { %4038 = vmatpush.bf16.msrb.mxu0 %v9728_v15  ;;  %4051 = vmatpush.bf16.msrb.mxu1 %v9984_v51  ;;  %v13145_v15 = vld [vmem:[#allocation10 + $0x584] sm:$0xf]  ;;  %v9888_v23 = vor.u32 %v13033_v20, %v9885_v21  ;;  %v13030_v20 = vld [vmem:[#allocation10 + $0x1e4] sm:$0xf0] }
 0x1c8   :  { %v10336_v17 = vor.u32 %v13145_v15, %v10333_v16  ;;  %v13217_v22 = vld [vmem:[#allocation10 + $0x7c4] sm:$0xf] }
 0x1c9   :  { %v10621_v25 = vld [vmem:[#allocation10 + $0x7e0] sm:$0xf0] }
 0x1ca   :  { %4014 = vmatpush.bf16.msra.mxu2 %v10172_v55  ;;  %4026 = vmatpush.bf16.msra.mxu3 %v10460_v52  ;;  %v10624_v26 = vor.u32 %v13217_v22, %v10621_v25  ;;  %v13209_v30 = vld [vmem:[#allocation10 + $0x784] sm:$0xf]  ;;  %v1912_v25 = vadd.f32 %v1856_v5, %v14205_v6  ;;  %v12998_v5 = vld [vmem:[#allocation10 + $0xe4] sm:$0xf0] }
 0x1cb   :  { %4039 = vmatpush.bf16.msrb.mxu0 %v9696_v28  ;;  %4052 = vmatpush.bf16.msrb.mxu1 %v9952_v2  ;;  %v13137_v28 = vld [vmem:[#allocation10 + $0x544] sm:$0xf]  ;;  %v10592_v32 = vor.u32 %v13209_v30, %v10589_v31 }
 0x1cc   :  { %v10304_v19 = vor.u32 %v13137_v28, %v10301_v53  ;;  %v13129_v51 = vld [vmem:[#allocation10 + $0x504] sm:$0xf] }
 0x1cd   :  { %v10272_v35 = vor.u32 %v13129_v51, %v10269_v33  ;;  %v10557_v55 = vld [vmem:[#allocation10 + $0x760] sm:$0xf0]  ;;  %v9827_v51 = vld [vmem:[#allocation10 + $0x188] sm:$0xf] }
 0x1ce   :  { %4015 = vmatpush.bf16.msra.mxu2 %v10140_v60  ;;  %4027 = vmatpush.bf16.msra.mxu3 %v10428_v4  ;;  %v10560_v40 = vor.u32 %v13201_v36, %v10557_v55  ;;  %v13193_v52 = vld [vmem:[#allocation10 + $0x704] sm:$0xf]  ;;  %v13022_v33 = vld [vmem:[#allocation10 + $0x1a4] sm:$0xf0] }
 0x1cf   :  { %4040 = vmatpush.bf16.msrb.mxu0 %v9664_v43  ;;  %4053 = vmatpush.bf16.msrb.mxu1 %v9920_v11  ;;  %v10528_v24 = vor.u32 %v13193_v52, %v10525_v54  ;;  %v10205_v60 = vld [vmem:[#allocation10 + $0x4a0] sm:$0xf0] }
 0x1d0   :  { %v10208_v56 = vor.u32 %v13113_v58, %v10205_v60  ;;  %v10173_v4 = vld [vmem:[#allocation10 + $0x460] sm:$0xf0] }
 0x1d1   :  { %v10176_v11 = vor.u32 %v13105_v3, %v10173_v4  ;;  %v13177_v18 = vld [vmem:[#allocation10 + $0x684] sm:$0xf]  ;;  %v13078_v3 = vld [vmem:[#allocation10 + $0x364] sm:$0xf0] }
 0x1d2   :  { %v14229_v13 = vpop.f32.mrf.mxu0  ;;  %v14231_v14 = vpop.f32.mrf.mxu1  ;;  %4060 = vmatpush.bf16.msrb.mxu2 %v10368_v62  ;;  %4028 = vmatpush.bf16.msra.mxu3 %v10396_v57  ;;  %v13185_v62 = vld [vmem:[#allocation10 + $0x6c4] sm:$0xf]  ;;  %v9859_v57 = vld [vmem:[#allocation10 + $0x1c8] sm:$0xf] }
 0x1d3   :  { %4041 = vmatpush.bf16.msrb.mxu0 %v9632_v59  ;;  %4054 = vmatpush.bf16.msrb.mxu1 %v9888_v23  ;;  %v1911_v59 = vadd.f32 %v1830_v44, %v14200_v9  ;;  %v10496_v63 = vor.u32 %v13185_v62, %v10493_v47  ;;  %v10461_v37 = vld [vmem:[#allocation10 + $0x6a0] sm:$0xf0]  ;;  %v9828_v44 = vor.u32 %v13022_v33, %v9827_v51  ;;  %v9763_v62 = vld [vmem:[#allocation10 + $0x108] sm:$0xf] }
 0x1d4   :  { %v10464_v21 = vor.u32 %v13177_v18, %v10461_v37  ;;  %v10429_v36 = vld [vmem:[#allocation10 + $0x660] sm:$0xf0]  ;;  %v13006_v47 = vld [vmem:[#allocation10 + $0x124] sm:$0xf0] }
 0x1d5   :  { %v13161_v52 = vld [vmem:[#allocation10 + $0x604] sm:$0xf]  ;;  %v9731_v4 = vld [vmem:[#allocation10 + $0xc8] sm:$0xf] }
 0x1d6   :  { %4061 = vmatpush.bf16.msrb.mxu2 %v10336_v17  ;;  %4073 = vmatpush.bf16.msrb.mxu3 %v10624_v26  ;;  %v10141_v26 = vld [vmem:[#allocation10 + $0x420] sm:$0xf0]  ;;  %v9699_v18 = vld [vmem:[#allocation10 + $0x88] sm:$0xf] }
 0x1d7   :  { %v10144_v30 = vor.u32 %v13097_v34, %v10141_v26  ;;  %v12990_v37 = vld [vmem:[#allocation10 + $0xa4] sm:$0xf0]  ;;  %v2420_v34 = vperm.slane %v14239_v10, 2 }
 0x1d8   :  { %v9667_v26 = vld [vmem:[#allocation10 + $0x48] sm:$0xf] }
 0x1d9   :  { %v9955_v33 = vld [vmem:[#allocation10 + $0x288] sm:$0xf] }
 0x1da   :  { %v1870_v41 = vpop.f32.mrf.mxu0  ;;  %v1883_v42 = vpop.f32.mrf.mxu1  ;;  %4062 = vmatpush.bf16.msrb.mxu2 %v10304_v19  ;;  %4074 = vmatpush.bf16.msrb.mxu3 %v10592_v32  ;;  %v9860_v19 = vor.u32 %v13030_v20, %v9859_v57 }
 0x1db   :  { %v14233_v38 = vpop.f32.mrf.mxu2  ;;  %v14235_v39 = vpop.f32.mrf.mxu3  ;;  %v13121_v41 = vld [vmem:[#allocation10 + $0x4c4] sm:$0xf] }
 0x1dc   :  { %v10237_v42 = vld [vmem:[#allocation10 + $0x4e0] sm:$0xf0] }
 0x1dd   :  { %v10240_v43 = vor.u32 %v13121_v41, %v10237_v42  ;;  %v10115_v41 = vld [vmem:[#allocation10 + $0x3c8] sm:$0xf] }
 0x1de   :  { %4063 = vmatpush.bf16.msrb.mxu2 %v10272_v35  ;;  %4075 = vmatpush.bf16.msrb.mxu3 %v10560_v40  ;;  %v13169_v35 = vld [vmem:[#allocation10 + $0x644] sm:$0xf]  ;;  %v13094_v42 = vld [vmem:[#allocation10 + $0x3e4] sm:$0xf0] }
 0x1df   :  { %v10116_v60 = vor.u32 %v13094_v42, %v10115_v41  ;;  %v12974_v41 = vld [vmem:[#allocation10 + $0x24] sm:$0xf0] }
 0x1e0   :  { %v10371_v42 = vld [vmem:[#allocation10 + $0x5c8] sm:$0xf] }
 0x1e2   :  { %4064 = vmatpush.bf16.msrb.mxu2 %v10240_v43  ;;  %4076 = vmatpush.bf16.msrb.mxu3 %v10528_v24  ;;  %v10432_v43 = vor.u32 %v13169_v35, %v10429_v36  ;;  %v13054_v35 = vld [vmem:[#allocation10 + $0x2a4] sm:$0xf0] }
 0x1e3   :  { %v1896_v7 = vpop.f32.mrf.mxu2  ;;  %v1909_v8 = vpop.f32.mrf.mxu3 }
 0x1e6   :  { %4065 = vmatpush.bf16.msrb.mxu2 %v10208_v56  ;;  %4077 = vmatpush.bf16.msrb.mxu3 %v10496_v63  ;;  %v9764_v63 = vor.u32 %v13006_v47, %v9763_v62  ;;  %v10339_v62 = vld [vmem:[#allocation10 + $0x588] sm:$0xf] }
 0x1ea   :  { %4066 = vmatpush.bf16.msrb.mxu2 %v10176_v11  ;;  %4078 = vmatpush.bf16.msrb.mxu3 %v10464_v21  ;;  %v10019_v11 = vld [vmem:[#allocation10 + $0x308] sm:$0xf] }
 0x1ee   :  { %4067 = vmatpush.bf16.msrb.mxu2 %v10144_v30  ;;  %4079 = vmatpush.bf16.msrb.mxu3 %v10432_v43  ;;  %v13158_v43 = vld [vmem:[#allocation10 + $0x5e4] sm:$0xf0] }
 0x1f2   :  { %v2309_v49 = vpop.f32.mrf.mxu0  ;;  %v2322_v50 = vpop.f32.mrf.mxu1 }
 0x1f3   :  { %v2323_v2 = vadd.f32 %v2322_v50, %v2309_v49  ;;  %v9795_v49 = vld [vmem:[#allocation10 + $0x148] sm:$0xf] }
 0x1f4   :  { %v13014_v50 = vld [vmem:[#allocation10 + $0x164] sm:$0xf0] }
 0x1f5   :  { %v2404_v27 = vrot.slane %v2323_v2, 1  ;;  %v10397_v2 = vld [vmem:[#allocation10 + $0x620] sm:$0xf0]  ;;  %v9796_v56 = vor.u32 %v13014_v50, %v9795_v49  ;;  %v9861_v49 = vld [vmem:[#allocation10 + $0x1e8] sm:$0xf0]  ;;  %v9956_v50 = vor.u32 %v13054_v35, %v9955_v33 }
 0x1f6   :  { %v10400_v24 = vor.u32 %v13161_v52, %v10397_v2  ;;  %v13002_v33 = vld [vmem:[#allocation10 + $0x10c] sm:$0xf] }
 0x1f7   :  { %v2408_v48 = vsel %vm14113_vm1, 0.0, %v2404_v27  ;;  %v9765_v35 = vld [vmem:[#allocation10 + $0x128] sm:$0xf0] }
 0x1f8   :  { %v2412_v0 = vadd.f32 %v2408_v48, %v1911_v59  ;;  %v10083_v59 = vld [vmem:[#allocation10 + $0x388] sm:$0xf]  ;;  %4080 = vmatpush.bf16.msrb.mxu3 %v10400_v24 }
 0x1f9   :  { %v9923_v24 = vld [vmem:[#allocation10 + $0x248] sm:$0xf] }
 0x1fa   :  { %v2426_v9 = vadd.f32 %v2418_v61, %v2412_v0  ;;  %v2311_v16 = vpop.f32.mrf.mxu0  ;;  %v2324_v17 = vpop.f32.mrf.mxu1  ;;  %v13086_v61 = vld [vmem:[#allocation10 + $0x3a4] sm:$0xf0] }
 0x1fb   :  { %v2335_v7 = vpop.f32.mrf.mxu2  ;;  %v2348_v8 = vpop.f32.mrf.mxu3  ;;  %v10084_v48 = vor.u32 %v13086_v61, %v10083_v59  ;;  %v10051_v0 = vld [vmem:[#allocation10 + $0x348] sm:$0xf]  ;;  %v10372_v59 = vor.u32 %v13158_v43, %v10371_v42  ;;  %v13074_v42 = vld [vmem:[#allocation10 + $0x34c] sm:$0xf] }
 0x1fc   :  { %v2349_v15 = vadd.f32 %v2348_v8, %v2335_v7  ;;  %vm2430_vm7 = vcmp.ge.f32.partialorder %v2426_v9, 0.0  ;;  %v2434_v22 = vmul.f32 0.2, %v2426_v9  ;;  %v10052_v7 = vor.u32 %v13078_v3, %v10051_v0  ;;  %v13018_v0 = vld [vmem:[#allocation10 + $0x18c] sm:$0xf] }
 0x1fd   :  { %v9732_v8 = vor.u32 %v12998_v5, %v9731_v4  ;;  %v9829_v3 = vld [vmem:[#allocation10 + $0x1a8] sm:$0xf0]  ;;  %v13038_v4 = vld [vmem:[#allocation10 + $0x224] sm:$0xf0] }
 0x1fe   :  { %v2405_v23 = vrot.slane %v2349_v15, 1  ;;  %v2438_v28 = vsel %vm2430_vm7, %v2426_v9, %v2434_v22  ;;  %v13070_v9 = vld [vmem:[#allocation10 + $0x324] sm:$0xf0]  ;;  %v1882_v15 = vadd.f32 %v14231_v14, %v14229_v13  ;;  %v9700_v22 = vor.u32 %v12990_v37, %v9699_v18  ;;  %v10053_v43 = vld [vmem:[#allocation10 + $0x368] sm:$0xf0] }
 0x1ff   :  { %v14251_v31 = vpack.c.bf16 %v2438_v28, %v2438_v28  ;;  %v10020_v20 = vor.u32 %v13070_v9, %v10019_v11  ;;  %v12982_v13 = vld [vmem:[#allocation10 + $0x64] sm:$0xf0]  ;;  %v9832_v18 = vor.u32 %v13018_v0, %v9829_v3 }
 0x200   :  { %v2409_v53 = vsel %vm14113_vm1, 0.0, %v2405_v23  ;;  %v9987_v23 = vld [vmem:[#allocation10 + $0x2c8] sm:$0xf]  ;;  %v9668_v51 = vor.u32 %v12982_v13, %v9667_v26 }
 0x201   :  { %v2413_v32 = vadd.f32 %v2409_v53, %v1912_v25  ;;  %3990 = vmatmul.bf16.vlgmr.msra.gmra.mxu0 %v14251_v31  ;;  %v13062_v25 = vld [vmem:[#allocation10 + $0x2e4] sm:$0xf0] }
 0x202   :  { %4086 = vmatpush.bf16.msra.mxu0 %v9860_v19  ;;  %v9988_v53 = vor.u32 %v13062_v25, %v9987_v23  ;;  %v1908_v19 = vadd.f32 %v14235_v39, %v14233_v38  ;;  %v10627_v5 = vld [vmem:[#allocation10 + $0x7c8] sm:$0xf] }
 0x203   :  { %v2427_v6 = vadd.f32 %v2419_v46, %v2413_v32  ;;  %v2337_v55 = vpop.f32.mrf.mxu2  ;;  %v2350_v40 = vpop.f32.mrf.mxu3  ;;  %v1913_v46 = vadd.f32 %v1882_v15, %v14214_v12  ;;  %v13222_v9 = vld [vmem:[#allocation10 + $0x7e4] sm:$0xf0]  ;;  %v13090_v15 = vld [vmem:[#allocation10 + $0x3cc] sm:$0xf] }
 0x204   :  { %v9635_v40 = vld [vmem:[#allocation10 + $0x8] sm:$0xf]  ;;  %v1914_v52 = vadd.f32 %v1908_v19, %v14219_v29  ;;  %v13082_v19 = vld [vmem:[#allocation10 + $0x38c] sm:$0xf] }
 0x205   :  { %vm2431_vm8 = vcmp.ge.f32.partialorder %v2427_v6, 0.0  ;;  %v2435_v54 = vmul.f32 0.2, %v2427_v6  ;;  %v9636_v2 = vor.u32 %v12974_v41, %v9635_v40  ;;  %v10307_v37 = vld [vmem:[#allocation10 + $0x548] sm:$0xf]  ;;  %v9768_v40 = vor.u32 %v13002_v33, %v9765_v35 }
 0x206   :  { %4087 = vmatpush.bf16.msra.mxu0 %v9828_v44  ;;  %v13026_v44 = vld [vmem:[#allocation10 + $0x1cc] sm:$0xf]  ;;  %v10595_v26 = vld [vmem:[#allocation10 + $0x788] sm:$0xf] }
 0x207   :  { %v2439_v58 = vsel %vm2431_vm8, %v2427_v6, %v2435_v54  ;;  %v2421_v54 = vperm.slane %v14239_v10, 3  ;;  %v9864_v61 = vor.u32 %v13026_v44, %v9861_v49  ;;  %v9891_v10 = vld [vmem:[#allocation10 + $0x208] sm:$0xf]  ;;  %v12994_v44 = vld [vmem:[#allocation10 + $0xcc] sm:$0xf] }
 0x208   :  { %v14254_v27 = vpack.c.bf16 %v2439_v58, %v2439_v58  ;;  %v13046_v58 = vld [vmem:[#allocation10 + $0x264] sm:$0xf0]  ;;  %v9892_v23 = vor.u32 %v13038_v4, %v9891_v10  ;;  %v9733_v49 = vld [vmem:[#allocation10 + $0xe8] sm:$0xf0] }
 0x209   :  { %v9924_v29 = vor.u32 %v13046_v58, %v9923_v24  ;;  %v13214_v13 = vld [vmem:[#allocation10 + $0x7a4] sm:$0xf0]  ;;  %v13066_v58 = vld [vmem:[#allocation10 + $0x30c] sm:$0xf] }
 0x20a   :  { %4003 = vmatmul.bf16.vlgmr.msra.gmra.mxu1 %v14254_v27  ;;  %4088 = vmatpush.bf16.msra.mxu0 %v9796_v56  ;;  %v13206_v41 = vld [vmem:[#allocation10 + $0x764] sm:$0xf0]  ;;  %v13058_v4 = vld [vmem:[#allocation10 + $0x2cc] sm:$0xf] }
 0x20b   :  { %4099 = vmatpush.bf16.msra.mxu1 %v10116_v60  ;;  %v13198_v24 = vld [vmem:[#allocation10 + $0x724] sm:$0xf0]  ;;  %v13042_v35 = vld [vmem:[#allocation10 + $0x24c] sm:$0xf] }
 0x20c   :  { %v10499_v3 = vld [vmem:[#allocation10 + $0x6c8] sm:$0xf] }
 0x20d   :  { %v13190_v10 = vld [vmem:[#allocation10 + $0x6e4] sm:$0xf0] }
 0x20e   :  { %4089 = vmatpush.bf16.msra.mxu0 %v9764_v63  ;;  %v13150_v63 = vld [vmem:[#allocation10 + $0x5a4] sm:$0xf0] }
 0x20f   :  { %4100 = vmatpush.bf16.msra.mxu1 %v10084_v48  ;;  %v13174_v33 = vld [vmem:[#allocation10 + $0x664] sm:$0xf0] }
 0x211   :  { %4042 = vmatmul.bf16.vlgmr.msrb.gmra.mxu0 %v14251_v31 }
 0x212   :  { %v2361_v16 = vpop.f32.mrf.mxu0  ;;  %v2374_v17 = vpop.f32.mrf.mxu1  ;;  %4090 = vmatpush.bf16.msra.mxu0 %v9732_v8 }
 0x213   :  { %v2375_v57 = vadd.f32 %v2374_v17, %v2361_v16  ;;  %4101 = vmatpush.bf16.msra.mxu1 %v10052_v7  ;;  %v10117_v16 = vld [vmem:[#allocation10 + $0x3e8] sm:$0xf0]  ;;  %v10340_v17 = vor.u32 %v13150_v63, %v10339_v62  ;;  %v10211_v62 = vld [vmem:[#allocation10 + $0x488] sm:$0xf] }
 0x215   :  { %v2406_v21 = vrot.slane %v2375_v57, 1  ;;  %v13142_v57 = vld [vmem:[#allocation10 + $0x564] sm:$0xf0] }
 0x216   :  { %4091 = vmatpush.bf16.msra.mxu0 %v9700_v22  ;;  %v9797_v22 = vld [vmem:[#allocation10 + $0x168] sm:$0xf0] }
 0x217   :  { %v2410_v14 = vsel %vm14113_vm1, 0.0, %v2406_v21  ;;  %4102 = vmatpush.bf16.msra.mxu1 %v10020_v20  ;;  %v13010_v20 = vld [vmem:[#allocation10 + $0x14c] sm:$0xf] }
 0x218   :  { %v2414_v28 = vadd.f32 %v2410_v14, %v1913_v46  ;;  %v10628_v46 = vor.u32 %v13222_v9, %v10627_v5  ;;  %v9989_v5 = vld [vmem:[#allocation10 + $0x2e8] sm:$0xf0]  ;;  %v10179_v9 = vld [vmem:[#allocation10 + $0x448] sm:$0xf] }
 0x219   :  { %v2387_v30 = vpop.f32.mrf.mxu2  ;;  %v2400_v32 = vpop.f32.mrf.mxu3 }
 0x21a   :  { %v2428_v12 = vadd.f32 %v2420_v34, %v2414_v28  ;;  %v2401_v36 = vadd.f32 %v2400_v32, %v2387_v30  ;;  %v2363_v6 = vpop.f32.mrf.mxu0  ;;  %v2376_v55 = vpop.f32.mrf.mxu1  ;;  %4055 = vmatmul.bf16.vlgmr.msrb.gmra.mxu1 %v14254_v27  ;;  %4092 = vmatpush.bf16.msra.mxu0 %v9668_v51  ;;  %v10120_v34 = vor.u32 %v13090_v15, %v10117_v16  ;;  %v10085_v30 = vld [vmem:[#allocation10 + $0x3a8] sm:$0xf0]  ;;  %v10275_v32 = vld [vmem:[#allocation10 + $0x508] sm:$0xf] }
 0x21b   :  { %4103 = vmatpush.bf16.msra.mxu1 %v9988_v53  ;;  %v10308_v28 = vor.u32 %v13142_v57, %v10307_v37  ;;  %v9800_v53 = vor.u32 %v13010_v20, %v9797_v22  ;;  %v13134_v51 = vld [vmem:[#allocation10 + $0x524] sm:$0xf0]  ;;  %v10500_v16 = vor.u32 %v13190_v10, %v10499_v3  ;;  %v13050_v20 = vld [vmem:[#allocation10 + $0x28c] sm:$0xf] }
 0x21c   :  { %vm2432_vm9 = vcmp.ge.f32.partialorder %v2428_v12, 0.0  ;;  %v2436_v38 = vmul.f32 0.2, %v2428_v12  ;;  %v2407_v39 = vrot.slane %v2401_v36, 1  ;;  %v10088_v36 = vor.u32 %v13082_v19, %v10085_v30  ;;  %v10563_v6 = vld [vmem:[#allocation10 + $0x748] sm:$0xf] }
 0x21d   :  { %v10276_v55 = vor.u32 %v13134_v51, %v10275_v32  ;;  %v13110_v15 = vld [vmem:[#allocation10 + $0x464] sm:$0xf0]  ;;  %v13154_v19 = vld [vmem:[#allocation10 + $0x5cc] sm:$0xf] }
 0x21e   :  { %v2440_v60 = vsel %vm2432_vm9, %v2428_v12, %v2436_v38  ;;  %v2411_v56 = vsel %vm14113_vm1, 0.0, %v2407_v39  ;;  %4093 = vmatpush.bf16.msra.mxu0 %v9636_v2  ;;  %v10596_v12 = vor.u32 %v13214_v13, %v10595_v26  ;;  %v10243_v38 = vld [vmem:[#allocation10 + $0x4c8] sm:$0xf]  ;;  %v9736_v2 = vor.u32 %v12994_v44, %v9733_v49  ;;  %v9867_v26 = vld [vmem:[#allocation10 + $0x1d0] sm:$0xf] }
 0x21f   :  { %v14271_v47 = vpack.c.bf16 %v2440_v60, %v2440_v60  ;;  %v2415_v48 = vadd.f32 %v2411_v56, %v1914_v52  ;;  %4104 = vmatpush.bf16.msra.mxu1 %v9956_v50  ;;  %v13126_v39 = vld [vmem:[#allocation10 + $0x4e4] sm:$0xf0]  ;;  %v10564_v50 = vor.u32 %v13206_v41, %v10563_v6  ;;  %v10056_v52 = vor.u32 %v13074_v42, %v10053_v43  ;;  %v10021_v60 = vld [vmem:[#allocation10 + $0x328] sm:$0xf0]  ;;  %v13031_v13 = vld [vmem:[#allocation10 + $0x1ec] sm:$0xf0] }
 0x220   :  { %v10244_v56 = vor.u32 %v13126_v39, %v10243_v38  ;;  %v10024_v0 = vor.u32 %v13066_v58, %v10021_v60  ;;  %v13182_v57 = vld [vmem:[#allocation10 + $0x6a4] sm:$0xf0]  ;;  %v10180_v22 = vor.u32 %v13110_v15, %v10179_v9  ;;  %v10373_v30 = vld [vmem:[#allocation10 + $0x5e8] sm:$0xf0]  ;;  %v9868_v6 = vor.u32 %v13031_v13, %v9867_v26  ;;  %v9835_v41 = vld [vmem:[#allocation10 + $0x190] sm:$0xf] }
 0x221   :  { %v2429_v7 = vadd.f32 %v2421_v54, %v2415_v48  ;;  %v2389_v8 = vpop.f32.mrf.mxu2  ;;  %v2402_v11 = vpop.f32.mrf.mxu3  ;;  %4016 = vmatmul.bf16.vlgmr.msra.gmra.mxu2 %v14271_v47  ;;  %4094 = vmatmul.bf16.vlgmr.msra.gmra.mxu0 %v14251_v31  ;;  %v10531_v54 = vld [vmem:[#allocation10 + $0x708] sm:$0xf]  ;;  %v13023_v42 = vld [vmem:[#allocation10 + $0x1ac] sm:$0xf0]  ;;  %v10341_v49 = vld [vmem:[#allocation10 + $0x5a8] sm:$0xf0] }
 0x222   :  { %4112 = vmatpush.bf16.msra.mxu2 %v10372_v59  ;;  %4138 = vmatpush.bf16.msrb.mxu0 %v9864_v61  ;;  %v12986_v59 = vld [vmem:[#allocation10 + $0x8c] sm:$0xf]  ;;  %v13118_v48 = vld [vmem:[#allocation10 + $0x4a4] sm:$0xf0]  ;;  %v10532_v63 = vor.u32 %v13198_v24, %v10531_v54  ;;  %v10123_v58 = vld [vmem:[#allocation10 + $0x3d0] sm:$0xf] }
 0x223   :  { %vm2433_vm10 = vcmp.ge.f32.partialorder %v2429_v7, 0.0  ;;  %v2437_v21 = vmul.f32 0.2, %v2429_v7  ;;  %4105 = vmatpush.bf16.msra.mxu1 %v9924_v29  ;;  %v9701_v61 = vld [vmem:[#allocation10 + $0xa8] sm:$0xf0] }
 0x224   :  { %v9704_v29 = vor.u32 %v12986_v59, %v9701_v61  ;;  %v12978_v8 = vld [vmem:[#allocation10 + $0x4c] sm:$0xf]  ;;  %v10435_v32 = vld [vmem:[#allocation10 + $0x648] sm:$0xf]  ;;  %v13095_v60 = vld [vmem:[#allocation10 + $0x3ec] sm:$0xf0] }
 0x225   :  { %v2441_v25 = vsel %vm2433_vm10, %v2429_v7, %v2437_v21  ;;  %v10212_v7 = vor.u32 %v13118_v48, %v10211_v62  ;;  %v9669_v11 = vld [vmem:[#allocation10 + $0x68] sm:$0xf0]  ;;  %v10436_v43 = vor.u32 %v13174_v33, %v10435_v32  ;;  %v10403_v38 = vld [vmem:[#allocation10 + $0x608] sm:$0xf]  ;;  %v9803_v59 = vld [vmem:[#allocation10 + $0x150] sm:$0xf] }
 0x226   :  { %v14275_v14 = vpack.c.bf16 %v2441_v25, %v2441_v25  ;;  %4113 = vmatpush.bf16.msra.mxu2 %v10340_v17  ;;  %4139 = vmatpush.bf16.msrb.mxu0 %v9832_v18  ;;  %v9992_v17 = vor.u32 %v13058_v4, %v9989_v5  ;;  %v10467_v18 = vld [vmem:[#allocation10 + $0x688] sm:$0xf]  ;;  %v9672_v37 = vor.u32 %v12978_v8, %v9669_v11  ;;  %v9957_v21 = vld [vmem:[#allocation10 + $0x2a8] sm:$0xf0]  ;;  %v13015_v61 = vld [vmem:[#allocation10 + $0x16c] sm:$0xf0] }
 0x227   :  { %4106 = vmatpush.bf16.msra.mxu1 %v9892_v23  ;;  %v10147_v23 = vld [vmem:[#allocation10 + $0x408] sm:$0xf]  ;;  %v12970_v25 = vld [vmem:[#allocation10 + $0xc] sm:$0xf]  ;;  %v9804_v4 = vor.u32 %v13015_v61, %v9803_v59  ;;  %v13087_v8 = vld [vmem:[#allocation10 + $0x3ac] sm:$0xf0] }
 0x228   :  { %4029 = vmatmul.bf16.vlgmr.msra.gmra.mxu3 %v14275_v14  ;;  %v13166_v39 = vld [vmem:[#allocation10 + $0x624] sm:$0xf0]  ;;  %v13218_v54 = vld [vmem:[#allocation10 + $0x7cc] sm:$0xf]  ;;  %v9771_v9 = vld [vmem:[#allocation10 + $0x110] sm:$0xf] }
 0x229   :  { %4125 = vmatpush.bf16.msra.mxu3 %v10628_v46  ;;  %v9637_v46 = vld [vmem:[#allocation10 + $0x28] sm:$0xf0]  ;;  %v10404_v62 = vor.u32 %v13166_v39, %v10403_v38  ;;  %v13007_v15 = vld [vmem:[#allocation10 + $0x12c] sm:$0xf0] }
 0x22a   :  { %4114 = vmatpush.bf16.msra.mxu2 %v10308_v28  ;;  %4140 = vmatpush.bf16.msrb.mxu0 %v9800_v53  ;;  %v10468_v28 = vor.u32 %v13182_v57, %v10467_v18  ;;  %v9960_v53 = vor.u32 %v13050_v20, %v9957_v21  ;;  %v9640_v51 = vor.u32 %v12970_v25, %v9637_v46  ;;  %v10629_v24 = vld [vmem:[#allocation10 + $0x7e8] sm:$0xf0]  ;;  %v9739_v46 = vld [vmem:[#allocation10 + $0xd0] sm:$0xf] }
 0x22b   :  { %4151 = vmatpush.bf16.msrb.mxu1 %v10120_v34  ;;  %v13102_v34 = vld [vmem:[#allocation10 + $0x424] sm:$0xf0]  ;;  %v10632_v3 = vor.u32 %v13218_v54, %v10629_v24  ;;  %v13210_v10 = vld [vmem:[#allocation10 + $0x78c] sm:$0xf]  ;;  %v9772_v20 = vor.u32 %v13007_v15, %v9771_v9  ;;  %v13071_v33 = vld [vmem:[#allocation10 + $0x32c] sm:$0xf0] }
 0x22c   :  { %4107 = vmatmul.bf16.vlgmr.msra.gmra.mxu1 %v14254_v27  ;;  %v10597_v5 = vld [vmem:[#allocation10 + $0x7a8] sm:$0xf0]  ;;  %v13063_v38 = vld [vmem:[#allocation10 + $0x2ec] sm:$0xf0] }
 0x22d   :  { %4126 = vmatpush.bf16.msra.mxu3 %v10596_v12  ;;  %v9925_v12 = vld [vmem:[#allocation10 + $0x268] sm:$0xf0]  ;;  %v10600_v18 = vor.u32 %v13210_v10, %v10597_v5  ;;  %v9963_v61 = vld [vmem:[#allocation10 + $0x290] sm:$0xf]  ;;  %v13027_v10 = vld [vmem:[#allocation10 + $0x1d4] sm:$0xf] }
 0x22e   :  { %4115 = vmatpush.bf16.msra.mxu2 %v10276_v55  ;;  %4141 = vmatpush.bf16.msrb.mxu0 %v9768_v40  ;;  %v10376_v55 = vor.u32 %v13154_v19, %v10373_v30  ;;  %v13146_v40 = vld [vmem:[#allocation10 + $0x58c] sm:$0xf]  ;;  %v9928_v44 = vor.u32 %v13042_v35, %v9925_v12  ;;  %v9707_v12 = vld [vmem:[#allocation10 + $0x90] sm:$0xf] }
 0x22f   :  { %4152 = vmatpush.bf16.msrb.mxu1 %v10088_v36  ;;  %v10148_v36 = vor.u32 %v13102_v34, %v10147_v23  ;;  %v13202_v57 = vld [vmem:[#allocation10 + $0x74c] sm:$0xf]  ;;  %v13079_v23 = vld [vmem:[#allocation10 + $0x36c] sm:$0xf0] }
 0x230   :  { %v10565_v21 = vld [vmem:[#allocation10 + $0x768] sm:$0xf0]  ;;  %v12999_v34 = vld [vmem:[#allocation10 + $0xec] sm:$0xf0] }
 0x231   :  { %4127 = vmatpush.bf16.msra.mxu3 %v10564_v50  ;;  %4068 = vmatmul.bf16.vlgmr.msrb.gmra.mxu2 %v14271_v47  ;;  %v13034_v50 = vld [vmem:[#allocation10 + $0x20c] sm:$0xf]  ;;  %v9740_v30 = vor.u32 %v12999_v34, %v9739_v46  ;;  %v13151_v34 = vld [vmem:[#allocation10 + $0x5ac] sm:$0xf0] }
 0x232   :  { %4142 = vmatpush.bf16.msrb.mxu0 %v9736_v2  ;;  %4116 = vmatpush.bf16.msra.mxu2 %v10244_v56  ;;  %v9836_v2 = vor.u32 %v13023_v42, %v9835_v41  ;;  %v10344_v56 = vor.u32 %v13146_v40, %v10341_v49  ;;  %v13122_v26 = vld [vmem:[#allocation10 + $0x4cc] sm:$0xf]  ;;  %v9995_v49 = vld [vmem:[#allocation10 + $0x2d0] sm:$0xf] }
 0x233   :  { %4153 = vmatpush.bf16.msrb.mxu1 %v10056_v52  ;;  %v9893_v52 = vld [vmem:[#allocation10 + $0x228] sm:$0xf0] }
 0x234   :  { %v9896_v48 = vor.u32 %v13034_v50, %v9893_v52  ;;  %v10245_v13 = vld [vmem:[#allocation10 + $0x4e8] sm:$0xf0]  ;;  %v9675_v50 = vld [vmem:[#allocation10 + $0x50] sm:$0xf] }
 0x235   :  { %4128 = vmatpush.bf16.msra.mxu3 %v10532_v63  ;;  %v13138_v63 = vld [vmem:[#allocation10 + $0x54c] sm:$0xf]  ;;  %v10248_v35 = vor.u32 %v13122_v26, %v10245_v13  ;;  %v12983_v52 = vld [vmem:[#allocation10 + $0x6c] sm:$0xf0] }
 0x236   :  { %4143 = vmatpush.bf16.msrb.mxu0 %v9704_v29  ;;  %4117 = vmatpush.bf16.msra.mxu2 %v10212_v7  ;;  %v10124_v29 = vor.u32 %v13095_v60, %v10123_v58  ;;  %v10091_v7 = vld [vmem:[#allocation10 + $0x390] sm:$0xf]  ;;  %v13194_v19 = vld [vmem:[#allocation10 + $0x70c] sm:$0xf]  ;;  %v9996_v58 = vor.u32 %v13063_v38, %v9995_v49 }
 0x237   :  { %4154 = vmatpush.bf16.msrb.mxu1 %v10024_v0  ;;  %v10309_v0 = vld [vmem:[#allocation10 + $0x568] sm:$0xf0]  ;;  %v13215_v38 = vld [vmem:[#allocation10 + $0x7ac] sm:$0xf0] }
 0x238   :  { %4081 = vmatmul.bf16.vlgmr.msrb.gmra.mxu3 %v14275_v14  ;;  %v10312_v11 = vor.u32 %v13138_v63, %v10309_v0  ;;  %v10533_v32 = vld [vmem:[#allocation10 + $0x728] sm:$0xf0]  ;;  %v9643_v0 = vld [vmem:[#allocation10 + $0x10] sm:$0xf] }
 0x239   :  { %4129 = vmatpush.bf16.msra.mxu3 %v10500_v16  ;;  %v13130_v16 = vld [vmem:[#allocation10 + $0x50c] sm:$0xf]  ;;  %v10536_v40 = vor.u32 %v13194_v19, %v10533_v32  ;;  %v10635_v19 = vld [vmem:[#allocation10 + $0x7d0] sm:$0xf] }
 0x23a   :  { %4144 = vmatpush.bf16.msrb.mxu0 %v9672_v37  ;;  %4118 = vmatpush.bf16.msra.mxu2 %v10180_v22  ;;  %v10092_v37 = vor.u32 %v13087_v8, %v10091_v7  ;;  %v10059_v22 = vld [vmem:[#allocation10 + $0x350] sm:$0xf]  ;;  %v13186_v42 = vld [vmem:[#allocation10 + $0x6cc] sm:$0xf] }
 0x23b   :  { %4155 = vmatpush.bf16.msrb.mxu1 %v9992_v17  ;;  %v10277_v17 = vld [vmem:[#allocation10 + $0x528] sm:$0xf0]  ;;  %v10379_v8 = vld [vmem:[#allocation10 + $0x5d0] sm:$0xf] }
 0x23c   :  { %v10280_v25 = vor.u32 %v13130_v16, %v10277_v17  ;;  %v13106_v54 = vld [vmem:[#allocation10 + $0x44c] sm:$0xf]  ;;  %v9931_v17 = vld [vmem:[#allocation10 + $0x250] sm:$0xf] }
 0x23d   :  { %4130 = vmatpush.bf16.msra.mxu3 %v10468_v28  ;;  %v10568_v28 = vor.u32 %v13202_v57, %v10565_v21  ;;  %v13178_v60 = vld [vmem:[#allocation10 + $0x68c] sm:$0xf]  ;;  %v10347_v21 = vld [vmem:[#allocation10 + $0x590] sm:$0xf] }
 0x23e   :  { %4145 = vmatpush.bf16.msrb.mxu0 %v9640_v51  ;;  %4119 = vmatpush.bf16.msra.mxu2 %v10148_v36  ;;  %v10027_v51 = vld [vmem:[#allocation10 + $0x310] sm:$0xf]  ;;  %v10469_v59 = vld [vmem:[#allocation10 + $0x6a8] sm:$0xf0] }
 0x23f   :  { %4156 = vmatpush.bf16.msrb.mxu1 %v9960_v53  ;;  %v10060_v53 = vor.u32 %v13079_v23, %v10059_v22  ;;  %v12991_v36 = vld [vmem:[#allocation10 + $0xac] sm:$0xf0]  ;;  %v10028_v41 = vor.u32 %v13071_v33, %v10027_v51  ;;  %v13098_v63 = vld [vmem:[#allocation10 + $0x40c] sm:$0xf]  ;;  %v10472_v5 = vor.u32 %v13178_v60, %v10469_v59  ;;  %v13019_v22 = vld [vmem:[#allocation10 + $0x194] sm:$0xf] }
 0x240   :  { %v13170_v9 = vld [vmem:[#allocation10 + $0x64c] sm:$0xf]  ;;  %v9837_v23 = vld [vmem:[#allocation10 + $0x1b0] sm:$0xf0]  ;;  %v13223_v32 = vld [vmem:[#allocation10 + $0x7ec] sm:$0xf0] }
 0x241   :  { %4131 = vmatpush.bf16.msra.mxu3 %v10436_v43  ;;  %4146 = vmatmul.bf16.vlgmr.msrb.gmra.mxu0 %v14251_v31  ;;  %v9708_v43 = vor.u32 %v12991_v36, %v9707_v12  ;;  %v10437_v16 = vld [vmem:[#allocation10 + $0x668] sm:$0xf0]  ;;  %v13091_v51 = vld [vmem:[#allocation10 + $0x3d4] sm:$0xf]  ;;  %v10283_v60 = vld [vmem:[#allocation10 + $0x510] sm:$0xf] }
 0x242   :  { %4190 = vmatpush.bf16.msra.mxu0 %v9868_v6  ;;  %4164 = vmatpush.bf16.msrb.mxu2 %v10376_v55  ;;  %v13114_v6 = vld [vmem:[#allocation10 + $0x48c] sm:$0xf]  ;;  %v10125_v33 = vld [vmem:[#allocation10 + $0x3f0] sm:$0xf0]  ;;  %v10571_v59 = vld [vmem:[#allocation10 + $0x750] sm:$0xf] }
 0x243   :  { %4157 = vmatpush.bf16.msrb.mxu1 %v9928_v44  ;;  %4120 = vmatmul.bf16.vlgmr.msra.gmra.mxu2 %v14271_v47  ;;  %v10213_v55 = vld [vmem:[#allocation10 + $0x4a8] sm:$0xf0]  ;;  %v13011_v12 = vld [vmem:[#allocation10 + $0x154] sm:$0xf] }
 0x244   :  { %v10501_v44 = vld [vmem:[#allocation10 + $0x6e8] sm:$0xf0]  ;;  %v10216_v39 = vor.u32 %v13114_v6, %v10213_v55  ;;  %v9805_v36 = vld [vmem:[#allocation10 + $0x170] sm:$0xf0] }
 0x245   :  { %4132 = vmatpush.bf16.msra.mxu3 %v10404_v62  ;;  %v10504_v24 = vor.u32 %v13186_v42, %v10501_v44  ;;  %v13055_v62 = vld [vmem:[#allocation10 + $0x2ac] sm:$0xf0]  ;;  %v13162_v26 = vld [vmem:[#allocation10 + $0x60c] sm:$0xf]  ;;  %v9808_v49 = vor.u32 %v13011_v12, %v9805_v36  ;;  %v13051_v36 = vld [vmem:[#allocation10 + $0x294] sm:$0xf] }
 0x246   :  { %4191 = vmatpush.bf16.msra.mxu0 %v9836_v2  ;;  %4165 = vmatpush.bf16.msrb.mxu2 %v10344_v56  ;;  %v10181_v2 = vld [vmem:[#allocation10 + $0x468] sm:$0xf0]  ;;  %v9676_v56 = vor.u32 %v12983_v52, %v9675_v50  ;;  %v9964_v7 = vor.u32 %v13055_v62, %v9963_v61  ;;  %v10315_v42 = vld [vmem:[#allocation10 + $0x550] sm:$0xf]  ;;  %v10093_v50 = vld [vmem:[#allocation10 + $0x3b0] sm:$0xf0] }
 0x247   :  { %4158 = vmatpush.bf16.msrb.mxu1 %v9896_v48  ;;  %v10184_v48 = vor.u32 %v13106_v54, %v10181_v2  ;;  %v10405_v13 = vld [vmem:[#allocation10 + $0x628] sm:$0xf0]  ;;  %v10603_v44 = vld [vmem:[#allocation10 + $0x790] sm:$0xf]  ;;  %v13003_v52 = vld [vmem:[#allocation10 + $0x114] sm:$0xf] }
 0x248   :  { %4133 = vmatmul.bf16.vlgmr.msra.gmra.mxu3 %v14275_v14  ;;  %v10408_v6 = vor.u32 %v13162_v26, %v10405_v13  ;;  %v9773_v54 = vld [vmem:[#allocation10 + $0x130] sm:$0xf0]  ;;  %v13207_v62 = vld [vmem:[#allocation10 + $0x76c] sm:$0xf0] }
 0x249   :  { %4177 = vmatpush.bf16.msrb.mxu3 %v10632_v3  ;;  %v12975_v3 = vld [vmem:[#allocation10 + $0x2c] sm:$0xf0]  ;;  %v9776_v61 = vor.u32 %v13003_v52, %v9773_v54  ;;  %v9997_v26 = vld [vmem:[#allocation10 + $0x2f0] sm:$0xf0] }
 0x24a   :  { %4192 = vmatpush.bf16.msra.mxu0 %v9804_v4  ;;  %4159 = vmatmul.bf16.vlgmr.msrb.gmra.mxu1 %v14254_v27  ;;  %v9869_v4 = vld [vmem:[#allocation10 + $0x1f0] sm:$0xf0]  ;;  %v9644_v15 = vor.u32 %v12975_v3, %v9643_v0  ;;  %v13183_v12 = vld [vmem:[#allocation10 + $0x6ac] sm:$0xf0] }
 0x24b   :  { %4203 = vmatpush.bf16.msra.mxu1 %v10124_v29  ;;  %4166 = vmatpush.bf16.msrb.mxu2 %v10312_v11  ;;  %v10149_v29 = vld [vmem:[#allocation10 + $0x428] sm:$0xf0]  ;;  %v13159_v11 = vld [vmem:[#allocation10 + $0x5ec] sm:$0xf0]  ;;  %v9872_v57 = vor.u32 %v13027_v10, %v9869_v4  ;;  %v12995_v0 = vld [vmem:[#allocation10 + $0xd4] sm:$0xf]  ;;  %v10572_v10 = vor.u32 %v13207_v62, %v10571_v59 }
 0x24c   :  { %v9741_v3 = vld [vmem:[#allocation10 + $0xf0] sm:$0xf0]  ;;  %v13024_v62 = vld [vmem:[#allocation10 + $0x1b4] sm:$0xf0] }
 0x24d   :  { %4178 = vmatpush.bf16.msrb.mxu3 %v10600_v18  ;;  %v13047_v18 = vld [vmem:[#allocation10 + $0x26c] sm:$0xf0]  ;;  %v12979_v13 = vld [vmem:[#allocation10 + $0x54] sm:$0xf] }
 0x24e   :  { %4193 = vmatpush.bf16.msra.mxu0 %v9772_v20  ;;  %v10380_v20 = vor.u32 %v13159_v11, %v10379_v8  ;;  %v9932_v46 = vor.u32 %v13047_v18, %v9931_v17  ;;  %v10539_v8 = vld [vmem:[#allocation10 + $0x710] sm:$0xf]  ;;  %v9744_v11 = vor.u32 %v12995_v0, %v9741_v3  ;;  %v12987_v17 = vld [vmem:[#allocation10 + $0x94] sm:$0xf] }
 0x24f   :  { %4204 = vmatpush.bf16.msra.mxu1 %v10092_v37  ;;  %4167 = vmatpush.bf16.msrb.mxu2 %v10280_v25  ;;  %v10152_v37 = vor.u32 %v13098_v63, %v10149_v29  ;;  %v10440_v25 = vor.u32 %v13170_v9, %v10437_v16  ;;  %v10061_v63 = vld [vmem:[#allocation10 + $0x370] sm:$0xf0]  ;;  %v13199_v9 = vld [vmem:[#allocation10 + $0x72c] sm:$0xf0] }
 0x250   :  { %v10029_v16 = vld [vmem:[#allocation10 + $0x330] sm:$0xf0] }
 0x251   :  { %4179 = vmatpush.bf16.msrb.mxu3 %v10568_v28  ;;  %v9899_v28 = vld [vmem:[#allocation10 + $0x210] sm:$0xf]  ;;  %v9709_v18 = vld [vmem:[#allocation10 + $0xb0] sm:$0xf0] }
 0x252   :  { %4194 = vmatpush.bf16.msra.mxu0 %v9740_v30  ;;  %v9840_v30 = vor.u32 %v13019_v22, %v9837_v23  ;;  %v13119_v22 = vld [vmem:[#allocation10 + $0x4ac] sm:$0xf0]  ;;  %v10381_v54 = vld [vmem:[#allocation10 + $0x5f0] sm:$0xf0] }
 0x253   :  { %4205 = vmatpush.bf16.msra.mxu1 %v10060_v53  ;;  %4168 = vmatpush.bf16.msrb.mxu2 %v10248_v35  ;;  %v13039_v53 = vld [vmem:[#allocation10 + $0x22c] sm:$0xf0]  ;;  %v10348_v35 = vor.u32 %v13151_v34, %v10347_v21  ;;  %v13059_v34 = vld [vmem:[#allocation10 + $0x2d4] sm:$0xf] }
 0x254   :  { %v9900_v55 = vor.u32 %v13039_v53, %v9899_v28  ;;  %v10219_v21 = vld [vmem:[#allocation10 + $0x490] sm:$0xf]  ;;  %v9677_v28 = vld [vmem:[#allocation10 + $0x70] sm:$0xf0] }
 0x255   :  { %4180 = vmatpush.bf16.msrb.mxu3 %v10536_v40  ;;  %v10636_v40 = vor.u32 %v13223_v32, %v10635_v19  ;;  %v10507_v23 = vld [vmem:[#allocation10 + $0x6d0] sm:$0xf]  ;;  %v10220_v53 = vor.u32 %v13119_v22, %v10219_v21  ;;  %v13147_v0 = vld [vmem:[#allocation10 + $0x594] sm:$0xf] }
 0x256   :  { %4195 = vmatpush.bf16.msra.mxu0 %v9708_v43  ;;  %v13143_v43 = vld [vmem:[#allocation10 + $0x56c] sm:$0xf0]  ;;  %v10349_v3 = vld [vmem:[#allocation10 + $0x5b0] sm:$0xf0] }
 0x257   :  { %4206 = vmatpush.bf16.msra.mxu1 %v10028_v41  ;;  %4169 = vmatpush.bf16.msrb.mxu2 %v10216_v39  ;;  %v10128_v41 = vor.u32 %v13091_v51, %v10125_v33  ;;  %v13083_v39 = vld [vmem:[#allocation10 + $0x394] sm:$0xf]  ;;  %v10316_v2 = vor.u32 %v13143_v43, %v10315_v42  ;;  %v10187_v32 = vld [vmem:[#allocation10 + $0x450] sm:$0xf]  ;;  %v9875_v42 = vld [vmem:[#allocation10 + $0x1d8] sm:$0xf] }
 0x258   :  { %v13111_v51 = vld [vmem:[#allocation10 + $0x46c] sm:$0xf0]  ;;  %v13032_v43 = vld [vmem:[#allocation10 + $0x1f4] sm:$0xf0]  ;;  %v13139_v22 = vld [vmem:[#allocation10 + $0x554] sm:$0xf] }
 0x259   :  { %4181 = vmatpush.bf16.msrb.mxu3 %v10504_v24  ;;  %v10604_v24 = vor.u32 %v13215_v38, %v10603_v44  ;;  %v10475_v33 = vld [vmem:[#allocation10 + $0x690] sm:$0xf] }
 0x25a   :  { %4196 = vmatpush.bf16.msra.mxu0 %v9676_v56  ;;  %v13135_v56 = vld [vmem:[#allocation10 + $0x52c] sm:$0xf0]  ;;  %v10476_v44 = vor.u32 %v13183_v12, %v10475_v33  ;;  %v10285_v33 = vld [vmem:[#allocation10 + $0x530] sm:$0xf0] }
 0x25b   :  { %4207 = vmatpush.bf16.msra.mxu1 %v9996_v58  ;;  %4170 = vmatpush.bf16.msrb.mxu2 %v10184_v48  ;;  %v10096_v58 = vor.u32 %v13083_v39, %v10093_v50  ;;  %v13075_v48 = vld [vmem:[#allocation10 + $0x354] sm:$0xf]  ;;  %v10284_v29 = vor.u32 %v13135_v56, %v10283_v60  ;;  %v10155_v38 = vld [vmem:[#allocation10 + $0x410] sm:$0xf] }
 0x25c   :  { %v10064_v4 = vor.u32 %v13075_v48, %v10061_v63  ;;  %v13103_v39 = vld [vmem:[#allocation10 + $0x42c] sm:$0xf0]  ;;  %v13155_v50 = vld [vmem:[#allocation10 + $0x5d4] sm:$0xf] }
 0x25d   :  { %4182 = vmatpush.bf16.msrb.mxu3 %v10472_v5  ;;  %v10251_v5 = vld [vmem:[#allocation10 + $0x4d0] sm:$0xf]  ;;  %v13043_v60 = vld [vmem:[#allocation10 + $0x254] sm:$0xf]  ;;  %v10156_v59 = vor.u32 %v13103_v39, %v10155_v38  ;;  %v10384_v48 = vor.u32 %v13155_v50, %v10381_v54 }
 0x25e   :  { %4197 = vmatpush.bf16.msra.mxu0 %v9644_v15  ;;  %v13067_v15 = vld [vmem:[#allocation10 + $0x314] sm:$0xf] }
 0x25f   :  { %4208 = vmatpush.bf16.msra.mxu1 %v9964_v7  ;;  %4171 = vmatpush.bf16.msrb.mxu2 %v10152_v37  ;;  %v13127_v7 = vld [vmem:[#allocation10 + $0x4ec] sm:$0xf0]  ;;  %v9933_v56 = vld [vmem:[#allocation10 + $0x270] sm:$0xf0] }
 0x260   :  { %v10252_v37 = vor.u32 %v13127_v7, %v10251_v5  ;;  %v13035_v5 = vld [vmem:[#allocation10 + $0x214] sm:$0xf] }
 0x261   :  { %4183 = vmatpush.bf16.msrb.mxu3 %v10440_v25  ;;  %4198 = vmatmul.bf16.vlgmr.msra.gmra.mxu0 %v14251_v31  ;;  %v9712_v25 = vor.u32 %v12987_v17, %v9709_v18  ;;  %v9901_v7 = vld [vmem:[#allocation10 + $0x230] sm:$0xf0]  ;;  %v9811_v17 = vld [vmem:[#allocation10 + $0x158] sm:$0xf] }
 0x262   :  { %4242 = vmatpush.bf16.msrb.mxu0 %v9872_v57  ;;  %4172 = vmatmul.bf16.vlgmr.msrb.gmra.mxu2 %v14271_v47  ;;  %v10540_v57 = vor.u32 %v13199_v9, %v10539_v8  ;;  %v10637_v9 = vld [vmem:[#allocation10 + $0x7f0] sm:$0xf0]  ;;  %v13016_v18 = vld [vmem:[#allocation10 + $0x174] sm:$0xf0] }
 0x263   :  { %4216 = vmatpush.bf16.msra.mxu2 %v10380_v20  ;;  %4209 = vmatpush.bf16.msra.mxu1 %v9932_v46  ;;  %v10032_v20 = vor.u32 %v13067_v15, %v10029_v16  ;;  %v13191_v46 = vld [vmem:[#allocation10 + $0x6ec] sm:$0xf0]  ;;  %v10131_v15 = vld [vmem:[#allocation10 + $0x3d8] sm:$0xf]  ;;  %v13123_v38 = vld [vmem:[#allocation10 + $0x4d4] sm:$0xf] }
 0x264   :  { %v10508_v19 = vor.u32 %v13191_v46, %v10507_v23  ;;  %v13096_v16 = vld [vmem:[#allocation10 + $0x3f4] sm:$0xf0]  ;;  %v10317_v23 = vld [vmem:[#allocation10 + $0x570] sm:$0xf0]  ;;  %v9812_v46 = vor.u32 %v13016_v18, %v9811_v17 }
 0x265   :  { %4184 = vmatpush.bf16.msrb.mxu3 %v10408_v6  ;;  %v9965_v6 = vld [vmem:[#allocation10 + $0x2b0] sm:$0xf0] }
 0x266   :  { %4243 = vmatpush.bf16.msrb.mxu0 %v9840_v30  ;;  %v10000_v30 = vor.u32 %v13059_v34, %v9997_v26  ;;  %v13211_v34 = vld [vmem:[#allocation10 + $0x794] sm:$0xf] }
 0x267   :  { %4217 = vmatpush.bf16.msra.mxu2 %v10348_v35  ;;  %4210 = vmatpush.bf16.msra.mxu1 %v9900_v55  ;;  %v9680_v35 = vor.u32 %v12979_v13, %v9677_v28  ;;  %v12971_v55 = vld [vmem:[#allocation10 + $0x14] sm:$0xf]  ;;  %v10099_v13 = vld [vmem:[#allocation10 + $0x398] sm:$0xf] }
 0x268   :  { %4185 = vmatmul.bf16.vlgmr.msrb.gmra.mxu3 %v14275_v14  ;;  %v10605_v26 = vld [vmem:[#allocation10 + $0x7b0] sm:$0xf0]  ;;  %v13088_v28 = vld [vmem:[#allocation10 + $0x3b4] sm:$0xf0] }
 0x269   :  { %4229 = vmatpush.bf16.msra.mxu3 %v10636_v40  ;;  %v9645_v40 = vld [vmem:[#allocation10 + $0x30] sm:$0xf0]  ;;  %v10100_v12 = vor.u32 %v13088_v28, %v10099_v13  ;;  %v9877_v13 = vld [vmem:[#allocation10 + $0x1f8] sm:$0xf0] }
 0x26a   :  { %4244 = vmatpush.bf16.msrb.mxu0 %v9808_v49  ;;  %4211 = vmatmul.bf16.vlgmr.msra.gmra.mxu1 %v14254_v27  ;;  %v9968_v49 = vor.u32 %v13051_v36, %v9965_v6  ;;  %v9648_v52 = vor.u32 %v12971_v55, %v9645_v40  ;;  %v13203_v6 = vld [vmem:[#allocation10 + $0x754] sm:$0xf]  ;;  %v10067_v40 = vld [vmem:[#allocation10 + $0x358] sm:$0xf] }
 0x26b   :  { %4255 = vmatpush.bf16.msrb.mxu1 %v10128_v41  ;;  %4218 = vmatpush.bf16.msra.mxu2 %v10316_v2  ;;  %v10188_v41 = vor.u32 %v13111_v51, %v10187_v32  ;;  %v10443_v2 = vld [vmem:[#allocation10 + $0x650] sm:$0xf]  ;;  %v10608_v32 = vor.u32 %v13211_v34, %v10605_v26  ;;  %v13131_v51 = vld [vmem:[#allocation10 + $0x514] sm:$0xf]  ;;  %v13028_v26 = vld [vmem:[#allocation10 + $0x1dc] sm:$0xf] }
 0x26c   :  { %v10573_v55 = vld [vmem:[#allocation10 + $0x770] sm:$0xf0] }
 0x26d   :  { %4230 = vmatpush.bf16.msra.mxu3 %v10604_v24  ;;  %v13175_v24 = vld [vmem:[#allocation10 + $0x66c] sm:$0xf0]  ;;  %v10253_v39 = vld [vmem:[#allocation10 + $0x4f0] sm:$0xf0] }
 0x26e   :  { %4245 = vmatpush.bf16.msrb.mxu0 %v9776_v61  ;;  %v9843_v61 = vld [vmem:[#allocation10 + $0x198] sm:$0xf]  ;;  %v10444_v63 = vor.u32 %v13175_v24, %v10443_v2  ;;  %v13195_v54 = vld [vmem:[#allocation10 + $0x714] sm:$0xf] }
 0x26f   :  { %4256 = vmatpush.bf16.msrb.mxu1 %v10096_v58  ;;  %4219 = vmatpush.bf16.msra.mxu2 %v10284_v29  ;;  %v9876_v58 = vor.u32 %v13032_v43, %v9875_v42  ;;  %v10411_v29 = vld [vmem:[#allocation10 + $0x610] sm:$0xf]  ;;  %v9844_v8 = vor.u32 %v13024_v62, %v9843_v61  ;;  %v9747_v42 = vld [vmem:[#allocation10 + $0xd8] sm:$0xf]  ;;  %v10541_v2 = vld [vmem:[#allocation10 + $0x730] sm:$0xf0] }
 0x270   :  { %v13000_v43 = vld [vmem:[#allocation10 + $0xf4] sm:$0xf0]  ;;  %v10544_v62 = vor.u32 %v13195_v54, %v10541_v2  ;;  %v13107_v17 = vld [vmem:[#allocation10 + $0x454] sm:$0xf] }
 0x271   :  { %4231 = vmatpush.bf16.msra.mxu3 %v10572_v10  ;;  %v9936_v10 = vor.u32 %v13043_v60, %v9933_v56  ;;  %v10035_v24 = vld [vmem:[#allocation10 + $0x318] sm:$0xf]  ;;  %v10189_v18 = vld [vmem:[#allocation10 + $0x470] sm:$0xf0] }
 0x272   :  { %4246 = vmatpush.bf16.msrb.mxu0 %v9744_v11  ;;  %v13219_v11 = vld [vmem:[#allocation10 + $0x7d4] sm:$0xf]  ;;  %v9715_v60 = vld [vmem:[#allocation10 + $0x98] sm:$0xf]  ;;  %v10192_v34 = vor.u32 %v13107_v17, %v10189_v18 }
 0x273   :  { %4257 = vmatpush.bf16.msrb.mxu1 %v10064_v4  ;;  %4220 = vmatpush.bf16.msra.mxu2 %v10252_v37  ;;  %v13167_v4 = vld [vmem:[#allocation10 + $0x62c] sm:$0xf0]  ;;  %v10352_v37 = vor.u32 %v13147_v0, %v10349_v3  ;;  %v10640_v21 = vor.u32 %v13219_v11, %v10637_v9  ;;  %v12992_v56 = vld [vmem:[#allocation10 + $0xb4] sm:$0xf0]  ;;  %v10413_v2 = vld [vmem:[#allocation10 + $0x630] sm:$0xf0] }
 0x274   :  { %v9683_v11 = vld [vmem:[#allocation10 + $0x58] sm:$0xf] }
 0x275   :  { %4232 = vmatpush.bf16.msra.mxu3 %v10540_v57  ;;  %v10412_v57 = vor.u32 %v13167_v4, %v10411_v29  ;;  %v13187_v4 = vld [vmem:[#allocation10 + $0x6d4] sm:$0xf]  ;;  %v12984_v9 = vld [vmem:[#allocation10 + $0x74] sm:$0xf0] }
 0x276   :  { %4247 = vmatpush.bf16.msrb.mxu0 %v9712_v25  ;;  %v10132_v25 = vor.u32 %v13096_v16, %v10131_v15  ;;  %v10611_v17 = vld [vmem:[#allocation10 + $0x798] sm:$0xf] }
 0x277   :  { %4258 = vmatpush.bf16.msrb.mxu1 %v10032_v20  ;;  %4221 = vmatpush.bf16.msra.mxu2 %v10220_v53  ;;  %v9904_v20 = vor.u32 %v13035_v5, %v9901_v7  ;;  %v9779_v53 = vld [vmem:[#allocation10 + $0x118] sm:$0xf]  ;;  %v10509_v5 = vld [vmem:[#allocation10 + $0x6f0] sm:$0xf0] }
 0x278   :  { %v10003_v7 = vld [vmem:[#allocation10 + $0x2d8] sm:$0xf]  ;;  %v10512_v16 = vor.u32 %v13187_v4, %v10509_v5 }
 0x279   :  { %4233 = vmatpush.bf16.msra.mxu3 %v10508_v19  ;;  %v13008_v19 = vld [vmem:[#allocation10 + $0x134] sm:$0xf0] }
 0x27a   :  { %4248 = vmatpush.bf16.msrb.mxu0 %v9680_v35  ;;  %v9780_v36 = vor.u32 %v13008_v19, %v9779_v53  ;;  %v13099_v19 = vld [vmem:[#allocation10 + $0x414] sm:$0xf]  ;;  %v13216_v18 = vld [vmem:[#allocation10 + $0x7b4] sm:$0xf0] }
 0x27b   :  { %4259 = vmatpush.bf16.msrb.mxu1 %v10000_v30  ;;  %4222 = vmatpush.bf16.msra.mxu2 %v10188_v41  ;;  %v10320_v30 = vor.u32 %v13139_v22, %v10317_v23  ;;  %v13080_v41 = vld [vmem:[#allocation10 + $0x374] sm:$0xf0] }
 0x27c   :  { %v10068_v50 = vor.u32 %v13080_v41, %v10067_v40  ;;  %v9971_v22 = vld [vmem:[#allocation10 + $0x298] sm:$0xf] }
 0x27d   :  { %4234 = vmatpush.bf16.msra.mxu3 %v10476_v44  ;;  %v10288_v44 = vor.u32 %v13131_v51, %v10285_v33  ;;  %v13056_v23 = vld [vmem:[#allocation10 + $0x2b4] sm:$0xf0] }
 0x27e   :  { %4249 = vmatpush.bf16.msrb.mxu0 %v9648_v52  ;;  %v3991_v35 = vpop.f32.mrf.mxu0  ;;  %v9748_v52 = vor.u32 %v13000_v43, %v9747_v42  ;;  %v9972_v33 = vor.u32 %v13056_v23, %v9971_v22  ;;  %v9939_v40 = vld [vmem:[#allocation10 + $0x258] sm:$0xf]  ;;  %v13020_v43 = vld [vmem:[#allocation10 + $0x19c] sm:$0xf]  ;;  %v10612_v23 = vor.u32 %v13216_v18, %v10611_v17 }
 0x27f   :  { %4260 = vmatpush.bf16.msrb.mxu1 %v9968_v49  ;;  %4223 = vmatpush.bf16.msra.mxu2 %v10156_v59  ;;  %v10576_v49 = vor.u32 %v13203_v6, %v10573_v55  ;;  %v10256_v59 = vor.u32 %v13123_v38, %v10253_v39  ;;  %v10445_v6 = vld [vmem:[#allocation10 + $0x670] sm:$0xf0]  ;;  %v9880_v55 = vor.u32 %v13028_v26, %v9877_v13  ;;  %v13048_v41 = vld [vmem:[#allocation10 + $0x274] sm:$0xf0]  ;;  %v13052_v17 = vld [vmem:[#allocation10 + $0x29c] sm:$0xf] }
 0x280   :  { %v10355_v39 = vld [vmem:[#allocation10 + $0x598] sm:$0xf]  ;;  %v9940_v54 = vor.u32 %v13048_v41, %v9939_v40 }
 0x281   :  { %4235 = vmatpush.bf16.msra.mxu3 %v10444_v63  ;;  %4250 = vmatmul.bf16.vlgmr.msrb.gmra.mxu0 %v14251_v31  ;;  %v10221_v63 = vld [vmem:[#allocation10 + $0x4b0] sm:$0xf0]  ;;  %v10579_v13 = vld [vmem:[#allocation10 + $0x758] sm:$0xf] }
 0x282   :  { %4294 = vmatpush.bf16.msra.mxu0 %v9876_v58  ;;  %4224 = vmatmul.bf16.vlgmr.msra.gmra.mxu2 %v14271_v47  ;;  %v13072_v58 = vld [vmem:[#allocation10 + $0x334] sm:$0xf0] }
 0x283   :  { %4268 = vmatpush.bf16.msrb.mxu2 %v10384_v48  ;;  %4261 = vmatpush.bf16.msrb.mxu1 %v9936_v10  ;;  %v13115_v48 = vld [vmem:[#allocation10 + $0x494] sm:$0xf]  ;;  %v10036_v29 = vor.u32 %v13072_v58, %v10035_v24  ;;  %v9716_v10 = vor.u32 %v12992_v56, %v9715_v60  ;;  %v9907_v24 = vld [vmem:[#allocation10 + $0x218] sm:$0xf] }
 0x284   :  { %v10224_v15 = vor.u32 %v13115_v48, %v10221_v63  ;;  %v13040_v58 = vld [vmem:[#allocation10 + $0x234] sm:$0xf0]  ;;  %v13012_v48 = vld [vmem:[#allocation10 + $0x15c] sm:$0xf] }
 0x285   :  { %4236 = vmatpush.bf16.msra.mxu3 %v10412_v57  ;;  %v9684_v57 = vor.u32 %v12984_v9, %v9683_v11  ;;  %v10643_v56 = vld [vmem:[#allocation10 + $0x7d8] sm:$0xf]  ;;  %v9813_v63 = vld [vmem:[#allocation10 + $0x178] sm:$0xf0] }
 0x286   :  { %4295 = vmatpush.bf16.msra.mxu0 %v9844_v8  ;;  %v3993_v3 = vpop.f32.mrf.mxu0  ;;  %v13064_v8 = vld [vmem:[#allocation10 + $0x2f4] sm:$0xf0] }
 0x287   :  { %4269 = vmatpush.bf16.msrb.mxu2 %v10352_v37  ;;  %4262 = vmatpush.bf16.msrb.mxu1 %v9904_v20  ;;  %v4004_v61 = vpop.f32.mrf.mxu1  ;;  %v10004_v37 = vor.u32 %v13064_v8, %v10003_v7  ;;  %v13179_v20 = vld [vmem:[#allocation10 + $0x694] sm:$0xf]  ;;  %v9908_v7 = vor.u32 %v13040_v58, %v9907_v24  ;;  %v10323_v11 = vld [vmem:[#allocation10 + $0x558] sm:$0xf] }
 0x288   :  { %4237 = vmatmul.bf16.vlgmr.msra.gmra.mxu3 %v14275_v14  ;;  %v14293_v0 = vadd.f32 %v4004_v61, %v3991_v35  ;;  %v13092_v61 = vld [vmem:[#allocation10 + $0x3dc] sm:$0xf]  ;;  %v13144_v9 = vld [vmem:[#allocation10 + $0x574] sm:$0xf0] }
 0x289   :  { %4281 = vmatpush.bf16.msrb.mxu3 %v10640_v21  ;;  %v10477_v21 = vld [vmem:[#allocation10 + $0x6b0] sm:$0xf0]  ;;  %v10324_v22 = vor.u32 %v13144_v9, %v10323_v11  ;;  %v10547_v41 = vld [vmem:[#allocation10 + $0x718] sm:$0xf] }
 0x28a   :  { %4296 = vmatpush.bf16.msra.mxu0 %v9812_v46  ;;  %4263 = vmatmul.bf16.vlgmr.msrb.gmra.mxu1 %v14254_v27  ;;  %v12976_v46 = vld [vmem:[#allocation10 + $0x34] sm:$0xf0]  ;;  %v10480_v53 = vor.u32 %v13179_v20, %v10477_v21  ;;  %v13004_v20 = vld [vmem:[#allocation10 + $0x11c] sm:$0xf] }
 0x28b   :  { %4307 = vmatpush.bf16.msra.mxu1 %v10132_v25  ;;  %4270 = vmatpush.bf16.msrb.mxu2 %v10320_v30  ;;  %v9651_v25 = vld [vmem:[#allocation10 + $0x18] sm:$0xf]  ;;  %v10157_v30 = vld [vmem:[#allocation10 + $0x430] sm:$0xf0]  ;;  %v9781_v21 = vld [vmem:[#allocation10 + $0x138] sm:$0xf0] }
 0x28c   :  { %v9652_v35 = vor.u32 %v12976_v46, %v9651_v25  ;;  %v10160_v42 = vor.u32 %v13099_v19, %v10157_v30  ;;  %v10291_v25 = vld [vmem:[#allocation10 + $0x518] sm:$0xf]  ;;  %v9784_v26 = vor.u32 %v13004_v20, %v9781_v21  ;;  %v10069_v19 = vld [vmem:[#allocation10 + $0x378] sm:$0xf0] }
 0x28d   :  { %4282 = vmatpush.bf16.msrb.mxu3 %v10608_v32  ;;  %v10387_v32 = vld [vmem:[#allocation10 + $0x5d8] sm:$0xf]  ;;  %v12996_v30 = vld [vmem:[#allocation10 + $0xdc] sm:$0xf] }
 0x28e   :  { %4297 = vmatpush.bf16.msra.mxu0 %v9780_v36  ;;  %v4043_v51 = vpop.f32.mrf.mxu0  ;;  %v13171_v36 = vld [vmem:[#allocation10 + $0x654] sm:$0xf]  ;;  %v13136_v46 = vld [vmem:[#allocation10 + $0x534] sm:$0xf0]  ;;  %v9653_v20 = vld [vmem:[#allocation10 + $0x38] sm:$0xf0] }
 0x28f   :  { %4308 = vmatpush.bf16.msra.mxu1 %v10100_v12  ;;  %4271 = vmatpush.bf16.msrb.mxu2 %v10288_v44  ;;  %v4006_v28 = vpop.f32.mrf.mxu1  ;;  %v13160_v12 = vld [vmem:[#allocation10 + $0x5f4] sm:$0xf0]  ;;  %v9845_v44 = vld [vmem:[#allocation10 + $0x1b8] sm:$0xf0]  ;;  %v10448_v38 = vor.u32 %v13171_v36, %v10445_v6 }
 0x290   :  { %v9848_v60 = vor.u32 %v13020_v43, %v9845_v44  ;;  %v13208_v28 = vld [vmem:[#allocation10 + $0x774] sm:$0xf0]  ;;  %v13068_v43 = vld [vmem:[#allocation10 + $0x31c] sm:$0xf] }
 0x291   :  { %4283 = vmatpush.bf16.msrb.mxu3 %v10576_v49  ;;  %v10388_v49 = vor.u32 %v13160_v12, %v10387_v32  ;;  %v9749_v32 = vld [vmem:[#allocation10 + $0xf8] sm:$0xf0]  ;;  %v10580_v12 = vor.u32 %v13208_v28, %v10579_v13  ;;  %v10259_v36 = vld [vmem:[#allocation10 + $0x4d8] sm:$0xf] }
 0x292   :  { %4298 = vmatpush.bf16.msra.mxu0 %v9748_v52  ;;  %v13163_v52 = vld [vmem:[#allocation10 + $0x614] sm:$0xf]  ;;  %v13128_v6 = vld [vmem:[#allocation10 + $0x4f4] sm:$0xf0]  ;;  %v9752_v40 = vor.u32 %v12996_v30, %v9749_v32  ;;  %v10037_v44 = vld [vmem:[#allocation10 + $0x338] sm:$0xf0] }
 0x293   :  { %4309 = vmatpush.bf16.msra.mxu1 %v10068_v50  ;;  %4272 = vmatpush.bf16.msrb.mxu2 %v10256_v59  ;;  %v13152_v50 = vld [vmem:[#allocation10 + $0x5b4] sm:$0xf0]  ;;  %v10040_v58 = vor.u32 %v13068_v43, %v10037_v44  ;;  %v13156_v28 = vld [vmem:[#allocation10 + $0x5dc] sm:$0xf] }
 0x294   :  { %v13224_v59 = vld [vmem:[#allocation10 + $0x7f4] sm:$0xf0]  ;;  %v10389_v30 = vld [vmem:[#allocation10 + $0x5f8] sm:$0xf0] }
 0x295   :  { %4284 = vmatpush.bf16.msrb.mxu3 %v10544_v62  ;;  %v10133_v62 = vld [vmem:[#allocation10 + $0x3f8] sm:$0xf0]  ;;  %v10644_v8 = vor.u32 %v13224_v59, %v10643_v56  ;;  %v13120_v24 = vld [vmem:[#allocation10 + $0x4b4] sm:$0xf0] }
 0x296   :  { %4299 = vmatpush.bf16.msra.mxu0 %v9716_v10  ;;  %v10416_v10 = vor.u32 %v13163_v52, %v10413_v2  ;;  %v4045_v5 = vpop.f32.mrf.mxu0  ;;  %v10227_v2 = vld [vmem:[#allocation10 + $0x498] sm:$0xf]  ;;  %v13148_v43 = vld [vmem:[#allocation10 + $0x59c] sm:$0xf] }
 0x297   :  { %4310 = vmatpush.bf16.msra.mxu1 %v10036_v29  ;;  %4273 = vmatpush.bf16.msrb.mxu2 %v10224_v15  ;;  %v4056_v3 = vpop.f32.mrf.mxu1  ;;  %v10356_v29 = vor.u32 %v13152_v50, %v10355_v39  ;;  %v10136_v15 = vor.u32 %v13092_v61, %v10133_v62  ;;  %v10260_v50 = vor.u32 %v13128_v6, %v10259_v36  ;;  %v10515_v56 = vld [vmem:[#allocation10 + $0x6d8] sm:$0xf]  ;;  %v13060_v61 = vld [vmem:[#allocation10 + $0x2dc] sm:$0xf] }
 0x298   :  { %v14295_v4 = vadd.f32 %v4056_v3, %v4043_v51  ;;  %v13192_v59 = vld [vmem:[#allocation10 + $0x6f4] sm:$0xf0]  ;;  %v10005_v62 = vld [vmem:[#allocation10 + $0x2f8] sm:$0xf0] }
 0x299   :  { %4285 = vmatpush.bf16.msrb.mxu3 %v10512_v16  ;;  %v9816_v16 = vor.u32 %v13012_v48, %v9813_v63  ;;  %v12980_v48 = vld [vmem:[#allocation10 + $0x5c] sm:$0xf]  ;;  %v10516_v5 = vor.u32 %v13192_v59, %v10515_v56  ;;  %v10008_v11 = vor.u32 %v13060_v61, %v10005_v62  ;;  %v13104_v13 = vld [vmem:[#allocation10 + $0x434] sm:$0xf0]  ;;  %v13349_v56 = vld [vmem:[#allocation10 + $0xbdc] sm:$0xf0] }
 0x29a   :  { %4300 = vmatpush.bf16.msra.mxu0 %v9684_v57  ;;  %v10101_v57 = vld [vmem:[#allocation10 + $0x3b8] sm:$0xf0]  ;;  %v10451_v32 = vld [vmem:[#allocation10 + $0x658] sm:$0xf]  ;;  %v10811_v59 = vld [vmem:[#allocation10 + $0x940] sm:$0xf] }
 0x29b   :  { %4311 = vmatpush.bf16.msra.mxu1 %v10004_v37  ;;  %4274 = vmatpush.bf16.msrb.mxu2 %v10192_v34  ;;  %v13084_v37 = vld [vmem:[#allocation10 + $0x39c] sm:$0xf]  ;;  %v13269_v61 = vld [vmem:[#allocation10 + $0x95c] sm:$0xf0] }
 0x29c   :  { %v10104_v34 = vor.u32 %v13084_v37, %v10101_v57  ;;  %v9685_v63 = vld [vmem:[#allocation10 + $0x78] sm:$0xf0] }
 0x29d   :  { %4286 = vmatpush.bf16.msrb.mxu3 %v10480_v53  ;;  %v13076_v53 = vld [vmem:[#allocation10 + $0x35c] sm:$0xf]  ;;  %v9688_v9 = vor.u32 %v12980_v48, %v9685_v63 }
 0x29e   :  { %4301 = vmatpush.bf16.msra.mxu0 %v9652_v35  ;;  %v4095_v35 = vpop.f32.mrf.mxu0  ;;  %v9973_v37 = vld [vmem:[#allocation10 + $0x2b8] sm:$0xf0] }
 0x29f   :  { %4312 = vmatpush.bf16.msra.mxu1 %v9972_v33  ;;  %4275 = vmatpush.bf16.msrb.mxu2 %v10160_v42  ;;  %v4058_v51 = vpop.f32.mrf.mxu1  ;;  %v10292_v33 = vor.u32 %v13136_v46, %v10291_v25  ;;  %v13200_v42 = vld [vmem:[#allocation10 + $0x734] sm:$0xf0]  ;;  %v12972_v57 = vld [vmem:[#allocation10 + $0x1c] sm:$0xf]  ;;  %v10875_v25 = vld [vmem:[#allocation10 + $0x9c0] sm:$0xf] }
 0x2a0   :  { %v13285_v46 = vld [vmem:[#allocation10 + $0x9dc] sm:$0xf0]  ;;  %v13176_v51 = vld [vmem:[#allocation10 + $0x674] sm:$0xf0]  ;;  %v10357_v44 = vld [vmem:[#allocation10 + $0x5b8] sm:$0xf0] }
 0x2a1   :  { %4287 = vmatpush.bf16.msrb.mxu3 %v10448_v38  ;;  %4302 = vmatmul.bf16.vlgmr.msra.gmra.mxu0 %v14251_v31  ;;  %v9717_v38 = vld [vmem:[#allocation10 + $0xb8] sm:$0xf0]  ;;  %v10360_v48 = vor.u32 %v13148_v43, %v10357_v44  ;;  %v13325_v43 = vld [vmem:[#allocation10 + $0xb1c] sm:$0xf0] }
 0x2a2   :  { %4346 = vmatpush.bf16.msrb.mxu0 %v9880_v55  ;;  %4276 = vmatmul.bf16.vlgmr.msrb.gmra.mxu2 %v14271_v47  ;;  %v10072_v55 = vor.u32 %v13076_v53, %v10069_v19  ;;  %v9976_v53 = vor.u32 %v13052_v17, %v9973_v37  ;;  %v9656_v19 = vor.u32 %v12972_v57, %v9653_v20  ;;  %v13341_v17 = vld [vmem:[#allocation10 + $0xb9c] sm:$0xf0]  ;;  %v13132_v20 = vld [vmem:[#allocation10 + $0x51c] sm:$0xf] }
 0x2a3   :  { %4320 = vmatpush.bf16.msra.mxu2 %v10388_v49  ;;  %4313 = vmatpush.bf16.msra.mxu1 %v9940_v54  ;;  %v12988_v49 = vld [vmem:[#allocation10 + $0x9c] sm:$0xf]  ;;  %v10548_v54 = vor.u32 %v13200_v42, %v10547_v41  ;;  %v10392_v41 = vor.u32 %v13156_v28, %v10389_v30  ;;  %v10452_v42 = vor.u32 %v13176_v51, %v10451_v32  ;;  %v13261_v37 = vld [vmem:[#allocation10 + $0x91c] sm:$0xf0] }
 0x2a4   :  { %v4017_v39 = vpop.f32.mrf.mxu2  ;;  %v13253_v30 = vld [vmem:[#allocation10 + $0x8dc] sm:$0xf0] }
 0x2a5   :  { %4288 = vmatpush.bf16.msrb.mxu3 %v10416_v10  ;;  %v4018_v52 = vadd.f32 %v4017_v39, %v14293_v0  ;;  %v13168_v39 = vld [vmem:[#allocation10 + $0x634] sm:$0xf0]  ;;  %v10715_v44 = vld [vmem:[#allocation10 + $0x880] sm:$0xf] }
 0x2a6   :  { %4347 = vmatpush.bf16.msrb.mxu0 %v9848_v60  ;;  %v9720_v60 = vor.u32 %v12988_v49, %v9717_v38  ;;  %v4097_v0 = vpop.f32.mrf.mxu0  ;;  %v10419_v49 = vld [vmem:[#allocation10 + $0x618] sm:$0xf] }
 0x2a7   :  { %4321 = vmatpush.bf16.msra.mxu2 %v10356_v29  ;;  %4314 = vmatpush.bf16.msra.mxu1 %v9908_v7  ;;  %v10228_v29 = vor.u32 %v13120_v24, %v10227_v2  ;;  %v10195_v7 = vld [vmem:[#allocation10 + $0x458] sm:$0xf]  ;;  %v13220_v24 = vld [vmem:[#allocation10 + $0x7dc] sm:$0xf]  ;;  %v10420_v63 = vor.u32 %v13168_v39, %v10419_v49  ;;  %v13245_v49 = vld [vmem:[#allocation10 + $0x89c] sm:$0xf0] }
 0x2a8   :  { %4289 = vmatmul.bf16.vlgmr.msrb.gmra.mxu3 %v14275_v14 }
 0x2a9   :  { %4333 = vmatpush.bf16.msra.mxu3 %v10644_v8  ;;  %v4108_v3 = vpop.f32.mrf.mxu1  ;;  %v13112_v8 = vld [vmem:[#allocation10 + $0x474] sm:$0xf0] }
 0x2aa   :  { %4348 = vmatpush.bf16.msrb.mxu0 %v9816_v16  ;;  %4315 = vmatmul.bf16.vlgmr.msra.gmra.mxu1 %v14254_v27  ;;  %v14302_v10 = vadd.f32 %v4108_v3, %v4095_v35  ;;  %v13184_v16 = vld [vmem:[#allocation10 + $0x6b4] sm:$0xf0]  ;;  %v13044_v35 = vld [vmem:[#allocation10 + $0x25c] sm:$0xf] }
 0x2ab   :  { %4359 = vmatpush.bf16.msrb.mxu1 %v10136_v15  ;;  %4322 = vmatpush.bf16.msra.mxu2 %v10324_v22  ;;  %v10483_v15 = vld [vmem:[#allocation10 + $0x698] sm:$0xf]  ;;  %v4030_v18 = vpop.f32.mrf.mxu3 }
 0x2ac   :  { %v14304_v21 = vadd.f32 %v4030_v18, %v4018_v52  ;;  %v4019_v22 = vpop.f32.mrf.mxu2  ;;  %v9909_v52 = vld [vmem:[#allocation10 + $0x238] sm:$0xf0]  ;;  %v10779_v18 = vld [vmem:[#allocation10 + $0x900] sm:$0xf] }
 0x2ad   :  { %4334 = vmatpush.bf16.msra.mxu3 %v10612_v23  ;;  %v10196_v23 = vor.u32 %v13112_v8, %v10195_v7  ;;  %v10325_v7 = vld [vmem:[#allocation10 + $0x578] sm:$0xf0] }
 0x2ae   :  { %4349 = vmatpush.bf16.msrb.mxu0 %v9784_v26  ;;  %v10163_v26 = vld [vmem:[#allocation10 + $0x418] sm:$0xf]  ;;  %v10293_v22 = vld [vmem:[#allocation10 + $0x538] sm:$0xf0] }
 0x2af   :  { %4360 = vmatpush.bf16.msrb.mxu1 %v10104_v34  ;;  %4323 = vmatpush.bf16.msra.mxu2 %v10292_v33  ;;  %v10484_v34 = vor.u32 %v13184_v16, %v10483_v15  ;;  %v10876_v33 = vor.u32 %v13285_v46, %v10875_v25  ;;  %v10164_v6 = vor.u32 %v13104_v13, %v10163_v26  ;;  %v10613_v15 = vld [vmem:[#allocation10 + $0x7b8] sm:$0xf0]  ;;  %v11099_v16 = vld [vmem:[#allocation10 + $0xb80] sm:$0xf] }
 0x2b0   :  { %v11100_v25 = vor.u32 %v13341_v17, %v11099_v16  ;;  %v10780_v46 = vor.u32 %v13261_v37, %v10779_v18  ;;  %v10581_v26 = vld [vmem:[#allocation10 + $0x778] sm:$0xf0]  ;;  %v11067_v13 = vld [vmem:[#allocation10 + $0xb40] sm:$0xf]  ;;  %v10296_v51 = vor.u32 %v13132_v20, %v10293_v22  ;;  %v13281_v22 = vld [vmem:[#allocation10 + $0x9c4] sm:$0xf] }
 0x2b1   :  { %4335 = vmatpush.bf16.msra.mxu3 %v10580_v12  ;;  %v9941_v12 = vld [vmem:[#allocation10 + $0x278] sm:$0xf0]  ;;  %v4110_v36 = vpop.f32.mrf.mxu1  ;;  %v10971_v18 = vld [vmem:[#allocation10 + $0xa80] sm:$0xf] }
 0x2b2   :  { %4350 = vmatpush.bf16.msrb.mxu0 %v9752_v40  ;;  %v13277_v40 = vld [vmem:[#allocation10 + $0x99c] sm:$0xf0]  ;;  %v9944_v38 = vor.u32 %v13044_v35, %v9941_v12  ;;  %v13124_v35 = vld [vmem:[#allocation10 + $0x4dc] sm:$0xf] }
 0x2b3   :  { %4361 = vmatpush.bf16.msrb.mxu1 %v10072_v55  ;;  %4324 = vmatpush.bf16.msra.mxu2 %v10260_v50  ;;  %v10843_v55 = vld [vmem:[#allocation10 + $0x980] sm:$0xf]  ;;  %v13036_v50 = vld [vmem:[#allocation10 + $0x21c] sm:$0xf] }
 0x2b4   :  { %v10844_v2 = vor.u32 %v13277_v40, %v10843_v55  ;;  %v4069_v62 = vpop.f32.mrf.mxu2  ;;  %v10261_v12 = vld [vmem:[#allocation10 + $0x4f8] sm:$0xf0]  ;;  %v13309_v37 = vld [vmem:[#allocation10 + $0xa9c] sm:$0xf0] }
 0x2b5   :  { %4336 = vmatpush.bf16.msra.mxu3 %v10548_v54  ;;  %v4032_v54 = vpop.f32.mrf.mxu3  ;;  %v4070_v3 = vadd.f32 %v4069_v62, %v14295_v4  ;;  %v13196_v40 = vld [vmem:[#allocation10 + $0x71c] sm:$0xf]  ;;  %v13237_v62 = vld [vmem:[#allocation10 + $0x85c] sm:$0xf0] }
 0x2b6   :  { %4351 = vmatpush.bf16.msrb.mxu0 %v9720_v60  ;;  %v11131_v60 = vld [vmem:[#allocation10 + $0xbc0] sm:$0xf]  ;;  %v13180_v16 = vld [vmem:[#allocation10 + $0x69c] sm:$0xf] }
 0x2b7   :  { %4362 = vmatpush.bf16.msrb.mxu1 %v10040_v58  ;;  %4325 = vmatpush.bf16.msra.mxu2 %v10228_v29  ;;  %v10645_v58 = vld [vmem:[#allocation10 + $0x7f8] sm:$0xf0]  ;;  %v9912_v29 = vor.u32 %v13036_v50, %v9909_v52  ;;  %v11132_v8 = vor.u32 %v13349_v56, %v11131_v60  ;;  %v11003_v56 = vld [vmem:[#allocation10 + $0xac0] sm:$0xf] }
 0x2b8   :  { %v10648_v0 = vor.u32 %v13220_v24, %v10645_v58  ;;  %v13116_v50 = vld [vmem:[#allocation10 + $0x49c] sm:$0xf]  ;;  %v10716_v24 = vor.u32 %v13245_v49, %v10715_v44  ;;  %v11355_v44 = vld [vmem:[#allocation10 + $0xd80] sm:$0xf] }
 0x2b9   :  { %4337 = vmatpush.bf16.msra.mxu3 %v10516_v5  ;;  %v13140_v5 = vld [vmem:[#allocation10 + $0x55c] sm:$0xf]  ;;  %v13405_v49 = vld [vmem:[#allocation10 + $0xd9c] sm:$0xf0] }
 0x2ba   :  { %4352 = vmatpush.bf16.msrb.mxu0 %v9688_v9  ;;  %v13212_v9 = vld [vmem:[#allocation10 + $0x79c] sm:$0xf]  ;;  %v10328_v4 = vor.u32 %v13140_v5, %v10325_v7 }
 0x2bb   :  { %4363 = vmatpush.bf16.msrb.mxu1 %v10008_v11  ;;  %4326 = vmatpush.bf16.msra.mxu2 %v10196_v23  ;;  %v10812_v11 = vor.u32 %v13269_v61, %v10811_v59  ;;  %v10616_v57 = vor.u32 %v13212_v9, %v10613_v15  ;;  %v10229_v52 = vld [vmem:[#allocation10 + $0x4b8] sm:$0xf0]  ;;  %v13317_v59 = vld [vmem:[#allocation10 + $0xadc] sm:$0xf0] }
 0x2bc   :  { %v4071_v32 = vpop.f32.mrf.mxu2  ;;  %v13188_v58 = vld [vmem:[#allocation10 + $0x6dc] sm:$0xf]  ;;  %v10683_v61 = vld [vmem:[#allocation10 + $0x840] sm:$0xf]  ;;  %v11004_v9 = vor.u32 %v13317_v59, %v11003_v56  ;;  %v11133_v56 = vld [vmem:[#allocation10 + $0xbe0] sm:$0xf0] }
 0x2bd   :  { %4338 = vmatpush.bf16.msra.mxu3 %v10484_v34  ;;  %v4082_v23 = vpop.f32.mrf.mxu3  ;;  %v13204_v34 = vld [vmem:[#allocation10 + $0x75c] sm:$0xf]  ;;  %v10684_v15 = vor.u32 %v13237_v62, %v10683_v61  ;;  %v13265_v59 = vld [vmem:[#allocation10 + $0x944] sm:$0xf]  ;;  %v11356_v62 = vor.u32 %v13405_v49, %v11355_v44 }
 0x2be   :  { %4353 = vmatpush.bf16.msrb.mxu0 %v9656_v19  ;;  %v14309_v28 = vadd.f32 %v4082_v23, %v4070_v3  ;;  %v10747_v19 = vld [vmem:[#allocation10 + $0x8c0] sm:$0xf]  ;;  %v4147_v36 = vpop.f32.mrf.mxu0  ;;  %v10517_v60 = vld [vmem:[#allocation10 + $0x6f8] sm:$0xf0]  ;;  %v10232_v3 = vor.u32 %v13116_v50, %v10229_v52  ;;  %v10877_v23 = vld [vmem:[#allocation10 + $0x9e0] sm:$0xf0] }
 0x2bf   :  { %4364 = vmatpush.bf16.msrb.mxu1 %v9976_v53  ;;  %4327 = vmatpush.bf16.msra.mxu2 %v10164_v6  ;;  %v13333_v53 = vld [vmem:[#allocation10 + $0xb5c] sm:$0xf0]  ;;  %v10748_v55 = vor.u32 %v13253_v30, %v10747_v19  ;;  %v10520_v5 = vor.u32 %v13188_v58, %v10517_v60  ;;  %v13108_v7 = vld [vmem:[#allocation10 + $0x45c] sm:$0xf]  ;;  %v13345_v60 = vld [vmem:[#allocation10 + $0xbc4] sm:$0xf] }
 0x2c0   :  { %v11068_v6 = vor.u32 %v13333_v53, %v11067_v13  ;;  %v10485_v17 = vld [vmem:[#allocation10 + $0x6b8] sm:$0xf0]  ;;  %v13413_v53 = vld [vmem:[#allocation10 + $0xddc] sm:$0xf0]  ;;  %v10813_v61 = vld [vmem:[#allocation10 + $0x960] sm:$0xf0] }
 0x2c1   :  { %4339 = vmatpush.bf16.msra.mxu3 %v10452_v42  ;;  %4354 = vmatmul.bf16.vlgmr.msrb.gmra.mxu0 %v14251_v31  ;;  %v11035_v42 = vld [vmem:[#allocation10 + $0xb00] sm:$0xf]  ;;  %v13172_v19 = vld [vmem:[#allocation10 + $0x65c] sm:$0xf] }
 0x2c2   :  { %5951 = vmatpush.bf16.msra.mxu0 %v10876_v33  ;;  %4328 = vmatmul.bf16.vlgmr.msra.gmra.mxu2 %v14271_v47  ;;  %v10584_v33 = vor.u32 %v13204_v34, %v10581_v26  ;;  %v11387_v34 = vld [vmem:[#allocation10 + $0xdc0] sm:$0xf]  ;;  %v10972_v26 = vor.u32 %v13309_v37, %v10971_v18  ;;  %v10453_v30 = vld [vmem:[#allocation10 + $0x678] sm:$0xf0]  ;;  %v13257_v18 = vld [vmem:[#allocation10 + $0x904] sm:$0xf] }
 0x2c3   :  { %4372 = vmatpush.bf16.msrb.mxu2 %v10392_v41  ;;  %4365 = vmatpush.bf16.msrb.mxu1 %v9944_v38  ;;  %v10549_v41 = vld [vmem:[#allocation10 + $0x738] sm:$0xf0]  ;;  %v10264_v38 = vor.u32 %v13124_v35, %v10261_v12  ;;  %v13301_v35 = vld [vmem:[#allocation10 + $0xa5c] sm:$0xf0]  ;;  %v10781_v37 = vld [vmem:[#allocation10 + $0x920] sm:$0xf0] }
 0x2c4   :  { %v10552_v39 = vor.u32 %v13196_v40, %v10549_v41  ;;  %v13273_v40 = vld [vmem:[#allocation10 + $0x984] sm:$0xf]  ;;  %v10421_v50 = vld [vmem:[#allocation10 + $0x638] sm:$0xf0]  ;;  %v10907_v52 = vld [vmem:[#allocation10 + $0xa00] sm:$0xf] }
 0x2c5   :  { %4340 = vmatpush.bf16.msra.mxu3 %v10420_v63  ;;  %v4084_v54 = vpop.f32.mrf.mxu3  ;;  %v10845_v41 = vld [vmem:[#allocation10 + $0x9a0] sm:$0xf0]  ;;  %v13477_v58 = vld [vmem:[#allocation10 + $0xfdc] sm:$0xf0] }
 0x2c6   :  { %5952 = vmatpush.bf16.msra.mxu0 %v10844_v2  ;;  %v11036_v2 = vor.u32 %v13325_v43, %v11035_v42  ;;  %v4121_v63 = vpop.f32.mrf.mxu2  ;;  %v11388_v42 = vor.u32 %v13413_v53, %v11387_v34  ;;  %v10456_v43 = vor.u32 %v13172_v19, %v10453_v30  ;;  %v13293_v54 = vld [vmem:[#allocation10 + $0xa1c] sm:$0xf0]  ;;  %v13329_v34 = vld [vmem:[#allocation10 + $0xb44] sm:$0xf] }
 0x2c7   :  { %4373 = vmatpush.bf16.msrb.mxu2 %v10360_v48  ;;  %4366 = vmatpush.bf16.msrb.mxu1 %v9912_v29  ;;  %v4160_v48 = vpop.f32.mrf.mxu1  ;;  %v10749_v53 = vld [vmem:[#allocation10 + $0x8e0] sm:$0xf0] }
 0x2c8   :  { %4341 = vmatmul.bf16.vlgmr.msra.gmra.mxu3 %v14275_v14  ;;  %v14313_v29 = vadd.f32 %v4160_v48, %v4147_v36 }
 0x2c9   :  { %4385 = vmatpush.bf16.msrb.mxu3 %v10648_v0  ;;  %v4122_v0 = vadd.f32 %v4121_v63, %v14302_v10  ;;  %v10488_v10 = vor.u32 %v13180_v16, %v10485_v17  ;;  %v10908_v63 = vor.u32 %v13293_v54, %v10907_v52  ;;  %v13337_v16 = vld [vmem:[#allocation10 + $0xb84] sm:$0xf]  ;;  %v11515_v54 = vld [vmem:[#allocation10 + $0xec0] sm:$0xf] }
 0x2ca   :  { %5953 = vmatpush.bf16.msra.mxu0 %v10812_v11  ;;  %4367 = vmatmul.bf16.vlgmr.msrb.gmra.mxu1 %v14254_v27  ;;  %v4149_v11 = vpop.f32.mrf.mxu0  ;;  %v11101_v17 = vld [vmem:[#allocation10 + $0xba0] sm:$0xf0] }
 0x2cb   :  { %5964 = vmatpush.bf16.msra.mxu1 %v11132_v8  ;;  %4374 = vmatpush.bf16.msrb.mxu2 %v10328_v4  ;;  %v10197_v8 = vld [vmem:[#allocation10 + $0x478] sm:$0xf0]  ;;  %v10651_v4 = vld [vmem:[#allocation10 + $0x800] sm:$0xf]  ;;  %v10816_v11 = vor.u32 %v13265_v59, %v10813_v61 }
 0x2cc   :  { %v10200_v20 = vor.u32 %v13108_v7, %v10197_v8  ;;  %v11136_v8 = vor.u32 %v13345_v60, %v11133_v56  ;;  %v13233_v60 = vld [vmem:[#allocation10 + $0x844] sm:$0xf] }
 0x2cd   :  { %4386 = vmatpush.bf16.msrb.mxu3 %v10616_v57  ;;  %v13229_v57 = vld [vmem:[#allocation10 + $0x81c] sm:$0xf0]  ;;  %v4134_v32 = vpop.f32.mrf.mxu3  ;;  %v10685_v56 = vld [vmem:[#allocation10 + $0x860] sm:$0xf0] }
 0x2ce   :  { %5954 = vmatpush.bf16.msra.mxu0 %v10780_v46  ;;  %v10165_v46 = vld [vmem:[#allocation10 + $0x438] sm:$0xf0]  ;;  %v10652_v13 = vor.u32 %v13229_v57, %v10651_v4  ;;  %v14316_v12 = vadd.f32 %v4134_v32, %v4122_v0  ;;  %v11323_v0 = vld [vmem:[#allocation10 + $0xd40] sm:$0xf] }
 0x2cf   :  { %5965 = vmatpush.bf16.msra.mxu1 %v11100_v25  ;;  %4375 = vmatpush.bf16.msrb.mxu2 %v10296_v51  ;;  %v13100_v25 = vld [vmem:[#allocation10 + $0x41c] sm:$0xf]  ;;  %v10880_v51 = vor.u32 %v13281_v22, %v10877_v23  ;;  %v4162_v36 = vpop.f32.mrf.mxu1  ;;  %v13389_v22 = vld [vmem:[#allocation10 + $0xd1c] sm:$0xf0]  ;;  %v11104_v23 = vor.u32 %v13337_v16, %v11101_v17  ;;  %v13305_v16 = vld [vmem:[#allocation10 + $0xa84] sm:$0xf] }
 0x2d0   :  { %v11259_v32 = vld [vmem:[#allocation10 + $0xcc0] sm:$0xf]  ;;  %v10973_v17 = vld [vmem:[#allocation10 + $0xaa0] sm:$0xf0] }
 0x2d1   :  { %4387 = vmatpush.bf16.msrb.mxu3 %v10584_v33  ;;  %v10939_v33 = vld [vmem:[#allocation10 + $0xa40] sm:$0xf] }
 0x2d2   :  { %5955 = vmatpush.bf16.msra.mxu0 %v10748_v55  ;;  %v10168_v55 = vor.u32 %v13100_v25, %v10165_v46  ;;  %v11579_v25 = vld [vmem:[#allocation10 + $0xf40] sm:$0xf] }
 0x2d3   :  { %5966 = vmatpush.bf16.msra.mxu1 %v11068_v6  ;;  %4376 = vmatpush.bf16.msrb.mxu2 %v10264_v38  ;;  %v4123_v6 = vpop.f32.mrf.mxu2  ;;  %v13164_v38 = vld [vmem:[#allocation10 + $0x61c] sm:$0xf]  ;;  %v13461_v46 = vld [vmem:[#allocation10 + $0xf5c] sm:$0xf0] }
 0x2d4   :  { %v10424_v48 = vor.u32 %v13164_v38, %v10421_v50  ;;  %v11580_v30 = vor.u32 %v13461_v46, %v11579_v25  ;;  %v11547_v6 = vld [vmem:[#allocation10 + $0xf00] sm:$0xf]  ;;  %v10976_v46 = vor.u32 %v13305_v16, %v10973_v17  ;;  %v13342_v16 = vld [vmem:[#allocation10 + $0xba4] sm:$0xf0] }
 0x2d5   :  { %4388 = vmatpush.bf16.msrb.mxu3 %v10552_v39  ;;  %v10940_v39 = vor.u32 %v13301_v35, %v10939_v33  ;;  %v4136_v7 = vpop.f32.mrf.mxu3  ;;  %v11227_v38 = vld [vmem:[#allocation10 + $0xc80] sm:$0xf]  ;;  %v10787_v17 = vld [vmem:[#allocation10 + $0x908] sm:$0xf] }
 0x2d6   :  { %5956 = vmatpush.bf16.msra.mxu0 %v10716_v24  ;;  %v11643_v24 = vld [vmem:[#allocation10 + $0xfc0] sm:$0xf] }
 0x2d7   :  { %5967 = vmatpush.bf16.msra.mxu1 %v11036_v2  ;;  %4377 = vmatpush.bf16.msrb.mxu2 %v10232_v3  ;;  %v10848_v2 = vor.u32 %v13273_v40, %v10845_v41  ;;  %v11644_v3 = vor.u32 %v13477_v58, %v11643_v24  ;;  %v13321_v40 = vld [vmem:[#allocation10 + $0xb04] sm:$0xf] }
 0x2d8   :  { %v11037_v41 = vld [vmem:[#allocation10 + $0xb20] sm:$0xf0] }
 0x2d9   :  { %4389 = vmatpush.bf16.msrb.mxu3 %v10520_v5  ;;  %v13397_v5 = vld [vmem:[#allocation10 + $0xd5c] sm:$0xf0]  ;;  %v11040_v50 = vor.u32 %v13321_v40, %v11037_v41  ;;  %v13313_v24 = vld [vmem:[#allocation10 + $0xac4] sm:$0xf] }
 0x2da   :  { %5957 = vmatpush.bf16.msra.mxu0 %v10684_v15  ;;  %v13469_v15 = vld [vmem:[#allocation10 + $0xf9c] sm:$0xf0]  ;;  %v11324_v4 = vor.u32 %v13397_v5, %v11323_v0  ;;  %v11005_v58 = vld [vmem:[#allocation10 + $0xae0] sm:$0xf0] }
 0x2db   :  { %5968 = vmatpush.bf16.msra.mxu1 %v11004_v9  ;;  %4378 = vmatpush.bf16.msrb.mxu2 %v10200_v20  ;;  %v11611_v9 = vld [vmem:[#allocation10 + $0xf80] sm:$0xf] }
 0x2dc   :  { %v11612_v57 = vor.u32 %v13469_v15, %v11611_v9  ;;  %v11291_v20 = vld [vmem:[#allocation10 + $0xd00] sm:$0xf] }
 0x2dd   :  { %4390 = vmatpush.bf16.msrb.mxu3 %v10488_v10  ;;  %v10784_v10 = vor.u32 %v13257_v18, %v10781_v37  ;;  %v11292_v19 = vor.u32 %v13389_v22, %v11291_v20  ;;  %v11195_v0 = vld [vmem:[#allocation10 + $0xc40] sm:$0xf]  ;;  %v13225_v18 = vld [vmem:[#allocation10 + $0x804] sm:$0xf] }
 0x2de   :  { %5958 = vmatpush.bf16.msra.mxu0 %v10652_v13  ;;  %v13249_v13 = vld [vmem:[#allocation10 + $0x8c4] sm:$0xf]  ;;  %v4199_v33 = vpop.f32.mrf.mxu0  ;;  %v13365_v5 = vld [vmem:[#allocation10 + $0xc5c] sm:$0xf0] }
 0x2df   :  { %5969 = vmatpush.bf16.msra.mxu1 %v10972_v26  ;;  %4379 = vmatpush.bf16.msrb.mxu2 %v10168_v55  ;;  %v11069_v26 = vld [vmem:[#allocation10 + $0xb60] sm:$0xf0]  ;;  %v10752_v36 = vor.u32 %v13249_v13, %v10749_v53  ;;  %v13453_v55 = vld [vmem:[#allocation10 + $0xf1c] sm:$0xf0] }
 0x2e0   :  { %v11072_v35 = vor.u32 %v13329_v34, %v11069_v26  ;;  %v11548_v49 = vor.u32 %v13453_v55, %v11547_v6  ;;  %v11483_v9 = vld [vmem:[#allocation10 + $0xe80] sm:$0xf]  ;;  %v10653_v37 = vld [vmem:[#allocation10 + $0x820] sm:$0xf0]  ;;  %v10851_v6 = vld [vmem:[#allocation10 + $0x988] sm:$0xf] }
 0x2e1   :  { %4391 = vmatpush.bf16.msrb.mxu3 %v10456_v43  ;;  %5959 = vmatmul.bf16.vlgmr.msra.gmra.mxu0 %v14251_v31  ;;  %v10717_v43 = vld [vmem:[#allocation10 + $0x8a0] sm:$0xf0]  ;;  %v13437_v15 = vld [vmem:[#allocation10 + $0xe9c] sm:$0xf0]  ;;  %v10656_v34 = vor.u32 %v13225_v18, %v10653_v37  ;;  %v13278_v55 = vld [vmem:[#allocation10 + $0x9a4] sm:$0xf0] }
 0x2e2   :  { %6003 = vmatpush.bf16.msrb.mxu0 %v10880_v51  ;;  %4380 = vmatmul.bf16.vlgmr.msrb.gmra.mxu2 %v14271_v47  ;;  %v13381_v51 = vld [vmem:[#allocation10 + $0xcdc] sm:$0xf0]  ;;  %v11484_v20 = vor.u32 %v13437_v15, %v11483_v9  ;;  %v11389_v26 = vld [vmem:[#allocation10 + $0xde0] sm:$0xf0]  ;;  %v11107_v15 = vld [vmem:[#allocation10 + $0xb88] sm:$0xf] }
 0x2e3   :  { %5977 = vmatpush.bf16.msra.mxu2 %v11388_v42  ;;  %5970 = vmatpush.bf16.msra.mxu1 %v10940_v39  ;;  %v13241_v42 = vld [vmem:[#allocation10 + $0x884] sm:$0xf]  ;;  %v11260_v44 = vor.u32 %v13381_v51, %v11259_v32  ;;  %v13373_v39 = vld [vmem:[#allocation10 + $0xc9c] sm:$0xf0]  ;;  %v13262_v18 = vld [vmem:[#allocation10 + $0x924] sm:$0xf0] }
 0x2e4   :  { %v10720_v52 = vor.u32 %v13241_v42, %v10717_v43  ;;  %v11163_v22 = vld [vmem:[#allocation10 + $0xc00] sm:$0xf]  ;;  %v13297_v32 = vld [vmem:[#allocation10 + $0xa44] sm:$0xf] }
 0x2e5   :  { %4392 = vmatpush.bf16.msrb.mxu3 %v10424_v48  ;;  %v4173_v59 = vpop.f32.mrf.mxu2  ;;  %v11451_v13 = vld [vmem:[#allocation10 + $0xe40] sm:$0xf]  ;;  %v10941_v51 = vld [vmem:[#allocation10 + $0xa60] sm:$0xf0] }
 0x2e6   :  { %6004 = vmatpush.bf16.msrb.mxu0 %v10848_v2  ;;  %v13445_v2 = vld [vmem:[#allocation10 + $0xedc] sm:$0xf0]  ;;  %v4174_v48 = vadd.f32 %v4173_v59, %v14313_v29  ;;  %v4201_v7 = vpop.f32.mrf.mxu0  ;;  %v10883_v29 = vld [vmem:[#allocation10 + $0x9c8] sm:$0xf]  ;;  %v13401_v42 = vld [vmem:[#allocation10 + $0xd84] sm:$0xf] }
 0x2e7   :  { %5978 = vmatpush.bf16.msra.mxu2 %v11356_v62  ;;  %5971 = vmatpush.bf16.msra.mxu1 %v10908_v63  ;;  %v4212_v61 = vpop.f32.mrf.mxu1  ;;  %v11228_v62 = vor.u32 %v13373_v39, %v11227_v38  ;;  %v13429_v53 = vld [vmem:[#allocation10 + $0xe5c] sm:$0xf0]  ;;  %v11357_v43 = vld [vmem:[#allocation10 + $0xda0] sm:$0xf0] }
 0x2e8   :  { %4393 = vmatmul.bf16.vlgmr.msrb.gmra.mxu3 %v14275_v14  ;;  %v14323_v63 = vadd.f32 %v4212_v61, %v4199_v33  ;;  %v11452_v41 = vor.u32 %v13429_v53, %v11451_v13  ;;  %v13421_v38 = vld [vmem:[#allocation10 + $0xe1c] sm:$0xf0]  ;;  %v13289_v39 = vld [vmem:[#allocation10 + $0xa04] sm:$0xf]  ;;  %v11360_v59 = vor.u32 %v13401_v42, %v11357_v43  ;;  %v13246_v42 = vld [vmem:[#allocation10 + $0x8a4] sm:$0xf0] }
 0x2e9   :  { %5990 = vmatpush.bf16.msra.mxu3 %v11644_v3  ;;  %v11516_v3 = vor.u32 %v13445_v2, %v11515_v54  ;;  %v13473_v54 = vld [vmem:[#allocation10 + $0xfc4] sm:$0xf] }
 0x2ea   :  { %6005 = vmatpush.bf16.msrb.mxu0 %v10816_v11  ;;  %5972 = vmatmul.bf16.vlgmr.msra.gmra.mxu1 %v14254_v27  ;;  %v10688_v11 = vor.u32 %v13233_v60, %v10685_v56  ;;  %v11645_v2 = vld [vmem:[#allocation10 + $0xfe0] sm:$0xf0]  ;;  %v10819_v60 = vld [vmem:[#allocation10 + $0x948] sm:$0xf] }
 0x2eb   :  { %6016 = vmatpush.bf16.msrb.mxu1 %v11136_v8  ;;  %5979 = vmatpush.bf16.msra.mxu2 %v11324_v4  ;;  %v11008_v8 = vor.u32 %v13313_v24, %v11005_v58  ;;  %v11196_v4 = vor.u32 %v13365_v5, %v11195_v0  ;;  %v4186_v25 = vpop.f32.mrf.mxu3  ;;  %v11139_v24 = vld [vmem:[#allocation10 + $0xbc8] sm:$0xf]  ;;  %v13393_v0 = vld [vmem:[#allocation10 + $0xd44] sm:$0xf] }
 0x2ec   :  { %v13350_v58 = vld [vmem:[#allocation10 + $0xbe4] sm:$0xf0]  ;;  %v11325_v5 = vld [vmem:[#allocation10 + $0xd60] sm:$0xf0] }
 0x2ed   :  { %5991 = vmatpush.bf16.msra.mxu3 %v11612_v57  ;;  %v13286_v57 = vld [vmem:[#allocation10 + $0x9e4] sm:$0xf0]  ;;  %v4175_v33 = vpop.f32.mrf.mxu2  ;;  %v11140_v7 = vor.u32 %v13350_v58, %v11139_v24  ;;  %v11613_v9 = vld [vmem:[#allocation10 + $0xfa0] sm:$0xf0]  ;;  %v11328_v37 = vor.u32 %v13393_v0, %v11325_v5 }
 0x2ee   :  { %6006 = vmatpush.bf16.msrb.mxu0 %v10784_v10  ;;  %v13409_v10 = vld [vmem:[#allocation10 + $0xdc4] sm:$0xf]  ;;  %v13270_v56 = vld [vmem:[#allocation10 + $0x964] sm:$0xf0] }
 0x2ef   :  { %6017 = vmatpush.bf16.msrb.mxu1 %v11104_v23  ;;  %5980 = vmatpush.bf16.msra.mxu2 %v11292_v19  ;;  %v13357_v23 = vld [vmem:[#allocation10 + $0xc1c] sm:$0xf0]  ;;  %v14325_v19 = vadd.f32 %v4186_v25, %v4174_v48  ;;  %v11392_v40 = vor.u32 %v13409_v10, %v11389_v26  ;;  %v11581_v10 = vld [vmem:[#allocation10 + $0xf60] sm:$0xf0]  ;;  %v11075_v25 = vld [vmem:[#allocation10 + $0xb48] sm:$0xf] }
 0x2f0   :  { %v13254_v26 = vld [vmem:[#allocation10 + $0x8e4] sm:$0xf0]  ;;  %v11197_v0 = vld [vmem:[#allocation10 + $0xc60] sm:$0xf0] }
 0x2f1   :  { %5992 = vmatpush.bf16.msra.mxu3 %v11580_v30  ;;  %v10884_v30 = vor.u32 %v13286_v57, %v10883_v29  ;;  %v13385_v29 = vld [vmem:[#allocation10 + $0xd04] sm:$0xf]  ;;  %v13318_v24 = vld [vmem:[#allocation10 + $0xae4] sm:$0xf0] }
 0x2f2   :  { %6007 = vmatpush.bf16.msrb.mxu0 %v10752_v36  ;;  %v11164_v36 = vor.u32 %v13357_v23, %v11163_v22  ;;  %v11293_v57 = vld [vmem:[#allocation10 + $0xd20] sm:$0xf0]  ;;  %v10788_v22 = vor.u32 %v13262_v18, %v10787_v17  ;;  %v10691_v58 = vld [vmem:[#allocation10 + $0x848] sm:$0xf] }
 0x2f3   :  { %6018 = vmatpush.bf16.msrb.mxu1 %v11072_v35  ;;  %5981 = vmatpush.bf16.msra.mxu2 %v11260_v44  ;;  %v4214_v35 = vpop.f32.mrf.mxu1  ;;  %v11419_v44 = vld [vmem:[#allocation10 + $0xe00] sm:$0xf]  ;;  %v13457_v23 = vld [vmem:[#allocation10 + $0xf44] sm:$0xf]  ;;  %v11296_v13 = vor.u32 %v13385_v29, %v11293_v57  ;;  %v13310_v17 = vld [vmem:[#allocation10 + $0xaa4] sm:$0xf0] }
 0x2f4   :  { %v11420_v61 = vor.u32 %v13421_v38, %v11419_v44  ;;  %v11584_v53 = vor.u32 %v13457_v23, %v11581_v10  ;;  %v11229_v38 = vld [vmem:[#allocation10 + $0xca0] sm:$0xf0]  ;;  %v10659_v18 = vld [vmem:[#allocation10 + $0x808] sm:$0xf]  ;;  %v13282_v29 = vld [vmem:[#allocation10 + $0x9cc] sm:$0xf] }
 0x2f5   :  { %5993 = vmatpush.bf16.msra.mxu3 %v11548_v49  ;;  %v10944_v49 = vor.u32 %v13297_v32, %v10941_v51  ;;  %v11261_v32 = vld [vmem:[#allocation10 + $0xce0] sm:$0xf0]  ;;  %v10885_v57 = vld [vmem:[#allocation10 + $0x9e8] sm:$0xf0]  ;;  %v11395_v23 = vld [vmem:[#allocation10 + $0xdc8] sm:$0xf] }
 0x2f6   :  { %6008 = vmatpush.bf16.msrb.mxu0 %v10720_v52  ;;  %v10852_v52 = vor.u32 %v13278_v55, %v10851_v6  ;;  %v11549_v6 = vld [vmem:[#allocation10 + $0xf20] sm:$0xf0]  ;;  %v11043_v55 = vld [vmem:[#allocation10 + $0xb08] sm:$0xf] }
 0x2f7   :  { %6019 = vmatpush.bf16.msrb.mxu1 %v11040_v50  ;;  %5982 = vmatpush.bf16.msra.mxu2 %v11228_v62  ;;  %v10909_v50 = vld [vmem:[#allocation10 + $0xa20] sm:$0xf0]  ;;  %v4188_v62 = vpop.f32.mrf.mxu3 }
 0x2f8   :  { %v10912_v48 = vor.u32 %v13289_v39, %v10909_v50  ;;  %v13441_v39 = vld [vmem:[#allocation10 + $0xec4] sm:$0xf] }
 0x2f9   :  { %5994 = vmatpush.bf16.msra.mxu3 %v11516_v3  ;;  %v11648_v3 = vor.u32 %v13473_v54, %v11645_v2  ;;  %v11517_v54 = vld [vmem:[#allocation10 + $0xee0] sm:$0xf0]  ;;  %v11011_v2 = vld [vmem:[#allocation10 + $0xac8] sm:$0xf] }
 0x2fa   :  { %6009 = vmatpush.bf16.msrb.mxu0 %v10688_v11  ;;  %v13465_v11 = vld [vmem:[#allocation10 + $0xf84] sm:$0xf]  ;;  %v11520_v62 = vor.u32 %v13441_v39, %v11517_v54  ;;  %v10915_v39 = vld [vmem:[#allocation10 + $0xa08] sm:$0xf] }
 0x2fb   :  { %6020 = vmatpush.bf16.msrb.mxu1 %v11008_v8  ;;  %5983 = vmatpush.bf16.msra.mxu2 %v11196_v4  ;;  %v10820_v8 = vor.u32 %v13270_v56, %v10819_v60  ;;  %v11616_v4 = vor.u32 %v13465_v11, %v11613_v9  ;;  %v13238_v60 = vld [vmem:[#allocation10 + $0x864] sm:$0xf0]  ;;  %v13433_v9 = vld [vmem:[#allocation10 + $0xe84] sm:$0xf] }
 0x2fc   :  { %v10692_v11 = vor.u32 %v13238_v60, %v10691_v58  ;;  %v11651_v54 = vld [vmem:[#allocation10 + $0xfc8] sm:$0xf]  ;;  %v11141_v58 = vld [vmem:[#allocation10 + $0xbe8] sm:$0xf0] }
 0x2fd   :  { %5995 = vmatpush.bf16.msra.mxu3 %v11484_v20  ;;  %v11108_v20 = vor.u32 %v13342_v16, %v11107_v15  ;;  %v11485_v15 = vld [vmem:[#allocation10 + $0xea0] sm:$0xf0]  ;;  %v10979_v16 = vld [vmem:[#allocation10 + $0xa88] sm:$0xf]  ;;  %v13266_v60 = vld [vmem:[#allocation10 + $0x94c] sm:$0xf] }
 0x2fe   :  { %6010 = vmatpush.bf16.msrb.mxu0 %v10656_v34  ;;  %v10755_v34 = vld [vmem:[#allocation10 + $0x8c8] sm:$0xf]  ;;  %v4251_v51 = vpop.f32.mrf.mxu0 }
 0x2ff   :  { %6021 = vmatpush.bf16.msrb.mxu1 %v10976_v46  ;;  %5984 = vmatpush.bf16.msra.mxu2 %v11164_v36  ;;  %v13334_v46 = vld [vmem:[#allocation10 + $0xb64] sm:$0xf0]  ;;  %v10756_v35 = vor.u32 %v13254_v26, %v10755_v34  ;;  %v13449_v36 = vld [vmem:[#allocation10 + $0xf04] sm:$0xf] }
 0x300   :  { %v11076_v33 = vor.u32 %v13334_v46, %v11075_v25  ;;  %v11552_v44 = vor.u32 %v13449_v36, %v11549_v6  ;;  %v10980_v25 = vor.u32 %v13310_v17, %v10979_v16  ;;  %v13414_v34 = vld [vmem:[#allocation10 + $0xde4] sm:$0xf0]  ;;  %v13425_v26 = vld [vmem:[#allocation10 + $0xe44] sm:$0xf]  ;;  %v10853_v36 = vld [vmem:[#allocation10 + $0x9a8] sm:$0xf0] }
 0x301   :  { %5996 = vmatpush.bf16.msra.mxu3 %v11452_v41  ;;  %6011 = vmatmul.bf16.vlgmr.msrb.gmra.mxu0 %v14251_v31  ;;  %v10723_v41 = vld [vmem:[#allocation10 + $0x888] sm:$0xf]  ;;  %v13338_v16 = vld [vmem:[#allocation10 + $0xb8c] sm:$0xf] }
 0x302   :  { %6055 = vmatpush.bf16.msra.mxu0 %v10884_v30  ;;  %5985 = vmatmul.bf16.vlgmr.msra.gmra.mxu2 %v14271_v47  ;;  %v13377_v30 = vld [vmem:[#allocation10 + $0xcc4] sm:$0xf]  ;;  %v11109_v17 = vld [vmem:[#allocation10 + $0xba8] sm:$0xf0] }
 0x303   :  { %6029 = vmatpush.bf16.msrb.mxu2 %v11392_v40  ;;  %6022 = vmatpush.bf16.msrb.mxu1 %v10944_v49  ;;  %v13326_v40 = vld [vmem:[#allocation10 + $0xb24] sm:$0xf0]  ;;  %v11264_v43 = vor.u32 %v13377_v30, %v11261_v32  ;;  %v13369_v49 = vld [vmem:[#allocation10 + $0xc84] sm:$0xf]  ;;  %v10888_v30 = vor.u32 %v13282_v29, %v10885_v57 }
 0x304   :  { %v11044_v50 = vor.u32 %v13326_v40, %v11043_v55  ;;  %v11232_v56 = vor.u32 %v13369_v49, %v11229_v38  ;;  %v10947_v32 = vld [vmem:[#allocation10 + $0xa48] sm:$0xf]  ;;  %v11396_v40 = vor.u32 %v13414_v34, %v11395_v23  ;;  %v11421_v38 = vld [vmem:[#allocation10 + $0xe20] sm:$0xf0]  ;;  %v13250_v34 = vld [vmem:[#allocation10 + $0x8cc] sm:$0xf] }
 0x305   :  { %5997 = vmatpush.bf16.msra.mxu3 %v11420_v61  ;;  %v11299_v57 = vld [vmem:[#allocation10 + $0xd08] sm:$0xf] }
 0x306   :  { %6056 = vmatpush.bf16.msra.mxu0 %v10852_v52  ;;  %v10724_v52 = vor.u32 %v13246_v42, %v10723_v41  ;;  %v11363_v42 = vld [vmem:[#allocation10 + $0xd88] sm:$0xf] }
 0x307   :  { %6030 = vmatpush.bf16.msrb.mxu2 %v11360_v59  ;;  %6023 = vmatpush.bf16.msrb.mxu1 %v10912_v48  ;;  %v4225_v59 = vpop.f32.mrf.mxu2  ;;  %v4264_v61 = vpop.f32.mrf.mxu1  ;;  %v11012_v48 = vor.u32 %v13318_v24, %v11011_v2  ;;  %v13478_v2 = vld [vmem:[#allocation10 + $0xfe4] sm:$0xf0]  ;;  %v13346_v24 = vld [vmem:[#allocation10 + $0xbcc] sm:$0xf] }
 0x308   :  { %5998 = vmatmul.bf16.vlgmr.msra.gmra.mxu3 %v14275_v14  ;;  %v4226_v5 = vadd.f32 %v4225_v59, %v14323_v63  ;;  %v11165_v63 = vld [vmem:[#allocation10 + $0xc20] sm:$0xf0]  ;;  %v11587_v23 = vld [vmem:[#allocation10 + $0xf48] sm:$0xf] }
 0x309   :  { %6042 = vmatpush.bf16.msrb.mxu3 %v11648_v3  ;;  %v13361_v3 = vld [vmem:[#allocation10 + $0xc44] sm:$0xf] }
 0x30a   :  { %6057 = vmatpush.bf16.msra.mxu0 %v10820_v8  ;;  %6024 = vmatmul.bf16.vlgmr.msrb.gmra.mxu1 %v14254_v27  ;;  %v4253_v8 = vpop.f32.mrf.mxu0 }
 0x30b   :  { %6068 = vmatpush.bf16.msra.mxu1 %v11140_v7  ;;  %6031 = vmatpush.bf16.msrb.mxu2 %v11328_v37  ;;  %v14332_v7 = vadd.f32 %v4264_v61, %v4251_v51  ;;  %v13230_v37 = vld [vmem:[#allocation10 + $0x824] sm:$0xf0]  ;;  %v4238_v10 = vpop.f32.mrf.mxu3  ;;  %v11144_v8 = vor.u32 %v13346_v24, %v11141_v58  ;;  %v13314_v24 = vld [vmem:[#allocation10 + $0xacc] sm:$0xf] }
 0x30c   :  { %v10660_v46 = vor.u32 %v13230_v37, %v10659_v18  ;;  %v13302_v51 = vld [vmem:[#allocation10 + $0xa64] sm:$0xf0]  ;;  %v13258_v18 = vld [vmem:[#allocation10 + $0x90c] sm:$0xf] }
 0x30d   :  { %6043 = vmatpush.bf16.msrb.mxu3 %v11616_v4  ;;  %v11200_v4 = vor.u32 %v13361_v3, %v11197_v0  ;;  %v10948_v49 = vor.u32 %v13302_v51, %v10947_v32  ;;  %v11652_v3 = vor.u32 %v13478_v2, %v11651_v54  ;;  %v11331_v0 = vld [vmem:[#allocation10 + $0xd48] sm:$0xf]  ;;  %v10789_v37 = vld [vmem:[#allocation10 + $0x928] sm:$0xf0] }
 0x30e   :  { %6058 = vmatpush.bf16.msra.mxu0 %v10788_v22  ;;  %v13353_v22 = vld [vmem:[#allocation10 + $0xc04] sm:$0xf]  ;;  %v11267_v32 = vld [vmem:[#allocation10 + $0xcc8] sm:$0xf]  ;;  %v11013_v58 = vld [vmem:[#allocation10 + $0xae8] sm:$0xf0] }
 0x30f   :  { %6069 = vmatpush.bf16.msra.mxu1 %v11108_v20  ;;  %6032 = vmatpush.bf16.msrb.mxu2 %v11296_v13  ;;  %v11488_v20 = vor.u32 %v13433_v9, %v11485_v15  ;;  %v11453_v13 = vld [vmem:[#allocation10 + $0xe60] sm:$0xf0]  ;;  %v4227_v6 = vpop.f32.mrf.mxu2  ;;  %v4266_v55 = vpop.f32.mrf.mxu1  ;;  %v11619_v9 = vld [vmem:[#allocation10 + $0xf88] sm:$0xf] }
 0x310   :  { %v11456_v41 = vor.u32 %v13425_v26, %v11453_v13  ;;  %v13470_v15 = vld [vmem:[#allocation10 + $0xfa4] sm:$0xf0]  ;;  %v10757_v26 = vld [vmem:[#allocation10 + $0x8e8] sm:$0xf0] }
 0x311   :  { %6044 = vmatpush.bf16.msrb.mxu3 %v11584_v53  ;;  %v14334_v53 = vadd.f32 %v4238_v10, %v4226_v5  ;;  %v13398_v5 = vld [vmem:[#allocation10 + $0xd64] sm:$0xf0]  ;;  %v11620_v29 = vor.u32 %v13470_v15, %v11619_v9 }
 0x312   :  { %6059 = vmatpush.bf16.msra.mxu0 %v10756_v35  ;;  %v13274_v35 = vld [vmem:[#allocation10 + $0x98c] sm:$0xf]  ;;  %v13462_v10 = vld [vmem:[#allocation10 + $0xf64] sm:$0xf0] }
 0x313   :  { %6070 = vmatpush.bf16.msra.mxu1 %v11076_v33  ;;  %6033 = vmatpush.bf16.msrb.mxu2 %v11264_v43  ;;  %v11168_v33 = vor.u32 %v13353_v22, %v11165_v63  ;;  %v13406_v43 = vld [vmem:[#allocation10 + $0xda4] sm:$0xf0]  ;;  %v11112_v22 = vor.u32 %v13338_v16, %v11109_v17  ;;  %v10792_v63 = vor.u32 %v13258_v18, %v10789_v37  ;;  %v13306_v18 = vld [vmem:[#allocation10 + $0xa8c] sm:$0xf] }
 0x314   :  { %v11364_v59 = vor.u32 %v13406_v43, %v11363_v42  ;;  %v13382_v51 = vld [vmem:[#allocation10 + $0xce4] sm:$0xf0]  ;;  %v13242_v42 = vld [vmem:[#allocation10 + $0x88c] sm:$0xf] }
 0x315   :  { %6045 = vmatpush.bf16.msrb.mxu3 %v11552_v44  ;;  %v13417_v44 = vld [vmem:[#allocation10 + $0xe04] sm:$0xf]  ;;  %v11555_v6 = vld [vmem:[#allocation10 + $0xf08] sm:$0xf]  ;;  %v10725_v43 = vld [vmem:[#allocation10 + $0x8a8] sm:$0xf0] }
 0x316   :  { %6060 = vmatpush.bf16.msra.mxu0 %v10724_v52  ;;  %v10856_v52 = vor.u32 %v13274_v35, %v10853_v36  ;;  %v11424_v61 = vor.u32 %v13417_v44, %v11421_v38  ;;  %v10760_v36 = vor.u32 %v13250_v34, %v10757_v26  ;;  %v13454_v55 = vld [vmem:[#allocation10 + $0xf24] sm:$0xf0]  ;;  %v11268_v44 = vor.u32 %v13382_v51, %v11267_v32  ;;  %v10981_v37 = vld [vmem:[#allocation10 + $0xaa8] sm:$0xf0] }
 0x317   :  { %6071 = vmatpush.bf16.msra.mxu1 %v11044_v50  ;;  %6034 = vmatpush.bf16.msrb.mxu2 %v11232_v56  ;;  %v13294_v50 = vld [vmem:[#allocation10 + $0xa24] sm:$0xf0]  ;;  %v10821_v56 = vld [vmem:[#allocation10 + $0x968] sm:$0xf0]  ;;  %v10728_v54 = vor.u32 %v13242_v42, %v10725_v43 }
 0x318   :  { %v11235_v38 = vld [vmem:[#allocation10 + $0xc88] sm:$0xf]  ;;  %v11397_v26 = vld [vmem:[#allocation10 + $0xde8] sm:$0xf0] }
 0x319   :  { %6046 = vmatpush.bf16.msrb.mxu3 %v11520_v62  ;;  %v4240_v62 = vpop.f32.mrf.mxu3  ;;  %v13446_v2 = vld [vmem:[#allocation10 + $0xee4] sm:$0xf0] }
 0x31a   :  { %6061 = vmatpush.bf16.msra.mxu0 %v10692_v11  ;;  %v10824_v11 = vor.u32 %v13266_v60, %v10821_v56  ;;  %v13234_v60 = vld [vmem:[#allocation10 + $0x84c] sm:$0xf]  ;;  %v11491_v16 = vld [vmem:[#allocation10 + $0xe88] sm:$0xf] }
 0x31b   :  { %6072 = vmatpush.bf16.msra.mxu1 %v11012_v48  ;;  %6035 = vmatpush.bf16.msrb.mxu2 %v11200_v4  ;;  %v10916_v48 = vor.u32 %v13294_v50, %v10915_v39  ;;  %v11332_v4 = vor.u32 %v13398_v5, %v11331_v0  ;;  %v13374_v39 = vld [vmem:[#allocation10 + $0xca4] sm:$0xf0]  ;;  %v10693_v56 = vld [vmem:[#allocation10 + $0x868] sm:$0xf0] }
 0x31c   :  { %v11523_v50 = vld [vmem:[#allocation10 + $0xec8] sm:$0xf]  ;;  %v10696_v15 = vor.u32 %v13234_v60, %v10693_v56  ;;  %v11147_v60 = vld [vmem:[#allocation10 + $0xbd0] sm:$0xf] }
 0x31d   :  { %6047 = vmatpush.bf16.msrb.mxu3 %v11488_v20  ;;  %v13390_v20 = vld [vmem:[#allocation10 + $0xd24] sm:$0xf0]  ;;  %v13351_v56 = vld [vmem:[#allocation10 + $0xbec] sm:$0xf0] }
 0x31e   :  { %6062 = vmatpush.bf16.msra.mxu0 %v10660_v46  ;;  %v11077_v46 = vld [vmem:[#allocation10 + $0xb68] sm:$0xf0]  ;;  %v11300_v13 = vor.u32 %v13390_v20, %v11299_v57  ;;  %v11203_v0 = vld [vmem:[#allocation10 + $0xc48] sm:$0xf]  ;;  %v10891_v20 = vld [vmem:[#allocation10 + $0x9d0] sm:$0xf] }
 0x31f   :  { %6073 = vmatpush.bf16.msra.mxu1 %v10980_v25  ;;  %6036 = vmatpush.bf16.msrb.mxu2 %v11168_v33  ;;  %v13330_v25 = vld [vmem:[#allocation10 + $0xb4c] sm:$0xf]  ;;  %v4303_v33 = vpop.f32.mrf.mxu0  ;;  %v13366_v5 = vld [vmem:[#allocation10 + $0xc64] sm:$0xf0] }
 0x320   :  { %v11080_v35 = vor.u32 %v13330_v25, %v11077_v46  ;;  %v13438_v17 = vld [vmem:[#allocation10 + $0xea4] sm:$0xf0]  ;;  %v11204_v57 = vor.u32 %v13366_v5, %v11203_v0  ;;  %v10984_v46 = vor.u32 %v13306_v18, %v10981_v37  ;;  %v11621_v18 = vld [vmem:[#allocation10 + $0xfa8] sm:$0xf0]  ;;  %v11115_v37 = vld [vmem:[#allocation10 + $0xb90] sm:$0xf] }
 0x321   :  { %6048 = vmatpush.bf16.msrb.mxu3 %v11456_v41  ;;  %6063 = vmatmul.bf16.vlgmr.msra.gmra.mxu0 %v14251_v31  ;;  %v11045_v41 = vld [vmem:[#allocation10 + $0xb28] sm:$0xf0] }
 0x322   :  { %6107 = vmatpush.bf16.msrb.mxu0 %v10888_v30  ;;  %6037 = vmatmul.bf16.vlgmr.msrb.gmra.mxu2 %v14271_v47  ;;  %v11588_v30 = vor.u32 %v13462_v10, %v11587_v23  ;;  %v11171_v23 = vld [vmem:[#allocation10 + $0xc08] sm:$0xf]  ;;  %v13410_v10 = vld [vmem:[#allocation10 + $0xdcc] sm:$0xf] }
 0x323   :  { %6081 = vmatpush.bf16.msra.mxu2 %v11396_v40  ;;  %6074 = vmatpush.bf16.msra.mxu1 %v10948_v49  ;;  %v13322_v40 = vld [vmem:[#allocation10 + $0xb0c] sm:$0xf]  ;;  %v11556_v49 = vor.u32 %v13454_v55, %v11555_v6  ;;  %v10859_v6 = vld [vmem:[#allocation10 + $0x990] sm:$0xf]  ;;  %v11400_v42 = vor.u32 %v13410_v10, %v11397_v26 }
 0x324   :  { %v13279_v55 = vld [vmem:[#allocation10 + $0x9ac] sm:$0xf0] }
 0x325   :  { %6049 = vmatpush.bf16.msrb.mxu3 %v11424_v61  ;;  %v4277_v61 = vpop.f32.mrf.mxu2  ;;  %v13335_v26 = vld [vmem:[#allocation10 + $0xb6c] sm:$0xf0] }
 0x326   :  { %6108 = vmatpush.bf16.msrb.mxu0 %v10856_v52  ;;  %v11048_v52 = vor.u32 %v13322_v40, %v11045_v41 }
 0x327   :  { %6082 = vmatpush.bf16.msra.mxu2 %v11364_v59  ;;  %6075 = vmatpush.bf16.msra.mxu1 %v10916_v48  ;;  %v11236_v59 = vor.u32 %v13374_v39, %v11235_v38  ;;  %v4316_v62 = vpop.f32.mrf.mxu1  ;;  %v11524_v48 = vor.u32 %v13446_v2, %v11523_v50  ;;  %v4305_v9 = vpop.f32.mrf.mxu0  ;;  %v11427_v38 = vld [vmem:[#allocation10 + $0xe08] sm:$0xf]  ;;  %v10860_v2 = vor.u32 %v13279_v55, %v10859_v6 }
 0x328   :  { %6050 = vmatmul.bf16.vlgmr.msrb.gmra.mxu3 %v14275_v14  ;;  %v13422_v50 = vld [vmem:[#allocation10 + $0xe24] sm:$0xf0]  ;;  %v11333_v9 = vld [vmem:[#allocation10 + $0xd68] sm:$0xf0] }
 0x329   :  { %6094 = vmatpush.bf16.msra.mxu3 %v11652_v3  ;;  %v11016_v3 = vor.u32 %v13314_v24, %v11013_v58  ;;  %v13474_v24 = vld [vmem:[#allocation10 + $0xfcc] sm:$0xf] }
 0x32a   :  { %6109 = vmatpush.bf16.msrb.mxu0 %v10824_v11  ;;  %6076 = vmatmul.bf16.vlgmr.msra.gmra.mxu1 %v14254_v27  ;;  %v14341_v11 = vadd.f32 %v4316_v62, %v4303_v33  ;;  %v13298_v33 = vld [vmem:[#allocation10 + $0xa4c] sm:$0xf] }
 0x32b   :  { %6120 = vmatpush.bf16.msrb.mxu1 %v11144_v8  ;;  %6083 = vmatpush.bf16.msra.mxu2 %v11332_v4  ;;  %v4278_v8 = vadd.f32 %v4277_v61, %v14332_v7  ;;  %v13226_v4 = vld [vmem:[#allocation10 + $0x80c] sm:$0xf]  ;;  %v13358_v7 = vld [vmem:[#allocation10 + $0xc24] sm:$0xf0]  ;;  %v4290_v25 = vpop.f32.mrf.mxu3  ;;  %v13271_v61 = vld [vmem:[#allocation10 + $0x96c] sm:$0xf0] }
 0x32c   :  { %v11653_v58 = vld [vmem:[#allocation10 + $0xfe8] sm:$0xf0] }
 0x32d   :  { %6095 = vmatpush.bf16.msra.mxu3 %v11620_v29  ;;  %v10661_v29 = vld [vmem:[#allocation10 + $0x828] sm:$0xf0]  ;;  %v14343_v32 = vadd.f32 %v4290_v25, %v4278_v8  ;;  %v4279_v40 = vpop.f32.mrf.mxu2  ;;  %v11656_v5 = vor.u32 %v13474_v24, %v11653_v58 }
 0x32e   :  { %6110 = vmatpush.bf16.msrb.mxu0 %v10792_v63  ;;  %v11492_v63 = vor.u32 %v13438_v17, %v11491_v16  ;;  %v10664_v34 = vor.u32 %v13226_v4, %v10661_v29  ;;  %v13394_v8 = vld [vmem:[#allocation10 + $0xd4c] sm:$0xf]  ;;  %v13343_v4 = vld [vmem:[#allocation10 + $0xbac] sm:$0xf0] }
 0x32f   :  { %6121 = vmatpush.bf16.msrb.mxu1 %v11112_v22  ;;  %6084 = vmatpush.bf16.msra.mxu2 %v11300_v13  ;;  %v13287_v22 = vld [vmem:[#allocation10 + $0x9ec] sm:$0xf0]  ;;  %v11459_v13 = vld [vmem:[#allocation10 + $0xe48] sm:$0xf]  ;;  %v4318_v41 = vpop.f32.mrf.mxu1  ;;  %v13466_v17 = vld [vmem:[#allocation10 + $0xf8c] sm:$0xf] }
 0x330   :  { %v10892_v51 = vor.u32 %v13287_v22, %v10891_v20  ;;  %v10795_v29 = vld [vmem:[#allocation10 + $0x910] sm:$0xf]  ;;  %v11336_v20 = vor.u32 %v13394_v8, %v11333_v9  ;;  %v11624_v22 = vor.u32 %v13466_v17, %v11621_v18  ;;  %v13458_v25 = vld [vmem:[#allocation10 + $0xf4c] sm:$0xf] }
 0x331   :  { %6096 = vmatpush.bf16.msra.mxu3 %v11588_v30  ;;  %v13430_v30 = vld [vmem:[#allocation10 + $0xe64] sm:$0xf0]  ;;  %v13450_v41 = vld [vmem:[#allocation10 + $0xf0c] sm:$0xf] }
 0x332   :  { %6111 = vmatpush.bf16.msrb.mxu0 %v10760_v36  ;;  %v11172_v36 = vor.u32 %v13358_v7, %v11171_v23  ;;  %v11460_v43 = vor.u32 %v13430_v30, %v11459_v13  ;;  %v11301_v23 = vld [vmem:[#allocation10 + $0xd28] sm:$0xf0]  ;;  %v11116_v7 = vor.u32 %v13343_v4, %v11115_v37  ;;  %v10763_v13 = vld [vmem:[#allocation10 + $0x8d0] sm:$0xf] }
 0x333   :  { %6122 = vmatpush.bf16.msrb.mxu1 %v11080_v35  ;;  %6085 = vmatpush.bf16.msra.mxu2 %v11268_v44  ;;  %v10949_v35 = vld [vmem:[#allocation10 + $0xa68] sm:$0xf0]  ;;  %v13255_v30 = vld [vmem:[#allocation10 + $0x8ec] sm:$0xf0] }
 0x334   :  { %v13402_v44 = vld [vmem:[#allocation10 + $0xd8c] sm:$0xf]  ;;  %v10952_v39 = vor.u32 %v13298_v33, %v10949_v35  ;;  %v10764_v40 = vor.u32 %v13255_v30, %v10763_v13 }
 0x335   :  { %6097 = vmatpush.bf16.msra.mxu3 %v11556_v49  ;;  %v11365_v49 = vld [vmem:[#allocation10 + $0xda8] sm:$0xf0] }
 0x336   :  { %6112 = vmatpush.bf16.msrb.mxu0 %v10728_v54  ;;  %v10917_v54 = vld [vmem:[#allocation10 + $0xa28] sm:$0xf0]  ;;  %v11368_v62 = vor.u32 %v13402_v44, %v11365_v49  ;;  %v13327_v44 = vld [vmem:[#allocation10 + $0xb2c] sm:$0xf0] }
 0x337   :  { %6123 = vmatpush.bf16.msrb.mxu1 %v11048_v52  ;;  %6086 = vmatpush.bf16.msra.mxu2 %v11236_v59  ;;  %v13290_v52 = vld [vmem:[#allocation10 + $0xa0c] sm:$0xf]  ;;  %v10827_v59 = vld [vmem:[#allocation10 + $0x950] sm:$0xf] }
 0x338   :  { %v10920_v0 = vor.u32 %v13290_v52, %v10917_v54  ;;  %v10828_v16 = vor.u32 %v13271_v61, %v10827_v59  ;;  %v13378_v35 = vld [vmem:[#allocation10 + $0xccc] sm:$0xf]  ;;  %v10731_v49 = vld [vmem:[#allocation10 + $0x890] sm:$0xf] }
 0x339   :  { %6098 = vmatpush.bf16.msra.mxu3 %v11524_v48  ;;  %v11428_v48 = vor.u32 %v13422_v50, %v11427_v38  ;;  %v13247_v38 = vld [vmem:[#allocation10 + $0x8ac] sm:$0xf0]  ;;  %v13370_v52 = vld [vmem:[#allocation10 + $0xc8c] sm:$0xf] }
 0x33a   :  { %6113 = vmatpush.bf16.msrb.mxu0 %v10696_v15  ;;  %v11148_v15 = vor.u32 %v13351_v56, %v11147_v60  ;;  %v11237_v54 = vld [vmem:[#allocation10 + $0xca8] sm:$0xf0]  ;;  %v10732_v58 = vor.u32 %v13247_v38, %v10731_v49  ;;  %v11019_v56 = vld [vmem:[#allocation10 + $0xad0] sm:$0xf] }
 0x33b   :  { %6124 = vmatpush.bf16.msrb.mxu1 %v11016_v3  ;;  %6087 = vmatpush.bf16.msra.mxu2 %v11204_v57  ;;  %v4292_v3 = vpop.f32.mrf.mxu3  ;;  %v13263_v57 = vld [vmem:[#allocation10 + $0x92c] sm:$0xf0]  ;;  %v11525_v60 = vld [vmem:[#allocation10 + $0xee8] sm:$0xf0] }
 0x33c   :  { %v10796_v10 = vor.u32 %v13263_v57, %v10795_v29  ;;  %v13319_v59 = vld [vmem:[#allocation10 + $0xaec] sm:$0xf0]  ;;  %v13362_v9 = vld [vmem:[#allocation10 + $0xc4c] sm:$0xf] }
 0x33d   :  { %6099 = vmatpush.bf16.msra.mxu3 %v11492_v63  ;;  %v13386_v63 = vld [vmem:[#allocation10 + $0xd0c] sm:$0xf]  ;;  %v10699_v61 = vld [vmem:[#allocation10 + $0x850] sm:$0xf]  ;;  %v11020_v8 = vor.u32 %v13319_v59, %v11019_v56 }
 0x33e   :  { %6114 = vmatpush.bf16.msrb.mxu0 %v10664_v34  ;;  %v11083_v34 = vld [vmem:[#allocation10 + $0xb50] sm:$0xf]  ;;  %v4355_v6 = vpop.f32.mrf.mxu0  ;;  %v13434_v4 = vld [vmem:[#allocation10 + $0xe8c] sm:$0xf] }
 0x33f   :  { %6125 = vmatpush.bf16.msrb.mxu1 %v10984_v46  ;;  %6088 = vmatpush.bf16.msra.mxu2 %v11172_v36  ;;  %v11589_v46 = vld [vmem:[#allocation10 + $0xf68] sm:$0xf0]  ;;  %v11084_v55 = vor.u32 %v13335_v26, %v11083_v34  ;;  %v10987_v57 = vld [vmem:[#allocation10 + $0xa90] sm:$0xf] }
 0x340   :  { %v11592_v33 = vor.u32 %v13458_v25, %v11589_v46  ;;  %v11269_v36 = vld [vmem:[#allocation10 + $0xce8] sm:$0xf0]  ;;  %v11403_v34 = vld [vmem:[#allocation10 + $0xdd0] sm:$0xf] }
 0x341   :  { %6100 = vmatpush.bf16.msra.mxu3 %v11460_v43  ;;  %6115 = vmatmul.bf16.vlgmr.msrb.gmra.mxu0 %v14251_v31  ;;  %v11051_v43 = vld [vmem:[#allocation10 + $0xb10] sm:$0xf]  ;;  %v11493_v29 = vld [vmem:[#allocation10 + $0xea8] sm:$0xf0] }
 0x342   :  { %6159 = vmatpush.bf16.msra.mxu0 %v10892_v51  ;;  %6089 = vmatmul.bf16.vlgmr.msra.gmra.mxu2 %v14271_v47  ;;  %v11304_v51 = vor.u32 %v13386_v63, %v11301_v23  ;;  %v11052_v24 = vor.u32 %v13327_v44, %v11051_v43  ;;  %v13231_v63 = vld [vmem:[#allocation10 + $0x82c] sm:$0xf0]  ;;  %v11496_v25 = vor.u32 %v13434_v4, %v11493_v29  ;;  %v13354_v46 = vld [vmem:[#allocation10 + $0xc0c] sm:$0xf]  ;;  %v10861_v43 = vld [vmem:[#allocation10 + $0x9b0] sm:$0xf0] }
 0x343   :  { %6133 = vmatpush.bf16.msrb.mxu2 %v11400_v42  ;;  %6126 = vmatpush.bf16.msrb.mxu1 %v10952_v39  ;;  %v11557_v42 = vld [vmem:[#allocation10 + $0xf28] sm:$0xf0]  ;;  %v11272_v39 = vor.u32 %v13378_v35, %v11269_v36  ;;  %v11659_v59 = vld [vmem:[#allocation10 + $0xfd0] sm:$0xf] }
 0x344   :  { %v11560_v50 = vor.u32 %v13450_v41, %v11557_v42  ;;  %v11461_v35 = vld [vmem:[#allocation10 + $0xe68] sm:$0xf0]  ;;  %v13275_v42 = vld [vmem:[#allocation10 + $0x994] sm:$0xf] }
 0x345   :  { %6101 = vmatpush.bf16.msra.mxu3 %v11428_v48  ;;  %v11240_v48 = vor.u32 %v13370_v52, %v11237_v54  ;;  %v4329_v3 = vpop.f32.mrf.mxu2  ;;  %v13407_v52 = vld [vmem:[#allocation10 + $0xdac] sm:$0xf0]  ;;  %v13418_v54 = vld [vmem:[#allocation10 + $0xe0c] sm:$0xf]  ;;  %v10864_v56 = vor.u32 %v13275_v42, %v10861_v43 }
 0x346   :  { %6160 = vmatpush.bf16.msra.mxu0 %v10860_v2  ;;  %v13442_v2 = vld [vmem:[#allocation10 + $0xecc] sm:$0xf]  ;;  %v4357_v18 = vpop.f32.mrf.mxu0  ;;  %v13383_v42 = vld [vmem:[#allocation10 + $0xcec] sm:$0xf0] }
 0x347   :  { %6134 = vmatpush.bf16.msrb.mxu2 %v11368_v62  ;;  %6127 = vmatpush.bf16.msrb.mxu1 %v10920_v0  ;;  %v13239_v62 = vld [vmem:[#allocation10 + $0x86c] sm:$0xf0]  ;;  %v4368_v0 = vpop.f32.mrf.mxu1 }
 0x348   :  { %6102 = vmatmul.bf16.vlgmr.msra.gmra.mxu3 %v14275_v14  ;;  %v14350_v17 = vadd.f32 %v4368_v0, %v4355_v6  ;;  %v10700_v37 = vor.u32 %v13239_v62, %v10699_v61  ;;  %v13479_v61 = vld [vmem:[#allocation10 + $0xfec] sm:$0xf0]  ;;  %v13347_v62 = vld [vmem:[#allocation10 + $0xbd4] sm:$0xf] }
 0x349   :  { %6146 = vmatpush.bf16.msrb.mxu3 %v11656_v5  ;;  %v11528_v5 = vor.u32 %v13442_v2, %v11525_v60  ;;  %v13295_v60 = vld [vmem:[#allocation10 + $0xa2c] sm:$0xf0]  ;;  %v10829_v0 = vld [vmem:[#allocation10 + $0x970] sm:$0xf0] }
 0x34a   :  { %6161 = vmatpush.bf16.msra.mxu0 %v10828_v16  ;;  %6128 = vmatmul.bf16.vlgmr.msrb.gmra.mxu1 %v14254_v27  ;;  %v4330_v16 = vadd.f32 %v4329_v3, %v14341_v11  ;;  %v11173_v11 = vld [vmem:[#allocation10 + $0xc28] sm:$0xf0]  ;;  %v13267_v3 = vld [vmem:[#allocation10 + $0x954] sm:$0xf]  ;;  %v11339_v18 = vld [vmem:[#allocation10 + $0xd50] sm:$0xf] }
 0x34b   :  { %6172 = vmatpush.bf16.msra.mxu1 %v11148_v15  ;;  %6135 = vmatpush.bf16.msrb.mxu2 %v11336_v20  ;;  %v11205_v15 = vld [vmem:[#allocation10 + $0xc68] sm:$0xf0]  ;;  %v13311_v20 = vld [vmem:[#allocation10 + $0xaac] sm:$0xf0]  ;;  %v4342_v26 = vpop.f32.mrf.mxu3  ;;  %v11176_v41 = vor.u32 %v13354_v46, %v11173_v11  ;;  %v10832_v29 = vor.u32 %v13267_v3, %v10829_v0  ;;  %v13315_v3 = vld [vmem:[#allocation10 + $0xad4] sm:$0xf] }
 0x34c   :  { %v11208_v23 = vor.u32 %v13362_v9, %v11205_v15  ;;  %v10988_v13 = vor.u32 %v13311_v20, %v10987_v57  ;;  %v14352_v36 = vadd.f32 %v4342_v26, %v4330_v16  ;;  %v11660_v16 = vor.u32 %v13479_v61, %v11659_v59  ;;  %v11627_v57 = vld [vmem:[#allocation10 + $0xf90] sm:$0xf]  ;;  %v11021_v0 = vld [vmem:[#allocation10 + $0xaf0] sm:$0xf0] }
 0x34d   :  { %6147 = vmatpush.bf16.msrb.mxu3 %v11624_v22  ;;  %v10667_v22 = vld [vmem:[#allocation10 + $0x810] sm:$0xf]  ;;  %v4331_v44 = vpop.f32.mrf.mxu2 }
 0x34e   :  { %6162 = vmatpush.bf16.msra.mxu0 %v10796_v10  ;;  %v10893_v10 = vld [vmem:[#allocation10 + $0x9f0] sm:$0xf0]  ;;  %v10668_v30 = vor.u32 %v13231_v63, %v10667_v22  ;;  %v13471_v20 = vld [vmem:[#allocation10 + $0xfac] sm:$0xf0] }
 0x34f   :  { %6173 = vmatpush.bf16.msra.mxu1 %v11116_v7  ;;  %6136 = vmatpush.bf16.msrb.mxu2 %v11304_v51  ;;  %v13283_v7 = vld [vmem:[#allocation10 + $0x9d4] sm:$0xf]  ;;  %v13415_v51 = vld [vmem:[#allocation10 + $0xdec] sm:$0xf0]  ;;  %v4370_v49 = vpop.f32.mrf.mxu1 }
 0x350   :  { %v10896_v6 = vor.u32 %v13283_v7, %v10893_v10  ;;  %v11404_v38 = vor.u32 %v13415_v51, %v11403_v34  ;;  %v13339_v22 = vld [vmem:[#allocation10 + $0xb94] sm:$0xf]  ;;  %v11307_v46 = vld [vmem:[#allocation10 + $0xd10] sm:$0xf] }
 0x351   :  { %6148 = vmatpush.bf16.msrb.mxu3 %v11592_v33  ;;  %v13426_v33 = vld [vmem:[#allocation10 + $0xe4c] sm:$0xf]  ;;  %v11117_v63 = vld [vmem:[#allocation10 + $0xbb0] sm:$0xf0]  ;;  %v13391_v11 = vld [vmem:[#allocation10 + $0xd2c] sm:$0xf0] }
 0x352   :  { %6163 = vmatpush.bf16.msra.mxu0 %v10764_v40  ;;  %v13303_v40 = vld [vmem:[#allocation10 + $0xa6c] sm:$0xf0]  ;;  %v10797_v7 = vld [vmem:[#allocation10 + $0x930] sm:$0xf0]  ;;  %v11120_v34 = vor.u32 %v13339_v22, %v11117_v63 }
 0x353   :  { %6174 = vmatpush.bf16.msra.mxu1 %v11084_v55  ;;  %6137 = vmatpush.bf16.msrb.mxu2 %v11272_v39  ;;  %v10955_v55 = vld [vmem:[#allocation10 + $0xa50] sm:$0xf]  ;;  %v11464_v39 = vor.u32 %v13426_v33, %v11461_v35  ;;  %v4344_v9 = vpop.f32.mrf.mxu3  ;;  %v13331_v51 = vld [vmem:[#allocation10 + $0xb54] sm:$0xf] }
 0x354   :  { %v10956_v2 = vor.u32 %v13303_v40, %v10955_v55  ;;  %v11085_v33 = vld [vmem:[#allocation10 + $0xb70] sm:$0xf0]  ;;  %v11308_v55 = vor.u32 %v13391_v11, %v11307_v46  ;;  %v11531_v59 = vld [vmem:[#allocation10 + $0xed0] sm:$0xf] }
 0x355   :  { %6149 = vmatpush.bf16.msrb.mxu3 %v11560_v50  ;;  %v11371_v50 = vld [vmem:[#allocation10 + $0xd90] sm:$0xf]  ;;  %v13251_v35 = vld [vmem:[#allocation10 + $0x8d4] sm:$0xf]  ;;  %v11088_v44 = vor.u32 %v13331_v51, %v11085_v33 }
 0x356   :  { %6164 = vmatpush.bf16.msra.mxu0 %v10732_v58  ;;  %v10923_v58 = vld [vmem:[#allocation10 + $0xa10] sm:$0xf]  ;;  %v13227_v46 = vld [vmem:[#allocation10 + $0x814] sm:$0xf] }
 0x357   :  { %6175 = vmatpush.bf16.msra.mxu1 %v11052_v24  ;;  %6138 = vmatpush.bf16.msrb.mxu2 %v11240_v48  ;;  %v11429_v24 = vld [vmem:[#allocation10 + $0xe28] sm:$0xf0]  ;;  %v11149_v48 = vld [vmem:[#allocation10 + $0xbf0] sm:$0xf0]  ;;  %v10924_v15 = vor.u32 %v13295_v60, %v10923_v58  ;;  %v11243_v60 = vld [vmem:[#allocation10 + $0xc90] sm:$0xf] }
 0x358   :  { %v11152_v4 = vor.u32 %v13347_v62, %v11149_v48  ;;  %v13447_v48 = vld [vmem:[#allocation10 + $0xeec] sm:$0xf0]  ;;  %v10669_v11 = vld [vmem:[#allocation10 + $0x830] sm:$0xf0] }
 0x359   :  { %6150 = vmatpush.bf16.msrb.mxu3 %v11528_v5  ;;  %v11372_v5 = vor.u32 %v13407_v52, %v11371_v50  ;;  %v13323_v50 = vld [vmem:[#allocation10 + $0xb14] sm:$0xf]  ;;  %v11179_v51 = vld [vmem:[#allocation10 + $0xc10] sm:$0xf] }
 0x35a   :  { %6165 = vmatpush.bf16.msra.mxu0 %v10700_v37  ;;  %v13399_v37 = vld [vmem:[#allocation10 + $0xd6c] sm:$0xf0]  ;;  %v11053_v52 = vld [vmem:[#allocation10 + $0xb30] sm:$0xf0] }
 0x35b   :  { %6176 = vmatpush.bf16.msra.mxu1 %v11020_v8  ;;  %6139 = vmatpush.bf16.msrb.mxu2 %v11208_v23  ;;  %v11432_v8 = vor.u32 %v13418_v54, %v11429_v24  ;;  %v13259_v23 = vld [vmem:[#allocation10 + $0x914] sm:$0xf]  ;;  %v11340_v10 = vor.u32 %v13399_v37, %v11339_v18  ;;  %v11056_v61 = vor.u32 %v13323_v50, %v11053_v52  ;;  %v10867_v50 = vld [vmem:[#allocation10 + $0x998] sm:$0xf] }
 0x35c   :  { %v10800_v26 = vor.u32 %v13259_v23, %v10797_v7  ;;  %v13243_v54 = vld [vmem:[#allocation10 + $0x894] sm:$0xf]  ;;  %v11532_v18 = vor.u32 %v13447_v48, %v11531_v59  ;;  %v11024_v37 = vor.u32 %v13315_v3, %v11021_v0  ;;  %v11499_v23 = vld [vmem:[#allocation10 + $0xe90] sm:$0xf]  ;;  %v13280_v52 = vld [vmem:[#allocation10 + $0x9b4] sm:$0xf0] }
 0x35d   :  { %6151 = vmatpush.bf16.msrb.mxu3 %v11496_v25  ;;  %v11628_v25 = vor.u32 %v13471_v20, %v11627_v57  ;;  %v13439_v7 = vld [vmem:[#allocation10 + $0xeac] sm:$0xf0]  ;;  %v13411_v33 = vld [vmem:[#allocation10 + $0xdd4] sm:$0xf]  ;;  %v10868_v0 = vor.u32 %v13280_v52, %v10867_v50 }
 0x35e   :  { %6166 = vmatpush.bf16.msra.mxu0 %v10668_v30  ;;  %v13463_v30 = vld [vmem:[#allocation10 + $0xf6c] sm:$0xf0]  ;;  %v5960_v43 = vpop.f32.mrf.mxu0  ;;  %v13291_v48 = vld [vmem:[#allocation10 + $0xa14] sm:$0xf] }
 0x35f   :  { %6177 = vmatpush.bf16.msra.mxu1 %v10988_v13  ;;  %6140 = vmatpush.bf16.msrb.mxu2 %v11176_v41  ;;  %v11595_v13 = vld [vmem:[#allocation10 + $0xf50] sm:$0xf]  ;;  %v10925_v3 = vld [vmem:[#allocation10 + $0xa30] sm:$0xf0] }
 0x360   :  { %v11596_v40 = vor.u32 %v13463_v30, %v11595_v13  ;;  %v11275_v41 = vld [vmem:[#allocation10 + $0xcd0] sm:$0xf]  ;;  %v13288_v13 = vld [vmem:[#allocation10 + $0x9f4] sm:$0xf0]  ;;  %v11500_v30 = vor.u32 %v13439_v7, %v11499_v23  ;;  %v11341_v23 = vld [vmem:[#allocation10 + $0xd70] sm:$0xf0] }
 0x361   :  { %6152 = vmatpush.bf16.msrb.mxu3 %v11464_v39  ;;  %6167 = vmatmul.bf16.vlgmr.msra.gmra.mxu0 %v14251_v31  ;;  %v13455_v39 = vld [vmem:[#allocation10 + $0xf2c] sm:$0xf0]  ;;  %v11276_v24 = vor.u32 %v13383_v42, %v11275_v41  ;;  %v13379_v50 = vld [vmem:[#allocation10 + $0xcd4] sm:$0xf] }
 0x362   :  { %6211 = vmatpush.bf16.msrb.mxu0 %v10896_v6  ;;  %6141 = vmatmul.bf16.vlgmr.msrb.gmra.mxu2 %v14271_v47  ;;  %v10765_v6 = vld [vmem:[#allocation10 + $0x8f0] sm:$0xf0]  ;;  %v11467_v41 = vld [vmem:[#allocation10 + $0xe50] sm:$0xf] }
 0x363   :  { %6185 = vmatpush.bf16.msra.mxu2 %v11404_v38  ;;  %6178 = vmatpush.bf16.msra.mxu1 %v10956_v2  ;;  %v10768_v49 = vor.u32 %v13251_v35, %v10765_v6  ;;  %v11563_v38 = vld [vmem:[#allocation10 + $0xf10] sm:$0xf]  ;;  %v10733_v2 = vld [vmem:[#allocation10 + $0x8b0] sm:$0xf0] }
 0x364   :  { %v11564_v58 = vor.u32 %v13455_v39, %v11563_v38  ;;  %v10736_v62 = vor.u32 %v13243_v54, %v10733_v2  ;;  %v13431_v42 = vld [vmem:[#allocation10 + $0xe6c] sm:$0xf0]  ;;  %v10957_v38 = vld [vmem:[#allocation10 + $0xa70] sm:$0xf0] }
 0x365   :  { %6153 = vmatpush.bf16.msrb.mxu3 %v11432_v8  ;;  %v10701_v8 = vld [vmem:[#allocation10 + $0x870] sm:$0xf0]  ;;  %v11435_v59 = vld [vmem:[#allocation10 + $0xe10] sm:$0xf] }
 0x366   :  { %6212 = vmatpush.bf16.msrb.mxu0 %v10864_v56  ;;  %v13375_v56 = vld [vmem:[#allocation10 + $0xcac] sm:$0xf0]  ;;  %v5962_v22 = vpop.f32.mrf.mxu0  ;;  %v11277_v52 = vld [vmem:[#allocation10 + $0xcf0] sm:$0xf0] }
 0x367   :  { %6186 = vmatpush.bf16.msra.mxu2 %v11372_v5  ;;  %6179 = vmatpush.bf16.msra.mxu1 %v10924_v15  ;;  %v13235_v5 = vld [vmem:[#allocation10 + $0x854] sm:$0xf]  ;;  %v11244_v9 = vor.u32 %v13375_v56, %v11243_v60  ;;  %v4381_v15 = vpop.f32.mrf.mxu2 }
 0x368   :  { %6154 = vmatmul.bf16.vlgmr.msrb.gmra.mxu3 %v14275_v14  ;;  %v4382_v57 = vadd.f32 %v4381_v15, %v14350_v17  ;;  %v10704_v63 = vor.u32 %v13235_v5, %v10701_v8  ;;  %v13359_v17 = vld [vmem:[#allocation10 + $0xc2c] sm:$0xf0]  ;;  %v13403_v60 = vld [vmem:[#allocation10 + $0xd94] sm:$0xf]  ;;  %v13352_v15 = vld [vmem:[#allocation10 + $0xbf4] sm:$0xf0] }
 0x369   :  { %6198 = vmatpush.bf16.msra.mxu3 %v11660_v16  ;;  %v5973_v16 = vpop.f32.mrf.mxu1  ;;  %v11180_v39 = vor.u32 %v13359_v17, %v11179_v51  ;;  %v11373_v56 = vld [vmem:[#allocation10 + $0xdb0] sm:$0xf0] }
 0x36a   :  { %6213 = vmatpush.bf16.msrb.mxu0 %v10832_v29  ;;  %6180 = vmatmul.bf16.vlgmr.msra.gmra.mxu1 %v14254_v27  ;;  %v13367_v29 = vld [vmem:[#allocation10 + $0xc6c] sm:$0xf0]  ;;  %v14359_v20 = vadd.f32 %v5973_v16, %v5960_v43  ;;  %v13475_v5 = vld [vmem:[#allocation10 + $0xfd4] sm:$0xf]  ;;  %v10835_v16 = vld [vmem:[#allocation10 + $0x958] sm:$0xf] }
 0x36b   :  { %6224 = vmatpush.bf16.msrb.mxu1 %v11152_v4  ;;  %6187 = vmatpush.bf16.msra.mxu2 %v11340_v10  ;;  %v11211_v4 = vld [vmem:[#allocation10 + $0xc50] sm:$0xf]  ;;  %v13307_v10 = vld [vmem:[#allocation10 + $0xa94] sm:$0xf]  ;;  %v4394_v35 = vpop.f32.mrf.mxu3 }
 0x36c   :  { %v14361_v43 = vadd.f32 %v4394_v35, %v4382_v57  ;;  %v11661_v8 = vld [vmem:[#allocation10 + $0xff0] sm:$0xf0]  ;;  %v10928_v57 = vor.u32 %v13291_v48, %v10925_v3  ;;  %v11280_v48 = vor.u32 %v13379_v50, %v11277_v52  ;;  %v13416_v52 = vld [vmem:[#allocation10 + $0xdf4] sm:$0xf0] }
 0x36d   :  { %6199 = vmatpush.bf16.msra.mxu3 %v11628_v25  ;;  %v10989_v25 = vld [vmem:[#allocation10 + $0xab0] sm:$0xf0]  ;;  %v11664_v22 = vor.u32 %v13475_v5, %v11661_v8 }
 0x36e   :  { %6214 = vmatpush.bf16.msrb.mxu0 %v10800_v26  ;;  %v10899_v26 = vld [vmem:[#allocation10 + $0x9d8] sm:$0xf]  ;;  %v10992_v6 = vor.u32 %v13307_v10, %v10989_v25  ;;  %v13467_v25 = vld [vmem:[#allocation10 + $0xf94] sm:$0xf] }
 0x36f   :  { %6225 = vmatpush.bf16.msrb.mxu1 %v11120_v34  ;;  %6188 = vmatpush.bf16.msra.mxu2 %v11308_v55  ;;  %v11212_v34 = vor.u32 %v13367_v29, %v11211_v4  ;;  %v10672_v55 = vor.u32 %v13227_v46, %v10669_v11  ;;  %v4383_v54 = vpop.f32.mrf.mxu2  ;;  %v11629_v46 = vld [vmem:[#allocation10 + $0xfb0] sm:$0xf0]  ;;  %v11123_v11 = vld [vmem:[#allocation10 + $0xb98] sm:$0xf] }
 0x370   :  { %v11632_v51 = vor.u32 %v13467_v25, %v11629_v46  ;;  %v13387_v17 = vld [vmem:[#allocation10 + $0xd14] sm:$0xf] }
 0x371   :  { %6200 = vmatpush.bf16.msra.mxu3 %v11596_v40  ;;  %v11405_v40 = vld [vmem:[#allocation10 + $0xdf0] sm:$0xf0]  ;;  %v5975_v2 = vpop.f32.mrf.mxu1 }
 0x372   :  { %6215 = vmatpush.bf16.msrb.mxu0 %v10768_v49  ;;  %v13299_v49 = vld [vmem:[#allocation10 + $0xa54] sm:$0xf] }
 0x373   :  { %6226 = vmatpush.bf16.msrb.mxu1 %v11088_v44  ;;  %6189 = vmatpush.bf16.msra.mxu2 %v11276_v24  ;;  %v10900_v44 = vor.u32 %v13288_v13, %v10899_v26  ;;  %v11408_v24 = vor.u32 %v13411_v33, %v11405_v40  ;;  %v4396_v29 = vpop.f32.mrf.mxu3  ;;  %v10803_v26 = vld [vmem:[#allocation10 + $0x918] sm:$0xf]  ;;  %v11309_v33 = vld [vmem:[#allocation10 + $0xd30] sm:$0xf0] }
 0x374   :  { %v13264_v13 = vld [vmem:[#allocation10 + $0x934] sm:$0xf0]  ;;  %v11597_v40 = vld [vmem:[#allocation10 + $0xf70] sm:$0xf0] }
 0x375   :  { %6201 = vmatpush.bf16.msra.mxu3 %v11564_v58  ;;  %v11468_v58 = vor.u32 %v13431_v42, %v11467_v41  ;;  %v11091_v41 = vld [vmem:[#allocation10 + $0xb58] sm:$0xf]  ;;  %v11245_v5 = vld [vmem:[#allocation10 + $0xcb0] sm:$0xf0] }
 0x376   :  { %6216 = vmatpush.bf16.msrb.mxu0 %v10736_v62  ;;  %v13423_v62 = vld [vmem:[#allocation10 + $0xe2c] sm:$0xf0]  ;;  %v13336_v42 = vld [vmem:[#allocation10 + $0xb74] sm:$0xf0]  ;;  %v13443_v8 = vld [vmem:[#allocation10 + $0xed4] sm:$0xf] }
 0x377   :  { %6227 = vmatpush.bf16.msrb.mxu1 %v11056_v61  ;;  %6190 = vmatpush.bf16.msra.mxu2 %v11244_v9  ;;  %v10960_v61 = vor.u32 %v13299_v49, %v10957_v38  ;;  %v11155_v9 = vld [vmem:[#allocation10 + $0xbd8] sm:$0xf]  ;;  %v11436_v4 = vor.u32 %v13423_v62, %v11435_v59  ;;  %v11312_v38 = vor.u32 %v13387_v17, %v11309_v33  ;;  %v11213_v25 = vld [vmem:[#allocation10 + $0xc70] sm:$0xf0] }
 0x378   :  { %v11156_v7 = vor.u32 %v13352_v15, %v11155_v9  ;;  %v13256_v49 = vld [vmem:[#allocation10 + $0x8f4] sm:$0xf0]  ;;  %v11092_v2 = vor.u32 %v13336_v42, %v11091_v41  ;;  %v10901_v41 = vld [vmem:[#allocation10 + $0x9f8] sm:$0xf0]  ;;  %v13355_v42 = vld [vmem:[#allocation10 + $0xc14] sm:$0xf] }
 0x379   :  { %6202 = vmatpush.bf16.msra.mxu3 %v11532_v18  ;;  %v13272_v18 = vld [vmem:[#allocation10 + $0x974] sm:$0xf0] }
 0x37a   :  { %6217 = vmatpush.bf16.msrb.mxu0 %v10704_v63  ;;  %v13395_v63 = vld [vmem:[#allocation10 + $0xd54] sm:$0xf]  ;;  %v10836_v10 = vor.u32 %v13272_v18, %v10835_v16  ;;  %v13328_v59 = vld [vmem:[#allocation10 + $0xb34] sm:$0xf0] }
 0x37b   :  { %6228 = vmatpush.bf16.msrb.mxu1 %v11024_v37  ;;  %6191 = vmatpush.bf16.msra.mxu2 %v11212_v34  ;;  %v11376_v37 = vor.u32 %v13403_v60, %v11373_v56  ;;  %v13344_v34 = vld [vmem:[#allocation10 + $0xbb4] sm:$0xf0]  ;;  %v11565_v60 = vld [vmem:[#allocation10 + $0xf30] sm:$0xf0] }
 0x37c   :  { %v11124_v35 = vor.u32 %v13344_v34, %v11123_v11  ;;  %v11059_v56 = vld [vmem:[#allocation10 + $0xb18] sm:$0xf]  ;;  %v11533_v16 = vld [vmem:[#allocation10 + $0xef0] sm:$0xf0] }
 0x37d   :  { %6203 = vmatpush.bf16.msra.mxu3 %v11500_v30  ;;  %v11344_v30 = vor.u32 %v13395_v63, %v11341_v23  ;;  %v13248_v62 = vld [vmem:[#allocation10 + $0x8b4] sm:$0xf0]  ;;  %v11060_v9 = vor.u32 %v13328_v59, %v11059_v56  ;;  %v11536_v23 = vor.u32 %v13443_v8, %v11533_v16  ;;  %v13419_v16 = vld [vmem:[#allocation10 + $0xe14] sm:$0xf] }
 0x37e   :  { %6218 = vmatpush.bf16.msrb.mxu0 %v10672_v55  ;;  %v13459_v55 = vld [vmem:[#allocation10 + $0xf54] sm:$0xf]  ;;  %v6012_v54 = vpop.f32.mrf.mxu0  ;;  %v11027_v18 = vld [vmem:[#allocation10 + $0xad8] sm:$0xf] }
 0x37f   :  { %6229 = vmatpush.bf16.msrb.mxu1 %v10992_v6  ;;  %6192 = vmatpush.bf16.msra.mxu2 %v11180_v39  ;;  %v10804_v6 = vor.u32 %v13264_v13, %v10803_v26  ;;  %v11600_v39 = vor.u32 %v13459_v55, %v11597_v40  ;;  %v13240_v29 = vld [vmem:[#allocation10 + $0x874] sm:$0xf0]  ;;  %v13435_v13 = vld [vmem:[#allocation10 + $0xe94] sm:$0xf]  ;;  %v13284_v40 = vld [vmem:[#allocation10 + $0x9dc] sm:$0xf] }
 0x380   :  { %v13312_v17 = vld [vmem:[#allocation10 + $0xab4] sm:$0xf0] }
 0x381   :  { %6204 = vmatpush.bf16.msra.mxu3 %v11468_v58  ;;  %6219 = vmatmul.bf16.vlgmr.msrb.gmra.mxu0 %v14251_v31  ;;  %v13451_v58 = vld [vmem:[#allocation10 + $0xf14] sm:$0xf]  ;;  %v10675_v33 = vld [vmem:[#allocation10 + $0x818] sm:$0xf] }
 0x382   :  { %6263 = vmatpush.bf16.msra.mxu0 %v10900_v44  ;;  %6193 = vmatmul.bf16.vlgmr.msra.gmra.mxu2 %v14271_v47  ;;  %v10771_v44 = vld [vmem:[#allocation10 + $0x8d8] sm:$0xf]  ;;  %v11568_v3 = vor.u32 %v13451_v58, %v11565_v60  ;;  %v10904_v58 = vor.u32 %v13284_v40, %v10901_v41  ;;  %v13340_v40 = vld [vmem:[#allocation10 + $0xb9c] sm:$0xf] }
 0x383   :  { %6237 = vmatpush.bf16.msrb.mxu2 %v11408_v24  ;;  %6230 = vmatpush.bf16.msrb.mxu1 %v10960_v61  ;;  %v10772_v24 = vor.u32 %v13256_v49, %v10771_v44  ;;  %v10739_v61 = vld [vmem:[#allocation10 + $0x898] sm:$0xf]  ;;  %v11181_v44 = vld [vmem:[#allocation10 + $0xc30] sm:$0xf0]  ;;  %v11125_v41 = vld [vmem:[#allocation10 + $0xbb8] sm:$0xf0] }
 0x384   :  { %v10740_v15 = vor.u32 %v13248_v62, %v10739_v61  ;;  %v11411_v49 = vld [vmem:[#allocation10 + $0xdd8] sm:$0xf]  ;;  %v11184_v59 = vor.u32 %v13355_v42, %v11181_v44  ;;  %v13276_v61 = vld [vmem:[#allocation10 + $0x99c] sm:$0xf] }
 0x385   :  { %6205 = vmatpush.bf16.msra.mxu3 %v11436_v4  ;;  %v10707_v4 = vld [vmem:[#allocation10 + $0x858] sm:$0xf]  ;;  %v10869_v62 = vld [vmem:[#allocation10 + $0x9b8] sm:$0xf0] }
 0x386   :  { %6264 = vmatpush.bf16.msra.mxu0 %v10868_v0  ;;  %v13371_v0 = vld [vmem:[#allocation10 + $0xc94] sm:$0xf]  ;;  %v6014_v34 = vpop.f32.mrf.mxu0  ;;  %v10708_v26 = vor.u32 %v13240_v29, %v10707_v4  ;;  %v13304_v60 = vld [vmem:[#allocation10 + $0xa74] sm:$0xf0]  ;;  %v10805_v42 = vld [vmem:[#allocation10 + $0x938] sm:$0xf0] }
 0x387   :  { %6238 = vmatpush.bf16.msrb.mxu2 %v11376_v37  ;;  %6231 = vmatpush.bf16.msrb.mxu1 %v10928_v57  ;;  %v13320_v37 = vld [vmem:[#allocation10 + $0xaf4] sm:$0xf0]  ;;  %v11248_v57 = vor.u32 %v13371_v0, %v11245_v5  ;;  %v6025_v63 = vpop.f32.mrf.mxu1  ;;  %v11412_v5 = vor.u32 %v13416_v52, %v11411_v49 }
 0x388   :  { %6206 = vmatmul.bf16.vlgmr.msra.gmra.mxu3 %v14275_v14  ;;  %v14368_v11 = vadd.f32 %v6025_v63, %v6012_v54  ;;  %v13427_v54 = vld [vmem:[#allocation10 + $0xe54] sm:$0xf]  ;;  %v10931_v4 = vld [vmem:[#allocation10 + $0xa18] sm:$0xf] }
 0x389   :  { %6250 = vmatpush.bf16.msrb.mxu3 %v11664_v22  ;;  %v5986_v22 = vpop.f32.mrf.mxu2  ;;  %v13296_v29 = vld [vmem:[#allocation10 + $0xa34] sm:$0xf0] }
 0x38a   :  { %6265 = vmatpush.bf16.msra.mxu0 %v10836_v10  ;;  %6232 = vmatmul.bf16.vlgmr.msrb.gmra.mxu1 %v14254_v27  ;;  %v13363_v10 = vld [vmem:[#allocation10 + $0xc54] sm:$0xf]  ;;  %v5987_v46 = vadd.f32 %v5986_v22, %v14359_v20  ;;  %v11667_v22 = vld [vmem:[#allocation10 + $0xfd8] sm:$0xf] }
 0x38b   :  { %6276 = vmatpush.bf16.msra.mxu1 %v11156_v7  ;;  %6239 = vmatpush.bf16.msrb.mxu2 %v11344_v30  ;;  %v11028_v7 = vor.u32 %v13320_v37, %v11027_v18  ;;  %v11501_v30 = vld [vmem:[#allocation10 + $0xeb0] sm:$0xf0]  ;;  %v11216_v55 = vor.u32 %v13363_v10, %v11213_v25  ;;  %v13480_v63 = vld [vmem:[#allocation10 + $0xff4] sm:$0xf0]  ;;  %v13268_v10 = vld [vmem:[#allocation10 + $0x95c] sm:$0xf] }
 0x38c   :  { %v11504_v20 = vor.u32 %v13435_v13, %v11501_v30  ;;  %v11437_v37 = vld [vmem:[#allocation10 + $0xe30] sm:$0xf0]  ;;  %v10837_v25 = vld [vmem:[#allocation10 + $0x978] sm:$0xf0]  ;;  %v10932_v13 = vor.u32 %v13296_v29, %v10931_v4  ;;  %v11668_v30 = vor.u32 %v13480_v63, %v11667_v22  ;;  %v13376_v22 = vld [vmem:[#allocation10 + $0xcb4] sm:$0xf0] }
 0x38d   :  { %6251 = vmatpush.bf16.msrb.mxu3 %v11632_v51  ;;  %v10995_v51 = vld [vmem:[#allocation10 + $0xa98] sm:$0xf]  ;;  %v11440_v34 = vor.u32 %v13419_v16, %v11437_v37  ;;  %v11061_v16 = vld [vmem:[#allocation10 + $0xb38] sm:$0xf0] }
 0x38e   :  { %6266 = vmatpush.bf16.msra.mxu0 %v10804_v6  ;;  %v4398_v6 = vrot.slane %v14304_v21, 7  ;;  %v10963_v21 = vld [vmem:[#allocation10 + $0xa58] sm:$0xf]  ;;  %v10741_v37 = vld [vmem:[#allocation10 + $0x8b8] sm:$0xf0] }
 0x38f   :  { %6277 = vmatpush.bf16.msra.mxu1 %v11124_v35  ;;  %6240 = vmatpush.bf16.msrb.mxu2 %v11312_v38  ;;  %v13232_v35 = vld [vmem:[#allocation10 + $0x834] sm:$0xf0]  ;;  %v5999_v38 = vpop.f32.mrf.mxu3  ;;  %v6027_v0 = vpop.f32.mrf.mxu1  ;;  %v10964_v18 = vor.u32 %v13304_v60, %v10963_v21  ;;  %v13252_v21 = vld [vmem:[#allocation10 + $0x8dc] sm:$0xf] }
 0x390   :  { %v10676_v50 = vor.u32 %v13232_v35, %v10675_v33  ;;  %v4406_v56 = vsel %vm14138_vm4, 0.0, %v4398_v6  ;;  %v10840_v35 = vor.u32 %v13268_v10, %v10837_v25  ;;  %v11635_v6 = vld [vmem:[#allocation10 + $0xf98] sm:$0xf]  ;;  %v10773_v60 = vld [vmem:[#allocation10 + $0x8f8] sm:$0xf0] }
 0x391   :  { %6252 = vmatpush.bf16.msrb.mxu3 %v11600_v39  ;;  %v10996_v39 = vor.u32 %v13312_v17, %v10995_v51  ;;  %v11347_v51 = vld [vmem:[#allocation10 + $0xd58] sm:$0xf]  ;;  %v13316_v25 = vld [vmem:[#allocation10 + $0xadc] sm:$0xf] }
 0x392   :  { %6267 = vmatpush.bf16.msra.mxu0 %v10772_v24  ;;  %v6000_v24 = vadd.f32 %v5999_v38, %v5987_v46  ;;  %v13400_v17 = vld [vmem:[#allocation10 + $0xd74] sm:$0xf0] }
 0x393   :  { %6278 = vmatpush.bf16.msra.mxu1 %v11092_v2  ;;  %6241 = vmatpush.bf16.msrb.mxu2 %v11280_v48  ;;  %v11469_v2 = vld [vmem:[#allocation10 + $0xe70] sm:$0xf0]  ;;  %v11348_v44 = vor.u32 %v13400_v17, %v11347_v51  ;;  %v11315_v38 = vld [vmem:[#allocation10 + $0xd18] sm:$0xf] }
 0x394   :  { %v14373_v48 = vadd.f32 %v6000_v24, %v4406_v56  ;;  %v11472_v8 = vor.u32 %v13427_v54, %v11469_v2  ;;  %v11603_v54 = vld [vmem:[#allocation10 + $0xf58] sm:$0xf]  ;;  %v13332_v24 = vld [vmem:[#allocation10 + $0xb5c] sm:$0xf] }
 0x395   :  { %6253 = vmatpush.bf16.msrb.mxu3 %v11568_v3  ;;  %v5988_v3 = vpop.f32.mrf.mxu2  ;;  %v13464_v2 = vld [vmem:[#allocation10 + $0xf74] sm:$0xf0] }
 0x396   :  { %6268 = vmatpush.bf16.msra.mxu0 %v10740_v15  ;;  %v13408_v15 = vld [vmem:[#allocation10 + $0xdb4] sm:$0xf0] }
 0x397   :  { %6279 = vmatpush.bf16.msra.mxu1 %v11060_v9  ;;  %6242 = vmatpush.bf16.msrb.mxu2 %v11248_v57  ;;  %v11379_v9 = vld [vmem:[#allocation10 + $0xd98] sm:$0xf]  ;;  %v10872_v57 = vor.u32 %v13276_v61, %v10869_v62 }
 0x398   :  { %v11380_v46 = vor.u32 %v13408_v15, %v11379_v9  ;;  %v11283_v61 = vld [vmem:[#allocation10 + $0xcd8] sm:$0xf]  ;;  %v13324_v15 = vld [vmem:[#allocation10 + $0xb1c] sm:$0xf] }
 0x399   :  { %6254 = vmatpush.bf16.msrb.mxu3 %v11536_v23  ;;  %v13348_v23 = vld [vmem:[#allocation10 + $0xbdc] sm:$0xf]  ;;  %v13384_v62 = vld [vmem:[#allocation10 + $0xcf4] sm:$0xf0] }
 0x39a   :  { %6269 = vmatpush.bf16.msra.mxu0 %v10708_v26  ;;  %v6001_v26 = vpop.f32.mrf.mxu3  ;;  %v13456_v9 = vld [vmem:[#allocation10 + $0xf34] sm:$0xf0]  ;;  %v11284_v4 = vor.u32 %v13384_v62, %v11283_v61  ;;  %v11413_v62 = vld [vmem:[#allocation10 + $0xdf8] sm:$0xf0] }
 0x39b   :  { %6280 = vmatpush.bf16.msra.mxu1 %v11028_v7  ;;  %6243 = vmatpush.bf16.msrb.mxu2 %v11216_v55  ;;  %v11157_v7 = vld [vmem:[#allocation10 + $0xbf8] sm:$0xf0]  ;;  %v13472_v55 = vld [vmem:[#allocation10 + $0xfb4] sm:$0xf0] }
 0x39c   :  { %v11160_v33 = vor.u32 %v13348_v23, %v11157_v7  ;;  %v11636_v49 = vor.u32 %v13472_v55, %v11635_v6  ;;  %v11539_v63 = vld [vmem:[#allocation10 + $0xed8] sm:$0xf]  ;;  %v11064_v23 = vor.u32 %v13324_v15, %v11061_v16  ;;  %v10709_v26 = vld [vmem:[#allocation10 + $0x878] sm:$0xf0] }
 0x39d   :  { %6255 = vmatpush.bf16.msrb.mxu3 %v11504_v20  ;;  %v13260_v20 = vld [vmem:[#allocation10 + $0x91c] sm:$0xf]  ;;  %v13448_v10 = vld [vmem:[#allocation10 + $0xef4] sm:$0xf0] }
 0x39e   :  { %6270 = vmatpush.bf16.msra.mxu0 %v10676_v50  ;;  %v11128_v50 = vor.u32 %v13340_v40, %v11125_v41  ;;  %v10808_v52 = vor.u32 %v13260_v20, %v10805_v42  ;;  %v6064_v3 = vpop.f32.mrf.mxu0  ;;  %v11540_v17 = vor.u32 %v13448_v10, %v11539_v63  ;;  %v13368_v6 = vld [vmem:[#allocation10 + $0xc74] sm:$0xf0] }
 0x39f   :  { %6281 = vmatpush.bf16.msra.mxu1 %v10996_v39  ;;  %6244 = vmatpush.bf16.msrb.mxu2 %v11184_v59  ;;  %v13392_v39 = vld [vmem:[#allocation10 + $0xd34] sm:$0xf0]  ;;  %v11604_v59 = vor.u32 %v13464_v2, %v11603_v54  ;;  %v11899_v2 = vld [vmem:[#allocation10 + $0x11c0] sm:$0xf] }
 0x3a0   :  { %v11316_v56 = vor.u32 %v13392_v39, %v11315_v38  ;;  %v11507_v42 = vld [vmem:[#allocation10 + $0xe98] sm:$0xf]  ;;  %v10997_v38 = vld [vmem:[#allocation10 + $0xab8] sm:$0xf0] }
 0x3a1   :  { %6256 = vmatpush.bf16.msrb.mxu3 %v11472_v8  ;;  %6271 = vmatmul.bf16.vlgmr.msra.gmra.mxu0 %v14251_v31  ;;  %v11571_v8 = vld [vmem:[#allocation10 + $0xf18] sm:$0xf]  ;;  %v13228_v39 = vld [vmem:[#allocation10 + $0x81c] sm:$0xf] }
 0x3a2   :  { %6315 = vmatpush.bf16.msrb.mxu0 %v10904_v58  ;;  %6245 = vmatmul.bf16.vlgmr.msrb.gmra.mxu2 %v14271_v47  ;;  %v11093_v58 = vld [vmem:[#allocation10 + $0xb78] sm:$0xf0]  ;;  %v11572_v29 = vor.u32 %v13456_v9, %v11571_v8  ;;  %v11443_v10 = vld [vmem:[#allocation10 + $0xe18] sm:$0xf] }
 0x3a3   :  { %6289 = vmatpush.bf16.msra.mxu2 %v11412_v5  ;;  %6282 = vmatpush.bf16.msra.mxu1 %v10964_v18  ;;  %v11096_v0 = vor.u32 %v13332_v24, %v11093_v58  ;;  %v10776_v5 = vor.u32 %v13252_v21, %v10773_v60  ;;  %v13244_v18 = vld [vmem:[#allocation10 + $0x89c] sm:$0xf]  ;;  %v13541_v24 = vld [vmem:[#allocation10 + $0x11dc] sm:$0xf0]  ;;  %v11187_v58 = vld [vmem:[#allocation10 + $0xc18] sm:$0xf] }
 0x3a4   :  { %v10744_v7 = vor.u32 %v13244_v18, %v10741_v37  ;;  %v13360_v21 = vld [vmem:[#allocation10 + $0xc34] sm:$0xf0]  ;;  %v13412_v60 = vld [vmem:[#allocation10 + $0xddc] sm:$0xf]  ;;  %v11900_v8 = vor.u32 %v13541_v24, %v11899_v2  ;;  %v11867_v18 = vld [vmem:[#allocation10 + $0x1180] sm:$0xf] }
 0x3a5   :  { %6257 = vmatpush.bf16.msrb.mxu3 %v11440_v34  ;;  %v13236_v34 = vld [vmem:[#allocation10 + $0x85c] sm:$0xf]  ;;  %v11188_v16 = vor.u32 %v13360_v21, %v11187_v58  ;;  %v13533_v37 = vld [vmem:[#allocation10 + $0x119c] sm:$0xf0] }
 0x3a6   :  { %6316 = vmatpush.bf16.msrb.mxu0 %v10872_v57  ;;  %v11251_v57 = vld [vmem:[#allocation10 + $0xc98] sm:$0xf]  ;;  %v6066_v41 = vpop.f32.mrf.mxu0  ;;  %v10712_v20 = vor.u32 %v13236_v34, %v10709_v26  ;;  %v10965_v9 = vld [vmem:[#allocation10 + $0xa78] sm:$0xf0]  ;;  %v12123_v2 = vld [vmem:[#allocation10 + $0x1380] sm:$0xf] }
 0x3a7   :  { %6290 = vmatpush.bf16.msra.mxu2 %v11380_v46  ;;  %6283 = vmatpush.bf16.msra.mxu1 %v10932_v13  ;;  %v11029_v46 = vld [vmem:[#allocation10 + $0xaf8] sm:$0xf0]  ;;  %v11252_v13 = vor.u32 %v13376_v22, %v11251_v57  ;;  %v6077_v51 = vpop.f32.mrf.mxu1  ;;  %v11416_v22 = vor.u32 %v13412_v60, %v11413_v62  ;;  %v13597_v24 = vld [vmem:[#allocation10 + $0x139c] sm:$0xf0] }
 0x3a8   :  { %6258 = vmatmul.bf16.vlgmr.msrb.gmra.mxu3 %v14275_v14  ;;  %v14380_v40 = vadd.f32 %v6077_v51, %v6064_v3  ;;  %v11475_v3 = vld [vmem:[#allocation10 + $0xe58] sm:$0xf]  ;;  %v13292_v34 = vld [vmem:[#allocation10 + $0xa1c] sm:$0xf]  ;;  %v13517_v58 = vld [vmem:[#allocation10 + $0x111c] sm:$0xf0] }
 0x3a9   :  { %6302 = vmatpush.bf16.msra.mxu3 %v11668_v30  ;;  %v6038_v30 = vpop.f32.mrf.mxu2  ;;  %v10933_v26 = vld [vmem:[#allocation10 + $0xa38] sm:$0xf0] }
 0x3aa   :  { %6317 = vmatpush.bf16.msrb.mxu0 %v10840_v35  ;;  %6284 = vmatmul.bf16.vlgmr.msra.gmra.mxu1 %v14254_v27  ;;  %v11219_v35 = vld [vmem:[#allocation10 + $0xc58] sm:$0xf]  ;;  %v6039_v55 = vadd.f32 %v6038_v30, %v14368_v11  ;;  %v13476_v30 = vld [vmem:[#allocation10 + $0xfdc] sm:$0xf] }
 0x3ab   :  { %6328 = vmatpush.bf16.msrb.mxu1 %v11160_v33  ;;  %6291 = vmatpush.bf16.msra.mxu2 %v11348_v44  ;;  %v11032_v33 = vor.u32 %v13316_v25, %v11029_v46  ;;  %v13440_v44 = vld [vmem:[#allocation10 + $0xeb4] sm:$0xf0]  ;;  %v11220_v54 = vor.u32 %v13368_v6, %v11219_v35  ;;  %v11669_v51 = vld [vmem:[#allocation10 + $0xff8] sm:$0xf0]  ;;  %v11835_v35 = vld [vmem:[#allocation10 + $0x1140] sm:$0xf] }
 0x3ac   :  { %v11508_v11 = vor.u32 %v13440_v44, %v11507_v42  ;;  %v13424_v46 = vld [vmem:[#allocation10 + $0xe34] sm:$0xf0]  ;;  %v13525_v6 = vld [vmem:[#allocation10 + $0x115c] sm:$0xf0]  ;;  %v10936_v42 = vor.u32 %v13292_v34, %v10933_v26  ;;  %v11672_v44 = vor.u32 %v13476_v30, %v11669_v51  ;;  %v11253_v30 = vld [vmem:[#allocation10 + $0xcb8] sm:$0xf0] }
 0x3ad   :  { %6303 = vmatpush.bf16.msra.mxu3 %v11636_v49  ;;  %v13308_v49 = vld [vmem:[#allocation10 + $0xa9c] sm:$0xf]  ;;  %v11444_v41 = vor.u32 %v13424_v46, %v11443_v10  ;;  %v13581_v10 = vld [vmem:[#allocation10 + $0x131c] sm:$0xf0] }
 0x3ae   :  { %6318 = vmatpush.bf16.msrb.mxu0 %v10808_v52  ;;  %v4399_v52 = vrot.slane %v14309_v28, 7  ;;  %v13300_v28 = vld [vmem:[#allocation10 + $0xa5c] sm:$0xf]  ;;  %v13501_v46 = vld [vmem:[#allocation10 + $0x109c] sm:$0xf0] }
 0x3af   :  { %6329 = vmatpush.bf16.msrb.mxu1 %v11128_v50  ;;  %6292 = vmatpush.bf16.msra.mxu2 %v11316_v56  ;;  %v10677_v50 = vld [vmem:[#allocation10 + $0x838] sm:$0xf0]  ;;  %v6051_v56 = vpop.f32.mrf.mxu3  ;;  %v6079_v57 = vpop.f32.mrf.mxu1  ;;  %v10968_v25 = vor.u32 %v13300_v28, %v10965_v9  ;;  %v11771_v28 = vld [vmem:[#allocation10 + $0x10c0] sm:$0xf] }
 0x3b0   :  { %v10680_v61 = vor.u32 %v13228_v39, %v10677_v50  ;;  %v4407_v15 = vsel %vm14138_vm4, 0.0, %v4399_v52  ;;  %v11836_v50 = vor.u32 %v13525_v6, %v11835_v35  ;;  %v13468_v52 = vld [vmem:[#allocation10 + $0xf9c] sm:$0xf]  ;;  %v13509_v9 = vld [vmem:[#allocation10 + $0x10dc] sm:$0xf0] }
 0x3b1   :  { %6304 = vmatpush.bf16.msra.mxu3 %v11604_v59  ;;  %v11000_v59 = vor.u32 %v13308_v49, %v10997_v38  ;;  %v13396_v49 = vld [vmem:[#allocation10 + $0xd5c] sm:$0xf]  ;;  %v12027_v6 = vld [vmem:[#allocation10 + $0x12c0] sm:$0xf] }
 0x3b2   :  { %6319 = vmatpush.bf16.msrb.mxu0 %v10776_v5  ;;  %v6052_v5 = vadd.f32 %v6051_v56, %v6039_v55  ;;  %v11349_v38 = vld [vmem:[#allocation10 + $0xd78] sm:$0xf0] }
 0x3b3   :  { %6330 = vmatpush.bf16.msrb.mxu1 %v11096_v0  ;;  %6293 = vmatpush.bf16.msra.mxu2 %v11284_v4  ;;  %v13432_v0 = vld [vmem:[#allocation10 + $0xe74] sm:$0xf0]  ;;  %v11352_v21 = vor.u32 %v13396_v49, %v11349_v38  ;;  %v13388_v56 = vld [vmem:[#allocation10 + $0xd1c] sm:$0xf] }
 0x3b4   :  { %v14385_v4 = vadd.f32 %v6052_v5, %v4407_v15  ;;  %v11476_v63 = vor.u32 %v13432_v0, %v11475_v3  ;;  %v13460_v3 = vld [vmem:[#allocation10 + $0xf5c] sm:$0xf]  ;;  %v12091_v5 = vld [vmem:[#allocation10 + $0x1340] sm:$0xf] }
 0x3b5   :  { %6305 = vmatpush.bf16.msra.mxu3 %v11572_v29  ;;  %v6040_v29 = vpop.f32.mrf.mxu2  ;;  %v11605_v0 = vld [vmem:[#allocation10 + $0xf78] sm:$0xf0] }
 0x3b6   :  { %6320 = vmatpush.bf16.msrb.mxu0 %v10744_v7  ;;  %v11381_v7 = vld [vmem:[#allocation10 + $0xdb8] sm:$0xf0] }
 0x3b7   :  { %6331 = vmatpush.bf16.msrb.mxu1 %v11064_v23  ;;  %6294 = vmatpush.bf16.msra.mxu2 %v11252_v13  ;;  %v13404_v23 = vld [vmem:[#allocation10 + $0xd9c] sm:$0xf]  ;;  %v11868_v13 = vor.u32 %v13533_v37, %v11867_v18 }
 0x3b8   :  { %v11384_v55 = vor.u32 %v13404_v23, %v11381_v7  ;;  %v13380_v18 = vld [vmem:[#allocation10 + $0xcdc] sm:$0xf]  ;;  %v12059_v7 = vld [vmem:[#allocation10 + $0x1300] sm:$0xf] }
 0x3b9   :  { %6306 = vmatpush.bf16.msra.mxu3 %v11540_v17  ;;  %v12155_v17 = vld [vmem:[#allocation10 + $0x13c0] sm:$0xf]  ;;  %v11285_v37 = vld [vmem:[#allocation10 + $0xcf8] sm:$0xf0] }
 0x3ba   :  { %6321 = vmatpush.bf16.msrb.mxu0 %v10712_v20  ;;  %v6053_v20 = vpop.f32.mrf.mxu3  ;;  %v11573_v23 = vld [vmem:[#allocation10 + $0xf38] sm:$0xf0]  ;;  %v11288_v34 = vor.u32 %v13380_v18, %v11285_v37  ;;  %v13669_v37 = vld [vmem:[#allocation10 + $0x15dc] sm:$0xf0] }
 0x3bb   :  { %6332 = vmatpush.bf16.msrb.mxu1 %v11032_v33  ;;  %6295 = vmatpush.bf16.msra.mxu2 %v11220_v54  ;;  %v13605_v33 = vld [vmem:[#allocation10 + $0x13dc] sm:$0xf0]  ;;  %v11637_v54 = vld [vmem:[#allocation10 + $0xfb8] sm:$0xf0] }
 0x3bc   :  { %v12156_v39 = vor.u32 %v13605_v33, %v12155_v17  ;;  %v11640_v60 = vor.u32 %v13468_v52, %v11637_v54  ;;  %v13444_v51 = vld [vmem:[#allocation10 + $0xedc] sm:$0xf]  ;;  %v12060_v17 = vor.u32 %v13581_v10, %v12059_v7  ;;  %v13493_v20 = vld [vmem:[#allocation10 + $0x105c] sm:$0xf0] }
 0x3bd   :  { %6307 = vmatpush.bf16.msra.mxu3 %v11508_v11  ;;  %v11803_v11 = vld [vmem:[#allocation10 + $0x1100] sm:$0xf]  ;;  %v11541_v35 = vld [vmem:[#allocation10 + $0xef8] sm:$0xf0] }
 0x3be   :  { %6322 = vmatpush.bf16.msrb.mxu0 %v10680_v61  ;;  %v12124_v61 = vor.u32 %v13597_v24, %v12123_v2  ;;  %v11804_v62 = vor.u32 %v13517_v58, %v11803_v11  ;;  %v6116_v29 = vpop.f32.mrf.mxu0  ;;  %v11544_v38 = vor.u32 %v13444_v51, %v11541_v35  ;;  %v11221_v52 = vld [vmem:[#allocation10 + $0xc78] sm:$0xf0] }
 0x3bf   :  { %6333 = vmatpush.bf16.msrb.mxu1 %v11000_v59  ;;  %6296 = vmatpush.bf16.msra.mxu2 %v11188_v16  ;;  %v11317_v59 = vld [vmem:[#allocation10 + $0xd38] sm:$0xf0]  ;;  %v11608_v16 = vor.u32 %v13460_v3, %v11605_v0  ;;  %v13537_v0 = vld [vmem:[#allocation10 + $0x11c4] sm:$0xf] }
 0x3c0   :  { %v11320_v15 = vor.u32 %v13388_v56, %v11317_v59  ;;  %v13436_v58 = vld [vmem:[#allocation10 + $0xe9c] sm:$0xf]  ;;  %v13565_v56 = vld [vmem:[#allocation10 + $0x129c] sm:$0xf0] }
 0x3c1   :  { %6308 = vmatpush.bf16.msra.mxu3 %v11476_v63  ;;  %6323 = vmatmul.bf16.vlgmr.msrb.gmra.mxu0 %v14251_v31  ;;  %v13452_v63 = vld [vmem:[#allocation10 + $0xf1c] sm:$0xf]  ;;  %v11675_v59 = vld [vmem:[#allocation10 + $0x1000] sm:$0xf] }
 0x3c2   :  { %7912 = vmatpush.bf16.msra.mxu0 %v11900_v8  ;;  %6297 = vmatmul.bf16.vlgmr.msra.gmra.mxu2 %v14271_v47  ;;  %v13589_v8 = vld [vmem:[#allocation10 + $0x135c] sm:$0xf0]  ;;  %v11576_v26 = vor.u32 %v13452_v63, %v11573_v23  ;;  %v13420_v35 = vld [vmem:[#allocation10 + $0xe1c] sm:$0xf] }
 0x3c3   :  { %6341 = vmatpush.bf16.msrb.mxu2 %v11416_v22  ;;  %6334 = vmatpush.bf16.msrb.mxu1 %v10968_v25  ;;  %v12092_v57 = vor.u32 %v13589_v8, %v12091_v5  ;;  %v11772_v22 = vor.u32 %v13509_v9, %v11771_v28  ;;  %v11739_v25 = vld [vmem:[#allocation10 + $0x1080] sm:$0xf]  ;;  %v11901_v5 = vld [vmem:[#allocation10 + $0x11e0] sm:$0xf0]  ;;  %v13356_v8 = vld [vmem:[#allocation10 + $0xc1c] sm:$0xf] }
 0x3c4   :  { %v11740_v33 = vor.u32 %v13501_v46, %v11739_v25  ;;  %v11189_v28 = vld [vmem:[#allocation10 + $0xc38] sm:$0xf0]  ;;  %v12411_v9 = vld [vmem:[#allocation10 + $0x15c0] sm:$0xf]  ;;  %v11904_v63 = vor.u32 %v13537_v0, %v11901_v5  ;;  %v13529_v25 = vld [vmem:[#allocation10 + $0x1184] sm:$0xf] }
 0x3c5   :  { %6309 = vmatpush.bf16.msra.mxu3 %v11444_v41  ;;  %v11707_v41 = vld [vmem:[#allocation10 + $0x1040] sm:$0xf]  ;;  %v11192_v10 = vor.u32 %v13356_v8, %v11189_v28  ;;  %v11869_v46 = vld [vmem:[#allocation10 + $0x11a0] sm:$0xf0] }
 0x3c6   :  { %7913 = vmatpush.bf16.msra.mxu0 %v11868_v13  ;;  %v13372_v13 = vld [vmem:[#allocation10 + $0xc9c] sm:$0xf]  ;;  %v6118_v24 = vpop.f32.mrf.mxu0  ;;  %v11708_v11 = vor.u32 %v13493_v20, %v11707_v41  ;;  %v13557_v23 = vld [vmem:[#allocation10 + $0x125c] sm:$0xf0]  ;;  %v13593_v0 = vld [vmem:[#allocation10 + $0x1384] sm:$0xf] }
 0x3c7   :  { %6342 = vmatpush.bf16.msrb.mxu2 %v11384_v55  ;;  %6335 = vmatpush.bf16.msrb.mxu1 %v10936_v42  ;;  %v13573_v55 = vld [vmem:[#allocation10 + $0x12dc] sm:$0xf0]  ;;  %v11256_v42 = vor.u32 %v13372_v13, %v11253_v30  ;;  %v6129_v49 = vpop.f32.mrf.mxu1  ;;  %v12412_v30 = vor.u32 %v13669_v37, %v12411_v9  ;;  %v12125_v5 = vld [vmem:[#allocation10 + $0x13a0] sm:$0xf0] }
 0x3c8   :  { %6310 = vmatmul.bf16.vlgmr.msra.gmra.mxu3 %v14275_v14  ;;  %v14392_v2 = vadd.f32 %v6129_v49, %v6116_v29  ;;  %v13428_v29 = vld [vmem:[#allocation10 + $0xe5c] sm:$0xf]  ;;  %v11931_v41 = vld [vmem:[#allocation10 + $0x1200] sm:$0xf]  ;;  %v11805_v8 = vld [vmem:[#allocation10 + $0x1120] sm:$0xf0] }
 0x3c9   :  { %6354 = vmatpush.bf16.msrb.mxu3 %v11672_v44  ;;  %v6090_v44 = vpop.f32.mrf.mxu2  ;;  %v13549_v20 = vld [vmem:[#allocation10 + $0x121c] sm:$0xf0] }
 0x3ca   :  { %7914 = vmatpush.bf16.msra.mxu0 %v11836_v50  ;;  %6336 = vmatmul.bf16.vlgmr.msrb.gmra.mxu1 %v14254_v27  ;;  %v13364_v50 = vld [vmem:[#allocation10 + $0xc5c] sm:$0xf]  ;;  %v6091_v54 = vadd.f32 %v6090_v44, %v14380_v40  ;;  %v12667_v44 = vld [vmem:[#allocation10 + $0x17c0] sm:$0xf] }
 0x3cb   :  { %7925 = vmatpush.bf16.msra.mxu1 %v12156_v39  ;;  %6343 = vmatpush.bf16.msrb.mxu2 %v11352_v21  ;;  %v12028_v39 = vor.u32 %v13573_v55, %v12027_v6  ;;  %v11509_v21 = vld [vmem:[#allocation10 + $0xeb8] sm:$0xf0]  ;;  %v11224_v3 = vor.u32 %v13364_v50, %v11221_v52  ;;  %v13733_v49 = vld [vmem:[#allocation10 + $0x17dc] sm:$0xf0]  ;;  %v13521_v50 = vld [vmem:[#allocation10 + $0x1144] sm:$0xf] }
 0x3cc   :  { %v11512_v40 = vor.u32 %v13436_v58, %v11509_v21  ;;  %v11445_v55 = vld [vmem:[#allocation10 + $0xe38] sm:$0xf0]  ;;  %v11837_v52 = vld [vmem:[#allocation10 + $0x1160] sm:$0xf0]  ;;  %v11932_v58 = vor.u32 %v13549_v20, %v11931_v41  ;;  %v12668_v21 = vor.u32 %v13733_v49, %v12667_v44  ;;  %v13629_v44 = vld [vmem:[#allocation10 + $0x149c] sm:$0xf0] }
 0x3cd   :  { %6355 = vmatpush.bf16.msrb.mxu3 %v11640_v60  ;;  %v11995_v60 = vld [vmem:[#allocation10 + $0x1280] sm:$0xf]  ;;  %v11448_v24 = vor.u32 %v13420_v35, %v11445_v55  ;;  %v12061_v35 = vld [vmem:[#allocation10 + $0x1320] sm:$0xf0] }
 0x3ce   :  { %7915 = vmatpush.bf16.msra.mxu0 %v11804_v62  ;;  %v4400_v62 = vrot.slane %v14316_v12, 7  ;;  %v11963_v12 = vld [vmem:[#allocation10 + $0x1240] sm:$0xf]  ;;  %v11741_v55 = vld [vmem:[#allocation10 + $0x10a0] sm:$0xf0] }
 0x3cf   :  { %7926 = vmatpush.bf16.msra.mxu1 %v12124_v61  ;;  %6344 = vmatpush.bf16.msrb.mxu2 %v11320_v15  ;;  %v13485_v61 = vld [vmem:[#allocation10 + $0x101c] sm:$0xf0]  ;;  %v6103_v15 = vpop.f32.mrf.mxu3  ;;  %v6131_v13 = vpop.f32.mrf.mxu1  ;;  %v11964_v6 = vor.u32 %v13557_v23, %v11963_v12  ;;  %v13505_v12 = vld [vmem:[#allocation10 + $0x10c4] sm:$0xf] }
 0x3d0   :  { %v11676_v18 = vor.u32 %v13485_v61, %v11675_v59  ;;  %v4408_v7 = vsel %vm14138_vm4, 0.0, %v4400_v62  ;;  %v11840_v61 = vor.u32 %v13521_v50, %v11837_v52  ;;  %v12635_v62 = vld [vmem:[#allocation10 + $0x1780] sm:$0xf]  ;;  %v11773_v23 = vld [vmem:[#allocation10 + $0x10e0] sm:$0xf0] }
 0x3d1   :  { %6356 = vmatpush.bf16.msrb.mxu3 %v11608_v16  ;;  %v11996_v16 = vor.u32 %v13565_v56, %v11995_v60  ;;  %v12347_v60 = vld [vmem:[#allocation10 + $0x1540] sm:$0xf]  ;;  %v13569_v52 = vld [vmem:[#allocation10 + $0x12c4] sm:$0xf] }
 0x3d2   :  { %7916 = vmatpush.bf16.msra.mxu0 %v11772_v22  ;;  %v6104_v22 = vadd.f32 %v6103_v15, %v6091_v54  ;;  %v13653_v56 = vld [vmem:[#allocation10 + $0x155c] sm:$0xf0] }
 0x3d3   :  { %7927 = vmatpush.bf16.msra.mxu1 %v12092_v57  ;;  %6345 = vmatpush.bf16.msrb.mxu2 %v11288_v34  ;;  %v11477_v57 = vld [vmem:[#allocation10 + $0xe78] sm:$0xf0]  ;;  %v12348_v28 = vor.u32 %v13653_v56, %v12347_v60  ;;  %v12315_v15 = vld [vmem:[#allocation10 + $0x1500] sm:$0xf] }
 0x3d4   :  { %v14397_v34 = vadd.f32 %v6104_v22, %v4408_v7  ;;  %v11480_v51 = vor.u32 %v13428_v29, %v11477_v57  ;;  %v12603_v29 = vld [vmem:[#allocation10 + $0x1740] sm:$0xf]  ;;  %v13585_v22 = vld [vmem:[#allocation10 + $0x1344] sm:$0xf] }
 0x3d5   :  { %6357 = vmatpush.bf16.msrb.mxu3 %v11576_v26  ;;  %v6092_v26 = vpop.f32.mrf.mxu2  ;;  %v13717_v57 = vld [vmem:[#allocation10 + $0x175c] sm:$0xf0] }
 0x3d6   :  { %7917 = vmatpush.bf16.msra.mxu0 %v11740_v33  ;;  %v13661_v33 = vld [vmem:[#allocation10 + $0x159c] sm:$0xf0] }
 0x3d7   :  { %7928 = vmatpush.bf16.msra.mxu1 %v12060_v17  ;;  %6346 = vmatpush.bf16.msrb.mxu2 %v11256_v42  ;;  %v12379_v17 = vld [vmem:[#allocation10 + $0x1580] sm:$0xf]  ;;  %v11872_v42 = vor.u32 %v13529_v25, %v11869_v46 }
 0x3d8   :  { %v12380_v54 = vor.u32 %v13661_v33, %v12379_v17  ;;  %v12283_v25 = vld [vmem:[#allocation10 + $0x14c0] sm:$0xf]  ;;  %v13577_v33 = vld [vmem:[#allocation10 + $0x1304] sm:$0xf] }
 0x3d9   :  { %6358 = vmatpush.bf16.msrb.mxu3 %v11544_v38  ;;  %v13601_v38 = vld [vmem:[#allocation10 + $0x13c4] sm:$0xf]  ;;  %v13637_v46 = vld [vmem:[#allocation10 + $0x14dc] sm:$0xf0] }
 0x3da   :  { %7918 = vmatpush.bf16.msra.mxu0 %v11708_v11  ;;  %v6105_v11 = vpop.f32.mrf.mxu3  ;;  %v13709_v17 = vld [vmem:[#allocation10 + $0x171c] sm:$0xf0]  ;;  %v12284_v41 = vor.u32 %v13637_v46, %v12283_v25  ;;  %v12413_v46 = vld [vmem:[#allocation10 + $0x15e0] sm:$0xf0] }
 0x3db   :  { %7929 = vmatpush.bf16.msra.mxu1 %v12028_v39  ;;  %6347 = vmatpush.bf16.msrb.mxu2 %v11224_v3  ;;  %v12157_v39 = vld [vmem:[#allocation10 + $0x13e0] sm:$0xf0]  ;;  %v13725_v3 = vld [vmem:[#allocation10 + $0x179c] sm:$0xf0] }
 0x3dc   :  { %v12160_v59 = vor.u32 %v13601_v38, %v12157_v39  ;;  %v12636_v9 = vor.u32 %v13725_v3, %v12635_v62  ;;  %v12539_v49 = vld [vmem:[#allocation10 + $0x16c0] sm:$0xf]  ;;  %v12064_v38 = vor.u32 %v13577_v33, %v12061_v35  ;;  %v11709_v11 = vld [vmem:[#allocation10 + $0x1060] sm:$0xf0] }
 0x3dd   :  { %6359 = vmatpush.bf16.msrb.mxu3 %v11512_v40  ;;  %v13513_v40 = vld [vmem:[#allocation10 + $0x1104] sm:$0xf]  ;;  %v13701_v50 = vld [vmem:[#allocation10 + $0x16dc] sm:$0xf0] }
 0x3de   :  { %7919 = vmatpush.bf16.msra.mxu0 %v11676_v18  ;;  %v12128_v18 = vor.u32 %v13593_v0, %v12125_v5  ;;  %v11808_v37 = vor.u32 %v13513_v40, %v11805_v8  ;;  %v6168_v26 = vpop.f32.mrf.mxu0  ;;  %v12540_v56 = vor.u32 %v13701_v50, %v12539_v49  ;;  %v13621_v62 = vld [vmem:[#allocation10 + $0x145c] sm:$0xf0] }
 0x3df   :  { %7930 = vmatpush.bf16.msra.mxu1 %v11996_v16  ;;  %6348 = vmatpush.bf16.msrb.mxu2 %v11192_v10  ;;  %v13645_v16 = vld [vmem:[#allocation10 + $0x151c] sm:$0xf0]  ;;  %v12604_v10 = vor.u32 %v13717_v57, %v12603_v29  ;;  %v11907_v57 = vld [vmem:[#allocation10 + $0x11c8] sm:$0xf] }
 0x3e0   :  { %v12316_v7 = vor.u32 %v13645_v16, %v12315_v15  ;;  %v12507_v8 = vld [vmem:[#allocation10 + $0x1680] sm:$0xf]  ;;  %v11997_v15 = vld [vmem:[#allocation10 + $0x12a0] sm:$0xf0] }
 0x3e1   :  { %6360 = vmatpush.bf16.msrb.mxu3 %v11480_v51  ;;  %7920 = vmatmul.bf16.vlgmr.msra.gmra.mxu0 %v14251_v31  ;;  %v12571_v51 = vld [vmem:[#allocation10 + $0x1700] sm:$0xf]  ;;  %v13481_v16 = vld [vmem:[#allocation10 + $0x1004] sm:$0xf] }
 0x3e2   :  { %7964 = vmatpush.bf16.msrb.mxu0 %v11904_v63  ;;  %6349 = vmatmul.bf16.vlgmr.msrb.gmra.mxu2 %v14271_v47  ;;  %v12093_v63 = vld [vmem:[#allocation10 + $0x1360] sm:$0xf0]  ;;  %v12572_v20 = vor.u32 %v13709_v17, %v12571_v51  ;;  %v12443_v50 = vld [vmem:[#allocation10 + $0x1600] sm:$0xf] }
 0x3e3   :  { %7938 = vmatpush.bf16.msra.mxu2 %v12412_v30  ;;  %7931 = vmatpush.bf16.msra.mxu1 %v11964_v6  ;;  %v12096_v13 = vor.u32 %v13585_v22, %v12093_v63  ;;  %v11776_v30 = vor.u32 %v13505_v12, %v11773_v23  ;;  %v13497_v6 = vld [vmem:[#allocation10 + $0x1084] sm:$0xf]  ;;  %v13542_v22 = vld [vmem:[#allocation10 + $0x11e4] sm:$0xf0]  ;;  %v12187_v63 = vld [vmem:[#allocation10 + $0x1400] sm:$0xf] }
 0x3e4   :  { %v11744_v39 = vor.u32 %v13497_v6, %v11741_v55  ;;  %v13613_v12 = vld [vmem:[#allocation10 + $0x141c] sm:$0xf0]  ;;  %v13665_v23 = vld [vmem:[#allocation10 + $0x15c4] sm:$0xf]  ;;  %v11908_v51 = vor.u32 %v13542_v22, %v11907_v57  ;;  %v11875_v6 = vld [vmem:[#allocation10 + $0x1188] sm:$0xf] }
 0x3e5   :  { %6361 = vmatpush.bf16.msrb.mxu3 %v11448_v24  ;;  %v13489_v24 = vld [vmem:[#allocation10 + $0x1044] sm:$0xf]  ;;  %v12188_v35 = vor.u32 %v13613_v12, %v12187_v63  ;;  %v13534_v55 = vld [vmem:[#allocation10 + $0x11a4] sm:$0xf0] }
 0x3e6   :  { %7965 = vmatpush.bf16.msrb.mxu0 %v11872_v42  ;;  %v12251_v42 = vld [vmem:[#allocation10 + $0x1480] sm:$0xf]  ;;  %v6170_v5 = vpop.f32.mrf.mxu0  ;;  %v11712_v40 = vor.u32 %v13489_v24, %v11709_v11  ;;  %v11965_v17 = vld [vmem:[#allocation10 + $0x1260] sm:$0xf0]  ;;  %v12131_v57 = vld [vmem:[#allocation10 + $0x1388] sm:$0xf] }
 0x3e7   :  { %7939 = vmatpush.bf16.msra.mxu2 %v12380_v54  ;;  %7932 = vmatpush.bf16.msra.mxu1 %v11932_v58  ;;  %v12029_v54 = vld [vmem:[#allocation10 + $0x12e0] sm:$0xf0]  ;;  %v12252_v58 = vor.u32 %v13629_v44, %v12251_v42  ;;  %v6181_v60 = vpop.f32.mrf.mxu1  ;;  %v12416_v44 = vor.u32 %v13665_v23, %v12413_v46  ;;  %v13598_v22 = vld [vmem:[#allocation10 + $0x13a4] sm:$0xf0] }
 0x3e8   :  { %6362 = vmatmul.bf16.vlgmr.msrb.gmra.mxu3 %v14275_v14  ;;  %v14404_v0 = vadd.f32 %v6181_v60, %v6168_v26  ;;  %v12475_v26 = vld [vmem:[#allocation10 + $0x1640] sm:$0xf]  ;;  %v13545_v24 = vld [vmem:[#allocation10 + $0x1204] sm:$0xf]  ;;  %v13518_v63 = vld [vmem:[#allocation10 + $0x1124] sm:$0xf0] }
 0x3e9   :  { %7951 = vmatpush.bf16.msra.mxu3 %v12668_v21  ;;  %v6142_v21 = vpop.f32.mrf.mxu2  ;;  %v11933_v11 = vld [vmem:[#allocation10 + $0x1220] sm:$0xf0] }
 0x3ea   :  { %7966 = vmatpush.bf16.msrb.mxu0 %v11840_v61  ;;  %7933 = vmatmul.bf16.vlgmr.msra.gmra.mxu1 %v14254_v27  ;;  %v12219_v61 = vld [vmem:[#allocation10 + $0x1440] sm:$0xf]  ;;  %v6143_v3 = vadd.f32 %v6142_v21, %v14392_v2  ;;  %v13729_v21 = vld [vmem:[#allocation10 + $0x17c4] sm:$0xf] }
 0x3eb   :  { %7977 = vmatpush.bf16.msrb.mxu1 %v12160_v59  ;;  %7940 = vmatpush.bf16.msra.mxu2 %v12348_v28  ;;  %v12032_v59 = vor.u32 %v13569_v52, %v12029_v54  ;;  %v13693_v28 = vld [vmem:[#allocation10 + $0x169c] sm:$0xf0]  ;;  %v12220_v29 = vor.u32 %v13621_v62, %v12219_v61  ;;  %v12669_v60 = vld [vmem:[#allocation10 + $0x17e0] sm:$0xf0]  ;;  %v11843_v61 = vld [vmem:[#allocation10 + $0x1148] sm:$0xf] }
 0x3ec   :  { %v12508_v2 = vor.u32 %v13693_v28, %v12507_v8  ;;  %v13677_v54 = vld [vmem:[#allocation10 + $0x161c] sm:$0xf0]  ;;  %v13526_v62 = vld [vmem:[#allocation10 + $0x1164] sm:$0xf0]  ;;  %v11936_v8 = vor.u32 %v13545_v24, %v11933_v11  ;;  %v12672_v28 = vor.u32 %v13729_v21, %v12669_v60  ;;  %v12253_v21 = vld [vmem:[#allocation10 + $0x14a0] sm:$0xf0] }
 0x3ed   :  { %7952 = vmatpush.bf16.msra.mxu3 %v12636_v9  ;;  %v13561_v9 = vld [vmem:[#allocation10 + $0x1284] sm:$0xf]  ;;  %v12444_v5 = vor.u32 %v13677_v54, %v12443_v50  ;;  %v13582_v50 = vld [vmem:[#allocation10 + $0x1324] sm:$0xf0] }
 0x3ee   :  { %7967 = vmatpush.bf16.msrb.mxu0 %v11808_v37  ;;  %v4401_v37 = vrot.slane %v14325_v19, 7  ;;  %v13553_v19 = vld [vmem:[#allocation10 + $0x1244] sm:$0xf]  ;;  %v13502_v54 = vld [vmem:[#allocation10 + $0x10a4] sm:$0xf0] }
 0x3ef   :  { %7978 = vmatpush.bf16.msrb.mxu1 %v12128_v18  ;;  %7941 = vmatpush.bf16.msra.mxu2 %v12316_v7  ;;  %v11677_v18 = vld [vmem:[#allocation10 + $0x1020] sm:$0xf0]  ;;  %v6155_v7 = vpop.f32.mrf.mxu3  ;;  %v6183_v42 = vpop.f32.mrf.mxu1  ;;  %v11968_v52 = vor.u32 %v13553_v19, %v11965_v17  ;;  %v11779_v19 = vld [vmem:[#allocation10 + $0x10c8] sm:$0xf] }
 0x3f0   :  { %v11680_v25 = vor.u32 %v13481_v16, %v11677_v18  ;;  %v4409_v33 = vsel %vm14138_vm4, 0.0, %v4401_v37  ;;  %v11844_v18 = vor.u32 %v13526_v62, %v11843_v61  ;;  %v13721_v37 = vld [vmem:[#allocation10 + $0x1784] sm:$0xf]  ;;  %v13510_v17 = vld [vmem:[#allocation10 + $0x10e4] sm:$0xf0] }
 0x3f1   :  { %7953 = vmatpush.bf16.msra.mxu3 %v12604_v10  ;;  %v12000_v10 = vor.u32 %v13561_v9, %v11997_v15  ;;  %v13649_v9 = vld [vmem:[#allocation10 + $0x1544] sm:$0xf]  ;;  %v12035_v62 = vld [vmem:[#allocation10 + $0x12c8] sm:$0xf] }
 0x3f2   :  { %7968 = vmatpush.bf16.msrb.mxu0 %v11776_v30  ;;  %v6156_v30 = vadd.f32 %v6155_v7, %v6143_v3  ;;  %v12349_v15 = vld [vmem:[#allocation10 + $0x1560] sm:$0xf0] }
 0x3f3   :  { %7979 = vmatpush.bf16.msrb.mxu1 %v12096_v13  ;;  %7942 = vmatpush.bf16.msra.mxu2 %v12284_v41  ;;  %v13685_v13 = vld [vmem:[#allocation10 + $0x165c] sm:$0xf0]  ;;  %v12352_v12 = vor.u32 %v13649_v9, %v12349_v15  ;;  %v13641_v7 = vld [vmem:[#allocation10 + $0x1504] sm:$0xf] }
 0x3f4   :  { %v14409_v41 = vadd.f32 %v6156_v30, %v4409_v33  ;;  %v12476_v49 = vor.u32 %v13685_v13, %v12475_v26  ;;  %v13713_v26 = vld [vmem:[#allocation10 + $0x1744] sm:$0xf]  ;;  %v12099_v30 = vld [vmem:[#allocation10 + $0x1348] sm:$0xf] }
 0x3f5   :  { %7954 = vmatpush.bf16.msra.mxu3 %v12572_v20  ;;  %v6144_v20 = vpop.f32.mrf.mxu2  ;;  %v12605_v13 = vld [vmem:[#allocation10 + $0x1760] sm:$0xf0] }
 0x3f6   :  { %7969 = vmatpush.bf16.msrb.mxu0 %v11744_v39  ;;  %v12381_v39 = vld [vmem:[#allocation10 + $0x15a0] sm:$0xf0] }
 0x3f7   :  { %7980 = vmatpush.bf16.msrb.mxu1 %v12064_v38  ;;  %7943 = vmatpush.bf16.msra.mxu2 %v12252_v58  ;;  %v13657_v38 = vld [vmem:[#allocation10 + $0x1584] sm:$0xf]  ;;  %v11876_v58 = vor.u32 %v13534_v55, %v11875_v6 }
 0x3f8   :  { %v12384_v3 = vor.u32 %v13657_v38, %v12381_v39  ;;  %v13633_v6 = vld [vmem:[#allocation10 + $0x14c4] sm:$0xf]  ;;  %v12067_v39 = vld [vmem:[#allocation10 + $0x1308] sm:$0xf] }
 0x3f9   :  { %7955 = vmatpush.bf16.msra.mxu3 %v12540_v56  ;;  %v12163_v56 = vld [vmem:[#allocation10 + $0x13c8] sm:$0xf]  ;;  %v12285_v55 = vld [vmem:[#allocation10 + $0x14e0] sm:$0xf0] }
 0x3fa   :  { %7970 = vmatpush.bf16.msrb.mxu0 %v11712_v40  ;;  %v6157_v40 = vpop.f32.mrf.mxu3  ;;  %v12573_v38 = vld [vmem:[#allocation10 + $0x1720] sm:$0xf0]  ;;  %v12288_v24 = vor.u32 %v13633_v6, %v12285_v55  ;;  %v13670_v55 = vld [vmem:[#allocation10 + $0x15e4] sm:$0xf0] }
 0x3fb   :  { %7981 = vmatpush.bf16.msrb.mxu1 %v12032_v59  ;;  %7944 = vmatpush.bf16.msra.mxu2 %v12220_v29  ;;  %v13606_v59 = vld [vmem:[#allocation10 + $0x13e4] sm:$0xf0]  ;;  %v12637_v29 = vld [vmem:[#allocation10 + $0x17a0] sm:$0xf0] }
 0x3fc   :  { %v12164_v16 = vor.u32 %v13606_v59, %v12163_v56  ;;  %v12640_v23 = vor.u32 %v13721_v37, %v12637_v29  ;;  %v13697_v60 = vld [vmem:[#allocation10 + $0x16c4] sm:$0xf]  ;;  %v12068_v56 = vor.u32 %v13582_v50, %v12067_v39  ;;  %v13494_v40 = vld [vmem:[#allocation10 + $0x1064] sm:$0xf0] }
 0x3fd   :  { %7956 = vmatpush.bf16.msra.mxu3 %v12508_v2  ;;  %v11811_v2 = vld [vmem:[#allocation10 + $0x1108] sm:$0xf]  ;;  %v12541_v61 = vld [vmem:[#allocation10 + $0x16e0] sm:$0xf0] }
 0x3fe   :  { %7971 = vmatpush.bf16.msrb.mxu0 %v11680_v25  ;;  %v12132_v25 = vor.u32 %v13598_v22, %v12131_v57  ;;  %v11812_v46 = vor.u32 %v13518_v63, %v11811_v2  ;;  %v6220_v20 = vpop.f32.mrf.mxu0  ;;  %v12544_v15 = vor.u32 %v13697_v60, %v12541_v61  ;;  %v12221_v37 = vld [vmem:[#allocation10 + $0x1460] sm:$0xf0] }
 0x3ff   :  { %7982 = vmatpush.bf16.msrb.mxu1 %v12000_v10  ;;  %7945 = vmatpush.bf16.msra.mxu2 %v12188_v35  ;;  %v12317_v10 = vld [vmem:[#allocation10 + $0x1520] sm:$0xf0]  ;;  %v12608_v35 = vor.u32 %v13713_v26, %v12605_v13  ;;  %v13538_v13 = vld [vmem:[#allocation10 + $0x11cc] sm:$0xf] }
 0x400   :  { %v12320_v33 = vor.u32 %v13641_v7, %v12317_v10  ;;  %v13689_v63 = vld [vmem:[#allocation10 + $0x1684] sm:$0xf]  ;;  %v13566_v7 = vld [vmem:[#allocation10 + $0x12a4] sm:$0xf0] }
 0x401   :  { %7957 = vmatpush.bf16.msra.mxu3 %v12476_v49  ;;  %7972 = vmatmul.bf16.vlgmr.msrb.gmra.mxu0 %v14251_v31  ;;  %v13705_v49 = vld [vmem:[#allocation10 + $0x1704] sm:$0xf]  ;;  %v11683_v10 = vld [vmem:[#allocation10 + $0x1008] sm:$0xf] }
 0x402   :  { %8016 = vmatpush.bf16.msra.mxu0 %v11908_v51  ;;  %7946 = vmatmul.bf16.vlgmr.msra.gmra.mxu2 %v14271_v47  ;;  %v13590_v51 = vld [vmem:[#allocation10 + $0x1364] sm:$0xf0]  ;;  %v12576_v11 = vor.u32 %v13705_v49, %v12573_v38  ;;  %v13673_v61 = vld [vmem:[#allocation10 + $0x1604] sm:$0xf] }
 0x403   :  { %7990 = vmatpush.bf16.msrb.mxu2 %v12416_v44  ;;  %7983 = vmatpush.bf16.msrb.mxu1 %v11968_v52  ;;  %v12100_v42 = vor.u32 %v13590_v51, %v12099_v30  ;;  %v11780_v44 = vor.u32 %v13510_v17, %v11779_v19  ;;  %v11747_v52 = vld [vmem:[#allocation10 + $0x1088] sm:$0xf]  ;;  %v11909_v30 = vld [vmem:[#allocation10 + $0x11e8] sm:$0xf0]  ;;  %v13609_v51 = vld [vmem:[#allocation10 + $0x1404] sm:$0xf] }
 0x404   :  { %v11748_v59 = vor.u32 %v13502_v54, %v11747_v52  ;;  %v12189_v19 = vld [vmem:[#allocation10 + $0x1420] sm:$0xf0]  ;;  %v12419_v17 = vld [vmem:[#allocation10 + $0x15c8] sm:$0xf]  ;;  %v11912_v49 = vor.u32 %v13538_v13, %v11909_v30  ;;  %v13530_v52 = vld [vmem:[#allocation10 + $0x118c] sm:$0xf] }
 0x405   :  { %7958 = vmatpush.bf16.msra.mxu3 %v12444_v5  ;;  %v11715_v5 = vld [vmem:[#allocation10 + $0x1048] sm:$0xf]  ;;  %v12192_v50 = vor.u32 %v13609_v51, %v12189_v19  ;;  %v11877_v54 = vld [vmem:[#allocation10 + $0x11a8] sm:$0xf0] }
 0x406   :  { %8017 = vmatpush.bf16.msra.mxu0 %v11876_v58  ;;  %v13625_v58 = vld [vmem:[#allocation10 + $0x1484] sm:$0xf]  ;;  %v6222_v22 = vpop.f32.mrf.mxu0  ;;  %v11716_v2 = vor.u32 %v13494_v40, %v11715_v5  ;;  %v13558_v38 = vld [vmem:[#allocation10 + $0x1264] sm:$0xf0]  ;;  %v13594_v13 = vld [vmem:[#allocation10 + $0x138c] sm:$0xf] }
 0x407   :  { %7991 = vmatpush.bf16.msrb.mxu2 %v12384_v3  ;;  %7984 = vmatpush.bf16.msrb.mxu1 %v11936_v8  ;;  %v13574_v3 = vld [vmem:[#allocation10 + $0x12e4] sm:$0xf0]  ;;  %v12256_v8 = vor.u32 %v13625_v58, %v12253_v21  ;;  %v6233_v9 = vpop.f32.mrf.mxu1  ;;  %v12420_v21 = vor.u32 %v13670_v55, %v12419_v17  ;;  %v12133_v30 = vld [vmem:[#allocation10 + $0x13a8] sm:$0xf0] }
 0x408   :  { %7959 = vmatmul.bf16.vlgmr.msra.gmra.mxu3 %v14275_v14  ;;  %v14416_v57 = vadd.f32 %v6233_v9, %v6220_v20  ;;  %v13681_v20 = vld [vmem:[#allocation10 + $0x1644] sm:$0xf]  ;;  %v11939_v5 = vld [vmem:[#allocation10 + $0x1208] sm:$0xf]  ;;  %v11813_v51 = vld [vmem:[#allocation10 + $0x1128] sm:$0xf0] }
 0x409   :  { %8003 = vmatpush.bf16.msrb.mxu3 %v12672_v28  ;;  %v6194_v28 = vpop.f32.mrf.mxu2  ;;  %v13550_v40 = vld [vmem:[#allocation10 + $0x1224] sm:$0xf0] }
 0x40a   :  { %8018 = vmatpush.bf16.msra.mxu0 %v11844_v18  ;;  %7985 = vmatmul.bf16.vlgmr.msrb.gmra.mxu1 %v14254_v27  ;;  %v13617_v18 = vld [vmem:[#allocation10 + $0x1444] sm:$0xf]  ;;  %v6195_v29 = vadd.f32 %v6194_v28, %v14404_v0  ;;  %v12675_v28 = vld [vmem:[#allocation10 + $0x17c8] sm:$0xf] }
 0x40b   :  { %8029 = vmatpush.bf16.msra.mxu1 %v12164_v16  ;;  %7992 = vmatpush.bf16.msrb.mxu2 %v12352_v12  ;;  %v12036_v16 = vor.u32 %v13574_v3, %v12035_v62  ;;  %v12509_v12 = vld [vmem:[#allocation10 + $0x16a0] sm:$0xf0]  ;;  %v12224_v26 = vor.u32 %v13617_v18, %v12221_v37  ;;  %v13734_v9 = vld [vmem:[#allocation10 + $0x17e4] sm:$0xf0]  ;;  %v13522_v18 = vld [vmem:[#allocation10 + $0x114c] sm:$0xf] }
 0x40c   :  { %v12512_v0 = vor.u32 %v13689_v63, %v12509_v12  ;;  %v12445_v3 = vld [vmem:[#allocation10 + $0x1620] sm:$0xf0]  ;;  %v11845_v37 = vld [vmem:[#allocation10 + $0x1168] sm:$0xf0]  ;;  %v11940_v63 = vor.u32 %v13550_v40, %v11939_v5  ;;  %v12676_v12 = vor.u32 %v13734_v9, %v12675_v28  ;;  %v13630_v28 = vld [vmem:[#allocation10 + $0x14a4] sm:$0xf0] }
 0x40d   :  { %8004 = vmatpush.bf16.msrb.mxu3 %v12640_v23  ;;  %v12003_v23 = vld [vmem:[#allocation10 + $0x1288] sm:$0xf]  ;;  %v12448_v22 = vor.u32 %v13673_v61, %v12445_v3  ;;  %v12069_v61 = vld [vmem:[#allocation10 + $0x1328] sm:$0xf0] }
 0x40e   :  { %8019 = vmatpush.bf16.msra.mxu0 %v11812_v46  ;;  %v4402_v46 = vrot.slane %v14334_v53, 7  ;;  %v11971_v53 = vld [vmem:[#allocation10 + $0x1248] sm:$0xf]  ;;  %v11749_v3 = vld [vmem:[#allocation10 + $0x10a8] sm:$0xf0] }
 0x40f   :  { %8030 = vmatpush.bf16.msra.mxu1 %v12132_v25  ;;  %7993 = vmatpush.bf16.msrb.mxu2 %v12320_v33  ;;  %v13486_v25 = vld [vmem:[#allocation10 + $0x1024] sm:$0xf0]  ;;  %v6207_v33 = vpop.f32.mrf.mxu3  ;;  %v6235_v58 = vpop.f32.mrf.mxu1  ;;  %v11972_v62 = vor.u32 %v13558_v38, %v11971_v53  ;;  %v13506_v53 = vld [vmem:[#allocation10 + $0x10cc] sm:$0xf] }
 0x410   :  { %v11684_v6 = vor.u32 %v13486_v25, %v11683_v10  ;;  %v4410_v39 = vsel %vm14138_vm4, 0.0, %v4402_v46  ;;  %v11848_v25 = vor.u32 %v13522_v18, %v11845_v37  ;;  %v12643_v46 = vld [vmem:[#allocation10 + $0x1788] sm:$0xf]  ;;  %v11781_v38 = vld [vmem:[#allocation10 + $0x10e8] sm:$0xf0] }
 0x411   :  { %8005 = vmatpush.bf16.msrb.mxu3 %v12608_v35  ;;  %v12004_v35 = vor.u32 %v13566_v7, %v12003_v23  ;;  %v12355_v23 = vld [vmem:[#allocation10 + $0x1548] sm:$0xf]  ;;  %v13570_v37 = vld [vmem:[#allocation10 + $0x12cc] sm:$0xf] }
 0x412   :  { %8020 = vmatpush.bf16.msra.mxu0 %v11780_v44  ;;  %v6208_v44 = vadd.f32 %v6207_v33, %v6195_v29  ;;  %v13654_v7 = vld [vmem:[#allocation10 + $0x1564] sm:$0xf0] }
 0x413   :  { %8031 = vmatpush.bf16.msra.mxu1 %v12100_v42  ;;  %7994 = vmatpush.bf16.msrb.mxu2 %v12288_v24  ;;  %v12477_v42 = vld [vmem:[#allocation10 + $0x1660] sm:$0xf0]  ;;  %v12356_v19 = vor.u32 %v13654_v7, %v12355_v23  ;;  %v12323_v33 = vld [vmem:[#allocation10 + $0x1508] sm:$0xf] }
 0x414   :  { %v14421_v24 = vadd.f32 %v6208_v44, %v4410_v39  ;;  %v12480_v60 = vor.u32 %v13681_v20, %v12477_v42  ;;  %v12611_v20 = vld [vmem:[#allocation10 + $0x1748] sm:$0xf]  ;;  %v13586_v44 = vld [vmem:[#allocation10 + $0x134c] sm:$0xf] }
 0x415   :  { %8006 = vmatpush.bf16.msrb.mxu3 %v12576_v11  ;;  %v6196_v11 = vpop.f32.mrf.mxu2  ;;  %v13718_v42 = vld [vmem:[#allocation10 + $0x1764] sm:$0xf0] }
 0x416   :  { %8021 = vmatpush.bf16.msra.mxu0 %v11748_v59  ;;  %v13662_v59 = vld [vmem:[#allocation10 + $0x15a4] sm:$0xf0] }
 0x417   :  { %8032 = vmatpush.bf16.msra.mxu1 %v12068_v56  ;;  %7995 = vmatpush.bf16.msrb.mxu2 %v12256_v8  ;;  %v12387_v56 = vld [vmem:[#allocation10 + $0x1588] sm:$0xf]  ;;  %v11880_v8 = vor.u32 %v13530_v52, %v11877_v54 }
 0x418   :  { %v12388_v29 = vor.u32 %v13662_v59, %v12387_v56  ;;  %v12291_v52 = vld [vmem:[#allocation10 + $0x14c8] sm:$0xf]  ;;  %v13578_v59 = vld [vmem:[#allocation10 + $0x130c] sm:$0xf] }
 0x419   :  { %8007 = vmatpush.bf16.msrb.mxu3 %v12544_v15  ;;  %v13602_v15 = vld [vmem:[#allocation10 + $0x13cc] sm:$0xf]  ;;  %v13638_v54 = vld [vmem:[#allocation10 + $0x14e4] sm:$0xf0] }
 0x41a   :  { %8022 = vmatpush.bf16.msra.mxu0 %v11716_v2  ;;  %v6209_v2 = vpop.f32.mrf.mxu3  ;;  %v13710_v56 = vld [vmem:[#allocation10 + $0x1724] sm:$0xf0]  ;;  %v12292_v5 = vor.u32 %v13638_v54, %v12291_v52  ;;  %v12421_v54 = vld [vmem:[#allocation10 + $0x15e8] sm:$0xf0] }
 0x41b   :  { %8033 = vmatpush.bf16.msra.mxu1 %v12036_v16  ;;  %7996 = vmatpush.bf16.msrb.mxu2 %v12224_v26  ;;  %v12165_v16 = vld [vmem:[#allocation10 + $0x13e8] sm:$0xf0]  ;;  %v13726_v26 = vld [vmem:[#allocation10 + $0x17a4] sm:$0xf0] }
 0x41c   :  { %v12168_v10 = vor.u32 %v13602_v15, %v12165_v16  ;;  %v12644_v17 = vor.u32 %v13726_v26, %v12643_v46  ;;  %v12547_v9 = vld [vmem:[#allocation10 + $0x16c8] sm:$0xf]  ;;  %v12072_v15 = vor.u32 %v13578_v59, %v12069_v61  ;;  %v11717_v2 = vld [vmem:[#allocation10 + $0x1068] sm:$0xf0] }
 0x41d   :  { %8008 = vmatpush.bf16.msrb.mxu3 %v12512_v0  ;;  %v13514_v0 = vld [vmem:[#allocation10 + $0x110c] sm:$0xf]  ;;  %v13702_v18 = vld [vmem:[#allocation10 + $0x16e4] sm:$0xf0] }
 0x41e   :  { %8023 = vmatpush.bf16.msra.mxu0 %v11684_v6  ;;  %v12136_v6 = vor.u32 %v13594_v13, %v12133_v30  ;;  %v11816_v55 = vor.u32 %v13514_v0, %v11813_v51  ;;  %v6272_v11 = vpop.f32.mrf.mxu0  ;;  %v12548_v7 = vor.u32 %v13702_v18, %v12547_v9  ;;  %v13622_v46 = vld [vmem:[#allocation10 + $0x1464] sm:$0xf0] }
 0x41f   :  { %8034 = vmatpush.bf16.msra.mxu1 %v12004_v35  ;;  %7997 = vmatpush.bf16.msrb.mxu2 %v12192_v50  ;;  %v13646_v35 = vld [vmem:[#allocation10 + $0x1524] sm:$0xf0]  ;;  %v12612_v50 = vor.u32 %v13718_v42, %v12611_v20  ;;  %v11915_v42 = vld [vmem:[#allocation10 + $0x11d0] sm:$0xf] }
 0x420   :  { %v12324_v39 = vor.u32 %v13646_v35, %v12323_v33  ;;  %v12515_v51 = vld [vmem:[#allocation10 + $0x1688] sm:$0xf]  ;;  %v12005_v33 = vld [vmem:[#allocation10 + $0x12a8] sm:$0xf0] }
 0x421   :  { %8009 = vmatpush.bf16.msrb.mxu3 %v12480_v60  ;;  %8024 = vmatmul.bf16.vlgmr.msra.gmra.mxu0 %v14251_v31  ;;  %v12579_v60 = vld [vmem:[#allocation10 + $0x1708] sm:$0xf]  ;;  %v13482_v35 = vld [vmem:[#allocation10 + $0x100c] sm:$0xf] }
 0x422   :  { %8068 = vmatpush.bf16.msrb.mxu0 %v11912_v49  ;;  %7998 = vmatmul.bf16.vlgmr.msrb.gmra.mxu2 %v14271_v47  ;;  %v12101_v49 = vld [vmem:[#allocation10 + $0x1368] sm:$0xf0]  ;;  %v12580_v40 = vor.u32 %v13710_v56, %v12579_v60  ;;  %v12451_v18 = vld [vmem:[#allocation10 + $0x1608] sm:$0xf] }
 0x423   :  { %8042 = vmatpush.bf16.msra.mxu2 %v12420_v21  ;;  %8035 = vmatpush.bf16.msra.mxu1 %v11972_v62  ;;  %v12104_v58 = vor.u32 %v13586_v44, %v12101_v49  ;;  %v11784_v21 = vor.u32 %v13506_v53, %v11781_v38  ;;  %v13498_v62 = vld [vmem:[#allocation10 + $0x108c] sm:$0xf]  ;;  %v13543_v44 = vld [vmem:[#allocation10 + $0x11ec] sm:$0xf0]  ;;  %v12195_v49 = vld [vmem:[#allocation10 + $0x1408] sm:$0xf] }
 0x424   :  { %v11752_v16 = vor.u32 %v13498_v62, %v11749_v3  ;;  %v13614_v53 = vld [vmem:[#allocation10 + $0x1424] sm:$0xf0]  ;;  %v13666_v38 = vld [vmem:[#allocation10 + $0x15cc] sm:$0xf]  ;;  %v11916_v60 = vor.u32 %v13543_v44, %v11915_v42  ;;  %v11883_v62 = vld [vmem:[#allocation10 + $0x1190] sm:$0xf] }
 0x425   :  { %8010 = vmatpush.bf16.msrb.mxu3 %v12448_v22  ;;  %v13490_v22 = vld [vmem:[#allocation10 + $0x104c] sm:$0xf]  ;;  %v12196_v61 = vor.u32 %v13614_v53, %v12195_v49  ;;  %v13535_v3 = vld [vmem:[#allocation10 + $0x11ac] sm:$0xf0] }
 0x426   :  { %8069 = vmatpush.bf16.msrb.mxu0 %v11880_v8  ;;  %v12259_v8 = vld [vmem:[#allocation10 + $0x1488] sm:$0xf]  ;;  %v6274_v30 = vpop.f32.mrf.mxu0  ;;  %v11720_v0 = vor.u32 %v13490_v22, %v11717_v2  ;;  %v11973_v56 = vld [vmem:[#allocation10 + $0x1268] sm:$0xf0]  ;;  %v12139_v42 = vld [vmem:[#allocation10 + $0x1390] sm:$0xf] }
 0x427   :  { %8043 = vmatpush.bf16.msra.mxu2 %v12388_v29  ;;  %8036 = vmatpush.bf16.msra.mxu1 %v11940_v63  ;;  %v12037_v29 = vld [vmem:[#allocation10 + $0x12e8] sm:$0xf0]  ;;  %v12260_v63 = vor.u32 %v13630_v28, %v12259_v8  ;;  %v6285_v23 = vpop.f32.mrf.mxu1  ;;  %v12424_v28 = vor.u32 %v13666_v38, %v12421_v54  ;;  %v13599_v44 = vld [vmem:[#allocation10 + $0x13ac] sm:$0xf0] }
 0x428   :  { %8011 = vmatmul.bf16.vlgmr.msrb.gmra.mxu3 %v14275_v14  ;;  %v14428_v13 = vadd.f32 %v6285_v23, %v6272_v11  ;;  %v12483_v11 = vld [vmem:[#allocation10 + $0x1648] sm:$0xf]  ;;  %v13546_v22 = vld [vmem:[#allocation10 + $0x120c] sm:$0xf]  ;;  %v13519_v49 = vld [vmem:[#allocation10 + $0x112c] sm:$0xf0] }
 0x429   :  { %8055 = vmatpush.bf16.msra.mxu3 %v12676_v12  ;;  %v6246_v12 = vpop.f32.mrf.mxu2  ;;  %v11941_v2 = vld [vmem:[#allocation10 + $0x1228] sm:$0xf0] }
 0x42a   :  { %8070 = vmatpush.bf16.msrb.mxu0 %v11848_v25  ;;  %8037 = vmatmul.bf16.vlgmr.msra.gmra.mxu1 %v14254_v27  ;;  %v12227_v25 = vld [vmem:[#allocation10 + $0x1448] sm:$0xf]  ;;  %v6247_v26 = vadd.f32 %v6246_v12, %v14416_v57  ;;  %v13730_v12 = vld [vmem:[#allocation10 + $0x17cc] sm:$0xf] }
 0x42b   :  { %8081 = vmatpush.bf16.msrb.mxu1 %v12168_v10  ;;  %8044 = vmatpush.bf16.msra.mxu2 %v12356_v19  ;;  %v12040_v10 = vor.u32 %v13570_v37, %v12037_v29  ;;  %v13694_v19 = vld [vmem:[#allocation10 + $0x16a4] sm:$0xf0]  ;;  %v12228_v20 = vor.u32 %v13622_v46, %v12227_v25  ;;  %v12677_v23 = vld [vmem:[#allocation10 + $0x17e8] sm:$0xf0]  ;;  %v11851_v25 = vld [vmem:[#allocation10 + $0x1150] sm:$0xf] }
 0x42c   :  { %v12516_v57 = vor.u32 %v13694_v19, %v12515_v51  ;;  %v13678_v29 = vld [vmem:[#allocation10 + $0x1624] sm:$0xf0]  ;;  %v13527_v46 = vld [vmem:[#allocation10 + $0x116c] sm:$0xf0]  ;;  %v11944_v51 = vor.u32 %v13546_v22, %v11941_v2  ;;  %v12680_v19 = vor.u32 %v13730_v12, %v12677_v23  ;;  %v12261_v12 = vld [vmem:[#allocation10 + $0x14a8] sm:$0xf0] }
 0x42d   :  { %8056 = vmatpush.bf16.msra.mxu3 %v12644_v17  ;;  %v13562_v17 = vld [vmem:[#allocation10 + $0x128c] sm:$0xf]  ;;  %v12452_v30 = vor.u32 %v13678_v29, %v12451_v18  ;;  %v13583_v18 = vld [vmem:[#allocation10 + $0x132c] sm:$0xf0] }
 0x42e   :  { %8071 = vmatpush.bf16.msrb.mxu0 %v11816_v55  ;;  %v4403_v55 = vrot.slane %v14343_v32, 7  ;;  %v13554_v32 = vld [vmem:[#allocation10 + $0x124c] sm:$0xf]  ;;  %v13503_v29 = vld [vmem:[#allocation10 + $0x10ac] sm:$0xf0] }
 0x42f   :  { %8082 = vmatpush.bf16.msrb.mxu1 %v12136_v6  ;;  %8045 = vmatpush.bf16.msra.mxu2 %v12324_v39  ;;  %v11685_v6 = vld [vmem:[#allocation10 + $0x1028] sm:$0xf0]  ;;  %v6259_v39 = vpop.f32.mrf.mxu3  ;;  %v6287_v8 = vpop.f32.mrf.mxu1  ;;  %v11976_v37 = vor.u32 %v13554_v32, %v11973_v56  ;;  %v11787_v32 = vld [vmem:[#allocation10 + $0x10d0] sm:$0xf] }
 0x430   :  { %v11688_v52 = vor.u32 %v13482_v35, %v11685_v6  ;;  %v4411_v59 = vsel %vm14138_vm4, 0.0, %v4403_v55  ;;  %v11852_v6 = vor.u32 %v13527_v46, %v11851_v25  ;;  %v13722_v55 = vld [vmem:[#allocation10 + $0x178c] sm:$0xf]  ;;  %v13511_v56 = vld [vmem:[#allocation10 + $0x10ec] sm:$0xf0] }
 0x431   :  { %8057 = vmatpush.bf16.msra.mxu3 %v12612_v50  ;;  %v12008_v50 = vor.u32 %v13562_v17, %v12005_v33  ;;  %v13650_v17 = vld [vmem:[#allocation10 + $0x154c] sm:$0xf]  ;;  %v12043_v46 = vld [vmem:[#allocation10 + $0x12d0] sm:$0xf] }
 0x432   :  { %8072 = vmatpush.bf16.msrb.mxu0 %v11784_v21  ;;  %v6260_v21 = vadd.f32 %v6259_v39, %v6247_v26  ;;  %v12357_v33 = vld [vmem:[#allocation10 + $0x1568] sm:$0xf0] }
 0x433   :  { %8083 = vmatpush.bf16.msrb.mxu1 %v12104_v58  ;;  %8046 = vmatpush.bf16.msra.mxu2 %v12292_v5  ;;  %v13686_v58 = vld [vmem:[#allocation10 + $0x1664] sm:$0xf0]  ;;  %v12360_v53 = vor.u32 %v13650_v17, %v12357_v33  ;;  %v13642_v39 = vld [vmem:[#allocation10 + $0x150c] sm:$0xf] }
 0x434   :  { %v14433_v5 = vadd.f32 %v6260_v21, %v4411_v59  ;;  %v12484_v9 = vor.u32 %v13686_v58, %v12483_v11  ;;  %v13714_v11 = vld [vmem:[#allocation10 + $0x174c] sm:$0xf]  ;;  %v12107_v21 = vld [vmem:[#allocation10 + $0x1350] sm:$0xf] }
 0x435   :  { %8058 = vmatpush.bf16.msra.mxu3 %v12580_v40  ;;  %v6248_v40 = vpop.f32.mrf.mxu2  ;;  %v12613_v58 = vld [vmem:[#allocation10 + $0x1768] sm:$0xf0] }
 0x436   :  { %8073 = vmatpush.bf16.msrb.mxu0 %v11752_v16  ;;  %v12389_v16 = vld [vmem:[#allocation10 + $0x15a8] sm:$0xf0] }
 0x437   :  { %8084 = vmatpush.bf16.msrb.mxu1 %v12072_v15  ;;  %8047 = vmatpush.bf16.msra.mxu2 %v12260_v63  ;;  %v13658_v15 = vld [vmem:[#allocation10 + $0x158c] sm:$0xf]  ;;  %v11884_v63 = vor.u32 %v13535_v3, %v11883_v62 }
 0x438   :  { %v12392_v26 = vor.u32 %v13658_v15, %v12389_v16  ;;  %v13634_v62 = vld [vmem:[#allocation10 + $0x14cc] sm:$0xf]  ;;  %v12075_v16 = vld [vmem:[#allocation10 + $0x1310] sm:$0xf] }
 0x439   :  { %8059 = vmatpush.bf16.msra.mxu3 %v12548_v7  ;;  %v12171_v7 = vld [vmem:[#allocation10 + $0x13d0] sm:$0xf]  ;;  %v12293_v3 = vld [vmem:[#allocation10 + $0x14e8] sm:$0xf0] }
 0x43a   :  { %8074 = vmatpush.bf16.msrb.mxu0 %v11720_v0  ;;  %v6261_v0 = vpop.f32.mrf.mxu3  ;;  %v12581_v15 = vld [vmem:[#allocation10 + $0x1728] sm:$0xf0]  ;;  %v12296_v22 = vor.u32 %v13634_v62, %v12293_v3  ;;  %v13671_v3 = vld [vmem:[#allocation10 + $0x15ec] sm:$0xf0] }
 0x43b   :  { %8085 = vmatpush.bf16.msrb.mxu1 %v12040_v10  ;;  %8048 = vmatpush.bf16.msra.mxu2 %v12228_v20  ;;  %v13607_v10 = vld [vmem:[#allocation10 + $0x13ec] sm:$0xf0]  ;;  %v12645_v20 = vld [vmem:[#allocation10 + $0x17a8] sm:$0xf0] }
 0x43c   :  { %v12172_v35 = vor.u32 %v13607_v10, %v12171_v7  ;;  %v12648_v38 = vor.u32 %v13722_v55, %v12645_v20  ;;  %v13698_v23 = vld [vmem:[#allocation10 + $0x16cc] sm:$0xf]  ;;  %v12076_v7 = vor.u32 %v13583_v18, %v12075_v16  ;;  %v13495_v0 = vld [vmem:[#allocation10 + $0x106c] sm:$0xf0] }
 0x43d   :  { %8060 = vmatpush.bf16.msra.mxu3 %v12516_v57  ;;  %v11819_v57 = vld [vmem:[#allocation10 + $0x1110] sm:$0xf]  ;;  %v12549_v25 = vld [vmem:[#allocation10 + $0x16e8] sm:$0xf0] }
 0x43e   :  { %8075 = vmatpush.bf16.msrb.mxu0 %v11688_v52  ;;  %v12140_v52 = vor.u32 %v13599_v44, %v12139_v42  ;;  %v11820_v54 = vor.u32 %v13519_v49, %v11819_v57  ;;  %v6324_v40 = vpop.f32.mrf.mxu0  ;;  %v12552_v33 = vor.u32 %v13698_v23, %v12549_v25  ;;  %v12229_v55 = vld [vmem:[#allocation10 + $0x1468] sm:$0xf0] }
 0x43f   :  { %8086 = vmatpush.bf16.msrb.mxu1 %v12008_v50  ;;  %8049 = vmatpush.bf16.msra.mxu2 %v12196_v61  ;;  %v12325_v50 = vld [vmem:[#allocation10 + $0x1528] sm:$0xf0]  ;;  %v12616_v61 = vor.u32 %v13714_v11, %v12613_v58  ;;  %v13539_v58 = vld [vmem:[#allocation10 + $0x11d4] sm:$0xf] }
 0x440   :  { %v12328_v59 = vor.u32 %v13642_v39, %v12325_v50  ;;  %v13690_v49 = vld [vmem:[#allocation10 + $0x168c] sm:$0xf]  ;;  %v13567_v39 = vld [vmem:[#allocation10 + $0x12ac] sm:$0xf0] }
 0x441   :  { %8061 = vmatpush.bf16.msra.mxu3 %v12484_v9  ;;  %8076 = vmatmul.bf16.vlgmr.msrb.gmra.mxu0 %v14251_v31  ;;  %v13706_v9 = vld [vmem:[#allocation10 + $0x170c] sm:$0xf]  ;;  %v11691_v50 = vld [vmem:[#allocation10 + $0x1010] sm:$0xf] }
 0x442   :  { %8120 = vmatpush.bf16.msra.mxu0 %v11916_v60  ;;  %8050 = vmatmul.bf16.vlgmr.msra.gmra.mxu2 %v14271_v47  ;;  %v13591_v60 = vld [vmem:[#allocation10 + $0x136c] sm:$0xf0]  ;;  %v12584_v2 = vor.u32 %v13706_v9, %v12581_v15  ;;  %v13674_v25 = vld [vmem:[#allocation10 + $0x160c] sm:$0xf] }
 0x443   :  { %8094 = vmatpush.bf16.msrb.mxu2 %v12424_v28  ;;  %8087 = vmatpush.bf16.msrb.mxu1 %v11976_v37  ;;  %v12108_v8 = vor.u32 %v13591_v60, %v12107_v21  ;;  %v11788_v28 = vor.u32 %v13511_v56, %v11787_v32  ;;  %v11755_v37 = vld [vmem:[#allocation10 + $0x1090] sm:$0xf]  ;;  %v11917_v21 = vld [vmem:[#allocation10 + $0x11f0] sm:$0xf0]  ;;  %v13610_v60 = vld [vmem:[#allocation10 + $0x140c] sm:$0xf] }
 0x444   :  { %v11756_v10 = vor.u32 %v13503_v29, %v11755_v37  ;;  %v12197_v32 = vld [vmem:[#allocation10 + $0x1428] sm:$0xf0]  ;;  %v12427_v56 = vld [vmem:[#allocation10 + $0x15d0] sm:$0xf]  ;;  %v11920_v9 = vor.u32 %v13539_v58, %v11917_v21  ;;  %v13531_v37 = vld [vmem:[#allocation10 + $0x1194] sm:$0xf] }
 0x445   :  { %8062 = vmatpush.bf16.msra.mxu3 %v12452_v30  ;;  %v11723_v30 = vld [vmem:[#allocation10 + $0x1050] sm:$0xf]  ;;  %v12200_v18 = vor.u32 %v13610_v60, %v12197_v32  ;;  %v11885_v29 = vld [vmem:[#allocation10 + $0x11b0] sm:$0xf0] }
 0x446   :  { %8121 = vmatpush.bf16.msra.mxu0 %v11884_v63  ;;  %v13626_v63 = vld [vmem:[#allocation10 + $0x148c] sm:$0xf]  ;;  %v6326_v44 = vpop.f32.mrf.mxu0  ;;  %v11724_v57 = vor.u32 %v13495_v0, %v11723_v30  ;;  %v13559_v15 = vld [vmem:[#allocation10 + $0x126c] sm:$0xf0]  ;;  %v13595_v58 = vld [vmem:[#allocation10 + $0x1394] sm:$0xf] }
 0x447   :  { %8095 = vmatpush.bf16.msrb.mxu2 %v12392_v26  ;;  %8088 = vmatpush.bf16.msrb.mxu1 %v11944_v51  ;;  %v13575_v26 = vld [vmem:[#allocation10 + $0x12ec] sm:$0xf0]  ;;  %v12264_v51 = vor.u32 %v13626_v63, %v12261_v12  ;;  %v6337_v17 = vpop.f32.mrf.mxu1  ;;  %v12428_v12 = vor.u32 %v13671_v3, %v12427_v56  ;;  %v12141_v21 = vld [vmem:[#allocation10 + $0x13b0] sm:$0xf0] }
 0x448   :  { %8063 = vmatmul.bf16.vlgmr.msra.gmra.mxu3 %v14275_v14  ;;  %v14440_v42 = vadd.f32 %v6337_v17, %v6324_v40  ;;  %v13682_v40 = vld [vmem:[#allocation10 + $0x164c] sm:$0xf]  ;;  %v11947_v30 = vld [vmem:[#allocation10 + $0x1210] sm:$0xf]  ;;  %v11821_v60 = vld [vmem:[#allocation10 + $0x1130] sm:$0xf0] }
 0x449   :  { %8107 = vmatpush.bf16.msrb.mxu3 %v12680_v19  ;;  %v6298_v19 = vpop.f32.mrf.mxu2  ;;  %v13551_v0 = vld [vmem:[#allocation10 + $0x122c] sm:$0xf0] }
 0x44a   :  { %8122 = vmatpush.bf16.msra.mxu0 %v11852_v6  ;;  %8089 = vmatmul.bf16.vlgmr.msrb.gmra.mxu1 %v14254_v27  ;;  %v13618_v6 = vld [vmem:[#allocation10 + $0x144c] sm:$0xf]  ;;  %v6299_v20 = vadd.f32 %v6298_v19, %v14428_v13  ;;  %v12683_v19 = vld [vmem:[#allocation10 + $0x17d0] sm:$0xf] }
 0x44b   :  { %8133 = vmatpush.bf16.msra.mxu1 %v12172_v35  ;;  %8096 = vmatpush.bf16.msrb.mxu2 %v12360_v53  ;;  %v12044_v35 = vor.u32 %v13575_v26, %v12043_v46  ;;  %v12517_v53 = vld [vmem:[#allocation10 + $0x16a8] sm:$0xf0]  ;;  %v12232_v11 = vor.u32 %v13618_v6, %v12229_v55  ;;  %v13735_v17 = vld [vmem:[#allocation10 + $0x17ec] sm:$0xf0]  ;;  %v13523_v6 = vld [vmem:[#allocation10 + $0x1154] sm:$0xf] }
 0x44c   :  { %v12520_v13 = vor.u32 %v13690_v49, %v12517_v53  ;;  %v12453_v26 = vld [vmem:[#allocation10 + $0x1628] sm:$0xf0]  ;;  %v11853_v55 = vld [vmem:[#allocation10 + $0x1170] sm:$0xf0]  ;;  %v11948_v49 = vor.u32 %v13551_v0, %v11947_v30  ;;  %v12684_v53 = vor.u32 %v13735_v17, %v12683_v19  ;;  %v13631_v19 = vld [vmem:[#allocation10 + $0x14ac] sm:$0xf0] }
 0x44d   :  { %8108 = vmatpush.bf16.msrb.mxu3 %v12648_v38  ;;  %v12011_v38 = vld [vmem:[#allocation10 + $0x1290] sm:$0xf]  ;;  %v12456_v44 = vor.u32 %v13674_v25, %v12453_v26  ;;  %v12077_v25 = vld [vmem:[#allocation10 + $0x1330] sm:$0xf0] }
 0x44e   :  { %8123 = vmatpush.bf16.msra.mxu0 %v11820_v54  ;;  %v4404_v54 = vrot.slane %v14352_v36, 7  ;;  %v11979_v36 = vld [vmem:[#allocation10 + $0x1250] sm:$0xf]  ;;  %v11757_v26 = vld [vmem:[#allocation10 + $0x10b0] sm:$0xf0] }
 0x44f   :  { %8134 = vmatpush.bf16.msra.mxu1 %v12140_v52  ;;  %8097 = vmatpush.bf16.msrb.mxu2 %v12328_v59  ;;  %v13487_v52 = vld [vmem:[#allocation10 + $0x102c] sm:$0xf0]  ;;  %v6311_v59 = vpop.f32.mrf.mxu3  ;;  %v6339_v63 = vpop.f32.mrf.mxu1  ;;  %v11980_v46 = vor.u32 %v13559_v15, %v11979_v36  ;;  %v13507_v36 = vld [vmem:[#allocation10 + $0x10d4] sm:$0xf] }
 0x450   :  { %v11692_v62 = vor.u32 %v13487_v52, %v11691_v50  ;;  %v4412_v16 = vsel %vm14138_vm4, 0.0, %v4404_v54  ;;  %v11856_v52 = vor.u32 %v13523_v6, %v11853_v55  ;;  %v12651_v54 = vld [vmem:[#allocation10 + $0x1790] sm:$0xf]  ;;  %v11789_v15 = vld [vmem:[#allocation10 + $0x10f0] sm:$0xf0] }
 0x451   :  { %8109 = vmatpush.bf16.msrb.mxu3 %v12616_v61  ;;  %v12012_v61 = vor.u32 %v13567_v39, %v12011_v38  ;;  %v12363_v38 = vld [vmem:[#allocation10 + $0x1550] sm:$0xf]  ;;  %v13571_v55 = vld [vmem:[#allocation10 + $0x12d4] sm:$0xf] }
 0x452   :  { %8124 = vmatpush.bf16.msra.mxu0 %v11788_v28  ;;  %v6312_v28 = vadd.f32 %v6311_v59, %v6299_v20  ;;  %v13655_v39 = vld [vmem:[#allocation10 + $0x156c] sm:$0xf0] }
 0x453   :  { %8135 = vmatpush.bf16.msra.mxu1 %v12108_v8  ;;  %8098 = vmatpush.bf16.msrb.mxu2 %v12296_v22  ;;  %v12485_v8 = vld [vmem:[#allocation10 + $0x1668] sm:$0xf0]  ;;  %v12364_v32 = vor.u32 %v13655_v39, %v12363_v38  ;;  %v12331_v59 = vld [vmem:[#allocation10 + $0x1510] sm:$0xf] }
 0x454   :  { %v14445_v22 = vadd.f32 %v6312_v28, %v4412_v16  ;;  %v12488_v23 = vor.u32 %v13682_v40, %v12485_v8  ;;  %v12619_v40 = vld [vmem:[#allocation10 + $0x1750] sm:$0xf]  ;;  %v13587_v28 = vld [vmem:[#allocation10 + $0x1354] sm:$0xf] }
 0x455   :  { %8110 = vmatpush.bf16.msrb.mxu3 %v12584_v2  ;;  %v6300_v2 = vpop.f32.mrf.mxu2  ;;  %v13719_v8 = vld [vmem:[#allocation10 + $0x176c] sm:$0xf0] }
 0x456   :  { %8125 = vmatpush.bf16.msra.mxu0 %v11756_v10  ;;  %v13663_v10 = vld [vmem:[#allocation10 + $0x15ac] sm:$0xf0] }
 0x457   :  { %8136 = vmatpush.bf16.msra.mxu1 %v12076_v7  ;;  %8099 = vmatpush.bf16.msrb.mxu2 %v12264_v51  ;;  %v12395_v7 = vld [vmem:[#allocation10 + $0x1590] sm:$0xf]  ;;  %v11888_v51 = vor.u32 %v13531_v37, %v11885_v29 }
 0x458   :  { %v12396_v20 = vor.u32 %v13663_v10, %v12395_v7  ;;  %v12299_v37 = vld [vmem:[#allocation10 + $0x14d0] sm:$0xf]  ;;  %v13579_v10 = vld [vmem:[#allocation10 + $0x1314] sm:$0xf] }
 0x459   :  { %8111 = vmatpush.bf16.msrb.mxu3 %v12552_v33  ;;  %v13603_v33 = vld [vmem:[#allocation10 + $0x13d4] sm:$0xf]  ;;  %v13639_v29 = vld [vmem:[#allocation10 + $0x14ec] sm:$0xf0] }
 0x45a   :  { %8126 = vmatpush.bf16.msra.mxu0 %v11724_v57  ;;  %v6313_v57 = vpop.f32.mrf.mxu3  ;;  %v13711_v7 = vld [vmem:[#allocation10 + $0x172c] sm:$0xf0]  ;;  %v12300_v30 = vor.u32 %v13639_v29, %v12299_v37  ;;  %v12429_v29 = vld [vmem:[#allocation10 + $0x15f0] sm:$0xf0] }
 0x45b   :  { %8137 = vmatpush.bf16.msra.mxu1 %v12044_v35  ;;  %8100 = vmatpush.bf16.msrb.mxu2 %v12232_v11  ;;  %v12173_v35 = vld [vmem:[#allocation10 + $0x13f0] sm:$0xf0]  ;;  %v13727_v11 = vld [vmem:[#allocation10 + $0x17ac] sm:$0xf0] }
 0x45c   :  { %v12176_v50 = vor.u32 %v13603_v33, %v12173_v35  ;;  %v12652_v56 = vor.u32 %v13727_v11, %v12651_v54  ;;  %v12555_v17 = vld [vmem:[#allocation10 + $0x16d0] sm:$0xf]  ;;  %v12080_v33 = vor.u32 %v13579_v10, %v12077_v25  ;;  %v11725_v57 = vld [vmem:[#allocation10 + $0x1070] sm:$0xf0] }
 0x45d   :  { %8112 = vmatpush.bf16.msrb.mxu3 %v12520_v13  ;;  %v13515_v13 = vld [vmem:[#allocation10 + $0x1114] sm:$0xf]  ;;  %v13703_v6 = vld [vmem:[#allocation10 + $0x16ec] sm:$0xf0] }
 0x45e   :  { %8127 = vmatpush.bf16.msra.mxu0 %v11692_v62  ;;  %v12144_v62 = vor.u32 %v13595_v58, %v12141_v21  ;;  %v11824_v3 = vor.u32 %v13515_v13, %v11821_v60  ;;  %v7921_v2 = vpop.f32.mrf.mxu0  ;;  %v12556_v39 = vor.u32 %v13703_v6, %v12555_v17  ;;  %v13623_v54 = vld [vmem:[#allocation10 + $0x146c] sm:$0xf0] }
 0x45f   :  { %8138 = vmatpush.bf16.msra.mxu1 %v12012_v61  ;;  %8101 = vmatpush.bf16.msrb.mxu2 %v12200_v18  ;;  %v13647_v61 = vld [vmem:[#allocation10 + $0x152c] sm:$0xf0]  ;;  %v12620_v18 = vor.u32 %v13719_v8, %v12619_v40  ;;  %v11923_v8 = vld [vmem:[#allocation10 + $0x11d8] sm:$0xf] }
 0x460   :  { %v12332_v16 = vor.u32 %v13647_v61, %v12331_v59  ;;  %v12523_v60 = vld [vmem:[#allocation10 + $0x1690] sm:$0xf]  ;;  %v12013_v59 = vld [vmem:[#allocation10 + $0x12b0] sm:$0xf0] }
 0x461   :  { %8113 = vmatpush.bf16.msrb.mxu3 %v12488_v23  ;;  %8128 = vmatmul.bf16.vlgmr.msra.gmra.mxu0 %v14251_v31  ;;  %v12587_v23 = vld [vmem:[#allocation10 + $0x1710] sm:$0xf]  ;;  %v13483_v61 = vld [vmem:[#allocation10 + $0x1014] sm:$0xf] }
 0x462   :  { %8172 = vmatpush.bf16.msrb.mxu0 %v11920_v9  ;;  %8102 = vmatmul.bf16.vlgmr.msrb.gmra.mxu2 %v14271_v47  ;;  %v12109_v9 = vld [vmem:[#allocation10 + $0x1370] sm:$0xf0]  ;;  %v12588_v0 = vor.u32 %v13711_v7, %v12587_v23  ;;  %v12459_v6 = vld [vmem:[#allocation10 + $0x1610] sm:$0xf] }
 0x463   :  { %8146 = vmatpush.bf16.msra.mxu2 %v12428_v12  ;;  %8139 = vmatpush.bf16.msra.mxu1 %v11980_v46  ;;  %v12112_v63 = vor.u32 %v13587_v28, %v12109_v9  ;;  %v11792_v12 = vor.u32 %v13507_v36, %v11789_v15  ;;  %v13499_v46 = vld [vmem:[#allocation10 + $0x1094] sm:$0xf]  ;;  %v13544_v28 = vld [vmem:[#allocation10 + $0x11f4] sm:$0xf0]  ;;  %v12203_v9 = vld [vmem:[#allocation10 + $0x1410] sm:$0xf] }
 0x464   :  { %v11760_v35 = vor.u32 %v13499_v46, %v11757_v26  ;;  %v13615_v36 = vld [vmem:[#allocation10 + $0x142c] sm:$0xf0]  ;;  %v13667_v15 = vld [vmem:[#allocation10 + $0x15d4] sm:$0xf]  ;;  %v11924_v23 = vor.u32 %v13544_v28, %v11923_v8  ;;  %v11891_v46 = vld [vmem:[#allocation10 + $0x1198] sm:$0xf] }
 0x465   :  { %8114 = vmatpush.bf16.msrb.mxu3 %v12456_v44  ;;  %v13491_v44 = vld [vmem:[#allocation10 + $0x1054] sm:$0xf]  ;;  %v12204_v25 = vor.u32 %v13615_v36, %v12203_v9  ;;  %v13536_v26 = vld [vmem:[#allocation10 + $0x11b4] sm:$0xf0] }
 0x466   :  { %8173 = vmatpush.bf16.msrb.mxu0 %v11888_v51  ;;  %v12267_v51 = vld [vmem:[#allocation10 + $0x1490] sm:$0xf]  ;;  %v7923_v21 = vpop.f32.mrf.mxu0  ;;  %v11728_v13 = vor.u32 %v13491_v44, %v11725_v57  ;;  %v11981_v7 = vld [vmem:[#allocation10 + $0x1270] sm:$0xf0]  ;;  %v12147_v8 = vld [vmem:[#allocation10 + $0x1398] sm:$0xf] }
 0x467   :  { %8147 = vmatpush.bf16.msra.mxu2 %v12396_v20  ;;  %8140 = vmatpush.bf16.msra.mxu1 %v11948_v49  ;;  %v12045_v20 = vld [vmem:[#allocation10 + $0x12f0] sm:$0xf0]  ;;  %v12268_v49 = vor.u32 %v13631_v19, %v12267_v51  ;;  %v7934_v38 = vpop.f32.mrf.mxu1  ;;  %v12432_v19 = vor.u32 %v13667_v15, %v12429_v29  ;;  %v13600_v28 = vld [vmem:[#allocation10 + $0x13b4] sm:$0xf0] }
 0x468   :  { %8115 = vmatmul.bf16.vlgmr.msrb.gmra.mxu3 %v14275_v14  ;;  %v14452_v58 = vadd.f32 %v7934_v38, %v7921_v2  ;;  %v12491_v2 = vld [vmem:[#allocation10 + $0x1650] sm:$0xf]  ;;  %v13547_v44 = vld [vmem:[#allocation10 + $0x1214] sm:$0xf]  ;;  %v13520_v9 = vld [vmem:[#allocation10 + $0x1134] sm:$0xf0] }
 0x469   :  { %8159 = vmatpush.bf16.msra.mxu3 %v12684_v53  ;;  %v6350_v53 = vpop.f32.mrf.mxu2  ;;  %v11949_v57 = vld [vmem:[#allocation10 + $0x1230] sm:$0xf0] }
 0x46a   :  { %8174 = vmatpush.bf16.msrb.mxu0 %v11856_v52  ;;  %8141 = vmatmul.bf16.vlgmr.msra.gmra.mxu1 %v14254_v27  ;;  %v12235_v52 = vld [vmem:[#allocation10 + $0x1450] sm:$0xf]  ;;  %v6351_v11 = vadd.f32 %v6350_v53, %v14440_v42  ;;  %v13731_v53 = vld [vmem:[#allocation10 + $0x17d4] sm:$0xf] }
 0x46b   :  { %8185 = vmatpush.bf16.msrb.mxu1 %v12176_v50  ;;  %8148 = vmatpush.bf16.msra.mxu2 %v12364_v32  ;;  %v12048_v50 = vor.u32 %v13571_v55, %v12045_v20  ;;  %v13695_v32 = vld [vmem:[#allocation10 + $0x16ac] sm:$0xf0]  ;;  %v12236_v40 = vor.u32 %v13623_v54, %v12235_v52  ;;  %v12685_v38 = vld [vmem:[#allocation10 + $0x17f0] sm:$0xf0]  ;;  %v11859_v52 = vld [vmem:[#allocation10 + $0x1158] sm:$0xf] }
 0x46c   :  { %v12524_v42 = vor.u32 %v13695_v32, %v12523_v60  ;;  %v13679_v20 = vld [vmem:[#allocation10 + $0x162c] sm:$0xf0]  ;;  %v13528_v54 = vld [vmem:[#allocation10 + $0x1174] sm:$0xf0]  ;;  %v11952_v60 = vor.u32 %v13547_v44, %v11949_v57  ;;  %v12688_v32 = vor.u32 %v13731_v53, %v12685_v38  ;;  %v12269_v53 = vld [vmem:[#allocation10 + $0x14b0] sm:$0xf0] }
 0x46d   :  { %8160 = vmatpush.bf16.msra.mxu3 %v12652_v56  ;;  %v13563_v56 = vld [vmem:[#allocation10 + $0x1294] sm:$0xf]  ;;  %v12460_v21 = vor.u32 %v13679_v20, %v12459_v6  ;;  %v13584_v6 = vld [vmem:[#allocation10 + $0x1334] sm:$0xf0] }
 0x46e   :  { %8175 = vmatpush.bf16.msrb.mxu0 %v11824_v3  ;;  %v4405_v3 = vrot.slane %v14361_v43, 7  ;;  %v13555_v43 = vld [vmem:[#allocation10 + $0x1254] sm:$0xf]  ;;  %v13504_v20 = vld [vmem:[#allocation10 + $0x10b4] sm:$0xf0] }
 0x46f   :  { %8186 = vmatpush.bf16.msrb.mxu1 %v12144_v62  ;;  %8149 = vmatpush.bf16.msra.mxu2 %v12332_v16  ;;  %v11693_v62 = vld [vmem:[#allocation10 + $0x1030] sm:$0xf0]  ;;  %v6363_v16 = vpop.f32.mrf.mxu3  ;;  %v7936_v51 = vpop.f32.mrf.mxu1  ;;  %v11984_v55 = vor.u32 %v13555_v43, %v11981_v7  ;;  %v11795_v43 = vld [vmem:[#allocation10 + $0x10d8] sm:$0xf] }
 0x470   :  { %v11696_v37 = vor.u32 %v13483_v61, %v11693_v62  ;;  %v4413_v10 = vsel %vm14138_vm4, 0.0, %v4405_v3  ;;  %v11860_v62 = vor.u32 %v13528_v54, %v11859_v52  ;;  %v13723_v3 = vld [vmem:[#allocation10 + $0x1794] sm:$0xf]  ;;  %v13512_v7 = vld [vmem:[#allocation10 + $0x10f4] sm:$0xf0] }
 0x471   :  { %8161 = vmatpush.bf16.msra.mxu3 %v12620_v18  ;;  %v12016_v18 = vor.u32 %v13563_v56, %v12013_v59  ;;  %v13651_v56 = vld [vmem:[#allocation10 + $0x1554] sm:$0xf]  ;;  %v12051_v54 = vld [vmem:[#allocation10 + $0x12d8] sm:$0xf] }
 0x472   :  { %8176 = vmatpush.bf16.msrb.mxu0 %v11792_v12  ;;  %v6364_v12 = vadd.f32 %v6363_v16, %v6351_v11  ;;  %v12365_v59 = vld [vmem:[#allocation10 + $0x1570] sm:$0xf0] }
 0x473   :  { %8187 = vmatpush.bf16.msrb.mxu1 %v12112_v63  ;;  %8150 = vmatpush.bf16.msra.mxu2 %v12300_v30  ;;  %v13687_v63 = vld [vmem:[#allocation10 + $0x166c] sm:$0xf0]  ;;  %v12368_v36 = vor.u32 %v13651_v56, %v12365_v59  ;;  %v13643_v16 = vld [vmem:[#allocation10 + $0x1514] sm:$0xf] }
 0x474   :  { %v14457_v30 = vadd.f32 %v6364_v12, %v4413_v10  ;;  %v12492_v17 = vor.u32 %v13687_v63, %v12491_v2  ;;  %v13715_v2 = vld [vmem:[#allocation10 + $0x1754] sm:$0xf]  ;;  %v12115_v12 = vld [vmem:[#allocation10 + $0x1358] sm:$0xf] }
 0x475   :  { %8162 = vmatpush.bf16.msra.mxu3 %v12588_v0  ;;  %v6352_v0 = vpop.f32.mrf.mxu2  ;;  %v12621_v63 = vld [vmem:[#allocation10 + $0x1770] sm:$0xf0] }
 0x476   :  { %8177 = vmatpush.bf16.msrb.mxu0 %v11760_v35  ;;  %v12397_v35 = vld [vmem:[#allocation10 + $0x15b0] sm:$0xf0] }
 0x477   :  { %8188 = vmatpush.bf16.msrb.mxu1 %v12080_v33  ;;  %8151 = vmatpush.bf16.msra.mxu2 %v12268_v49  ;;  %v13659_v33 = vld [vmem:[#allocation10 + $0x1594] sm:$0xf]  ;;  %v11892_v49 = vor.u32 %v13536_v26, %v11891_v46 }
 0x478   :  { %v12400_v11 = vor.u32 %v13659_v33, %v12397_v35  ;;  %v13635_v46 = vld [vmem:[#allocation10 + $0x14d4] sm:$0xf]  ;;  %v12083_v35 = vld [vmem:[#allocation10 + $0x1318] sm:$0xf] }
 0x479   :  { %8163 = vmatpush.bf16.msra.mxu3 %v12556_v39  ;;  %v12179_v39 = vld [vmem:[#allocation10 + $0x13d8] sm:$0xf]  ;;  %v12301_v26 = vld [vmem:[#allocation10 + $0x14f0] sm:$0xf0] }
 0x47a   :  { %8178 = vmatpush.bf16.msrb.mxu0 %v11728_v13  ;;  %v6365_v13 = vpop.f32.mrf.mxu3  ;;  %v12589_v33 = vld [vmem:[#allocation10 + $0x1730] sm:$0xf0]  ;;  %v12304_v44 = vor.u32 %v13635_v46, %v12301_v26  ;;  %v13672_v46 = vld [vmem:[#allocation10 + $0x15f4] sm:$0xf0] }
 0x47b   :  { %8189 = vmatpush.bf16.msrb.mxu1 %v12048_v50  ;;  %8152 = vmatpush.bf16.msra.mxu2 %v12236_v40  ;;  %v13608_v50 = vld [vmem:[#allocation10 + $0x13f4] sm:$0xf0]  ;;  %v12653_v40 = vld [vmem:[#allocation10 + $0x17b0] sm:$0xf0] }
 0x47c   :  { %v12180_v61 = vor.u32 %v13608_v50, %v12179_v39  ;;  %v12656_v15 = vor.u32 %v13723_v3, %v12653_v40  ;;  %v13699_v38 = vld [vmem:[#allocation10 + $0x16d4] sm:$0xf]  ;;  %v12084_v39 = vor.u32 %v13584_v6, %v12083_v35  ;;  %v13496_v13 = vld [vmem:[#allocation10 + $0x1074] sm:$0xf0] }
 0x47d   :  { %8164 = vmatpush.bf16.msra.mxu3 %v12524_v42  ;;  %v11827_v42 = vld [vmem:[#allocation10 + $0x1118] sm:$0xf]  ;;  %v12557_v52 = vld [vmem:[#allocation10 + $0x16f0] sm:$0xf0] }
 0x47e   :  { %8179 = vmatpush.bf16.msrb.mxu0 %v11696_v37  ;;  %v12148_v37 = vor.u32 %v13600_v28, %v12147_v8  ;;  %v11828_v29 = vor.u32 %v13520_v9, %v11827_v42  ;;  %v7973_v0 = vpop.f32.mrf.mxu0  ;;  %v12560_v59 = vor.u32 %v13699_v38, %v12557_v52  ;;  %v12237_v3 = vld [vmem:[#allocation10 + $0x1470] sm:$0xf0]  ;;  %v12403_v6 = vld [vmem:[#allocation10 + $0x1598] sm:$0xf] }
 0x47f   :  { %8190 = vmatpush.bf16.msrb.mxu1 %v12016_v18  ;;  %8153 = vmatpush.bf16.msra.mxu2 %v12204_v25  ;;  %v12333_v18 = vld [vmem:[#allocation10 + $0x1530] sm:$0xf0]  ;;  %v12624_v25 = vor.u32 %v13715_v2, %v12621_v63  ;;  %v13540_v2 = vld [vmem:[#allocation10 + $0x11dc] sm:$0xf] }
 0x480   :  { %v12336_v10 = vor.u32 %v13643_v16, %v12333_v18  ;;  %v13691_v9 = vld [vmem:[#allocation10 + $0x1694] sm:$0xf]  ;;  %v13568_v16 = vld [vmem:[#allocation10 + $0x12b4] sm:$0xf0]  ;;  %v11925_v63 = vld [vmem:[#allocation10 + $0x11f8] sm:$0xf0] }
 0x481   :  { %8165 = vmatpush.bf16.msra.mxu3 %v12492_v17  ;;  %8180 = vmatmul.bf16.vlgmr.msrb.gmra.mxu0 %v14251_v31  ;;  %v13707_v17 = vld [vmem:[#allocation10 + $0x1714] sm:$0xf]  ;;  %v11699_v18 = vld [vmem:[#allocation10 + $0x1018] sm:$0xf] }
 0x482   :  { %8224 = vmatpush.bf16.msra.mxu0 %v11924_v23  ;;  %8154 = vmatmul.bf16.vlgmr.msra.gmra.mxu2 %v14271_v47  ;;  %v13592_v23 = vld [vmem:[#allocation10 + $0x1374] sm:$0xf0]  ;;  %v12592_v57 = vor.u32 %v13707_v17, %v12589_v33  ;;  %v13683_v26 = vld [vmem:[#allocation10 + $0x1654] sm:$0xf] }
 0x483   :  { %8198 = vmatpush.bf16.msrb.mxu2 %v12432_v19  ;;  %8191 = vmatpush.bf16.msrb.mxu1 %v11984_v55  ;;  %v12116_v51 = vor.u32 %v13592_v23, %v12115_v12  ;;  %v11796_v19 = vor.u32 %v13512_v7, %v11795_v43  ;;  %v11763_v55 = vld [vmem:[#allocation10 + $0x1098] sm:$0xf]  ;;  %v13611_v23 = vld [vmem:[#allocation10 + $0x1414] sm:$0xf] }
 0x484   :  { %v11764_v50 = vor.u32 %v13504_v20, %v11763_v55  ;;  %v12435_v43 = vld [vmem:[#allocation10 + $0x15d8] sm:$0xf]  ;;  %v13532_v20 = vld [vmem:[#allocation10 + $0x119c] sm:$0xf]  ;;  %v12461_v52 = vld [vmem:[#allocation10 + $0x1630] sm:$0xf0] }
 0x485   :  { %8166 = vmatpush.bf16.msra.mxu3 %v12460_v21  ;;  %v11731_v21 = vld [vmem:[#allocation10 + $0x1058] sm:$0xf]  ;;  %v12436_v38 = vor.u32 %v13672_v46, %v12435_v43 }
 0x486   :  { %8225 = vmatpush.bf16.msra.mxu0 %v11892_v49  ;;  %v13627_v49 = vld [vmem:[#allocation10 + $0x1494] sm:$0xf]  ;;  %v7975_v28 = vpop.f32.mrf.mxu0  ;;  %v11732_v42 = vor.u32 %v13496_v13, %v11731_v21  ;;  %v11987_v17 = vld [vmem:[#allocation10 + $0x1258] sm:$0xf] }
 0x487   :  { %8199 = vmatpush.bf16.msrb.mxu2 %v12400_v11  ;;  %8192 = vmatpush.bf16.msrb.mxu1 %v11952_v60  ;;  %v13576_v11 = vld [vmem:[#allocation10 + $0x12f4] sm:$0xf0]  ;;  %v12272_v60 = vor.u32 %v13627_v49, %v12269_v53  ;;  %v7986_v56 = vpop.f32.mrf.mxu1 }
 0x488   :  { %8167 = vmatmul.bf16.vlgmr.msra.gmra.mxu3 %v14275_v14  ;;  %v14464_v8 = vadd.f32 %v7986_v56, %v7973_v0  ;;  %v12493_v0 = vld [vmem:[#allocation10 + $0x1670] sm:$0xf0]  ;;  %v13560_v33 = vld [vmem:[#allocation10 + $0x1274] sm:$0xf0] }
 0x489   :  { %8211 = vmatpush.bf16.msrb.mxu3 %v12688_v32  ;;  %v7947_v32 = vpop.f32.mrf.mxu2  ;;  %v13664_v55 = vld [vmem:[#allocation10 + $0x15b4] sm:$0xf0] }
 0x48a   :  { %8226 = vmatpush.bf16.msra.mxu0 %v11860_v62  ;;  %8193 = vmatmul.bf16.vlgmr.msrb.gmra.mxu1 %v14254_v27  ;;  %v13619_v62 = vld [vmem:[#allocation10 + $0x1454] sm:$0xf]  ;;  %v7948_v40 = vadd.f32 %v7947_v32, %v14452_v58  ;;  %v13552_v21 = vld [vmem:[#allocation10 + $0x1234] sm:$0xf0]  ;;  %v12404_v28 = vor.u32 %v13664_v55, %v12403_v6 }
 0x48b   :  { %8237 = vmatpush.bf16.msra.mxu1 %v12180_v61  ;;  %8200 = vmatpush.bf16.msrb.mxu2 %v12368_v36  ;;  %v12052_v61 = vor.u32 %v13576_v11, %v12051_v54  ;;  %v12525_v36 = vld [vmem:[#allocation10 + $0x16b0] sm:$0xf0]  ;;  %v7960_v7 = vpop.f32.mrf.mxu3  ;;  %v11988_v54 = vor.u32 %v13560_v33, %v11987_v17  ;;  %v11955_v11 = vld [vmem:[#allocation10 + $0x1218] sm:$0xf]  ;;  %v12117_v17 = vld [vmem:[#allocation10 + $0x1378] sm:$0xf0] }
 0x48c   :  { %v12528_v12 = vor.u32 %v13691_v9, %v12525_v36  ;;  %v12205_v58 = vld [vmem:[#allocation10 + $0x1430] sm:$0xf0]  ;;  %v12691_v13 = vld [vmem:[#allocation10 + $0x17d8] sm:$0xf]  ;;  %v11956_v36 = vor.u32 %v13552_v21, %v11955_v11  ;;  %v13508_v33 = vld [vmem:[#allocation10 + $0x10dc] sm:$0xf] }
 0x48d   :  { %8212 = vmatpush.bf16.msrb.mxu3 %v12656_v15  ;;  %v12019_v15 = vld [vmem:[#allocation10 + $0x1298] sm:$0xf]  ;;  %v12208_v35 = vor.u32 %v13611_v23, %v12205_v58  ;;  %v13516_v23 = vld [vmem:[#allocation10 + $0x111c] sm:$0xf]  ;;  %v14475_v21 = vld [vmem:[#allocation11] sm:$0xff] }
 0x48e   :  { %8227 = vmatpush.bf16.msra.mxu0 %v11828_v29  ;;  %v12240_v29 = vor.u32 %v13619_v62, %v12237_v3  ;;  %v13736_v56 = vld [vmem:[#allocation10 + $0x17f4] sm:$0xf0]  ;;  %v12181_v62 = vld [vmem:[#allocation10 + $0x13f8] sm:$0xf0] }
 0x48f   :  { %8238 = vmatpush.bf16.msra.mxu1 %v12148_v37  ;;  %8201 = vmatpush.bf16.msrb.mxu2 %v12336_v10  ;;  %v13488_v37 = vld [vmem:[#allocation10 + $0x1034] sm:$0xf0]  ;;  %v12020_v10 = vor.u32 %v13568_v16, %v12019_v15  ;;  %v7988_v53 = vpop.f32.mrf.mxu1  ;;  %v13524_v3 = vld [vmem:[#allocation10 + $0x115c] sm:$0xf]  ;;  %v12692_v15 = vor.u32 %v13736_v56, %v12691_v13 }
 0x490   :  { %v12371_v16 = vld [vmem:[#allocation10 + $0x1558] sm:$0xf]  ;;  %v11829_v58 = vld [vmem:[#allocation10 + $0x1138] sm:$0xf0] }
 0x491   :  { %8213 = vmatpush.bf16.msrb.mxu3 %v12624_v25  ;;  %v11700_v25 = vor.u32 %v13488_v37, %v11699_v18  ;;  %v7949_v49 = vpop.f32.mrf.mxu2  ;;  %v13656_v18 = vld [vmem:[#allocation10 + $0x1574] sm:$0xf0]  ;;  %v11765_v11 = vld [vmem:[#allocation10 + $0x10b8] sm:$0xf0] }
 0x492   :  { %8228 = vmatpush.bf16.msra.mxu0 %v11796_v19  ;;  %v11928_v19 = vor.u32 %v13540_v2, %v11925_v63  ;;  %v13728_v2 = vld [vmem:[#allocation10 + $0x17b4] sm:$0xf0]  ;;  %v13596_v63 = vld [vmem:[#allocation10 + $0x139c] sm:$0xf]  ;;  %v12372_v43 = vor.u32 %v13656_v18, %v12371_v16  ;;  %v8354_v16 = vperm.slane %v14475_v21, 0 }
 0x493   :  { %8239 = vmatpush.bf16.msra.mxu1 %v12116_v51  ;;  %8202 = vmatpush.bf16.msrb.mxu2 %v12304_v44  ;;  %v7961_v51 = vadd.f32 %v7960_v7, %v7948_v40  ;;  %v11893_v44 = vld [vmem:[#allocation10 + $0x11b8] sm:$0xf0]  ;;  %v7962_v9 = vpop.f32.mrf.mxu3  ;;  %v13632_v56 = vld [vmem:[#allocation10 + $0x14b4] sm:$0xf0] }
 0x494   :  { %v11896_v32 = vor.u32 %v13532_v20, %v11893_v44  ;;  %v11861_v40 = vld [vmem:[#allocation10 + $0x1178] sm:$0xf0]  ;;  %v12307_v20 = vld [vmem:[#allocation10 + $0x14d8] sm:$0xf] }
 0x495   :  { %8214 = vmatpush.bf16.msrb.mxu3 %v12592_v57  ;;  %v8328_v57 = vrot.slane %v7961_v51, 1  ;;  %v11864_v37 = vor.u32 %v13524_v3, %v11861_v40  ;;  %v13720_v51 = vld [vmem:[#allocation10 + $0x1774] sm:$0xf0]  ;;  %v13492_v9 = vld [vmem:[#allocation10 + $0x105c] sm:$0xf] }
 0x496   :  { %8229 = vmatpush.bf16.msra.mxu0 %v11764_v50  ;;  %v13675_v50 = vld [vmem:[#allocation10 + $0x1614] sm:$0xf]  ;;  %v13640_v44 = vld [vmem:[#allocation10 + $0x14f4] sm:$0xf0] }
 0x497   :  { %8240 = vmatpush.bf16.msra.mxu1 %v12084_v39  ;;  %8203 = vmatpush.bf16.msrb.mxu2 %v12272_v60  ;;  %v12496_v39 = vor.u32 %v13683_v26, %v12493_v0  ;;  %v8336_v60 = vsel %vm14113_vm1, 0.0, %v8328_v57  ;;  %v11832_v26 = vor.u32 %v13516_v23, %v11829_v58  ;;  %v12627_v0 = vld [vmem:[#allocation10 + $0x1758] sm:$0xf]  ;;  %v12308_v13 = vor.u32 %v13640_v44, %v12307_v20  ;;  %v12437_v20 = vld [vmem:[#allocation10 + $0x15f8] sm:$0xf0] }
 0x498   :  { %v12628_v55 = vor.u32 %v13720_v51, %v12627_v0  ;;  %v13704_v40 = vld [vmem:[#allocation10 + $0x16f4] sm:$0xf0]  ;;  %v11701_v0 = vld [vmem:[#allocation10 + $0x1038] sm:$0xf0] }
 0x499   :  { %8215 = vmatpush.bf16.msrb.mxu3 %v12560_v59  ;;  %v13604_v59 = vld [vmem:[#allocation10 + $0x13dc] sm:$0xf]  ;;  %v12499_v44 = vld [vmem:[#allocation10 + $0x1658] sm:$0xf] }
 0x49a   :  { %8230 = vmatpush.bf16.msra.mxu0 %v11732_v42  ;;  %v12464_v42 = vor.u32 %v13675_v50, %v12461_v52  ;;  %v13580_v50 = vld [vmem:[#allocation10 + $0x131c] sm:$0xf] }
 0x49b   :  { %8241 = vmatpush.bf16.msra.mxu1 %v12052_v61  ;;  %8204 = vmatpush.bf16.msrb.mxu2 %v12240_v29  ;;  %v14469_v61 = vadd.f32 %v8336_v60, %v14373_v48  ;;  %v12184_v48 = vor.u32 %v13604_v59, %v12181_v62  ;;  %v12659_v29 = vld [vmem:[#allocation10 + $0x1798] sm:$0xf]  ;;  %v12085_v52 = vld [vmem:[#allocation10 + $0x1338] sm:$0xf0] }
 0x49c   :  { %v12660_v7 = vor.u32 %v13728_v2, %v12659_v29  ;;  %v12563_v59 = vld [vmem:[#allocation10 + $0x16d8] sm:$0xf]  ;;  %v12088_v62 = vor.u32 %v13580_v50, %v12085_v52  ;;  %v11989_v50 = vld [vmem:[#allocation10 + $0x1278] sm:$0xf0]  ;;  %v14484_v52 = vld [vmem:[#allocation14] sm:$0xff] }
 0x49d   :  { %8216 = vmatpush.bf16.msrb.mxu3 %v12528_v12  ;;  %v12149_v12 = vld [vmem:[#allocation10 + $0x13b8] sm:$0xf0]  ;;  %v12243_v2 = vld [vmem:[#allocation10 + $0x1458] sm:$0xf] }
 0x49e   :  { %8231 = vmatpush.bf16.msra.mxu0 %v11700_v25  ;;  %v13648_v25 = vld [vmem:[#allocation10 + $0x1534] sm:$0xf0]  ;;  %v12152_v46 = vor.u32 %v13596_v63, %v12149_v12  ;;  %v8025_v57 = vpop.f32.mrf.mxu0 }
 0x49f   :  { %8242 = vmatpush.bf16.msra.mxu1 %v12020_v10  ;;  %8205 = vmatpush.bf16.msrb.mxu2 %v12208_v35  ;;  %v12339_v10 = vld [vmem:[#allocation10 + $0x1518] sm:$0xf]  ;;  %v11797_v35 = vld [vmem:[#allocation10 + $0x10f8] sm:$0xf0] }
 0x4a0   :  { %v12340_v6 = vor.u32 %v13648_v25, %v12339_v10  ;;  %v11800_v53 = vor.u32 %v13508_v33, %v11797_v35  ;;  %v13624_v63 = vld [vmem:[#allocation10 + $0x1474] sm:$0xf0]  ;;  %v13564_v25 = vld [vmem:[#allocation10 + $0x129c] sm:$0xf] }
 0x4a1   :  { %8217 = vmatpush.bf16.msrb.mxu3 %v12496_v39  ;;  %8232 = vmatmul.bf16.vlgmr.msra.gmra.mxu0 %v14251_v31  ;;  %v13712_v39 = vld [vmem:[#allocation10 + $0x1734] sm:$0xf0]  ;;  %v12244_v51 = vor.u32 %v13624_v63, %v12243_v2  ;;  %v13668_v35 = vld [vmem:[#allocation10 + $0x15dc] sm:$0xf]  ;;  %v8439_v2 = vperm.slane %v14484_v52, 0 }
 0x4a2   :  { %8276 = vmatpush.bf16.msrb.mxu0 %v11928_v19  ;;  %8206 = vmatmul.bf16.vlgmr.msrb.gmra.mxu2 %v14271_v47  ;;  %v13588_v19 = vld [vmem:[#allocation10 + $0x135c] sm:$0xf]  ;;  %v13696_v10 = vld [vmem:[#allocation10 + $0x16b4] sm:$0xf0] }
 0x4a3   :  { %8250 = vmatpush.bf16.msra.mxu2 %v12436_v38  ;;  %8243 = vmatpush.bf16.msra.mxu1 %v11988_v54  ;;  %v12120_v49 = vor.u32 %v13588_v19, %v12117_v17  ;;  %v12595_v38 = vld [vmem:[#allocation10 + $0x1718] sm:$0xf]  ;;  %v13500_v54 = vld [vmem:[#allocation10 + $0x109c] sm:$0xf] }
 0x4a4   :  { %v12596_v60 = vor.u32 %v13712_v39, %v12595_v38  ;;  %v11768_v3 = vor.u32 %v13500_v54, %v11765_v11  ;;  %v12211_v17 = vld [vmem:[#allocation10 + $0x1418] sm:$0xf]  ;;  %v13556_v39 = vld [vmem:[#allocation10 + $0x125c] sm:$0xf] }
 0x4a5   :  { %8218 = vmatpush.bf16.msrb.mxu3 %v12464_v42  ;;  %v12053_v42 = vld [vmem:[#allocation10 + $0x12f8] sm:$0xf0]  ;;  %v7999_v18 = vpop.f32.mrf.mxu2  ;;  %v13616_v33 = vld [vmem:[#allocation10 + $0x1434] sm:$0xf0] }
 0x4a6   :  { %8277 = vmatpush.bf16.msrb.mxu0 %v11896_v32  ;;  %v12275_v32 = vld [vmem:[#allocation10 + $0x1498] sm:$0xf]  ;;  %v8000_v12 = vadd.f32 %v7999_v18, %v14464_v8  ;;  %v8027_v58 = vpop.f32.mrf.mxu0  ;;  %v12212_v11 = vor.u32 %v13616_v33, %v12211_v17  ;;  %v8440_v17 = vperm.slane %v14484_v52, 1 }
 0x4a7   :  { %8251 = vmatpush.bf16.msra.mxu2 %v12404_v28  ;;  %8244 = vmatpush.bf16.msra.mxu1 %v11956_v36  ;;  %v13572_v28 = vld [vmem:[#allocation10 + $0x12dc] sm:$0xf] }
 0x4a8   :  { %8219 = vmatmul.bf16.vlgmr.msrb.gmra.mxu3 %v14275_v14  ;;  %v11733_v36 = vld [vmem:[#allocation10 + $0x1078] sm:$0xf0]  ;;  %v12056_v29 = vor.u32 %v13572_v28, %v12053_v42  ;;  %v13680_v28 = vld [vmem:[#allocation10 + $0x1634] sm:$0xf0]  ;;  %v11992_v42 = vor.u32 %v13556_v39, %v11989_v50 }
 0x4a9   :  { %8263 = vmatpush.bf16.msra.mxu3 %v12692_v15  ;;  %v12276_v15 = vor.u32 %v13632_v56, %v12275_v32  ;;  %v14486_v54 = vld [vmem:[#allocation16] sm:$0xff]  ;;  %v8355_v56 = vperm.slane %v14475_v21, 1 }
 0x4aa   :  { %8278 = vmatpush.bf16.msrb.mxu0 %v11864_v37  ;;  %8245 = vmatmul.bf16.vlgmr.msra.gmra.mxu1 %v14254_v27  ;;  %v12564_v37 = vor.u32 %v13704_v40, %v12563_v59  ;;  %v12467_v40 = vld [vmem:[#allocation10 + $0x1618] sm:$0xf]  ;;  %v8474_v63 = vperm.slane %v14486_v54, 0  ;;  %v8475_v33 = vperm.slane %v14486_v54, 1 }
 0x4ab   :  { %8289 = vmatpush.bf16.msrb.mxu1 %v12184_v48  ;;  %8252 = vmatpush.bf16.msra.mxu2 %v12372_v43  ;;  %v8038_v48 = vpop.f32.mrf.mxu1  ;;  %v11736_v43 = vor.u32 %v13492_v9, %v11733_v36  ;;  %v8012_v8 = vpop.f32.mrf.mxu3  ;;  %v13548_v9 = vld [vmem:[#allocation10 + $0x121c] sm:$0xf]  ;;  %v12468_v58 = vor.u32 %v13680_v28, %v12467_v40 }
 0x4ac   :  { %v14479_v23 = vadd.f32 %v8038_v48, %v8025_v57  ;;  %v13688_v57 = vld [vmem:[#allocation10 + $0x1674] sm:$0xf0]  ;;  %v8013_v38 = vadd.f32 %v8012_v8, %v8000_v12  ;;  %v11957_v36 = vld [vmem:[#allocation10 + $0x1238] sm:$0xf0] }
 0x4ad   :  { %8264 = vmatpush.bf16.msra.mxu3 %v12660_v7  ;;  %v12531_v7 = vld [vmem:[#allocation10 + $0x1698] sm:$0xf]  ;;  %v8001_v59 = vpop.f32.mrf.mxu2  ;;  %v12693_v48 = vld [vmem:[#allocation10 + $0x17f8] sm:$0xf0] }
 0x4ae   :  { %8279 = vmatpush.bf16.msrb.mxu0 %v11832_v26  ;;  %v13484_v26 = vld [vmem:[#allocation10 + $0x101c] sm:$0xf]  ;;  %v12532_v19 = vor.u32 %v13696_v10, %v12531_v7  ;;  %v8329_v32 = vrot.slane %v8013_v38, 1 }
 0x4af   :  { %8290 = vmatpush.bf16.msrb.mxu1 %v12152_v46  ;;  %8253 = vmatpush.bf16.msra.mxu2 %v12340_v6  ;;  %v12021_v46 = vld [vmem:[#allocation10 + $0x12b8] sm:$0xf0] }
 0x4b0   :  { %v12024_v6 = vor.u32 %v13564_v25, %v12021_v46  ;;  %v8337_v18 = vsel %vm14113_vm1, 0.0, %v8329_v32  ;;  %v11960_v25 = vor.u32 %v13548_v9, %v11957_v36  ;;  %v13708_v28 = vld [vmem:[#allocation10 + $0x171c] sm:$0xf] }
 0x4b1   :  { %8265 = vmatpush.bf16.msra.mxu3 %v12628_v55  ;;  %v11704_v55 = vor.u32 %v13484_v26, %v11701_v0  ;;  %v12373_v26 = vld [vmem:[#allocation10 + $0x1578] sm:$0xf0] }
 0x4b2   :  { %8280 = vmatpush.bf16.msrb.mxu0 %v11800_v53  ;;  %v14482_v53 = vld [vmem:[#allocation13] sm:$0xff]  ;;  %v13724_v0 = vld [vmem:[#allocation10 + $0x179c] sm:$0xf] }
 0x4b3   :  { %8291 = vmatpush.bf16.msrb.mxu1 %v12120_v49  ;;  %8254 = vmatpush.bf16.msra.mxu2 %v12308_v13  ;;  %v8370_v49 = vadd.f32 %v8354_v16, %v14469_v61  ;;  %v13660_v13 = vld [vmem:[#allocation10 + $0x159c] sm:$0xf]  ;;  %v12440_v61 = vor.u32 %v13668_v35, %v12437_v20  ;;  %v8014_v10 = vpop.f32.mrf.mxu3 }
 0x4b4   :  { %v13692_v10 = vld [vmem:[#allocation10 + $0x169c] sm:$0xf] }
 0x4b5   :  { %8266 = vmatpush.bf16.msra.mxu3 %v12596_v60  ;;  %v12405_v60 = vld [vmem:[#allocation10 + $0x15b8] sm:$0xf0]  ;;  %v8386_v16 = vmul.f32 0.2, %v8370_v49  ;;  %vm8378_vm11 = vcmp.ge.f32.partialorder %v8370_v49, 0.0 }
 0x4b6   :  { %8281 = vmatpush.bf16.msrb.mxu0 %v11768_v3  ;;  %v12500_v3 = vor.u32 %v13688_v57, %v12499_v44  ;;  %v12408_v12 = vor.u32 %v13660_v13, %v12405_v60  ;;  %v12629_v13 = vld [vmem:[#allocation10 + $0x1778] sm:$0xf0] }
 0x4b7   :  { %8292 = vmatpush.bf16.msrb.mxu1 %v12088_v62  ;;  %8255 = vmatpush.bf16.msra.mxu2 %v12276_v15  ;;  %v8040_v62 = vpop.f32.mrf.mxu1  ;;  %v13732_v15 = vld [vmem:[#allocation10 + $0x17dc] sm:$0xf] }
 0x4b8   :  { %v12696_v46 = vor.u32 %v13732_v15, %v12693_v48  ;;  %v13628_v15 = vld [vmem:[#allocation10 + $0x149c] sm:$0xf] }
 0x4b9   :  { %8267 = vmatpush.bf16.msra.mxu3 %v12564_v37  ;;  %v8404_v37 = vperm.slane %v14482_v53, 0 }
 0x4ba   :  { %8282 = vmatpush.bf16.msrb.mxu0 %v11736_v43  ;;  %v13652_v43 = vld [vmem:[#allocation10 + $0x155c] sm:$0xf] }
 0x4bb   :  { %8293 = vmatpush.bf16.msrb.mxu1 %v12056_v29  ;;  %8256 = vmatpush.bf16.msra.mxu2 %v12244_v51  ;;  %v8345_v29 = vadd.f32 %v8337_v18, %v14385_v4  ;;  %v12661_v4 = vld [vmem:[#allocation10 + $0x17b8] sm:$0xf0]  ;;  %v8394_v51 = vsel %vm8378_vm11, %v8370_v49, %v8386_v16 }
 0x4bc   :  { %v12664_v8 = vor.u32 %v13724_v0, %v12661_v4  ;;  %v8420_v20 = vmul.f32 %v8404_v37, %v8394_v51  ;;  %v8455_v44 = vmul.f32 %v8439_v2, %v8394_v51  ;;  %v8490_v49 = vmul.f32 %v8474_v63, %v8394_v51  ;;  %v13700_v16 = vld [vmem:[#allocation10 + $0x16dc] sm:$0xf] }
 0x4bd   :  { %8268 = vmatpush.bf16.msra.mxu3 %v12532_v19  ;;  %v8371_v7 = vadd.f32 %v8355_v56, %v8345_v29  ;;  %v8405_v19 = vperm.slane %v14482_v53, 1  ;;  %v12565_v18 = vld [vmem:[#allocation10 + $0x16f8] sm:$0xf0] }
 0x4be   :  { %8283 = vmatpush.bf16.msrb.mxu0 %v11704_v55  ;;  %v12341_v55 = vld [vmem:[#allocation10 + $0x1538] sm:$0xf0]  ;;  %v8077_v40 = vpop.f32.mrf.mxu0  ;;  %v12568_v2 = vor.u32 %v13700_v16, %v12565_v18 }
 0x4bf   :  { %8294 = vmatpush.bf16.msrb.mxu1 %v12024_v6  ;;  %8257 = vmatpush.bf16.msra.mxu2 %v12212_v11  ;;  %vm8379_vm12 = vcmp.ge.f32.partialorder %v8371_v7, 0.0  ;;  %v8387_v35 = vmul.f32 0.2, %v8371_v7  ;;  %v13644_v6 = vld [vmem:[#allocation10 + $0x151c] sm:$0xf] }
 0x4c0   :  { %v13716_v11 = vld [vmem:[#allocation10 + $0x175c] sm:$0xf]  ;;  %v12344_v60 = vor.u32 %v13644_v6, %v12341_v55  ;;  %v8356_v55 = vperm.slane %v14475_v21, 2 }
 0x4c1   :  { %8269 = vmatpush.bf16.msra.mxu3 %v12500_v3  ;;  %8284 = vmatmul.bf16.vlgmr.msrb.gmra.mxu0 %v14251_v31  ;;  %v12376_v31 = vor.u32 %v13652_v43, %v12373_v26  ;;  %v8395_v57 = vsel %vm8379_vm12, %v8371_v7, %v8387_v35  ;;  %v12632_v62 = vor.u32 %v13716_v11, %v12629_v13  ;;  %v12309_v3 = vld [vmem:[#allocation10 + $0x14f8] sm:$0xf0]  ;;  %v8476_v11 = vperm.slane %v14486_v54, 2 }
 0x4c2   :  { %8258 = vmatmul.bf16.vlgmr.msra.gmra.mxu2 %v14271_v47  ;;  %v8421_v38 = vmul.f32 %v8405_v19, %v8395_v57  ;;  %v8456_v39 = vmul.f32 %v8440_v17, %v8395_v57  ;;  %v8491_v50 = vmul.f32 %v8475_v33, %v8395_v57  ;;  %v13620_v63 = vld [vmem:[#allocation10 + $0x145c] sm:$0xf]  ;;  %v8441_v13 = vperm.slane %v14484_v52, 2 }
 0x4c3   :  { %8302 = vmatpush.bf16.msrb.mxu2 %v12440_v61  ;;  %8295 = vmatpush.bf16.msrb.mxu1 %v11992_v42  ;;  %v13636_v61 = vld [vmem:[#allocation10 + $0x14dc] sm:$0xf] }
 0x4c4   :  { %v14503_v32 = vadd.f32 %v8456_v39, %v8455_v44  ;;  %v14505_v56 = vadd.f32 %v8421_v38, %v8420_v20  ;;  %v14507_v59 = vadd.f32 %v8491_v50, %v8490_v49  ;;  %v12597_v42 = vld [vmem:[#allocation10 + $0x1738] sm:$0xf0]  ;;  %v12312_v9 = vor.u32 %v13636_v61, %v12309_v3 }
 0x4c5   :  { %8270 = vmatpush.bf16.msra.mxu3 %v12468_v58  ;;  %v12600_v36 = vor.u32 %v13708_v28, %v12597_v42  ;;  %v8051_v37 = vpop.f32.mrf.mxu2  ;;  %v13612_v0 = vld [vmem:[#allocation10 + $0x141c] sm:$0xf] }
 0x4c6   :  { %v8052_v58 = vadd.f32 %v8051_v37, %v14479_v23  ;;  %v8079_v7 = vpop.f32.mrf.mxu0  ;;  %v12213_v4 = vld [vmem:[#allocation10 + $0x1438] sm:$0xf0] }
 0x4c7   :  { %8303 = vmatpush.bf16.msrb.mxu2 %v12408_v12  ;;  %8296 = vmatpush.bf16.msrb.mxu1 %v11960_v25  ;;  %v8090_v29 = vpop.f32.mrf.mxu1  ;;  %v12245_v12 = vld [vmem:[#allocation10 + $0x1478] sm:$0xf0]  ;;  %v12216_v35 = vor.u32 %v13612_v0, %v12213_v4  ;;  %v8477_v7 = vperm.slane %v14486_v54, 3 }
 0x4c8   :  { %8271 = vmatmul.bf16.vlgmr.msra.gmra.mxu3 %v14275_v14  ;;  %v8091_v43 = vadd.f32 %v8090_v29, %v8077_v40  ;;  %v12533_v25 = vld [vmem:[#allocation10 + $0x16b8] sm:$0xf0] }
 0x4c9   :  { %8315 = vmatpush.bf16.msrb.mxu3 %v12696_v46  ;;  %v12248_v46 = vor.u32 %v13620_v63, %v12245_v12  ;;  %v12536_v26 = vor.u32 %v13692_v10, %v12533_v25  ;;  %v13684_v19 = vld [vmem:[#allocation10 + $0x165c] sm:$0xf]  ;;  %v8357_v12 = vperm.slane %v14475_v21, 3 }
 0x4ca   :  { %8297 = vmatmul.bf16.vlgmr.msrb.gmra.mxu1 %v14254_v27  ;;  %v12277_v27 = vld [vmem:[#allocation10 + $0x14b8] sm:$0xf0] }
 0x4cb   :  { %8304 = vmatpush.bf16.msrb.mxu2 %v12376_v31  ;;  %v12280_v48 = vor.u32 %v13628_v15, %v12277_v27  ;;  %v8064_v51 = vpop.f32.mrf.mxu3  ;;  %v12501_v17 = vld [vmem:[#allocation10 + $0x1678] sm:$0xf0] }
 0x4cc   :  { %v8065_v33 = vadd.f32 %v8064_v51, %v8052_v58  ;;  %v12504_v23 = vor.u32 %v13684_v19, %v12501_v17  ;;  %v13676_v20 = vld [vmem:[#allocation10 + $0x161c] sm:$0xf]  ;;  %v8442_v58 = vperm.slane %v14484_v52, 3 }
 0x4cd   :  { %8316 = vmatpush.bf16.msrb.mxu3 %v12664_v8  ;;  %v8053_v8 = vpop.f32.mrf.mxu2  ;;  %v12469_v44 = vld [vmem:[#allocation10 + $0x1638] sm:$0xf0] }
 0x4ce   :  { %v8330_v31 = vrot.slane %v8065_v33, 1  ;;  %v12472_v38 = vor.u32 %v13676_v20, %v12469_v44 }
 0x4cf   :  { %8305 = vmatpush.bf16.msrb.mxu2 %v12344_v60  ;;  %v8092_v6 = vpop.f32.mrf.mxu1  ;;  %v8406_v60 = vperm.slane %v14482_v53, 2 }
 0x4d0   :  { %v8338_v57 = vsel %vm14113_vm1, 0.0, %v8330_v31 }
 0x4d1   :  { %8317 = vmatpush.bf16.msrb.mxu3 %v12632_v62  ;;  %v8346_v49 = vadd.f32 %v8338_v57, %v14397_v34  ;;  %v8358_v57 = vperm.slane %v14475_v21, 4 }
 0x4d3   :  { %8306 = vmatpush.bf16.msrb.mxu2 %v12312_v9  ;;  %v8372_v39 = vadd.f32 %v8356_v55, %v8346_v49  ;;  %v8066_v50 = vpop.f32.mrf.mxu3 }
 0x4d5   :  { %8318 = vmatpush.bf16.msrb.mxu3 %v12600_v36  ;;  %vm8380_vm13 = vcmp.ge.f32.partialorder %v8372_v39, 0.0  ;;  %v8388_v62 = vmul.f32 0.2, %v8372_v39 }
 0x4d7   :  { %8307 = vmatpush.bf16.msrb.mxu2 %v12280_v48  ;;  %v8396_v61 = vsel %vm8380_vm13, %v8372_v39, %v8388_v62 }
 0x4d8   :  { %v8492_v3 = vmul.f32 %v8476_v11, %v8396_v61  ;;  %v8457_v40 = vmul.f32 %v8441_v13, %v8396_v61  ;;  %v8422_v34 = vmul.f32 %v8406_v60, %v8396_v61  ;;  %v8443_v11 = vperm.slane %v14484_v52, 4 }
 0x4d9   :  { %8319 = vmatpush.bf16.msrb.mxu3 %v12568_v2  ;;  %v8408_v13 = vperm.slane %v14482_v53, 4  ;;  %v8478_v60 = vperm.slane %v14486_v54, 4 }
 0x4da   :  { %v8464_v28 = vadd.f32 %v14503_v32, %v8457_v40  ;;  %v8429_v42 = vadd.f32 %v14505_v56, %v8422_v34  ;;  %v8499_v9 = vadd.f32 %v14507_v59, %v8492_v3 }
 0x4db   :  { %8308 = vmatpush.bf16.msrb.mxu2 %v12248_v46 }
 0x4dd   :  { %8320 = vmatpush.bf16.msrb.mxu3 %v12536_v26 }
 0x4df   :  { %8309 = vmatpush.bf16.msrb.mxu2 %v12216_v35 }
 0x4e1   :  { %8321 = vmatpush.bf16.msrb.mxu3 %v12504_v23 }
 0x4e2   :  { %8310 = vmatmul.bf16.vlgmr.msrb.gmra.mxu2 %v14271_v47  ;;  %v8129_v47 = vpop.f32.mrf.mxu0 }
 0x4e5   :  { %8322 = vmatpush.bf16.msrb.mxu3 %v12472_v38  ;;  %v8103_v36 = vpop.f32.mrf.mxu2 }
 0x4e6   :  { %v8104_v27 = vadd.f32 %v8103_v36, %v8091_v43  ;;  %v8407_v43 = vperm.slane %v14482_v53, 3 }
 0x4e7   :  { %v8142_v15 = vpop.f32.mrf.mxu1 }
 0x4e8   :  { %8323 = vmatmul.bf16.vlgmr.msrb.gmra.mxu3 %v14275_v14  ;;  %v8143_v16 = vadd.f32 %v8142_v15, %v8129_v47 }
 0x4ea   :  { %v8131_v18 = vpop.f32.mrf.mxu0 }
 0x4eb   :  { %v8116_v48 = vpop.f32.mrf.mxu3 }
 0x4ec   :  { %v8117_v37 = vadd.f32 %v8116_v48, %v8104_v27 }
 0x4ed   :  { %v8105_v2 = vpop.f32.mrf.mxu2 }
 0x4ee   :  { %v8331_v29 = vrot.slane %v8117_v37, 1  ;;  %v8359_v2 = vperm.slane %v14475_v21, 5 }
 0x4ef   :  { %v8144_v63 = vpop.f32.mrf.mxu1 }
 0x4f0   :  { %v8339_v14 = vsel %vm14113_vm1, 0.0, %v8331_v29 }
 0x4f1   :  { %v8347_v32 = vadd.f32 %v8339_v14, %v14409_v41 }
 0x4f3   :  { %v8373_v56 = vadd.f32 %v8357_v12, %v8347_v32  ;;  %v8118_v59 = vpop.f32.mrf.mxu3 }
 0x4f4   :  { %v8409_v59 = vperm.slane %v14482_v53, 5 }
 0x4f5   :  { %vm8381_vm14 = vcmp.ge.f32.partialorder %v8373_v56, 0.0  ;;  %v8389_v10 = vmul.f32 0.2, %v8373_v56 }
 0x4f7   :  { %v8397_v25 = vsel %vm8381_vm14, %v8373_v56, %v8389_v10  ;;  %v8444_v56 = vperm.slane %v14484_v52, 5 }
 0x4f8   :  { %v8458_v46 = vmul.f32 %v8442_v58, %v8397_v25  ;;  %v8423_v26 = vmul.f32 %v8407_v43, %v8397_v25  ;;  %v8493_v0 = vmul.f32 %v8477_v7, %v8397_v25  ;;  %v8479_v58 = vperm.slane %v14486_v54, 5 }
 0x4fa   :  { %v8465_v4 = vadd.f32 %v8464_v28, %v8458_v46  ;;  %v8430_v51 = vadd.f32 %v8429_v42, %v8423_v26  ;;  %v8500_v19 = vadd.f32 %v8499_v9, %v8493_v0 }
 0x4fe   :  { %v8181_v17 = vpop.f32.mrf.mxu0 }
 0x505   :  { %v8155_v33 = vpop.f32.mrf.mxu2 }
 0x506   :  { %v8156_v35 = vadd.f32 %v8155_v33, %v8143_v16  ;;  %v8183_v8 = vpop.f32.mrf.mxu0 }
 0x507   :  { %v8194_v41 = vpop.f32.mrf.mxu1 }
 0x508   :  { %v8195_v31 = vadd.f32 %v8194_v41, %v8181_v17 }
 0x50b   :  { %v8168_v6 = vpop.f32.mrf.mxu3 }
 0x50c   :  { %v8169_v23 = vadd.f32 %v8168_v6, %v8156_v35 }
 0x50d   :  { %v8157_v20 = vpop.f32.mrf.mxu2 }
 0x50e   :  { %v8332_v55 = vrot.slane %v8169_v23, 1 }
 0x50f   :  { %v8196_v44 = vpop.f32.mrf.mxu1 }
 0x510   :  { %v8340_v49 = vsel %vm14113_vm1, 0.0, %v8332_v55  ;;  %v8360_v55 = vperm.slane %v14475_v21, 6 }
 0x511   :  { %v8348_v38 = vadd.f32 %v8340_v49, %v14421_v24 }
 0x513   :  { %v8374_v39 = vadd.f32 %v8358_v57, %v8348_v38  ;;  %v8170_v50 = vpop.f32.mrf.mxu3  ;;  %v8445_v38 = vperm.slane %v14484_v52, 6 }
 0x514   :  { %v8480_v50 = vperm.slane %v14486_v54, 6 }
 0x515   :  { %vm8382_vm15 = vcmp.ge.f32.partialorder %v8374_v39, 0.0  ;;  %v8390_v62 = vmul.f32 0.2, %v8374_v39 }
 0x517   :  { %v8398_v61 = vsel %vm8382_vm15, %v8374_v39, %v8390_v62  ;;  %v8410_v39 = vperm.slane %v14482_v53, 6 }
 0x518   :  { %v8459_v3 = vmul.f32 %v8443_v11, %v8398_v61  ;;  %v8424_v40 = vmul.f32 %v8408_v13, %v8398_v61  ;;  %v8494_v34 = vmul.f32 %v8478_v60, %v8398_v61 }
 0x51a   :  { %v8466_v28 = vadd.f32 %v8465_v4, %v8459_v3  ;;  %v8431_v42 = vadd.f32 %v8430_v51, %v8424_v40  ;;  %v8501_v9 = vadd.f32 %v8500_v19, %v8494_v34 }
 0x51e   :  { %v8233_v47 = vpop.f32.mrf.mxu0 }
 0x525   :  { %v8207_v36 = vpop.f32.mrf.mxu2 }
 0x526   :  { %v8235_v15 = vpop.f32.mrf.mxu0  ;;  %v8208_v27 = vadd.f32 %v8207_v36, %v8195_v31 }
 0x527   :  { %v8246_v24 = vpop.f32.mrf.mxu1  ;;  %v8361_v15 = vperm.slane %v14475_v21, 7 }
 0x528   :  { %v8247_v33 = vadd.f32 %v8246_v24, %v8233_v47 }
 0x52b   :  { %v8220_v16 = vpop.f32.mrf.mxu3 }
 0x52c   :  { %v8221_v18 = vadd.f32 %v8220_v16, %v8208_v27 }
 0x52d   :  { %v8209_v37 = vpop.f32.mrf.mxu2 }
 0x52e   :  { %v8333_v48 = vrot.slane %v8221_v18, 1  ;;  %v8446_v37 = vperm.slane %v14484_v52, 7 }
 0x52f   :  { %v8248_v29 = vpop.f32.mrf.mxu1 }
 0x530   :  { %v8341_v63 = vsel %vm14113_vm1, 0.0, %v8333_v48  ;;  %v8411_v29 = vperm.slane %v14482_v53, 7 }
 0x531   :  { %v8349_v12 = vadd.f32 %v8341_v63, %v14433_v5 }
 0x533   :  { %v8375_v14 = vadd.f32 %v8359_v2, %v8349_v12  ;;  %v8222_v32 = vpop.f32.mrf.mxu3  ;;  %v8481_v2 = vperm.slane %v14486_v54, 7 }
 0x535   :  { %v8391_v43 = vmul.f32 0.2, %v8375_v14  ;;  %vm8383_vm0 = vcmp.ge.f32.partialorder %v8375_v14, 0.0 }
 0x537   :  { %v8399_v7 = vsel %vm8383_vm0, %v8375_v14, %v8391_v43 }
 0x538   :  { %v8460_v10 = vmul.f32 %v8444_v56, %v8399_v7  ;;  %v8425_v25 = vmul.f32 %v8409_v59, %v8399_v7  ;;  %v8495_v46 = vmul.f32 %v8479_v58, %v8399_v7 }
 0x53a   :  { %v8467_v26 = vadd.f32 %v8466_v28, %v8460_v10  ;;  %v8432_v0 = vadd.f32 %v8431_v42, %v8425_v25  ;;  %v8502_v4 = vadd.f32 %v8501_v9, %v8495_v46  ;;  %v13752_v25 = vld [vmem:[#allocation2] ss:$0 sm:$0xff] }
 0x53e   :  { %v8285_v51 = vpop.f32.mrf.mxu0 }
 0x545   :  { %v8259_v19 = vpop.f32.mrf.mxu2 }
 0x546   :  { %v8287_v17 = vpop.f32.mrf.mxu0  ;;  %v8260_v41 = vadd.f32 %v8259_v19, %v8247_v33 }
 0x547   :  { %v8298_v5 = vpop.f32.mrf.mxu1 }
 0x548   :  { %v8299_v42 = vadd.f32 %v8298_v5, %v8285_v51 }
 0x54b   :  { %v8272_v35 = vpop.f32.mrf.mxu3 }
 0x54c   :  { %v8273_v31 = vadd.f32 %v8272_v35, %v8260_v41 }
 0x54d   :  { %v8261_v6 = vpop.f32.mrf.mxu2 }
 0x54e   :  { %v8334_v8 = vrot.slane %v8273_v31, 1 }
 0x54f   :  { %v8300_v23 = vpop.f32.mrf.mxu1 }
 0x550   :  { %v8342_v20 = vsel %vm14113_vm1, 0.0, %v8334_v8 }
 0x551   :  { %v8350_v44 = vadd.f32 %v8342_v20, %v14445_v22 }
 0x553   :  { %v8376_v57 = vadd.f32 %v8360_v55, %v8350_v44  ;;  %v8274_v49 = vpop.f32.mrf.mxu3 }
 0x555   :  { %v8392_v11 = vmul.f32 0.2, %v8376_v57  ;;  %vm8384_vm2 = vcmp.ge.f32.partialorder %v8376_v57, 0.0 }
 0x557   :  { %v8400_v13 = vsel %vm8384_vm2, %v8376_v57, %v8392_v11 }
 0x558   :  { %v8461_v60 = vmul.f32 %v8445_v38, %v8400_v13  ;;  %v8426_v62 = vmul.f32 %v8410_v39, %v8400_v13  ;;  %v8496_v61 = vmul.f32 %v8480_v50, %v8400_v13 }
 0x55a   :  { %v8468_v3 = vadd.f32 %v8467_v26, %v8461_v60  ;;  %v8433_v40 = vadd.f32 %v8432_v0, %v8426_v62  ;;  %v8503_v34 = vadd.f32 %v8502_v4, %v8496_v61 }
 0x565   :  { %v8311_v28 = vpop.f32.mrf.mxu2 }
 0x566   :  { %v8312_v22 = vadd.f32 %v8311_v28, %v8299_v42 }
 0x56b   :  { %v8324_v9 = vpop.f32.mrf.mxu3 }
 0x56c   :  { %v8325_v47 = vadd.f32 %v8324_v9, %v8312_v22 }
 0x56d   :  { %v8313_v24 = vpop.f32.mrf.mxu2 }
 0x56e   :  { %v8335_v36 = vrot.slane %v8325_v47, 1 }
 0x570   :  { %v8343_v27 = vsel %vm14113_vm1, 0.0, %v8335_v36 }
 0x571   :  { %v8351_v16 = vadd.f32 %v8343_v27, %v14457_v30 }
 0x573   :  { %v8377_v18 = vadd.f32 %v8361_v15, %v8351_v16  ;;  %v8326_v48 = vpop.f32.mrf.mxu3 }
 0x575   :  { %vm8385_vm3 = vcmp.ge.f32.partialorder %v8377_v18, 0.0  ;;  %v8393_v63 = vmul.f32 0.2, %v8377_v18 }
 0x577   :  { %v8401_v12 = vsel %vm8385_vm3, %v8377_v18, %v8393_v63 }
 0x578   :  { %v8462_v14 = vmul.f32 %v8446_v37, %v8401_v12  ;;  %v8427_v32 = vmul.f32 %v8411_v29, %v8401_v12  ;;  %v8497_v56 = vmul.f32 %v8481_v2, %v8401_v12 }
 0x57a   :  { %v8469_v21 = vadd.f32 %v8468_v3, %v8462_v14  ;;  %v8434_v59 = vadd.f32 %v8433_v40, %v8427_v32  ;;  %v8504_v58 = vadd.f32 %v8503_v34, %v8497_v56 }
 0x57c   :  { %8470 = vadd.xlane.f32.xlu1 %v8469_v21  ;;  %8435 = vadd.xlane.f32.xlu0 %v8434_v59 }
 0x584   :  { %8505 = vadd.xlane.f32.xlu0 %v8504_v58 }
 0x5ef   :  { %v8436_v30 = vpop.xlane.xlu0 %8435  ;;  %v8471_v7 = vpop.xlane.xlu1 %8470 }
 0x5f0   :  { %v8507_v43 = vrot.slane %v8436_v30, 7 }
 0x5f2   :  { %v8508_v52 = vsel %vm14138_vm4, 0.0, %v8507_v43 }
 0x5f3   :  { %v8509_v10 = vadd.f32 %v8508_v52, %v8471_v7 }
 0x5f7   :  { %v8506_v53 = vpop.xlane.xlu0 %8505 }
 0x5f8   :  { %v8510_v54 = vrot.slane %v8506_v53, 1 }
 0x5fa   :  { %v8511_v46 = vsel %vm14113_vm1, 0.0, %v8510_v54 }
 0x5fb   :  { %v8512_v26 = vadd.f32 %v8511_v46, %v8509_v10 }
 0x5fd   :  { %v8517_v0 = vadd.f32 %v13752_v25, %v8512_v26 }
 0x5ff   :  { %8519 = vst.msk [vmem:[%s14575_s11] sm:$0xff] %vm8518_vm5, %v8517_v0 }
 0x600   :  { %8524 = vsyncpa [#allocation4], 1 }
 0x601   :  { %8525 = vsyncpa [#allocation6], 1 }
 0x602   :  { %8526 = vsyncpa [#allocation9], 1 }
 0x603   :  { %8527 = vsyncpa [#allocation12], 1 }
 0x604   :  { %8528 = vsyncpa [#allocation15], 1 }

</bundles_post_ra>
